<compile_context>
chip_gen: v6e
topology: v6e:2x2x1
jax: 0.10.0
libtpu: 0.0.40
codegen_flags: <defaults>
</compile_context>

<pallas_src>
import jax
import jax.numpy as jnp
from jax.experimental import pallas as pl
from jax.experimental.pallas import tpu as pltpu

# Flip to jnp.bfloat16 for extra MXU throughput on v6e/v7x (f32 accumulate);
# left at float32 so numerics track the f32 PyTorch reference.
MATMUL_DTYPE = jnp.float32


# ----------------------------------------------------------------------------
# Generation-aware tiling configuration
# ----------------------------------------------------------------------------
def _gen_config():
    gen = 6
    try:
        kind = jax.devices()[0].device_kind.lower()
        for g in (7, 6, 5, 4):
            if f"v{g}" in kind:
                gen = g
                break
    except Exception:
        pass
    if gen >= 7:
        # 64 MiB physical VMEM, 2 TensorCores: keep tiles modest, ensure the
        # grid has >= 4 steps so each core gets >= 2 pipelined steps.
        return {"min_steps": 4, "vmem_budget": 12 << 20,
                "vmem_limit": 32 << 20, "max_rows": 2048}
    # v5e / v6e (and older): 128 MiB VMEM, single TensorCore.
    return {"min_steps": 1, "vmem_budget": 40 << 20,
            "vmem_limit": 64 << 20, "max_rows": 8192}


# ----------------------------------------------------------------------------
# Pallas kernels
# ----------------------------------------------------------------------------
def _spectral_kernel(mag_ref, pha_ref,
                     wa1_ref, ba1_ref, wa2_ref, ba2_ref,
                     wp1_ref, bp1_ref, wp2_ref, bp2_ref,
                     real_ref, imag_ref):
    """amp_fuse / pha_fuse (1x1 conv -> LeakyReLU(0.1) -> 1x1 conv) and the
    Mag*cos(Pha), Mag*sin(Pha) products, fused.  Inputs are lane-packed
    (TM, F*C) rows; weights are F-way block-diagonal so the packed matmul is F
    independent per-pixel 1x1 convs.  real/imag are two lane-dense outputs."""

    def conv_lrelu_conv(x, w1, b1, w2, b2):
        h = jnp.dot(x.astype(MATMUL_DTYPE), w1,
                    preferred_element_type=jnp.float32) + b1
        h = jnp.where(h >= 0, h, 0.1 * h)                    # LeakyReLU(0.1)
        return jnp.dot(h.astype(MATMUL_DTYPE), w2,
                       preferred_element_type=jnp.float32) + b2

    Mag = conv_lrelu_conv(mag_ref[...], wa1_ref[...], ba1_ref[...],
                          wa2_ref[...], ba2_ref[...])
    Pha = conv_lrelu_conv(pha_ref[...], wp1_ref[...], bp1_ref[...],
                          wp2_ref[...], bp2_ref[...])
    real_ref[...] = Mag * jnp.cos(Pha)                       # EUP; lane-dense
    imag_ref[...] = Mag * jnp.sin(Pha)


def _bilin_post_fuse_kernel(x_ref, xu_ref, xd_ref, crop_ref,
                            wpost_ref, bpost_ref, wfuse_ref, bfuse_ref,
                            out_ref):
    """out = fuse( bilinear_up2(x) + nearest_up2(post(crop)) ), produced in the
    2x2-block-packed (TH, W, 4C) layout.

      x_ref  : (1, TH, W, C)  low-res rows of the current tile.
      xu_ref : (1, 1, W, C)   row max(i0-1, 0)      (clamped halo)
      xd_ref : (1, 1, W, C)   row min(i0+TH, H-1)   (clamped halo)
      crop_ref: (1, TH, W, C) spectral-branch crop at low resolution.
      wpost_ref = [Wpost|Wpost|Wpost|Wpost] (C,4C)  -> crop @ wpost == tile4(post(crop))
      wfuse_ref = 4-way block-diagonal fuse weight (4C,4C).
    The bilinear scale-2, align_corners=False weights are fixed (1/4, 3/4); the
    clamped halos make the boundary rows/cols come out exactly right.
    """
    _, TH, W, C = x_ref.shape
    xm = x_ref[0]                                            # (TH, W, C)
    xu = xu_ref[0]                                           # (1, W, C)
    xd = xd_ref[0]                                           # (1, W, C)

    if TH > 1:
        x_prev = jnp.concatenate([xu, xm[:-1]], axis=0)      # x[i-1] (clamped)
        x_next = jnp.concatenate([xm[1:], xd], axis=0)       # x[i+1] (clamped)
    else:
        x_prev, x_next = xu, xd

    va0 = 0.25 * x_prev + 0.75 * xm                          # output rows 2i
    va1 = 0.75 * xm + 0.25 * x_next                          # output rows 2i+1

    def hlerp(v):
        if W > 1:
            vl = jnp.concatenate([v[:, :1], v[:, :-1]], axis=1)
            vr = jnp.concatenate([v[:, 1:], v[:, -1:]], axis=1)
        else:
            vl = vr = v
        return 0.25 * vl + 0.75 * v, 0.75 * v + 0.25 * vr    # cols 2j, 2j+1

    x2_00, x2_01 = hlerp(va0)
    x2_10, x2_11 = hlerp(va1)
    x2 = jnp.concatenate([x2_00, x2_01, x2_10, x2_11], axis=-1)   # (TH, W, 4C)

    crop2d = crop_ref[0].reshape(TH * W, C)
    x3 = jnp.dot(crop2d.astype(MATMUL_DTYPE), wpost_ref[...],
                 preferred_element_type=jnp.float32) + bpost_ref[...]
    xsum = x2.reshape(TH * W, 4 * C) + x3
    out = jnp.dot(xsum.astype(MATMUL_DTYPE), wfuse_ref[...],
                  preferred_element_type=jnp.float32) + bfuse_ref[...]
    out_ref[...] = out.reshape(1, TH, W, 4 * C)


# ----------------------------------------------------------------------------
# Tiling helpers
# ----------------------------------------------------------------------------
def _pack_factor(C, total_pixels):
    """How many spatial pixels to pack into one 128-lane row."""
    if 128 % C != 0:
        return 1
    f = 128 // C
    while f > 1 and total_pixels % f != 0:
        f //= 2
    return max(1, f)


def _row_tile(P, bytes_per_row, *, max_rows, min_steps, vmem_budget):
    """Largest multiple-of-8 divisor of P under the VMEM budget that (when
    possible) leaves at least `min_steps` grid steps.  None if no divisor."""
    cap = min(max_rows, max(8, vmem_budget // max(1, bytes_per_row)), P)
    divs = [t for t in range(8, cap + 1, 8) if P % t == 0]
    if not divs:
        return None
    good = [t for t in divs if P // t >= min_steps]
    return max(good) if good else max(divs)


def _spatial_tile(H, n_outer, bytes_per_h_row, *, vmem_budget, min_steps):
    """Largest divisor of H under the VMEM budget leaving >= min_steps total
    grid steps (n_outer * H//t) when possible.  Always succeeds (t=1)."""
    cap = max(1, min(H, vmem_budget // max(1, bytes_per_h_row)))
    divs = [t for t in range(1, cap + 1) if H % t == 0]
    good = [t for t in divs if n_outer * (H // t) >= min_steps]
    return max(good) if good else max(divs)


# ----------------------------------------------------------------------------
# Pallas wrappers
# ----------------------------------------------------------------------------
def spectral_fuse(mag, pha, kp, cfg):
    """mag, pha: (N, H, W, C) NHWC.  Returns (real, imag), each (N, H, W, C):
       real = amp_fuse(mag) * cos(pha_fuse(pha)), imag = ... * sin(...)."""
    N, H, W, C = mag.shape
    F = kp["F"]
    Cp = F * C
    P = (N * H * W) // F

    magp = mag.reshape(P, Cp)          # pure reshape: F pixels per vreg row
    phap = pha.reshape(P, Cp)

    # streamed per row (2 in + 2 out, double-buffered) + ~8*Cp f32 temporaries
    bytes_per_row = 4 * Cp * (2 * 4 + 8)
    TM = _row_tile(P, bytes_per_row, max_rows=cfg["max_rows"],
                   min_steps=cfg["min_steps"], vmem_budget=cfg["vmem_budget"])
    if TM is None:
        # P not a multiple of 8: pad rows to a multiple of 256 (zero rows are
        # computed and then sliced away) instead of one oversize block.
        P_pad = ((P + 255) // 256) * 256
        magp = jnp.pad(magp, ((0, P_pad - P), (0, 0)))
        phap = jnp.pad(phap, ((0, P_pad - P), (0, 0)))
        TM = _row_tile(P_pad, bytes_per_row, max_rows=cfg["max_rows"],
                       min_steps=cfg["min_steps"],
                       vmem_budget=cfg["vmem_budget"])
        P_run = P_pad
    else:
        P_run = P

    row_spec = pl.BlockSpec((TM, Cp), lambda i: (i, 0))
    w_spec = pl.BlockSpec((Cp, Cp), lambda i: (0, 0))
    b_spec = pl.BlockSpec((1, Cp), lambda i: (0, 0))

    real_p, imag_p = pl.pallas_call(
        _spectral_kernel,
        out_shape=(jax.ShapeDtypeStruct((P_run, Cp), jnp.float32),
                   jax.ShapeDtypeStruct((P_run, Cp), jnp.float32)),
        grid=(P_run // TM,),
        in_specs=[row_spec, row_spec,
                  w_spec, b_spec, w_spec, b_spec,
                  w_spec, b_spec, w_spec, b_spec],
        out_specs=(row_spec, row_spec),
        compiler_params=pltpu.CompilerParams(
            dimension_semantics=("parallel",),
            vmem_limit_bytes=cfg["vmem_limit"]),
    )(magp, phap,
      kp["wa1"], kp["ba1"], kp["wa2"], kp["ba2"],
      kp["wp1"], kp["bp1"], kp["wp2"], kp["bp2"])

    real = real_p[:P].reshape(N, H, W, C)
    imag = imag_p[:P].reshape(N, H, W, C)
    return real, imag


def bilinear_post_add_fuse(x, crop, kp, cfg):
    """x, crop: (N, H, W, C).  Returns (N, H, W, 4C) 2x2-block packed
       fuse( bilinear_up2(x) + nearest_up2(post(crop)) ); the bilinear upsample
       is computed in-kernel from x row tiles + clamped halo rows (x2 is never
       materialised in HBM)."""
    N, H, W, C = x.shape
    C4 = 4 * C

    # per low-res H row: (x + crop + out) streamed double-buffered + temporaries
    bytes_per_h_row = 4 * W * C * (2 * 6 + 18)
    TH = _spatial_tile(H, N, bytes_per_h_row,
                       vmem_budget=cfg["vmem_budget"],
                       min_steps=cfg["min_steps"])

    def main_map(n, t):
        return (n, t, 0, 0)

    def up_map(n, t):                       # clamped row above the tile
        return (n, jnp.maximum(t * TH - 1, 0), 0, 0)

    def dn_map(n, t):                       # clamped row below the tile
        return (n, jnp.minimum((t + 1) * TH, H - 1), 0, 0)

    def const_map(n, t):
        return (0, 0)

    return pl.pallas_call(
        _bilin_post_fuse_kernel,
        out_shape=jax.ShapeDtypeStruct((N, H, W, C4), jnp.float32),
        grid=(N, H // TH),
        in_specs=[pl.BlockSpec((1, TH, W, C), main_map),
                  pl.BlockSpec((1, 1, W, C), up_map),
                  pl.BlockSpec((1, 1, W, C), dn_map),
                  pl.BlockSpec((1, TH, W, C), main_map),
                  pl.BlockSpec((C, C4), const_map),
                  pl.BlockSpec((1, C4), const_map),
                  pl.BlockSpec((C4, C4), const_map),
                  pl.BlockSpec((1, C4), const_map)],
        out_specs=pl.BlockSpec((1, TH, W, C4), main_map),
        compiler_params=pltpu.CompilerParams(
            dimension_semantics=("parallel", "parallel"),
            vmem_limit_bytes=cfg["vmem_limit"]),
    )(x, x, x, crop,
      kp["wpost_wide"], kp["bpost_wide"], kp["wfuse_bd"], kp["bfuse_t"])


# ----------------------------------------------------------------------------
# Parameter packing (block-diagonal / tiled weights for the packed kernels)
# ----------------------------------------------------------------------------
def prepare_kernel_params(params, C, F):
    eyeF = jnp.eye(F, dtype=jnp.float32)
    eye4 = jnp.eye(4, dtype=jnp.float32)

    def block_diag(w, eye):
        return jnp.kron(eye, w.astype(jnp.float32)).astype(MATMUL_DTYPE)

    def tile_b(b, f):
        return jnp.tile(b, (1, f)).astype(jnp.float32)

    kp = {"F": F}
    for n in ("a1", "a2", "p1", "p2"):
        kp["w" + n] = block_diag(params["w" + n], eyeF)
        kp["b" + n] = tile_b(params["b" + n], F)
    # post: wide weight [Wp|Wp|Wp|Wp] => crop @ wpost_wide == tile4(post(crop))
    kp["wpost_wide"] = jnp.tile(params["wpost"].astype(jnp.float32),
                                (1, 4)).astype(MATMUL_DTYPE)
    kp["bpost_wide"] = tile_b(params["bpost"], 4)
    kp["wfuse_bd"] = block_diag(params["wfuse"], eye4)
    kp["bfuse_t"] = tile_b(params["bfuse"], 4)
    return kp


# ----------------------------------------------------------------------------
# XLA glue (FFT + modulation-identity crop) — all in NHWC
# ----------------------------------------------------------------------------
def _crop_window(S):
    # |cos(pi*p/(2S))| evaluated at the output rows the reference crop keeps:
    # p = i for i < S//2 (-> cos), p = i + S for i >= S//2 (-> sin).
    i = jnp.arange(S, dtype=jnp.float32)
    ang = (jnp.pi / (2.0 * S)) * i
    return jnp.where(jnp.arange(S) < (S // 2), jnp.cos(ang), jnp.sin(ang))


def fresadd_forward(x_nchw, params):
    N, C, H, W = x_nchw.shape
    cfg = _gen_config()
    F = _pack_factor(C, N * H * W)
    kp = prepare_kernel_params(params, C, F)

    x = jnp.transpose(x_nchw, (0, 2, 3, 1))          # single NCHW -> NHWC

    # ---- spectral branch (freup_Areadinterpolation) -------------------------
    # TODO(synk): fft2/ifft2 have no Pallas TPU primitive; kept in XLA.
    fx = jnp.fft.fft2(x, axes=(1, 2))
    mag = jnp.abs(fx)
    pha = jnp.angle(fx)

    real_s, imag_s = spectral_fuse(mag, pha, kp, cfg)          # (N,H,W,C) each

    # repeat_interleave(2) + (2H,2W) ifft2 + 4-corner crop replaced by the
    # exact modulation identity (see module docstring): only the small (H,W)
    # ifft2 is ever computed and the (2H,2W) intermediates never exist.
    small = jnp.fft.ifft2(jax.lax.complex(real_s, imag_s), axes=(1, 2))
    crop = (jnp.abs(small)
            * _crop_window(H)[None, :, None, None]
            * _crop_window(W)[None, None, :, None])            # (N,H,W,C)

    # ---- bilinear 2x (in-kernel) + post(crop, nearest 2x) + add + fuse ------
    out_p = bilinear_post_add_fuse(x, crop, kp, cfg)           # (N,H,W,4C)
    out = out_p.reshape(N, H, W, 2, 2, C)
    # (n,i,j,a,b,c) -> (n,c,i,a,j,b) -> (N,C,2H,2W)
    return jnp.transpose(out, (0, 5, 1, 3, 2, 4)).reshape(N, C, 2 * H, 2 * W)


# ----------------------------------------------------------------------------
# Deterministic parameter init (1x1 convs -> (C_in, C_out) matrices, (1,C) bias)
# ----------------------------------------------------------------------------
def init_params(key, C):
    names = ["a1", "a2", "p1", "p2", "post", "fuse"]
    keys = jax.random.split(key, 2 * len(names))
    params = {}
    scale = 1.0 / jnp.sqrt(jnp.float32(C))
    for n, (kw, kb) in zip(names, zip(keys[0::2], keys[1::2])):
        # stored pre-transposed: y = x @ W  (W has shape (C_in, C_out))
        params["w" + n] = jax.random.uniform(
            kw, (C, C), jnp.float32, -1.0, 1.0) * scale
        params["b" + n] = jax.random.uniform(
            kb, (1, C), jnp.float32, -1.0, 1.0) * scale
    return params


if __name__ == "__main__":
    key = jax.random.PRNGKey(0)
    kx, kparam = jax.random.split(key)
    N, C, H, W = 2, 32, 16, 16          # default channels=32 in fresadd
    x = jax.random.normal(kx, (N, C, H, W), jnp.float32)
    params = init_params(kparam, C)

    out = jax.jit(lambda xx: fresadd_forward(xx, params))(x)
    out = jax.block_until_ready(out)
    assert out.shape == (N, C, 2 * H, 2 * W) and out.dtype == jnp.float32
    print("KERNEL_OK")
</pallas_src>

<mosaic_0001>
module attributes {stable_mosaic.version = 11 : i64} {
  func.func @_spectral_kernel(%arg0: i32, %arg1: memref<128x128xf32, #tpu.memory_space<vmem>>, %arg2: memref<128x128xf32, #tpu.memory_space<vmem>>, %arg3: memref<128x128xf32, #tpu.memory_space<vmem>>, %arg4: memref<1x128xf32, #tpu.memory_space<vmem>>, %arg5: memref<128x128xf32, #tpu.memory_space<vmem>>, %arg6: memref<1x128xf32, #tpu.memory_space<vmem>>, %arg7: memref<128x128xf32, #tpu.memory_space<vmem>>, %arg8: memref<1x128xf32, #tpu.memory_space<vmem>>, %arg9: memref<128x128xf32, #tpu.memory_space<vmem>>, %arg10: memref<1x128xf32, #tpu.memory_space<vmem>>, %arg11: memref<128x128xf32, #tpu.memory_space<vmem>>, %arg12: memref<128x128xf32, #tpu.memory_space<vmem>>) attributes {dimension_semantics = [#tpu.dimension_semantics<parallel>], iteration_bounds = array<i64: 1>, scalar_prefetch = 0 : i64, scratch_operands = 0 : i64, tpu.core_type = #tpu.core_type<tc>, window_params = [{transform_indices = @transform_0, window_bounds = array<i64: 128, 128>}, {transform_indices = @transform_1, window_bounds = array<i64: 128, 128>}, {pipeline_mode = #tpu.pipeline_mode<synchronous>, transform_indices = @transform_2, window_bounds = array<i64: 128, 128>}, {pipeline_mode = #tpu.pipeline_mode<synchronous>, transform_indices = @transform_3, window_bounds = array<i64: 1, 128>}, {pipeline_mode = #tpu.pipeline_mode<synchronous>, transform_indices = @transform_4, window_bounds = array<i64: 128, 128>}, {pipeline_mode = #tpu.pipeline_mode<synchronous>, transform_indices = @transform_5, window_bounds = array<i64: 1, 128>}, {pipeline_mode = #tpu.pipeline_mode<synchronous>, transform_indices = @transform_6, window_bounds = array<i64: 128, 128>}, {pipeline_mode = #tpu.pipeline_mode<synchronous>, transform_indices = @transform_7, window_bounds = array<i64: 1, 128>}, {pipeline_mode = #tpu.pipeline_mode<synchronous>, transform_indices = @transform_8, window_bounds = array<i64: 128, 128>}, {pipeline_mode = #tpu.pipeline_mode<synchronous>, transform_indices = @transform_9, window_bounds = array<i64: 1, 128>}, {transform_indices = @transform_10, window_bounds = array<i64: 128, 128>}, {transform_indices = @transform_11, window_bounds = array<i64: 128, 128>}]} {
    %c0 = arith.constant 0 : index
    %c0_0 = arith.constant 0 : index
    %0 = vector.load %arg1[%c0, %c0_0] : memref<128x128xf32, #tpu.memory_space<vmem>>, vector<128x128xf32>
    %c0_1 = arith.constant 0 : index
    %c0_2 = arith.constant 0 : index
    %1 = vector.load %arg3[%c0_1, %c0_2] : memref<128x128xf32, #tpu.memory_space<vmem>>, vector<128x128xf32>
    %c0_3 = arith.constant 0 : index
    %c0_4 = arith.constant 0 : index
    %2 = vector.load %arg4[%c0_3, %c0_4] : memref<1x128xf32, #tpu.memory_space<vmem>>, vector<1x128xf32>
    %c0_5 = arith.constant 0 : index
    %c0_6 = arith.constant 0 : index
    %3 = vector.load %arg5[%c0_5, %c0_6] : memref<128x128xf32, #tpu.memory_space<vmem>>, vector<128x128xf32>
    %c0_7 = arith.constant 0 : index
    %c0_8 = arith.constant 0 : index
    %4 = vector.load %arg6[%c0_7, %c0_8] : memref<1x128xf32, #tpu.memory_space<vmem>>, vector<1x128xf32>
    %cst = arith.constant dense<0.000000e+00> : vector<128x128xf32>
    %5 = tpu.matmul %0, %1, %cst {dimension_numbers = #tpu.dot_dimension_numbers<[1], [0], [0], [1], [0, 0, 1, 1], [], []>} : vector<128x128xf32>, vector<128x128xf32>, vector<128x128xf32> -> vector<128x128xf32>
    %6 = vector.broadcast %2 : vector<1x128xf32> to vector<128x128xf32>
    %7 = arith.addf %5, %6 : vector<128x128xf32>
    %cst_9 = arith.constant 0.000000e+00 : f32
    %8 = vector.broadcast %cst_9 : f32 to vector<128x128xf32>
    %9 = arith.cmpf oge, %7, %8 : vector<128x128xf32>
    %cst_10 = arith.constant 1.000000e-01 : f32
    %10 = vector.broadcast %cst_10 : f32 to vector<128x128xf32>
    %11 = arith.mulf %10, %7 : vector<128x128xf32>
    %12 = arith.select %9, %7, %11 : vector<128x128xi1>, vector<128x128xf32>
    %cst_11 = arith.constant dense<0.000000e+00> : vector<128x128xf32>
    %13 = tpu.matmul %12, %3, %cst_11 {dimension_numbers = #tpu.dot_dimension_numbers<[1], [0], [0], [1], [0, 0, 1, 1], [], []>} : vector<128x128xf32>, vector<128x128xf32>, vector<128x128xf32> -> vector<128x128xf32>
    %14 = vector.broadcast %4 : vector<1x128xf32> to vector<128x128xf32>
    %15 = arith.addf %13, %14 : vector<128x128xf32>
    %c0_12 = arith.constant 0 : index
    %c0_13 = arith.constant 0 : index
    %16 = vector.load %arg2[%c0_12, %c0_13] : memref<128x128xf32, #tpu.memory_space<vmem>>, vector<128x128xf32>
    %c0_14 = arith.constant 0 : index
    %c0_15 = arith.constant 0 : index
    %17 = vector.load %arg7[%c0_14, %c0_15] : memref<128x128xf32, #tpu.memory_space<vmem>>, vector<128x128xf32>
    %c0_16 = arith.constant 0 : index
    %c0_17 = arith.constant 0 : index
    %18 = vector.load %arg8[%c0_16, %c0_17] : memref<1x128xf32, #tpu.memory_space<vmem>>, vector<1x128xf32>
    %c0_18 = arith.constant 0 : index
    %c0_19 = arith.constant 0 : index
    %19 = vector.load %arg9[%c0_18, %c0_19] : memref<128x128xf32, #tpu.memory_space<vmem>>, vector<128x128xf32>
    %c0_20 = arith.constant 0 : index
    %c0_21 = arith.constant 0 : index
    %20 = vector.load %arg10[%c0_20, %c0_21] : memref<1x128xf32, #tpu.memory_space<vmem>>, vector<1x128xf32>
    %cst_22 = arith.constant dense<0.000000e+00> : vector<128x128xf32>
    %21 = tpu.matmul %16, %17, %cst_22 {dimension_numbers = #tpu.dot_dimension_numbers<[1], [0], [0], [1], [0, 0, 1, 1], [], []>} : vector<128x128xf32>, vector<128x128xf32>, vector<128x128xf32> -> vector<128x128xf32>
    %22 = vector.broadcast %18 : vector<1x128xf32> to vector<128x128xf32>
    %23 = arith.addf %21, %22 : vector<128x128xf32>
    %cst_23 = arith.constant 0.000000e+00 : f32
    %24 = vector.broadcast %cst_23 : f32 to vector<128x128xf32>
    %25 = arith.cmpf oge, %23, %24 : vector<128x128xf32>
    %cst_24 = arith.constant 1.000000e-01 : f32
    %26 = vector.broadcast %cst_24 : f32 to vector<128x128xf32>
    %27 = arith.mulf %26, %23 : vector<128x128xf32>
    %28 = arith.select %25, %23, %27 : vector<128x128xi1>, vector<128x128xf32>
    %cst_25 = arith.constant dense<0.000000e+00> : vector<128x128xf32>
    %29 = tpu.matmul %28, %19, %cst_25 {dimension_numbers = #tpu.dot_dimension_numbers<[1], [0], [0], [1], [0, 0, 1, 1], [], []>} : vector<128x128xf32>, vector<128x128xf32>, vector<128x128xf32> -> vector<128x128xf32>
    %30 = vector.broadcast %20 : vector<1x128xf32> to vector<128x128xf32>
    %31 = arith.addf %29, %30 : vector<128x128xf32>
    %32 = math.cos %31 : vector<128x128xf32>
    %33 = arith.mulf %15, %32 : vector<128x128xf32>
    %c0_26 = arith.constant 0 : index
    %c0_27 = arith.constant 0 : index
    %34 = vector.load %arg11[%c0_26, %c0_27] : memref<128x128xf32, #tpu.memory_space<vmem>>, vector<128x128xf32>
    tpu.vector_store %arg11[%c0_26, %c0_27], %33 {strides = array<i32>} : memref<128x128xf32, #tpu.memory_space<vmem>>, vector<128x128xf32>,
    %35 = math.sin %31 : vector<128x128xf32>
    %36 = arith.mulf %15, %35 : vector<128x128xf32>
    %c0_28 = arith.constant 0 : index
    %c0_29 = arith.constant 0 : index
    %37 = vector.load %arg12[%c0_28, %c0_29] : memref<128x128xf32, #tpu.memory_space<vmem>>, vector<128x128xf32>
    tpu.vector_store %arg12[%c0_28, %c0_29], %36 {strides = array<i32>} : memref<128x128xf32, #tpu.memory_space<vmem>>, vector<128x128xf32>,
    return
  }
  func.func @transform_0(%arg0: i32) -> (i32, i32) {
    %c0_i32 = arith.constant 0 : i32
    %c0_i32_0 = arith.constant 0 : i32
    return %arg0, %c0_i32 : i32, i32
  }
  func.func @transform_1(%arg0: i32) -> (i32, i32) {
    %c0_i32 = arith.constant 0 : i32
    %c0_i32_0 = arith.constant 0 : i32
    return %arg0, %c0_i32 : i32, i32
  }
  func.func @transform_2(%arg0: i32) -> (i32, i32) {
    %c0_i32 = arith.constant 0 : i32
    %c0_i32_0 = arith.constant 0 : i32
    %c0_i32_1 = arith.constant 0 : i32
    return %c0_i32, %c0_i32_0 : i32, i32
  }
  func.func @transform_3(%arg0: i32) -> (i32, i32) {
    %c0_i32 = arith.constant 0 : i32
    %c0_i32_0 = arith.constant 0 : i32
    %c0_i32_1 = arith.constant 0 : i32
    return %c0_i32, %c0_i32_0 : i32, i32
  }
  func.func @transform_4(%arg0: i32) -> (i32, i32) {
    %c0_i32 = arith.constant 0 : i32
    %c0_i32_0 = arith.constant 0 : i32
    %c0_i32_1 = arith.constant 0 : i32
    return %c0_i32, %c0_i32_0 : i32, i32
  }
  func.func @transform_5(%arg0: i32) -> (i32, i32) {
    %c0_i32 = arith.constant 0 : i32
    %c0_i32_0 = arith.constant 0 : i32
    %c0_i32_1 = arith.constant 0 : i32
    return %c0_i32, %c0_i32_0 : i32, i32
  }
  func.func @transform_6(%arg0: i32) -> (i32, i32) {
    %c0_i32 = arith.constant 0 : i32
    %c0_i32_0 = arith.constant 0 : i32
    %c0_i32_1 = arith.constant 0 : i32
    return %c0_i32, %c0_i32_0 : i32, i32
  }
  func.func @transform_7(%arg0: i32) -> (i32, i32) {
    %c0_i32 = arith.constant 0 : i32
    %c0_i32_0 = arith.constant 0 : i32
    %c0_i32_1 = arith.constant 0 : i32
    return %c0_i32, %c0_i32_0 : i32, i32
  }
  func.func @transform_8(%arg0: i32) -> (i32, i32) {
    %c0_i32 = arith.constant 0 : i32
    %c0_i32_0 = arith.constant 0 : i32
    %c0_i32_1 = arith.constant 0 : i32
    return %c0_i32, %c0_i32_0 : i32, i32
  }
  func.func @transform_9(%arg0: i32) -> (i32, i32) {
    %c0_i32 = arith.constant 0 : i32
    %c0_i32_0 = arith.constant 0 : i32
    %c0_i32_1 = arith.constant 0 : i32
    return %c0_i32, %c0_i32_0 : i32, i32
  }
  func.func @transform_10(%arg0: i32) -> (i32, i32) {
    %c0_i32 = arith.constant 0 : i32
    %c0_i32_0 = arith.constant 0 : i32
    return %arg0, %c0_i32 : i32, i32
  }
  func.func @transform_11(%arg0: i32) -> (i32, i32) {
    %c0_i32 = arith.constant 0 : i32
    %c0_i32_0 = arith.constant 0 : i32
    return %arg0, %c0_i32 : i32, i32
  }
}

module attributes {stable_mosaic.version = 11 : i64} {
  func.func @_bilin_post_fuse_kernel(%arg0: i32, %arg1: i32, %arg2: memref<1x16x16x32xf32, #tpu.memory_space<vmem>>, %arg3: memref<1x1x16x32xf32, #tpu.memory_space<vmem>>, %arg4: memref<1x1x16x32xf32, #tpu.memory_space<vmem>>, %arg5: memref<1x16x16x32xf32, #tpu.memory_space<vmem>>, %arg6: memref<32x128xf32, #tpu.memory_space<vmem>>, %arg7: memref<1x128xf32, #tpu.memory_space<vmem>>, %arg8: memref<128x128xf32, #tpu.memory_space<vmem>>, %arg9: memref<1x128xf32, #tpu.memory_space<vmem>>, %arg10: memref<1x16x16x128xf32, #tpu.memory_space<vmem>>) attributes {dimension_semantics = [#tpu.dimension_semantics<parallel>, #tpu.dimension_semantics<parallel>], iteration_bounds = array<i64: 2, 1>, scalar_prefetch = 0 : i64, scratch_operands = 0 : i64, tpu.core_type = #tpu.core_type<tc>, window_params = [{transform_indices = @transform_0, window_bounds = array<i64: 1, 16, 16, 32>}, {transform_indices = @transform_1, window_bounds = array<i64: 1, 1, 16, 32>}, {transform_indices = @transform_2, window_bounds = array<i64: 1, 1, 16, 32>}, {transform_indices = @transform_3, window_bounds = array<i64: 1, 16, 16, 32>}, {pipeline_mode = #tpu.pipeline_mode<synchronous>, transform_indices = @transform_4, window_bounds = array<i64: 32, 128>}, {pipeline_mode = #tpu.pipeline_mode<synchronous>, transform_indices = @transform_5, window_bounds = array<i64: 1, 128>}, {pipeline_mode = #tpu.pipeline_mode<synchronous>, transform_indices = @transform_6, window_bounds = array<i64: 128, 128>}, {pipeline_mode = #tpu.pipeline_mode<synchronous>, transform_indices = @transform_7, window_bounds = array<i64: 1, 128>}, {transform_indices = @transform_8, window_bounds = array<i64: 1, 16, 16, 128>}]} {
    %c0 = arith.constant 0 : index
    %c0_0 = arith.constant 0 : index
    %c0_1 = arith.constant 0 : index
    %c0_2 = arith.constant 0 : index
    %0 = vector.load %arg2[%c0, %c0_0, %c0_1, %c0_2] : memref<1x16x16x32xf32, #tpu.memory_space<vmem>>, vector<1x16x16x32xf32>
    %1 = vector.shape_cast %0 : vector<1x16x16x32xf32> to vector<16x16x32xf32>
    %c0_3 = arith.constant 0 : index
    %c0_4 = arith.constant 0 : index
    %c0_5 = arith.constant 0 : index
    %c0_6 = arith.constant 0 : index
    %2 = vector.load %arg3[%c0_3, %c0_4, %c0_5, %c0_6] : memref<1x1x16x32xf32, #tpu.memory_space<vmem>>, vector<1x1x16x32xf32>
    %3 = vector.shape_cast %2 : vector<1x1x16x32xf32> to vector<1x16x32xf32>
    %c0_7 = arith.constant 0 : index
    %c0_8 = arith.constant 0 : index
    %c0_9 = arith.constant 0 : index
    %c0_10 = arith.constant 0 : index
    %4 = vector.load %arg4[%c0_7, %c0_8, %c0_9, %c0_10] : memref<1x1x16x32xf32, #tpu.memory_space<vmem>>, vector<1x1x16x32xf32>
    %5 = vector.shape_cast %4 : vector<1x1x16x32xf32> to vector<1x16x32xf32>
    %6 = vector.extract_strided_slice %1 {offsets = [0, 0, 0], sizes = [15, 16, 32], strides = [1, 1, 1]} : vector<16x16x32xf32> to vector<15x16x32xf32>
    %7 = tpu.concatenate %3, %6 in 0 : vector<1x16x32xf32>, vector<15x16x32xf32> -> vector<16x16x32xf32>
    %8 = vector.extract_strided_slice %1 {offsets = [1, 0, 0], sizes = [15, 16, 32], strides = [1, 1, 1]} : vector<16x16x32xf32> to vector<15x16x32xf32>
    %9 = tpu.concatenate %8, %5 in 0 : vector<15x16x32xf32>, vector<1x16x32xf32> -> vector<16x16x32xf32>
    %cst = arith.constant 2.500000e-01 : f32
    %10 = vector.broadcast %cst : f32 to vector<16x16x32xf32>
    %11 = arith.mulf %10, %7 : vector<16x16x32xf32>
    %cst_11 = arith.constant 7.500000e-01 : f32
    %12 = vector.broadcast %cst_11 : f32 to vector<16x16x32xf32>
    %13 = arith.mulf %12, %1 : vector<16x16x32xf32>
    %14 = arith.addf %11, %13 : vector<16x16x32xf32>
    %cst_12 = arith.constant 7.500000e-01 : f32
    %15 = vector.broadcast %cst_12 : f32 to vector<16x16x32xf32>
    %16 = arith.mulf %15, %1 : vector<16x16x32xf32>
    %cst_13 = arith.constant 2.500000e-01 : f32
    %17 = vector.broadcast %cst_13 : f32 to vector<16x16x32xf32>
    %18 = arith.mulf %17, %9 : vector<16x16x32xf32>
    %19 = arith.addf %16, %18 : vector<16x16x32xf32>
    %20 = vector.extract_strided_slice %14 {offsets = [0, 0, 0], sizes = [16, 1, 32], strides = [1, 1, 1]} : vector<16x16x32xf32> to vector<16x1x32xf32>
    %21 = vector.extract_strided_slice %14 {offsets = [0, 0, 0], sizes = [16, 15, 32], strides = [1, 1, 1]} : vector<16x16x32xf32> to vector<16x15x32xf32>
    %22 = tpu.concatenate %20, %21 in 1 : vector<16x1x32xf32>, vector<16x15x32xf32> -> vector<16x16x32xf32>
    %23 = vector.extract_strided_slice %14 {offsets = [0, 1, 0], sizes = [16, 15, 32], strides = [1, 1, 1]} : vector<16x16x32xf32> to vector<16x15x32xf32>
    %24 = vector.extract_strided_slice %14 {offsets = [0, 15, 0], sizes = [16, 1, 32], strides = [1, 1, 1]} : vector<16x16x32xf32> to vector<16x1x32xf32>
    %25 = tpu.concatenate %23, %24 in 1 : vector<16x15x32xf32>, vector<16x1x32xf32> -> vector<16x16x32xf32>
    %cst_14 = arith.constant 2.500000e-01 : f32
    %26 = vector.broadcast %cst_14 : f32 to vector<16x16x32xf32>
    %27 = arith.mulf %26, %22 : vector<16x16x32xf32>
    %cst_15 = arith.constant 7.500000e-01 : f32
    %28 = vector.broadcast %cst_15 : f32 to vector<16x16x32xf32>
    %29 = arith.mulf %28, %14 : vector<16x16x32xf32>
    %30 = arith.addf %27, %29 : vector<16x16x32xf32>
    %cst_16 = arith.constant 7.500000e-01 : f32
    %31 = vector.broadcast %cst_16 : f32 to vector<16x16x32xf32>
    %32 = arith.mulf %31, %14 : vector<16x16x32xf32>
    %cst_17 = arith.constant 2.500000e-01 : f32
    %33 = vector.broadcast %cst_17 : f32 to vector<16x16x32xf32>
    %34 = arith.mulf %33, %25 : vector<16x16x32xf32>
    %35 = arith.addf %32, %34 : vector<16x16x32xf32>
    %36 = vector.extract_strided_slice %19 {offsets = [0, 0, 0], sizes = [16, 1, 32], strides = [1, 1, 1]} : vector<16x16x32xf32> to vector<16x1x32xf32>
    %37 = vector.extract_strided_slice %19 {offsets = [0, 0, 0], sizes = [16, 15, 32], strides = [1, 1, 1]} : vector<16x16x32xf32> to vector<16x15x32xf32>
    %38 = tpu.concatenate %36, %37 in 1 : vector<16x1x32xf32>, vector<16x15x32xf32> -> vector<16x16x32xf32>
    %39 = vector.extract_strided_slice %19 {offsets = [0, 1, 0], sizes = [16, 15, 32], strides = [1, 1, 1]} : vector<16x16x32xf32> to vector<16x15x32xf32>
    %40 = vector.extract_strided_slice %19 {offsets = [0, 15, 0], sizes = [16, 1, 32], strides = [1, 1, 1]} : vector<16x16x32xf32> to vector<16x1x32xf32>
    %41 = tpu.concatenate %39, %40 in 1 : vector<16x15x32xf32>, vector<16x1x32xf32> -> vector<16x16x32xf32>
    %cst_18 = arith.constant 2.500000e-01 : f32
    %42 = vector.broadcast %cst_18 : f32 to vector<16x16x32xf32>
    %43 = arith.mulf %42, %38 : vector<16x16x32xf32>
    %cst_19 = arith.constant 7.500000e-01 : f32
    %44 = vector.broadcast %cst_19 : f32 to vector<16x16x32xf32>
    %45 = arith.mulf %44, %19 : vector<16x16x32xf32>
    %46 = arith.addf %43, %45 : vector<16x16x32xf32>
    %cst_20 = arith.constant 7.500000e-01 : f32
    %47 = vector.broadcast %cst_20 : f32 to vector<16x16x32xf32>
    %48 = arith.mulf %47, %19 : vector<16x16x32xf32>
    %cst_21 = arith.constant 2.500000e-01 : f32
    %49 = vector.broadcast %cst_21 : f32 to vector<16x16x32xf32>
    %50 = arith.mulf %49, %41 : vector<16x16x32xf32>
    %51 = arith.addf %48, %50 : vector<16x16x32xf32>
    %52 = tpu.concatenate %30, %35, %46, %51 in 2 : vector<16x16x32xf32>, vector<16x16x32xf32>, vector<16x16x32xf32>, vector<16x16x32xf32> -> vector<16x16x128xf32>
    %c0_22 = arith.constant 0 : index
    %c0_23 = arith.constant 0 : index
    %c0_24 = arith.constant 0 : index
    %c0_25 = arith.constant 0 : index
    %53 = vector.load %arg5[%c0_22, %c0_23, %c0_24, %c0_25] : memref<1x16x16x32xf32, #tpu.memory_space<vmem>>, vector<1x16x16x32xf32>
    %54 = vector.shape_cast %53 : vector<1x16x16x32xf32> to vector<16x16x32xf32>
    %55 = vector.shape_cast %54 : vector<16x16x32xf32> to vector<256x32xf32>
    %c0_26 = arith.constant 0 : index
    %c0_27 = arith.constant 0 : index
    %56 = vector.load %arg6[%c0_26, %c0_27] : memref<32x128xf32, #tpu.memory_space<vmem>>, vector<32x128xf32>
    %cst_28 = arith.constant dense<0.000000e+00> : vector<256x128xf32>
    %57 = tpu.matmul %55, %56, %cst_28 {dimension_numbers = #tpu.dot_dimension_numbers<[1], [0], [0], [1], [0, 0, 1, 1], [], []>} : vector<256x32xf32>, vector<32x128xf32>, vector<256x128xf32> -> vector<256x128xf32>
    %c0_29 = arith.constant 0 : index
    %c0_30 = arith.constant 0 : index
    %58 = vector.load %arg7[%c0_29, %c0_30] : memref<1x128xf32, #tpu.memory_space<vmem>>, vector<1x128xf32>
    %59 = vector.broadcast %58 : vector<1x128xf32> to vector<256x128xf32>
    %60 = arith.addf %57, %59 : vector<256x128xf32>
    %61 = vector.shape_cast %52 : vector<16x16x128xf32> to vector<256x128xf32>
    %62 = arith.addf %61, %60 : vector<256x128xf32>
    %c0_31 = arith.constant 0 : index
    %c0_32 = arith.constant 0 : index
    %63 = vector.load %arg8[%c0_31, %c0_32] : memref<128x128xf32, #tpu.memory_space<vmem>>, vector<128x128xf32>
    %cst_33 = arith.constant dense<0.000000e+00> : vector<256x128xf32>
    %64 = tpu.matmul %62, %63, %cst_33 {dimension_numbers = #tpu.dot_dimension_numbers<[1], [0], [0], [1], [0, 0, 1, 1], [], []>} : vector<256x128xf32>, vector<128x128xf32>, vector<256x128xf32> -> vector<256x128xf32>
    %c0_34 = arith.constant 0 : index
    %c0_35 = arith.constant 0 : index
    %65 = vector.load %arg9[%c0_34, %c0_35] : memref<1x128xf32, #tpu.memory_space<vmem>>, vector<1x128xf32>
    %66 = vector.broadcast %65 : vector<1x128xf32> to vector<256x128xf32>
    %67 = arith.addf %64, %66 : vector<256x128xf32>
    %68 = vector.shape_cast %67 : vector<256x128xf32> to vector<1x16x16x128xf32>
    %c0_36 = arith.constant 0 : index
    %c0_37 = arith.constant 0 : index
    %c0_38 = arith.constant 0 : index
    %c0_39 = arith.constant 0 : index
    %69 = vector.load %arg10[%c0_36, %c0_37, %c0_38, %c0_39] : memref<1x16x16x128xf32, #tpu.memory_space<vmem>>, vector<1x16x16x128xf32>
    tpu.vector_store %arg10[%c0_36, %c0_37, %c0_38, %c0_39], %68 {strides = array<i32>} : memref<1x16x16x128xf32, #tpu.memory_space<vmem>>, vector<1x16x16x128xf32>,
    return
  }
  func.func @transform_0(%arg0: i32, %arg1: i32) -> (i32, i32, i32, i32) {
    %c0_i32 = arith.constant 0 : i32
    %c0_i32_0 = arith.constant 0 : i32
    %c0_i32_1 = arith.constant 0 : i32
    return %arg0, %arg1, %c0_i32, %c0_i32_0 : i32, i32, i32, i32
  }
  func.func @transform_1(%arg0: i32, %arg1: i32) -> (i32, i32, i32, i32) {
    %c16_i32 = arith.constant 16 : i32
    %0 = arith.muli %arg1, %c16_i32 : i32
    %c1_i32 = arith.constant 1 : i32
    %1 = arith.subi %0, %c1_i32 : i32
    %c0_i32 = arith.constant 0 : i32
    %2 = arith.maxsi %1, %c0_i32 : i32
    %c0_i32_0 = arith.constant 0 : i32
    %c0_i32_1 = arith.constant 0 : i32
    %c0_i32_2 = arith.constant 0 : i32
    return %arg0, %2, %c0_i32_0, %c0_i32_1 : i32, i32, i32, i32
  }
  func.func @transform_2(%arg0: i32, %arg1: i32) -> (i32, i32, i32, i32) {
    %c1_i32 = arith.constant 1 : i32
    %0 = arith.addi %arg1, %c1_i32 : i32
    %c16_i32 = arith.constant 16 : i32
    %1 = arith.muli %0, %c16_i32 : i32
    %c15_i32 = arith.constant 15 : i32
    %2 = arith.minsi %1, %c15_i32 : i32
    %c0_i32 = arith.constant 0 : i32
    %c0_i32_0 = arith.constant 0 : i32
    %c0_i32_1 = arith.constant 0 : i32
    return %arg0, %2, %c0_i32, %c0_i32_0 : i32, i32, i32, i32
  }
  func.func @transform_3(%arg0: i32, %arg1: i32) -> (i32, i32, i32, i32) {
    %c0_i32 = arith.constant 0 : i32
    %c0_i32_0 = arith.constant 0 : i32
    %c0_i32_1 = arith.constant 0 : i32
    return %arg0, %arg1, %c0_i32, %c0_i32_0 : i32, i32, i32, i32
  }
  func.func @transform_4(%arg0: i32, %arg1: i32) -> (i32, i32) {
    %c0_i32 = arith.constant 0 : i32
    %c0_i32_0 = arith.constant 0 : i32
    %c0_i32_1 = arith.constant 0 : i32
    return %c0_i32, %c0_i32_0 : i32, i32
  }
  func.func @transform_5(%arg0: i32, %arg1: i32) -> (i32, i32) {
    %c0_i32 = arith.constant 0 : i32
    %c0_i32_0 = arith.constant 0 : i32
    %c0_i32_1 = arith.constant 0 : i32
    return %c0_i32, %c0_i32_0 : i32, i32
  }
  func.func @transform_6(%arg0: i32, %arg1: i32) -> (i32, i32) {
    %c0_i32 = arith.constant 0 : i32
    %c0_i32_0 = arith.constant 0 : i32
    %c0_i32_1 = arith.constant 0 : i32
    return %c0_i32, %c0_i32_0 : i32, i32
  }
  func.func @transform_7(%arg0: i32, %arg1: i32) -> (i32, i32) {
    %c0_i32 = arith.constant 0 : i32
    %c0_i32_0 = arith.constant 0 : i32
    %c0_i32_1 = arith.constant 0 : i32
    return %c0_i32, %c0_i32_0 : i32, i32
  }
  func.func @transform_8(%arg0: i32, %arg1: i32) -> (i32, i32, i32, i32) {
    %c0_i32 = arith.constant 0 : i32
    %c0_i32_0 = arith.constant 0 : i32
    %c0_i32_1 = arith.constant 0 : i32
    return %arg0, %arg1, %c0_i32, %c0_i32_0 : i32, i32, i32, i32
  }
}

</mosaic_0001>

<bundles_post_ra>
// kernel: tile.47
= control target key start
LH: loop header
LB: loop body
LE: loop exit
PB: predicated region body
PF: predicated region fallthrough
CT: control target
= control target key end

     0   :  { %vm163_vm0 = vcmask 1047556   ;;  %s399_s10 = smov 96   ;;  %vm165_vm1 = vcmask 261120   ;;  %s401_s21 = smov 32   ;;  %vm202_vm2 = vcmask 1048320   ;;  %vm245_vm3 = vcmask 785920   ;;  %s580_s0 = inlined_call_operand.vmem [shape: f32[32,4,32], index: 0, kind: input, shape index: {}]   ;;  %s581_s1 = inlined_call_operand.vmem [shape: f32[32,128], index: 1, kind: output, shape index: {}]  }
   0x1   :  { %v377_v0 = vld [vmem:[%s580_s0 + $0x1c] sm:$0xf]  ;;  %v378_v1 = vld [vmem:[%s580_s0 + $0x18] sm:$0xf]  ;;  %v379_v2 = vld [vmem:[%s580_s0 + $0x14] sm:$0xf] }
   0x2   :  { %129 = vst [vmem:[#allocation0 + $0x38] sm:$0xf] %v377_v0  ;;  %134 = vst [vmem:[#allocation0 + $0x30] sm:$0xf] %v378_v1  ;;  %v380_v3 = vld [vmem:[%s580_s0 + $0x10] sm:$0xf] }
   0x3   :  { %139 = vst [vmem:[#allocation0 + $0x28] sm:$0xf] %v379_v2  ;;  %v381_v4 = vld [vmem:[%s580_s0 + $0xc] sm:$0xf]  ;;  %v382_v5 = vld [vmem:[%s580_s0 + $0x8] sm:$0xf] }
   0x4   :  { %144 = vst [vmem:[#allocation0 + $0x20] sm:$0xf] %v380_v3  ;;  %149 = vst [vmem:[#allocation0 + $0x18] sm:$0xf] %v381_v4  ;;  %v383_v6 = vld [vmem:[%s580_s0 + $0x4] sm:$0xf] }
   0x5   :  { %154 = vst [vmem:[#allocation0 + $0x10] sm:$0xf] %v382_v5  ;;  %v159_v7 = vld [vmem:[%s580_s0] sm:$0xf]  ;;  %158 = vst [vmem:[#allocation0 + $0x8] sm:$0xf] %v383_v6 }
   0x6   :  { %160 = vst [vmem:[#allocation0] sm:$0xf] %v159_v7  ;;  %v361_v8 = vld [vmem:[%s580_s0 + $0x5c] sm:$0xf]  ;;  %v362_v9 = vld [vmem:[%s580_s0 + $0x58] sm:$0xf] }
   0x7   :  { %v363_v10 = vld [vmem:[%s580_s0 + $0x54] sm:$0xf]  ;;  %49 = vst [vmem:[#allocation0 + $0xb8] sm:$0xf] %v361_v8  ;;  %54 = vst [vmem:[#allocation0 + $0xb0] sm:$0xf] %v362_v9 }
   0x8   :  { %59 = vst [vmem:[#allocation0 + $0xa8] sm:$0xf] %v363_v10  ;;  %v364_v11 = vld [vmem:[%s580_s0 + $0x50] sm:$0xf]  ;;  %v365_v12 = vld [vmem:[%s580_s0 + $0x4c] sm:$0xf] }
   0x9   :  { %v366_v13 = vld [vmem:[%s580_s0 + $0x48] sm:$0xf]  ;;  %64 = vst [vmem:[#allocation0 + $0xa0] sm:$0xf] %v364_v11  ;;  %69 = vst [vmem:[#allocation0 + $0x98] sm:$0xf] %v365_v12 }
   0xa   :  { %74 = vst [vmem:[#allocation0 + $0x90] sm:$0xf] %v366_v13  ;;  %v367_v14 = vld [vmem:[%s580_s0 + $0x44] sm:$0xf]  ;;  %v368_v15 = vld [vmem:[%s580_s0 + $0x40] sm:$0xf] }
   0xb   :  { %v369_v16 = vld [vmem:[%s580_s0 + $0x3c] sm:$0xf]  ;;  %79 = vst [vmem:[#allocation0 + $0x88] sm:$0xf] %v367_v14  ;;  %84 = vst [vmem:[#allocation0 + $0x80] sm:$0xf] %v368_v15 }
   0xc   :  { %89 = vst [vmem:[#allocation0 + $0x78] sm:$0xf] %v369_v16  ;;  %v370_v17 = vld [vmem:[%s580_s0 + $0x38] sm:$0xf]  ;;  %v371_v18 = vld [vmem:[%s580_s0 + $0x34] sm:$0xf] }
   0xd   :  { %v372_v19 = vld [vmem:[%s580_s0 + $0x30] sm:$0xf]  ;;  %94 = vst [vmem:[#allocation0 + $0x70] sm:$0xf] %v370_v17  ;;  %99 = vst [vmem:[#allocation0 + $0x68] sm:$0xf] %v371_v18 }
   0xe   :  { %104 = vst [vmem:[#allocation0 + $0x60] sm:$0xf] %v372_v19  ;;  %v373_v20 = vld [vmem:[%s580_s0 + $0x2c] sm:$0xf]  ;;  %v374_v21 = vld [vmem:[%s580_s0 + $0x28] sm:$0xf] }
   0xf   :  { %v375_v22 = vld [vmem:[%s580_s0 + $0x24] sm:$0xf]  ;;  %109 = vst [vmem:[#allocation0 + $0x58] sm:$0xf] %v373_v20  ;;  %114 = vst [vmem:[#allocation0 + $0x50] sm:$0xf] %v374_v21 }
  0x10   :  { %119 = vst [vmem:[#allocation0 + $0x48] sm:$0xf] %v375_v22  ;;  %v376_v23 = vld [vmem:[%s580_s0 + $0x20] sm:$0xf]  ;;  %v353_v24 = vld [vmem:[%s580_s0 + $0x7c] sm:$0xf] }
  0x11   :  { %v354_v25 = vld [vmem:[%s580_s0 + $0x78] sm:$0xf]  ;;  %124 = vst [vmem:[#allocation0 + $0x40] sm:$0xf] %v376_v23  ;;  %9 = vst [vmem:[#allocation0 + $0xf8] sm:$0xf] %v353_v24 }
  0x12   :  { %v197_v26 = vld [vmem:[#allocation0 + $0x3] ss:$8 sm:$0xf0]   ;;  %14 = vst [vmem:[#allocation0 + $0xf0] sm:$0xf] %v354_v25  ;;  %vm288_vm4 = vcmask 523520  }
  0x13   :  { %v355_v27 = vld [vmem:[%s580_s0 + $0x74] sm:$0xf]  ;;  %v195_v28 = vld [vmem:[#allocation0 + $0x3] ss:$8 sm:$0xf]  }
  0x14   :  { %19 = vst [vmem:[#allocation0 + $0xe8] sm:$0xf] %v355_v27  ;;  %v356_v29 = vld [vmem:[%s580_s0 + $0x70] sm:$0xf]  ;;  %v199_v30 = vsel %vm163_vm0, %v197_v26, %v195_v28  ;;  %v357_v31 = vld [vmem:[%s580_s0 + $0x6c] sm:$0xf] }
  0x15   :  { %24 = vst [vmem:[#allocation0 + $0xe0] sm:$0xf] %v356_v29  ;;  %v358_v32 = vld [vmem:[%s580_s0 + $0x68] sm:$0xf]  ;;  %v359_v33 = vld [vmem:[%s580_s0 + $0x64] sm:$0xf]  ;;  %200 = vrot.lane.b32.xlu0 %v199_v30, %s399_s10 }
  0x16   :  { %v218_v34 = vld [vmem:[#allocation0 + $0x83] ss:$8 sm:$0xf0]   ;;  %29 = vst [vmem:[#allocation0 + $0xd8] sm:$0xf] %v357_v31 }
  0x17   :  { %34 = vst [vmem:[#allocation0 + $0xd0] sm:$0xf] %v358_v32  ;;  %39 = vst [vmem:[#allocation0 + $0xc8] sm:$0xf] %v359_v33  ;;  %v360_v35 = vld [vmem:[%s580_s0 + $0x60] sm:$0xf] }
  0x18   :  { %v216_v36 = vld [vmem:[#allocation0 + $0x83] ss:$8 sm:$0xf]   ;;  %44 = vst [vmem:[#allocation0 + $0xc0] sm:$0xf] %v360_v35  ;;  %s400_s0 = smov 64  }
  0x19   :  { %v220_v37 = vsel %vm163_vm0, %v218_v34, %v216_v36  ;;  %v207_v38 = vld [vmem:[#allocation0 + $0x43] ss:$8 sm:$0xf0]   ;;  %v238_v39 = vld [vmem:[#allocation0 + $0x2] ss:$8 sm:$0xf]  }
  0x1a   :  { %221 = vrot.lane.b32.xlu1 %v220_v37, %s399_s10  ;;  %v205_v40 = vld [vmem:[#allocation0 + $0x43] ss:$8 sm:$0xf]   ;;  %v240_v41 = vld [vmem:[#allocation0 + $0x2] ss:$8 sm:$0xf0]  }
  0x1b   :  { %v209_v42 = vsel %vm163_vm0, %v207_v38, %v205_v40  ;;  %v250_v44 = vld [vmem:[#allocation0 + $0x42] ss:$8 sm:$0xf0]   ;;  %v242_v45 = vsel %vm163_vm0, %v240_v41, %v238_v39  ;;  %v281_v52 = vld [vmem:[#allocation0 + $0x1] ss:$8 sm:$0xf]  }
  0x1c   :  { %210 = vrot.lane.b32.xlu0 %v209_v42, %s399_s10  ;;  %v229_v43 = vld [vmem:[#allocation0 + $0xc3] ss:$8 sm:$0xf0]   ;;  %v248_v46 = vld [vmem:[#allocation0 + $0x42] ss:$8 sm:$0xf]  }
  0x1d   :  { %v259_v47 = vld [vmem:[#allocation0 + $0x82] ss:$8 sm:$0xf]   ;;  %v252_v53 = vsel %vm163_vm0, %v250_v44, %v248_v46  ;;  %v283_v55 = vld [vmem:[#allocation0 + $0x1] ss:$8 sm:$0xf0]  }
  0x1e   :  { %v261_v49 = vld [vmem:[#allocation0 + $0x82] ss:$8 sm:$0xf0]   ;;  %v161_v56 = vld [vmem:[#allocation0] ss:$8 sm:$0xf]   ;;  %v285_v4 = vsel %vm163_vm0, %v283_v55, %v281_v52 }
  0x1f   :  { %v227_v48 = vld [vmem:[#allocation0 + $0xc3] ss:$8 sm:$0xf]   ;;  %v272_v51 = vld [vmem:[#allocation0 + $0xc2] ss:$8 sm:$0xf0]   ;;  %v263_v54 = vsel %vm163_vm0, %v261_v49, %v259_v47 }
  0x20   :  { %v231_v50 = vsel %vm163_vm0, %v229_v43, %v227_v48  ;;  %243 = vrot.lane.b32.xlu0 %v242_v45, %s400_s0  ;;  %v270_v57 = vld [vmem:[#allocation0 + $0xc2] ss:$8 sm:$0xf]   ;;  %v162_v58 = vld [vmem:[#allocation0] ss:$8 sm:$0xf0]  }
  0x21   :  { %232 = vrot.lane.b32.xlu1 %v231_v50, %s399_s10  ;;  %v164_v59 = vsel %vm163_vm0, %v162_v58, %v161_v56  ;;  %v177_v60 = vld [vmem:[#allocation0 + $0x80] ss:$8 sm:$0xf]   ;;  %v291_v62 = vld [vmem:[#allocation0 + $0x41] ss:$8 sm:$0xf]   ;;  %v274_v3 = vsel %vm163_vm0, %v272_v51, %v270_v57 }
  0x22   :  { %v179_v61 = vld [vmem:[#allocation0 + $0x80] ss:$8 sm:$0xf0]   ;;  %v293_v63 = vld [vmem:[#allocation0 + $0x41] ss:$8 sm:$0xf0]  }
  0x23   :  { %166 = vst.msk [vmem:[%s581_s1] sm:$0xff] %vm165_vm1, %v164_v59   ;;  %v181_v0 = vsel %vm163_vm0, %v179_v61, %v177_v60  ;;  %v168_v1 = vld [vmem:[#allocation0 + $0x40] ss:$8 sm:$0xf]   ;;  %v295_v11 = vsel %vm163_vm0, %v293_v63, %v291_v62 }
  0x24   :  { %264 = vrot.lane.b32.xlu0 %v263_v54, %s400_s0  ;;  %v170_v2 = vld [vmem:[#allocation0 + $0x40] ss:$8 sm:$0xf0]   ;;  %385 = vst.msk [vmem:[%s581_s1 + $0x10] sm:$0xff] %vm165_vm1, %v181_v0  }
  0x25   :  { %253 = vrot.lane.b32.xlu1 %v252_v53, %s400_s0  ;;  %v172_v5 = vsel %vm163_vm0, %v170_v2, %v168_v1  ;;  %v186_v6 = vld [vmem:[#allocation0 + $0xc0] ss:$8 sm:$0xf]   ;;  %v302_v8 = vld [vmem:[#allocation0 + $0x81] ss:$8 sm:$0xf]  }
  0x26   :  { %v188_v7 = vld [vmem:[#allocation0 + $0xc0] ss:$8 sm:$0xf0]   ;;  %v304_v9 = vld [vmem:[#allocation0 + $0x81] ss:$8 sm:$0xf0]  }
  0x27   :  { %384 = vst.msk [vmem:[%s581_s1 + $0x8] sm:$0xff] %vm165_vm1, %v172_v5   ;;  %v190_v10 = vsel %vm163_vm0, %v188_v7, %v186_v6  ;;  %v306_v12 = vsel %vm163_vm0, %v304_v9, %v302_v8  ;;  %v313_v13 = vld [vmem:[#allocation0 + $0xc1] ss:$8 sm:$0xf]  }
  0x28   :  { %386 = vst.msk [vmem:[%s581_s1 + $0x18] sm:$0xff] %vm165_vm1, %v190_v10   ;;  %286 = vrot.lane.b32.xlu0 %v285_v4, %s401_s21  ;;  %v315_v14 = vld [vmem:[#allocation0 + $0xc1] ss:$8 sm:$0xf0]  }
  0x29   :  { %275 = vrot.lane.b32.xlu1 %v274_v3, %s400_s0  ;;  %v317_v15 = vsel %vm163_vm0, %v315_v14, %v313_v13 }
  0x2c   :  { %307 = vrot.lane.b32.xlu0 %v306_v12, %s401_s21 }
  0x2d   :  { %296 = vrot.lane.b32.xlu1 %v295_v11, %s401_s21 }
  0x31   :  { %318 = vrot.lane.b32.xlu1 %v317_v15, %s401_s21 }
  0x87   :  { %v201_v16 = vpop.permute.xlu0 %200  }
  0x88   :  { %203 = vst.msk [vmem:[%s581_s1] sm:$0xff] %vm202_vm2, %v201_v16  }
  0x8c   :  { %v222_v17 = vpop.permute.xlu1 %221  }
  0x8d   :  { %388 = vst.msk [vmem:[%s581_s1 + $0x10] sm:$0xff] %vm202_vm2, %v222_v17  }
  0x8e   :  { %v211_v18 = vpop.permute.xlu0 %210  }
  0x8f   :  { %387 = vst.msk [vmem:[%s581_s1 + $0x8] sm:$0xff] %vm202_vm2, %v211_v18  }
  0x92   :  { %v244_v20 = vpop.permute.xlu0 %243  }
  0x93   :  { %v233_v19 = vpop.permute.xlu1 %232   ;;  %246 = vst.msk [vmem:[%s581_s1] sm:$0xff] %vm245_vm3, %v244_v20  }
  0x94   :  { %389 = vst.msk [vmem:[%s581_s1 + $0x18] sm:$0xff] %vm202_vm2, %v233_v19  }
  0x96   :  { %v265_v22 = vpop.permute.xlu0 %264  }
  0x97   :  { %v254_v21 = vpop.permute.xlu1 %253   ;;  %391 = vst.msk [vmem:[%s581_s1 + $0x10] sm:$0xff] %vm245_vm3, %v265_v22  }
  0x98   :  { %390 = vst.msk [vmem:[%s581_s1 + $0x8] sm:$0xff] %vm245_vm3, %v254_v21  }
  0x9a   :  { %v287_v24 = vpop.permute.xlu0 %286  }
  0x9b   :  { %v276_v23 = vpop.permute.xlu1 %275   ;;  %289 = vst.msk [vmem:[%s581_s1] sm:$0xff] %vm288_vm4, %v287_v24  }
  0x9c   :  { %392 = vst.msk [vmem:[%s581_s1 + $0x18] sm:$0xff] %vm245_vm3, %v276_v23  }
  0x9e   :  { %v308_v26 = vpop.permute.xlu0 %307  }
  0x9f   :  { %v297_v25 = vpop.permute.xlu1 %296   ;;  %394 = vst.msk [vmem:[%s581_s1 + $0x10] sm:$0xff] %vm288_vm4, %v308_v26  }
  0xa0   :  { %393 = vst.msk [vmem:[%s581_s1 + $0x8] sm:$0xff] %vm288_vm4, %v297_v25  }
  0xa3   :  { %v319_v27 = vpop.permute.xlu1 %318  }
  0xa4   :  { %395 = vst.msk [vmem:[%s581_s1 + $0x18] sm:$0xff] %vm288_vm4, %v319_v27  }

// kernel: _lambda_.2
= control target key start
LH: loop header
LB: loop body
LE: loop exit
PB: predicated region body
PF: predicated region fallthrough
CT: control target
= control target key end

     0   :  { %s6886_s2 = inlined_call_operand.vmem [shape: f32[128,128], index: 2, kind: input, shape index: {}]   ;;  %s6887_s0 = inlined_call_operand.vmem [shape: f32[128,128], index: 0, kind: input, shape index: {}]   ;;  %s6888_s4 = inlined_call_operand.vmem [shape: f32[128,128], index: 4, kind: input, shape index: {}]   ;;  %s6889_s6 = inlined_call_operand.vmem [shape: f32[128,128], index: 6, kind: input, shape index: {}]   ;;  %s6890_s1 = inlined_call_operand.vmem [shape: f32[128,128], index: 1, kind: input, shape index: {}]   ;;  %s6891_s8 = inlined_call_operand.vmem [shape: f32[128,128], index: 8, kind: input, shape index: {}]   ;;  %s6892_s3 = inlined_call_operand.vmem [shape: f32[1,128], index: 3, kind: input, shape index: {}]   ;;  %s6893_s7 = inlined_call_operand.vmem [shape: f32[1,128], index: 7, kind: input, shape index: {}]   ;;  %s6894_s5 = inlined_call_operand.vmem [shape: f32[1,128], index: 5, kind: input, shape index: {}]   ;;  %s6895_s9 = inlined_call_operand.vmem [shape: f32[1,128], index: 9, kind: input, shape index: {}]   ;;  %s6896_s10 = inlined_call_operand.vmem [shape: f32[128,128], index: 10, kind: output, shape index: {0}]   ;;  %s6897_s11 = inlined_call_operand.vmem [shape: f32[128,128], index: 11, kind: output, shape index: {1}]  }
   0x1   :  { %v68_v0 = vld [vmem:[%s6886_s2 + $0x78] sm:$0xff]  ;;  %v67_v1 = vld [vmem:[%s6886_s2 + $0x70] sm:$0xff]  ;;  %v66_v2 = vld [vmem:[%s6886_s2 + $0x68] sm:$0xff] }
   0x2   :  { %4481 = vmatprep.subr.mxu0 %v68_v0  ;;  %v65_v3 = vld [vmem:[%s6886_s2 + $0x60] sm:$0xff]  ;;  %v64_v5 = vld [vmem:[%s6886_s2 + $0x58] sm:$0xff]  ;;  %v63_v6 = vld [vmem:[%s6886_s2 + $0x50] sm:$0xff] }
   0x3   :  { %4482 = vmatpush3.msra.mxu0 %v68_v0  ;;  %v37_v4 = vld [vmem:[%s6887_s0] sm:$0xff]  ;;  %v62_v7 = vld [vmem:[%s6886_s2 + $0x48] sm:$0xff]  ;;  %v60_v9 = vld [vmem:[%s6886_s2 + $0x38] sm:$0xff] }
   0x4   :  { %4483 = vmatprep.subr.mxu0 %v67_v1  ;;  %4513 = vmatprep.mubr.f32.mxu0 %v37_v4  ;;  %v61_v8 = vld [vmem:[%s6886_s2 + $0x40] sm:$0xff]  ;;  %v59_v10 = vld [vmem:[%s6886_s2 + $0x30] sm:$0xff]  ;;  %v58_v11 = vld [vmem:[%s6886_s2 + $0x28] sm:$0xff] }
   0x5   :  { %4484 = vmatpush3.msra.mxu0 %v67_v1  ;;  %v57_v12 = vld [vmem:[%s6886_s2 + $0x20] sm:$0xff]  ;;  %v85_v13 = vld [vmem:[%s6888_s4 + $0x78] sm:$0xff]  ;;  %v84_v14 = vld [vmem:[%s6888_s4 + $0x70] sm:$0xff] }
   0x6   :  { %4485 = vmatprep.subr.mxu0 %v66_v2  ;;  %v56_v15 = vld [vmem:[%s6886_s2 + $0x18] sm:$0xff]  ;;  %4537 = vmatprep.subr.mxu1 %v85_v13  ;;  %v83_v16 = vld [vmem:[%s6888_s4 + $0x68] sm:$0xff]  ;;  %v55_v17 = vld [vmem:[%s6886_s2 + $0x10] sm:$0xff] }
   0x7   :  { %4486 = vmatpush3.msra.mxu0 %v66_v2  ;;  %4538 = vmatpush3.msra.mxu1 %v85_v13  ;;  %v82_v18 = vld [vmem:[%s6888_s4 + $0x60] sm:$0xff]  ;;  %v54_v19 = vld [vmem:[%s6886_s2 + $0x8] sm:$0xff]  ;;  %v81_v20 = vld [vmem:[%s6888_s4 + $0x58] sm:$0xff] }
   0x8   :  { %4487 = vmatprep.subr.mxu0 %v65_v3  ;;  %4539 = vmatprep.subr.mxu1 %v84_v14  ;;  %v53_v21 = vld [vmem:[%s6886_s2] sm:$0xff]  ;;  %v80_v22 = vld [vmem:[%s6888_s4 + $0x50] sm:$0xff]  ;;  %v38_v23 = vld [vmem:[%s6887_s0 + $0x8] sm:$0xff] }
   0x9   :  { %4488 = vmatpush3.msra.mxu0 %v65_v3  ;;  %4540 = vmatpush3.msra.mxu1 %v84_v14  ;;  %v468_v24 = vld [vmem:[%s6889_s6 + $0x78] sm:$0xff]  ;;  %v39_v25 = vld [vmem:[%s6887_s0 + $0x10] sm:$0xff]  ;;  %v79_v27 = vld [vmem:[%s6888_s4 + $0x48] sm:$0xff] }
   0xa   :  { %4489 = vmatprep.subr.mxu0 %v64_v5  ;;  %4541 = vmatprep.subr.mxu1 %v83_v16  ;;  %v467_v26 = vld [vmem:[%s6889_s6 + $0x70] sm:$0xff]  ;;  %v40_v28 = vld [vmem:[%s6887_s0 + $0x18] sm:$0xff]  ;;  %v466_v29 = vld [vmem:[%s6889_s6 + $0x68] sm:$0xff] }
   0xb   :  { %4490 = vmatpush3.msra.mxu0 %v64_v5  ;;  %4542 = vmatpush3.msra.mxu1 %v83_v16  ;;  %v41_v30 = vld [vmem:[%s6887_s0 + $0x20] sm:$0xff]  ;;  %v42_v33 = vld [vmem:[%s6887_s0 + $0x28] sm:$0xff]  ;;  %v464_v34 = vld [vmem:[%s6889_s6 + $0x58] sm:$0xff] }
   0xc   :  { %4491 = vmatprep.subr.mxu0 %v63_v6  ;;  %4543 = vmatprep.subr.mxu1 %v82_v18  ;;  %v465_v31 = vld [vmem:[%s6889_s6 + $0x60] sm:$0xff]  ;;  %v43_v35 = vld [vmem:[%s6887_s0 + $0x30] sm:$0xff]  ;;  %v77_v37 = vld [vmem:[%s6888_s4 + $0x38] sm:$0xff] }
   0xd   :  { %4492 = vmatpush3.msra.mxu0 %v63_v6  ;;  %4544 = vmatpush3.msra.mxu1 %v82_v18  ;;  %v78_v32 = vld [vmem:[%s6888_s4 + $0x40] sm:$0xff]  ;;  %v463_v36 = vld [vmem:[%s6889_s6 + $0x50] sm:$0xff]  ;;  %v44_v38 = vld [vmem:[%s6887_s0 + $0x38] sm:$0xff] }
   0xe   :  { %4493 = vmatprep.subr.mxu0 %v62_v7  ;;  %4545 = vmatprep.subr.mxu1 %v81_v20  ;;  %v462_v39 = vld [vmem:[%s6889_s6 + $0x48] sm:$0xff]  ;;  %v45_v40 = vld [vmem:[%s6887_s0 + $0x40] sm:$0xff]  ;;  %v76_v42 = vld [vmem:[%s6888_s4 + $0x30] sm:$0xff] }
   0xf   :  { %4494 = vmatpush3.msra.mxu0 %v62_v7  ;;  %4546 = vmatpush3.msra.mxu1 %v81_v20  ;;  %v461_v41 = vld [vmem:[%s6889_s6 + $0x40] sm:$0xff]  ;;  %v46_v43 = vld [vmem:[%s6887_s0 + $0x48] sm:$0xff]  ;;  %v460_v44 = vld [vmem:[%s6889_s6 + $0x38] sm:$0xff] }
  0x10   :  { %4495 = vmatprep.subr.mxu0 %v61_v8  ;;  %4547 = vmatprep.subr.mxu1 %v80_v22  ;;  %v47_v45 = vld [vmem:[%s6887_s0 + $0x50] sm:$0xff]  ;;  %v75_v47 = vld [vmem:[%s6888_s4 + $0x28] sm:$0xff]  ;;  %v48_v48 = vld [vmem:[%s6887_s0 + $0x58] sm:$0xff] }
  0x11   :  { %4496 = vmatpush3.msra.mxu0 %v61_v8  ;;  %4548 = vmatpush3.msra.mxu1 %v80_v22  ;;  %v459_v46 = vld [vmem:[%s6889_s6 + $0x30] sm:$0xff]  ;;  %v458_v49 = vld [vmem:[%s6889_s6 + $0x28] sm:$0xff]  ;;  %v49_v50 = vld [vmem:[%s6887_s0 + $0x60] sm:$0xff] }
  0x12   :  { %4497 = vmatprep.subr.mxu0 %v60_v9  ;;  %4549 = vmatprep.subr.mxu1 %v79_v27  ;;  %v457_v51 = vld [vmem:[%s6889_s6 + $0x20] sm:$0xff]  ;;  %v50_v53 = vld [vmem:[%s6887_s0 + $0x68] sm:$0xff]  ;;  %v456_v54 = vld [vmem:[%s6889_s6 + $0x18] sm:$0xff] }
  0x13   :  { %4498 = vmatpush3.msra.mxu0 %v60_v9  ;;  %4550 = vmatpush3.msra.mxu1 %v79_v27  ;;  %v74_v52 = vld [vmem:[%s6888_s4 + $0x20] sm:$0xff]  ;;  %v51_v55 = vld [vmem:[%s6887_s0 + $0x70] sm:$0xff]  ;;  %v52_v57 = vld [vmem:[%s6887_s0 + $0x78] sm:$0xff] }
  0x14   :  { %4499 = vmatprep.subr.mxu0 %v59_v10  ;;  %4551 = vmatprep.subr.mxu1 %v78_v32  ;;  %v455_v56 = vld [vmem:[%s6889_s6 + $0x10] sm:$0xff]  ;;  %v454_v58 = vld [vmem:[%s6889_s6 + $0x8] sm:$0xff]  ;;  %v437_v59 = vld [vmem:[%s6890_s1] sm:$0xff] }
  0x15   :  { %4500 = vmatpush3.msra.mxu0 %v59_v10  ;;  %4552 = vmatpush3.msra.mxu1 %v78_v32  ;;  %v453_v60 = vld [vmem:[%s6889_s6] sm:$0xff]  ;;  %v438_v61 = vld [vmem:[%s6890_s1 + $0x8] sm:$0xff]  ;;  %v439_v62 = vld [vmem:[%s6890_s1 + $0x10] sm:$0xff] }
  0x16   :  { %4501 = vmatprep.subr.mxu0 %v58_v11  ;;  %4553 = vmatprep.subr.mxu1 %v77_v37  ;;  %v440_v63 = vld [vmem:[%s6890_s1 + $0x18] sm:$0xff]  ;;  %v441_v0 = vld [vmem:[%s6890_s1 + $0x20] sm:$0xff]  ;;  %v442_v1 = vld [vmem:[%s6890_s1 + $0x28] sm:$0xff] }
  0x17   :  { %4502 = vmatpush3.msra.mxu0 %v58_v11  ;;  %4554 = vmatpush3.msra.mxu1 %v77_v37  ;;  %v443_v2 = vld [vmem:[%s6890_s1 + $0x30] sm:$0xff]  ;;  %v444_v3 = vld [vmem:[%s6890_s1 + $0x38] sm:$0xff]  ;;  %v445_v4 = vld [vmem:[%s6890_s1 + $0x40] sm:$0xff] }
  0x18   :  { %4503 = vmatprep.subr.mxu0 %v57_v12  ;;  %4555 = vmatprep.subr.mxu1 %v76_v42  ;;  %v446_v5 = vld [vmem:[%s6890_s1 + $0x48] sm:$0xff]  ;;  %v447_v6 = vld [vmem:[%s6890_s1 + $0x50] sm:$0xff]  ;;  %v448_v7 = vld [vmem:[%s6890_s1 + $0x58] sm:$0xff] }
  0x19   :  { %4504 = vmatpush3.msra.mxu0 %v57_v12  ;;  %4556 = vmatpush3.msra.mxu1 %v76_v42  ;;  %v449_v8 = vld [vmem:[%s6890_s1 + $0x60] sm:$0xff]  ;;  %v450_v9 = vld [vmem:[%s6890_s1 + $0x68] sm:$0xff]  ;;  %v451_v10 = vld [vmem:[%s6890_s1 + $0x70] sm:$0xff] }
  0x1a   :  { %4505 = vmatprep.subr.mxu0 %v56_v15  ;;  %4557 = vmatprep.subr.mxu1 %v75_v47  ;;  %v452_v11 = vld [vmem:[%s6890_s1 + $0x78] sm:$0xff]  ;;  %v72_v13 = vld [vmem:[%s6888_s4 + $0x10] sm:$0xff]  ;;  %v71_v14 = vld [vmem:[%s6888_s4 + $0x8] sm:$0xff] }
  0x1b   :  { %4506 = vmatpush3.msra.mxu0 %v56_v15  ;;  %4558 = vmatpush3.msra.mxu1 %v75_v47  ;;  %v73_v12 = vld [vmem:[%s6888_s4 + $0x18] sm:$0xff]  ;;  %v70_v15 = vld [vmem:[%s6888_s4] sm:$0xff]  ;;  %v484_v32 = vld [vmem:[%s6891_s8 + $0x70] sm:$0xff] }
  0x1c   :  { %4507 = vmatprep.subr.mxu0 %v55_v17  ;;  %4559 = vmatprep.subr.mxu1 %v74_v52  ;;  %v485_v16 = vld [vmem:[%s6891_s8 + $0x78] sm:$0xff]  ;;  %v482_v42 = vld [vmem:[%s6891_s8 + $0x60] sm:$0xff] }
  0x1d   :  { %4508 = vmatpush3.msra.mxu0 %v55_v17  ;;  %4560 = vmatpush3.msra.mxu1 %v74_v52  ;;  %v5153_v17 = vld [vmem:[%s6892_s3] ss:$0 sm:$0xff]  ;;  %v480_v52 = vld [vmem:[%s6891_s8 + $0x50] sm:$0xff] }
  0x1e   :  { %4509 = vmatprep.subr.mxu0 %v54_v19  ;;  %4561 = vmatprep.subr.mxu1 %v73_v12 }
  0x1f   :  { %4510 = vmatpush3.msra.mxu0 %v54_v19  ;;  %4562 = vmatpush3.msra.mxu1 %v73_v12  ;;  %v475_v12 = vld [vmem:[%s6891_s8 + $0x28] sm:$0xff] }
  0x20   :  { %4511 = vmatprep.subr.mxu0 %v53_v21  ;;  %4563 = vmatprep.subr.mxu1 %v72_v13 }
  0x21   :  { %4512 = vmatpush3.msra.mxu0 %v53_v21  ;;  %4564 = vmatpush3.msra.mxu1 %v72_v13 }
  0x22   :  { %4514 = vmatmul.mubr.f32.vlgmr.msra.gmra.mxu0 %v38_v23  ;;  %4593 = vmatprep.subr.mxu0 %v468_v24 }
  0x23   :  { %4594 = vmatpush3.msra.mxu0 %v468_v24  ;;  %4516 = vmatprep.mubr.f32.mxu0 %v39_v25 }
  0x24   :  { %4595 = vmatprep.subr.mxu0 %v467_v26  ;;  %4565 = vmatprep.subr.mxu1 %v71_v14 }
  0x25   :  { %4596 = vmatpush3.msra.mxu0 %v467_v26  ;;  %4566 = vmatpush3.msra.mxu1 %v71_v14 }
  0x26   :  { %4517 = vmatmul.mubr.f32.gmra.mxu0 %v40_v28  ;;  %4597 = vmatprep.subr.mxu0 %v466_v29 }
  0x27   :  { %4598 = vmatpush3.msra.mxu0 %v466_v29  ;;  %4519 = vmatprep.mubr.f32.mxu0 %v41_v30 }
  0x28   :  { %4599 = vmatprep.subr.mxu0 %v465_v31  ;;  %4567 = vmatprep.subr.mxu1 %v70_v15 }
  0x29   :  { %4600 = vmatpush3.msra.mxu0 %v465_v31  ;;  %4568 = vmatpush3.msra.mxu1 %v70_v15 }
  0x2a   :  { %4520 = vmatmul.mubr.f32.gmra.mxu0 %v42_v33  ;;  %4601 = vmatprep.subr.mxu0 %v464_v34 }
  0x2b   :  { %4602 = vmatpush3.msra.mxu0 %v464_v34  ;;  %4522 = vmatprep.mubr.f32.mxu0 %v43_v35 }
  0x2c   :  { %4603 = vmatprep.subr.mxu0 %v463_v36  ;;  %4649 = vmatprep.subr.mxu1 %v485_v16 }
  0x2d   :  { %4604 = vmatpush3.msra.mxu0 %v463_v36  ;;  %v483_v36 = vld [vmem:[%s6891_s8 + $0x68] sm:$0xff] }
  0x2e   :  { %4523 = vmatmul.mubr.f32.gmra.mxu0 %v44_v38  ;;  %4605 = vmatprep.subr.mxu0 %v462_v39 }
  0x2f   :  { %4606 = vmatpush3.msra.mxu0 %v462_v39  ;;  %4525 = vmatprep.mubr.f32.mxu0 %v45_v40 }
  0x30   :  { %4607 = vmatprep.subr.mxu0 %v461_v41 }
  0x31   :  { %4608 = vmatpush3.msra.mxu0 %v461_v41 }
  0x32   :  { %4526 = vmatmul.mubr.f32.gmra.mxu0 %v46_v43  ;;  %4609 = vmatprep.subr.mxu0 %v460_v44 }
  0x33   :  { %4610 = vmatpush3.msra.mxu0 %v460_v44  ;;  %4528 = vmatprep.mubr.f32.mxu0 %v47_v45 }
  0x34   :  { %4611 = vmatprep.subr.mxu0 %v459_v46 }
  0x35   :  { %4612 = vmatpush3.msra.mxu0 %v459_v46  ;;  %v481_v46 = vld [vmem:[%s6891_s8 + $0x58] sm:$0xff] }
  0x36   :  { %4529 = vmatmul.mubr.f32.gmra.mxu0 %v48_v48  ;;  %4613 = vmatprep.subr.mxu0 %v458_v49 }
  0x37   :  { %4614 = vmatpush3.msra.mxu0 %v458_v49  ;;  %4531 = vmatprep.mubr.f32.mxu0 %v49_v50 }
  0x38   :  { %4615 = vmatprep.subr.mxu0 %v457_v51 }
  0x39   :  { %4616 = vmatpush3.msra.mxu0 %v457_v51 }
  0x3a   :  { %4532 = vmatmul.mubr.f32.gmra.mxu0 %v50_v53  ;;  %4617 = vmatprep.subr.mxu0 %v456_v54 }
  0x3b   :  { %4618 = vmatpush3.msra.mxu0 %v456_v54  ;;  %4534 = vmatprep.mubr.f32.mxu0 %v51_v55 }
  0x3c   :  { %4619 = vmatprep.subr.mxu0 %v455_v56 }
  0x3d   :  { %4620 = vmatpush3.msra.mxu0 %v455_v56  ;;  %v479_v56 = vld [vmem:[%s6891_s8 + $0x48] sm:$0xff] }
  0x3e   :  { %4535 = vmatmul.mubr.f32.gmra.mxu0 %v52_v57  ;;  %4621 = vmatprep.subr.mxu0 %v454_v58 }
  0x3f   :  { %4622 = vmatpush3.msra.mxu0 %v454_v58  ;;  %4625 = vmatprep.mubr.f32.mxu0 %v437_v59 }
  0x40   :  { %4623 = vmatprep.subr.mxu0 %v453_v60 }
  0x41   :  { %4624 = vmatpush3.msra.mxu0 %v453_v60 }
  0x42   :  { %4626 = vmatmul.mubr.f32.vlgmr.msra.gmra.mxu0 %v438_v61 }
  0x43   :  { %4628 = vmatprep.mubr.f32.mxu0 %v439_v62  ;;  %v478_v62 = vld [vmem:[%s6891_s8 + $0x40] sm:$0xff] }
  0x46   :  { %4629 = vmatmul.mubr.f32.gmra.mxu0 %v440_v63 }
  0x47   :  { %4631 = vmatprep.mubr.f32.mxu0 %v441_v0 }
  0x4a   :  { %4632 = vmatmul.mubr.f32.gmra.mxu0 %v442_v1 }
  0x4b   :  { %4634 = vmatprep.mubr.f32.mxu0 %v443_v2  ;;  %v477_v2 = vld [vmem:[%s6891_s8 + $0x38] sm:$0xff] }
  0x4e   :  { %4635 = vmatmul.mubr.f32.gmra.mxu0 %v444_v3 }
  0x4f   :  { %4637 = vmatprep.mubr.f32.mxu0 %v445_v4 }
  0x52   :  { %4638 = vmatmul.mubr.f32.gmra.mxu0 %v446_v5 }
  0x53   :  { %4640 = vmatprep.mubr.f32.mxu0 %v447_v6 }
  0x56   :  { %4641 = vmatmul.mubr.f32.gmra.mxu0 %v448_v7 }
  0x57   :  { %4643 = vmatprep.mubr.f32.mxu0 %v449_v8  ;;  %v476_v8 = vld [vmem:[%s6891_s8 + $0x30] sm:$0xff] }
  0x5a   :  { %4644 = vmatmul.mubr.f32.gmra.mxu0 %v450_v9 }
  0x5b   :  { %4646 = vmatprep.mubr.f32.mxu0 %v451_v10 }
  0x5e   :  { %4647 = vmatmul.mubr.f32.gmra.mxu0 %v452_v11 }
  0xe2   :  { %v4515_v18 = vpop.f32.mrf.mxu0 }
  0xe3   :  { %v165_v19 = vadd.f32 %v4515_v18, %v5153_v17 }
  0xe4   :  { %v159_v20 = vpop.f32.mrf.mxu0 }
  0xe5   :  { %v160_v21 = vadd.f32 %v5153_v17, %v159_v20  ;;  %v255_v22 = vmul.f32 0.1, %v165_v19  ;;  %vm239_vm1 = vcmp.ge.f32.partialorder %v165_v19, 0.0 }
  0xe6   :  { %v4518_v23 = vpop.f32.mrf.mxu0 }
  0xe7   :  { %v175_v24 = vadd.f32 %v4518_v23, %v5153_v17  ;;  %vm238_vm0 = vcmp.ge.f32.partialorder %v160_v21, 0.0  ;;  %v254_v25 = vmul.f32 0.1, %v160_v21  ;;  %v271_v31 = vsel %vm239_vm1, %v165_v19, %v255_v22  ;;  %v474_v19 = vld [vmem:[%s6891_s8 + $0x20] sm:$0xff] }
  0xe8   :  { %v169_v26 = vpop.f32.mrf.mxu0  ;;  %v5206_v23 = vld [vmem:[%s6893_s7] ss:$0 sm:$0xff] }
  0xe9   :  { %v170_v27 = vadd.f32 %v5153_v17, %v169_v26  ;;  %v270_v28 = vsel %vm238_vm0, %v160_v21, %v254_v25  ;;  %v257_v29 = vmul.f32 0.1, %v175_v24  ;;  %vm241_vm3 = vcmp.ge.f32.partialorder %v175_v24, 0.0 }
  0xea   :  { %v4521_v30 = vpop.f32.mrf.mxu0  ;;  %4569 = vmatprep.mubr.f32.mxu1 %v270_v28 }
  0xeb   :  { %v256_v33 = vmul.f32 0.1, %v170_v27  ;;  %v185_v34 = vadd.f32 %v4521_v30, %v5153_v17  ;;  %4570 = vmatmul.mubr.f32.vlgmr.msra.gmra.mxu1 %v271_v31  ;;  %vm240_vm2 = vcmp.ge.f32.partialorder %v170_v27, 0.0  ;;  %v273_v41 = vsel %vm241_vm3, %v175_v24, %v257_v29  ;;  %v473_v24 = vld [vmem:[%s6891_s8 + $0x18] sm:$0xff]  ;;  %v472_v30 = vld [vmem:[%s6891_s8 + $0x10] sm:$0xff] }
  0xec   :  { %v179_v35 = vpop.f32.mrf.mxu0  ;;  %4650 = vmatpush3.msra.mxu1 %v485_v16 }
  0xed   :  { %v180_v37 = vadd.f32 %v5153_v17, %v179_v35  ;;  %4651 = vmatprep.subr.mxu1 %v484_v32  ;;  %v272_v38 = vsel %vm240_vm2, %v170_v27, %v256_v33  ;;  %v259_v39 = vmul.f32 0.1, %v185_v34  ;;  %vm243_vm5 = vcmp.ge.f32.partialorder %v185_v34, 0.0 }
  0xee   :  { %v4524_v40 = vpop.f32.mrf.mxu0  ;;  %4572 = vmatprep.mubr.f32.mxu1 %v272_v38  ;;  %4652 = vmatpush3.msra.mxu1 %v484_v32 }
  0xef   :  { %v258_v43 = vmul.f32 0.1, %v180_v37  ;;  %v195_v44 = vadd.f32 %v4524_v40, %v5153_v17  ;;  %4573 = vmatmul.mubr.f32.gmra.mxu1 %v273_v41  ;;  %4653 = vmatprep.subr.mxu1 %v483_v36  ;;  %vm242_vm4 = vcmp.ge.f32.partialorder %v180_v37, 0.0  ;;  %v275_v51 = vsel %vm243_vm5, %v185_v34, %v259_v39  ;;  %v470_v39 = vld [vmem:[%s6891_s8] sm:$0xff] }
  0xf0   :  { %v189_v45 = vpop.f32.mrf.mxu0  ;;  %4654 = vmatpush3.msra.mxu1 %v483_v36 }
  0xf1   :  { %v190_v47 = vadd.f32 %v5153_v17, %v189_v45  ;;  %4655 = vmatprep.subr.mxu1 %v482_v42  ;;  %v274_v48 = vsel %vm242_vm4, %v180_v37, %v258_v43  ;;  %v261_v49 = vmul.f32 0.1, %v195_v44  ;;  %vm245_vm7 = vcmp.ge.f32.partialorder %v195_v44, 0.0 }
  0xf2   :  { %v4527_v50 = vpop.f32.mrf.mxu0  ;;  %4575 = vmatprep.mubr.f32.mxu1 %v274_v48  ;;  %4656 = vmatpush3.msra.mxu1 %v482_v42 }
  0xf3   :  { %v260_v53 = vmul.f32 0.1, %v190_v47  ;;  %v205_v54 = vadd.f32 %v4527_v50, %v5153_v17  ;;  %4576 = vmatmul.mubr.f32.gmra.mxu1 %v275_v51  ;;  %4657 = vmatprep.subr.mxu1 %v481_v46  ;;  %vm244_vm6 = vcmp.ge.f32.partialorder %v190_v47, 0.0  ;;  %v277_v61 = vsel %vm245_vm7, %v195_v44, %v261_v49 }
  0xf4   :  { %v199_v55 = vpop.f32.mrf.mxu0  ;;  %4658 = vmatpush3.msra.mxu1 %v481_v46 }
  0xf5   :  { %v200_v57 = vadd.f32 %v5153_v17, %v199_v55  ;;  %4659 = vmatprep.subr.mxu1 %v480_v52  ;;  %v276_v58 = vsel %vm244_vm6, %v190_v47, %v260_v53  ;;  %v263_v59 = vmul.f32 0.1, %v205_v54  ;;  %vm247_vm9 = vcmp.ge.f32.partialorder %v205_v54, 0.0 }
  0xf6   :  { %v4530_v60 = vpop.f32.mrf.mxu0  ;;  %4578 = vmatprep.mubr.f32.mxu1 %v276_v58  ;;  %4660 = vmatpush3.msra.mxu1 %v480_v52 }
  0xf7   :  { %v262_v63 = vmul.f32 0.1, %v200_v57  ;;  %v215_v0 = vadd.f32 %v4530_v60, %v5153_v17  ;;  %4579 = vmatmul.mubr.f32.gmra.mxu1 %v277_v61  ;;  %4661 = vmatprep.subr.mxu1 %v479_v56  ;;  %vm246_vm8 = vcmp.ge.f32.partialorder %v200_v57, 0.0  ;;  %v279_v7 = vsel %vm247_vm9, %v205_v54, %v263_v59 }
  0xf8   :  { %v209_v1 = vpop.f32.mrf.mxu0  ;;  %4662 = vmatpush3.msra.mxu1 %v479_v56 }
  0xf9   :  { %v210_v3 = vadd.f32 %v5153_v17, %v209_v1  ;;  %4663 = vmatprep.subr.mxu1 %v478_v62  ;;  %v278_v4 = vsel %vm246_vm8, %v200_v57, %v262_v63  ;;  %v265_v5 = vmul.f32 0.1, %v215_v0  ;;  %vm249_vm11 = vcmp.ge.f32.partialorder %v215_v0, 0.0 }
  0xfa   :  { %v4533_v6 = vpop.f32.mrf.mxu0  ;;  %4581 = vmatprep.mubr.f32.mxu1 %v278_v4  ;;  %4664 = vmatpush3.msra.mxu1 %v478_v62 }
  0xfb   :  { %v264_v9 = vmul.f32 0.1, %v210_v3  ;;  %v225_v10 = vadd.f32 %v4533_v6, %v5153_v17  ;;  %4582 = vmatmul.mubr.f32.gmra.mxu1 %v279_v7  ;;  %4665 = vmatprep.subr.mxu1 %v477_v2  ;;  %vm248_vm10 = vcmp.ge.f32.partialorder %v210_v3, 0.0  ;;  %v281_v18 = vsel %vm249_vm11, %v215_v0, %v265_v5 }
  0xfc   :  { %v219_v11 = vpop.f32.mrf.mxu0  ;;  %4666 = vmatpush3.msra.mxu1 %v477_v2 }
  0xfd   :  { %v220_v13 = vadd.f32 %v5153_v17, %v219_v11  ;;  %4667 = vmatprep.subr.mxu1 %v476_v8  ;;  %v280_v14 = vsel %vm248_vm10, %v210_v3, %v264_v9  ;;  %v267_v15 = vmul.f32 0.1, %v225_v10  ;;  %vm251_vm13 = vcmp.ge.f32.partialorder %v225_v10, 0.0 }
  0xfe   :  { %v4536_v16 = vpop.f32.mrf.mxu0  ;;  %4584 = vmatprep.mubr.f32.mxu1 %v280_v14  ;;  %4668 = vmatpush3.msra.mxu1 %v476_v8 }
  0xff   :  { %v266_v20 = vmul.f32 0.1, %v220_v13  ;;  %v235_v21 = vadd.f32 %v4536_v16, %v5153_v17  ;;  %4585 = vmatmul.mubr.f32.gmra.mxu1 %v281_v18  ;;  %4669 = vmatprep.subr.mxu1 %v475_v12  ;;  %vm250_vm12 = vcmp.ge.f32.partialorder %v220_v13, 0.0  ;;  %v283_v29 = vsel %vm251_vm13, %v225_v10, %v267_v15 }
 0x100   :  { %v229_v22 = vpop.f32.mrf.mxu0  ;;  %4670 = vmatpush3.msra.mxu1 %v475_v12 }
 0x101   :  { %v230_v25 = vadd.f32 %v5153_v17, %v229_v22  ;;  %4671 = vmatprep.subr.mxu1 %v474_v19  ;;  %v282_v26 = vsel %vm250_vm12, %v220_v13, %v266_v20  ;;  %v269_v27 = vmul.f32 0.1, %v235_v21  ;;  %vm253_vm15 = vcmp.ge.f32.partialorder %v235_v21, 0.0  ;;  %v471_v17 = vld [vmem:[%s6891_s8 + $0x8] sm:$0xff] }
 0x102   :  { %4587 = vmatprep.mubr.f32.mxu1 %v282_v26  ;;  %v4627_v28 = vpop.f32.mrf.mxu0  ;;  %4672 = vmatpush3.msra.mxu1 %v474_v19 }
 0x103   :  { %v268_v31 = vmul.f32 0.1, %v230_v25  ;;  %v565_v32 = vadd.f32 %v4627_v28, %v5206_v23  ;;  %4588 = vmatmul.mubr.f32.gmra.mxu1 %v283_v29  ;;  %4673 = vmatprep.subr.mxu1 %v473_v24  ;;  %vm252_vm14 = vcmp.ge.f32.partialorder %v230_v25, 0.0  ;;  %v285_v38 = vsel %vm253_vm15, %v235_v21, %v269_v27 }
 0x104   :  { %v559_v33 = vpop.f32.mrf.mxu0  ;;  %4674 = vmatpush3.msra.mxu1 %v473_v24 }
 0x105   :  { %v560_v34 = vadd.f32 %v5206_v23, %v559_v33  ;;  %4675 = vmatprep.subr.mxu1 %v472_v30  ;;  %v284_v35 = vsel %vm252_vm14, %v230_v25, %v268_v31  ;;  %v655_v36 = vmul.f32 0.1, %v565_v32  ;;  %vm639_vm0 = vcmp.ge.f32.partialorder %v565_v32, 0.0 }
 0x106   :  { %4590 = vmatprep.mubr.f32.mxu1 %v284_v35  ;;  %v4630_v37 = vpop.f32.mrf.mxu0  ;;  %4676 = vmatpush3.msra.mxu1 %v472_v30 }
 0x107   :  { %v654_v40 = vmul.f32 0.1, %v560_v34  ;;  %v575_v41 = vadd.f32 %v4630_v37, %v5206_v23  ;;  %4591 = vmatmul.mubr.f32.gmra.mxu1 %v285_v38  ;;  %4677 = vmatprep.subr.mxu1 %v471_v17  ;;  %vm638_vm1 = vcmp.ge.f32.partialorder %v560_v34, 0.0  ;;  %v671_v45 = vsel %vm639_vm0, %v565_v32, %v655_v36 }
 0x108   :  { %v569_v42 = vpop.f32.mrf.mxu0  ;;  %4678 = vmatpush3.msra.mxu1 %v471_v17 }
 0x109   :  { %v570_v43 = vadd.f32 %v5206_v23, %v569_v42  ;;  %4679 = vmatprep.subr.mxu1 %v470_v39  ;;  %v670_v44 = vsel %vm638_vm1, %v560_v34, %v654_v40  ;;  %v657_v46 = vmul.f32 0.1, %v575_v41  ;;  %vm641_vm3 = vcmp.ge.f32.partialorder %v575_v41, 0.0 }
 0x10a   :  { %v4633_v47 = vpop.f32.mrf.mxu0  ;;  %4680 = vmatpush3.msra.mxu1 %v470_v39  ;;  %4681 = vmatprep.mubr.f32.mxu1 %v670_v44 }
 0x10b   :  { %v656_v48 = vmul.f32 0.1, %v570_v43  ;;  %v585_v49 = vadd.f32 %v4633_v47, %v5206_v23  ;;  %4682 = vmatmul.mubr.f32.vlgmr.msra.gmra.mxu1 %v671_v45  ;;  %vm640_vm2 = vcmp.ge.f32.partialorder %v570_v43, 0.0  ;;  %v673_v55 = vsel %vm641_vm3, %v575_v41, %v657_v46 }
 0x10c   :  { %v579_v50 = vpop.f32.mrf.mxu0 }
 0x10d   :  { %v580_v51 = vadd.f32 %v5206_v23, %v579_v50  ;;  %v672_v52 = vsel %vm640_vm2, %v570_v43, %v656_v48  ;;  %v659_v53 = vmul.f32 0.1, %v585_v49  ;;  %vm643_vm5 = vcmp.ge.f32.partialorder %v585_v49, 0.0 }
 0x10e   :  { %v4636_v54 = vpop.f32.mrf.mxu0  ;;  %4684 = vmatprep.mubr.f32.mxu1 %v672_v52 }
 0x10f   :  { %v658_v56 = vmul.f32 0.1, %v580_v51  ;;  %v595_v57 = vadd.f32 %v4636_v54, %v5206_v23  ;;  %4685 = vmatmul.mubr.f32.gmra.mxu1 %v673_v55  ;;  %vm642_vm4 = vcmp.ge.f32.partialorder %v580_v51, 0.0  ;;  %v675_v63 = vsel %vm643_vm5, %v585_v49, %v659_v53 }
 0x110   :  { %v589_v58 = vpop.f32.mrf.mxu0 }
 0x111   :  { %v590_v59 = vadd.f32 %v5206_v23, %v589_v58  ;;  %v674_v60 = vsel %vm642_vm4, %v580_v51, %v658_v56  ;;  %v661_v61 = vmul.f32 0.1, %v595_v57  ;;  %vm645_vm7 = vcmp.ge.f32.partialorder %v595_v57, 0.0 }
 0x112   :  { %v4639_v62 = vpop.f32.mrf.mxu0  ;;  %4687 = vmatprep.mubr.f32.mxu1 %v674_v60 }
 0x113   :  { %v660_v0 = vmul.f32 0.1, %v590_v59  ;;  %v605_v1 = vadd.f32 %v4639_v62, %v5206_v23  ;;  %4688 = vmatmul.mubr.f32.gmra.mxu1 %v675_v63  ;;  %vm644_vm6 = vcmp.ge.f32.partialorder %v590_v59, 0.0  ;;  %v677_v7 = vsel %vm645_vm7, %v595_v57, %v661_v61  ;;  %v5287_v63 = vld [vmem:[%s6895_s9] ss:$0 sm:$0xff] }
 0x114   :  { %v599_v2 = vpop.f32.mrf.mxu0 }
 0x115   :  { %v600_v3 = vadd.f32 %v5206_v23, %v599_v2  ;;  %v676_v4 = vsel %vm644_vm6, %v590_v59, %v660_v0  ;;  %v663_v5 = vmul.f32 0.1, %v605_v1  ;;  %vm647_vm9 = vcmp.ge.f32.partialorder %v605_v1, 0.0 }
 0x116   :  { %v4642_v6 = vpop.f32.mrf.mxu0  ;;  %4690 = vmatprep.mubr.f32.mxu1 %v676_v4 }
 0x117   :  { %v662_v8 = vmul.f32 0.1, %v600_v3  ;;  %v615_v9 = vadd.f32 %v4642_v6, %v5206_v23  ;;  %4691 = vmatmul.mubr.f32.gmra.mxu1 %v677_v7  ;;  %vm646_vm8 = vcmp.ge.f32.partialorder %v600_v3, 0.0  ;;  %v679_v15 = vsel %vm647_vm9, %v605_v1, %v663_v5 }
 0x118   :  { %v609_v10 = vpop.f32.mrf.mxu0 }
 0x119   :  { %v610_v11 = vadd.f32 %v5206_v23, %v609_v10  ;;  %v678_v12 = vsel %vm646_vm8, %v600_v3, %v662_v8  ;;  %v665_v13 = vmul.f32 0.1, %v615_v9  ;;  %vm649_vm11 = vcmp.ge.f32.partialorder %v615_v9, 0.0 }
 0x11a   :  { %v4645_v14 = vpop.f32.mrf.mxu0  ;;  %4693 = vmatprep.mubr.f32.mxu1 %v678_v12 }
 0x11b   :  { %v664_v16 = vmul.f32 0.1, %v610_v11  ;;  %v625_v18 = vadd.f32 %v4645_v14, %v5206_v23  ;;  %4694 = vmatmul.mubr.f32.gmra.mxu1 %v679_v15  ;;  %vm648_vm10 = vcmp.ge.f32.partialorder %v610_v11, 0.0  ;;  %v681_v25 = vsel %vm649_vm11, %v615_v9, %v665_v13 }
 0x11c   :  { %v619_v19 = vpop.f32.mrf.mxu0 }
 0x11d   :  { %v620_v20 = vadd.f32 %v5206_v23, %v619_v19  ;;  %v680_v21 = vsel %vm648_vm10, %v610_v11, %v664_v16  ;;  %v667_v22 = vmul.f32 0.1, %v625_v18  ;;  %vm651_vm13 = vcmp.ge.f32.partialorder %v625_v18, 0.0 }
 0x11e   :  { %v4648_v24 = vpop.f32.mrf.mxu0  ;;  %4696 = vmatprep.mubr.f32.mxu1 %v680_v21 }
 0x11f   :  { %v666_v26 = vmul.f32 0.1, %v620_v20  ;;  %v635_v27 = vadd.f32 %v4648_v24, %v5206_v23  ;;  %4697 = vmatmul.mubr.f32.gmra.mxu1 %v681_v25  ;;  %vm650_vm12 = vcmp.ge.f32.partialorder %v620_v20, 0.0  ;;  %v683_v32 = vsel %vm651_vm13, %v625_v18, %v667_v22 }
 0x120   :  { %v629_v28 = vpop.f32.mrf.mxu0 }
 0x121   :  { %v630_v29 = vadd.f32 %v5206_v23, %v629_v28  ;;  %v682_v30 = vsel %vm650_vm12, %v620_v20, %v666_v26  ;;  %v669_v31 = vmul.f32 0.1, %v635_v27  ;;  %vm653_vm15 = vcmp.ge.f32.partialorder %v635_v27, 0.0  ;;  %v5246_v23 = vld [vmem:[%s6894_s5] ss:$0 sm:$0xff] }
 0x122   :  { %4699 = vmatprep.mubr.f32.mxu1 %v682_v30 }
 0x123   :  { %v668_v33 = vmul.f32 0.1, %v630_v29  ;;  %4700 = vmatmul.mubr.f32.gmra.mxu1 %v683_v32  ;;  %vm652_vm14 = vcmp.ge.f32.partialorder %v630_v29, 0.0  ;;  %v685_v34 = vsel %vm653_vm15, %v635_v27, %v669_v31 }
 0x125   :  { %v684_v17 = vsel %vm652_vm14, %v630_v29, %v668_v33  ;;  %v4841_v33 = vmov 683565275  }
 0x126   :  { %4702 = vmatprep.mubr.f32.mxu1 %v684_v17 }
 0x127   :  { %4703 = vmatmul.mubr.f32.gmra.mxu1 %v685_v34  ;;  %v6904_v34 = vmov 2475754826  }
 0x1ab   :  { %v5237_v35 = vpop.f32.mrf.mxu1 }
 0x1ad   :  { %v5239_v36 = vpop.f32.mrf.mxu1 }
 0x1af   :  { %v5241_v37 = vpop.f32.mrf.mxu1 }
 0x1b1   :  { %v368_v38 = vpop.f32.mrf.mxu1 }
 0x1b2   :  { %v5249_v39 = vadd.f32 %v5246_v23, %v368_v38 }
 0x1b3   :  { %v4577_v40 = vpop.f32.mrf.mxu1 }
 0x1b4   :  { %v5252_v41 = vadd.f32 %v4577_v40, %v5246_v23  ;;  %v6900_v40 = vmov 2131351028  }
 0x1b5   :  { %v378_v42 = vpop.f32.mrf.mxu1 }
 0x1b6   :  { %v5255_v43 = vadd.f32 %v5246_v23, %v378_v42 }
 0x1b7   :  { %v4580_v44 = vpop.f32.mrf.mxu1 }
 0x1b8   :  { %v5258_v45 = vadd.f32 %v4580_v44, %v5246_v23  ;;  %v4844_v44 = vmov 2102212464  }
 0x1b9   :  { %v388_v46 = vpop.f32.mrf.mxu1 }
 0x1ba   :  { %v5261_v47 = vadd.f32 %v5246_v23, %v388_v46 }
 0x1bb   :  { %v4583_v48 = vpop.f32.mrf.mxu1 }
 0x1bc   :  { %v5264_v49 = vadd.f32 %v4583_v48, %v5246_v23  ;;  %v4845_v48 = vmov 920167782  }
 0x1bd   :  { %v398_v50 = vpop.f32.mrf.mxu1 }
 0x1be   :  { %v5267_v51 = vadd.f32 %v5246_v23, %v398_v50 }
 0x1bf   :  { %v4586_v52 = vpop.f32.mrf.mxu1 }
 0x1c0   :  { %v5270_v53 = vadd.f32 %v4586_v52, %v5246_v23 }
 0x1c1   :  { %v408_v54 = vpop.f32.mrf.mxu1 }
 0x1c2   :  { %v5273_v55 = vadd.f32 %v5246_v23, %v408_v54 }
 0x1c3   :  { %v4589_v56 = vpop.f32.mrf.mxu1 }
 0x1c4   :  { %v5276_v57 = vadd.f32 %v4589_v56, %v5246_v23 }
 0x1c5   :  { %v418_v58 = vpop.f32.mrf.mxu1 }
 0x1c6   :  { %v5279_v59 = vadd.f32 %v5246_v23, %v418_v58 }
 0x1c7   :  { %v4592_v60 = vpop.f32.mrf.mxu1 }
 0x1c8   :  { %v5282_v61 = vadd.f32 %v4592_v60, %v5246_v23 }
 0x1c9   :  { %v428_v62 = vpop.f32.mrf.mxu1 }
 0x1ca   :  { %v5290_v0 = vadd.f32 %v5246_v23, %v428_v62  ;;  %v6902_v62 = vmov 1326507024  }
 0x1cb   :  { %v4683_v1 = vpop.f32.mrf.mxu1 }
 0x1cc   :  { %6908 = vst [vmem:[#allocation2_spill] sm:$0xff] %v5290_v0  ;;  %v5293_v2 = vadd.f32 %v4683_v1, %v5287_v63 }
 0x1cd   :  { %v758_v3 = vpop.f32.mrf.mxu1 }
 0x1ce   :  { %v940_v4 = vand.u32 2147483647, %v5293_v2  ;;  %v943_v5 = vand.u32 2139095040, %v5293_v2  ;;  %v5298_v6 = vadd.f32 %v5287_v63, %v758_v3  ;;  %vm942_vm14 = vcmp.lt.s32.totalorder %v5293_v2, 0 }
 0x1cf   :  { %v4686_v7 = vpop.f32.mrf.mxu1 }
 0x1d0   :  { %v944_v8 = vshrl.u32 %v943_v5, 23  ;;  %v5301_v9 = vadd.f32 %v4686_v7, %v5287_v63  ;;  %v947_v10 = vand.u32 8388607, %v940_v4  ;;  %v6906_v11 = vand.u32 2147483647, %v5298_v6 }
 0x1d1   :  { %v840_v12 = vand.u32 2139095040, %v5298_v6  ;;  %vm5387_vm13 = vcmp.le.f32.partialorder %v940_v4, 0.7853982 }
 0x1d2   :  { %v4229_v13 = vadd.s32 4294967169, %v944_v8  ;;  %v844_v15 = vand.u32 8388607, %v6906_v11  ;;  %v1149_v16 = vand.u32 2139095040, %v5301_v9  ;;  %v948_v19 = vor.u32 8388608, %v947_v10 }
 0x1d3   :  { %v841_v14 = vshrl.u32 %v840_v12, 23  ;;  %v6899_v30 = vand.u32 2147483647, %v5301_v9 }
 0x1d4   :  { %v950_v18 = vadd.s32 1, %v4229_v13  ;;  %v845_v21 = vor.u32 8388608, %v844_v15  ;;  %v1150_v22 = vshrl.u32 %v1149_v16, 23  ;;  %v5310_v28 = vshll.u32 %v948_v19, 8 }
 0x1d5   :  { %v4225_v20 = vadd.s32 4294967169, %v841_v14 }
 0x1d6   :  { %vm951_vm0 = vcmp.gt.s32.totalorder %v950_v18, 0  ;;  %v5312_v29 = vshll.u32 %v845_v21, 8  ;;  %v4237_v31 = vadd.s32 4294967169, %v1150_v22 }
 0x1d7   :  { %v952_v24 = vsel %vm951_vm0, %v950_v18, 0  ;;  %v847_v25 = vadd.s32 1, %v4225_v20 }
 0x1d8   :  { %v953_v26 = vshrl.u32 %v952_v24, 5  ;;  %v954_v27 = vand.u32 31, %v952_v24 }
 0x1d9   :  { %vm848_vm1 = vcmp.gt.s32.totalorder %v847_v25, 0 }
 0x1da   :  { %v955_v32 = vsub.s32 32, %v954_v27  ;;  %v957_v17 = vshll.u32 %v4841_v33, %v954_v27  ;;  %v960_v38 = vshll.u32 %v6904_v34, %v954_v27  ;;  %v963_v42 = vshll.u32 %v6900_v40, %v954_v27 }
 0x1db   :  { %v966_v46 = vshll.u32 %v4844_v44, %v954_v27  ;;  %v969_v50 = vshll.u32 %v4845_v48, %v954_v27  ;;  %vm972_vm2 = vcmp.lt.s32.totalorder %v953_v26, 1  ;;  %vm973_vm3 = vcmp.lt.s32.totalorder %v953_v26, 2 }
 0x1dc   :  { %v958_v52 = vshrl.u32 %v6904_v34, %v955_v32  ;;  %v961_v54 = vshrl.u32 %v6900_v40, %v955_v32  ;;  %v964_v56 = vshrl.u32 %v4844_v44, %v955_v32  ;;  %v956_v58 = vshrl.u32 %v4841_v33, %v955_v32 }
 0x1dd   :  { %v967_v60 = vshrl.u32 %v4845_v48, %v955_v32  ;;  %v970_v1 = vshrl.u32 %v6902_v62, %v955_v32  ;;  %vm974_vm4 = vcmp.lt.s32.totalorder %v953_v26, 3  ;;  %v849_v8 = vsel %vm848_vm1, %v847_v25, 0 }
 0x1de   :  { %v959_v3 = vor.u32 %v958_v52, %v957_v17  ;;  %v962_v5 = vor.u32 %v961_v54, %v960_v38  ;;  %v965_v7 = vor.u32 %v964_v56, %v963_v42  ;;  %vm975_vm5 = vcmp.lt.s32.totalorder %v953_v26, 4 }
 0x1df   :  { %v968_v10 = vor.u32 %v967_v60, %v966_v46  ;;  %v971_v12 = vor.u32 %v970_v1, %v969_v50  ;;  %v851_v13 = vand.u32 31, %v849_v8  ;;  %v1156_v32 = vadd.s32 1, %v4237_v31 }
 0x1e0   :  { %v976_v14 = vsel %vm972_vm2, %v956_v58, %v959_v3  ;;  %v977_v15 = vsel %vm975_vm5, %v965_v7, 2102212464  ;;  %v980_v16 = vsel %vm972_vm2, %v959_v3, %v962_v5  ;;  %v984_v18 = vsel %vm972_vm2, %v962_v5, %v965_v7 }
 0x1e1   :  { %v978_v19 = vsel %vm974_vm4, %v962_v5, %v977_v15  ;;  %v981_v20 = vsel %vm975_vm5, %v968_v10, 920167782  ;;  %v985_v21 = vsel %vm975_vm5, %v971_v12, 1326507024  ;;  %v852_v22 = vsub.s32 32, %v851_v13 }
 0x1e2   :  { %v979_v24 = vsel %vm973_vm3, %v976_v14, %v978_v19  ;;  %v982_v25 = vsel %vm974_vm4, %v965_v7, %v981_v20  ;;  %v986_v27 = vsel %vm974_vm4, %v968_v10, %v985_v21  ;;  %v850_v42 = vshrl.u32 %v849_v8, 5 }
 0x1e3   :  { %v983_v17 = vsel %vm973_vm3, %v980_v16, %v982_v25  ;;  %v987_v38 = vsel %vm973_vm3, %v984_v18, %v986_v27  ;;  %v854_v46 = vshll.u32 %v4841_v33, %v851_v13  ;;  %v995_v58 = vmul.u32 %v5310_v28, %v979_v24 }
 0x1e4   :  { %v5338_v50 = vmul.u32.u64.low %v5310_v28, %v987_v38  ;;  %v5339_v52 = vmul.u32.u64.high %v5310_v28, %v987_v38, %v5338_v50  ;;  %v5342_v54 = vmul.u32.u64.low %v5310_v28, %v983_v17  ;;  %v5343_v56 = vmul.u32.u64.high %v5310_v28, %v983_v17, %v5342_v54 }
 0x1e5   :  { %v855_v31 = vshrl.u32 %v6904_v34, %v852_v22  ;;  %v857_v60 = vshll.u32 %v6904_v34, %v851_v13  ;;  %v858_v26 = vshrl.u32 %v6900_v40, %v852_v22  ;;  %v860_v1 = vshll.u32 %v6900_v40, %v851_v13 }
 0x1e6   :  { %v861_v3 = vshrl.u32 %v4844_v44, %v852_v22  ;;  %v863_v5 = vshll.u32 %v4844_v44, %v851_v13  ;;  %v864_v7 = vshrl.u32 %v4845_v48, %v852_v22  ;;  %v866_v12 = vshll.u32 %v4845_v48, %v851_v13 }
 0x1e7   :  { %v856_v8 = vor.u32 %v855_v31, %v854_v46  ;;  %v859_v10 = vor.u32 %v858_v26, %v857_v60  ;;  %v867_v28 = vshrl.u32 %v6902_v62, %v852_v22  ;;  %vm997_vm6 = vc.u32 %v5339_v52, %v5342_v54 }
 0x1e8   :  { %v998_v14 = vadd.s32 1, %v5343_v56  ;;  %v853_v15 = vshrl.u32 %v4841_v33, %v852_v22  ;;  %v862_v16 = vor.u32 %v861_v3, %v860_v1  ;;  %v865_v18 = vor.u32 %v864_v7, %v863_v5 }
 0x1e9   :  { %v868_v19 = vor.u32 %v867_v28, %v866_v12  ;;  %vm869_vm7 = vcmp.lt.s32.totalorder %v850_v42, 1  ;;  %vm870_vm8 = vcmp.lt.s32.totalorder %v850_v42, 2  ;;  %vm871_vm9 = vcmp.lt.s32.totalorder %v850_v42, 3 }
 0x1ea   :  { %v999_v20 = vsel %vm997_vm6, %v998_v14, %v5343_v56  ;;  %vm872_vm10 = vcmp.lt.s32.totalorder %v850_v42, 4  ;;  %v877_v21 = vsel %vm869_vm7, %v856_v8, %v859_v10  ;;  %v881_v27 = vsel %vm869_vm7, %v859_v10, %v862_v16 }
 0x1eb   :  { %v1000_v13 = vadd.s32 %v999_v20, %v995_v58  ;;  %v874_v24 = vsel %vm872_vm10, %v862_v16, 2102212464  ;;  %v878_v25 = vsel %vm872_vm10, %v865_v18, 920167782  ;;  %v873_v17 = vsel %vm869_vm7, %v853_v15, %v856_v8  ;;  %v768_v58 = vpop.f32.mrf.mxu1 }
 0x1ec   :  { %v879_v38 = vsel %vm871_vm9, %v862_v16, %v878_v25  ;;  %v882_v46 = vsel %vm872_vm10, %v868_v19, 1326507024  ;;  %vm1157_vm11 = vcmp.gt.s32.totalorder %v1156_v32, 0  ;;  %v875_v22 = vsel %vm871_vm9, %v859_v10, %v874_v24 }
 0x1ed   :  { %v1001_v50 = vadd.s32 536870912, %v1000_v13  ;;  %v880_v31 = vsel %vm870_vm8, %v877_v21, %v879_v38  ;;  %v883_v60 = vsel %vm871_vm9, %v865_v18, %v882_v46  ;;  %v1158_v8 = vsel %vm1157_vm11, %v1156_v32, 0 }
 0x1ee   :  { %v884_v26 = vsel %vm870_vm8, %v881_v27, %v883_v60  ;;  %v5364_v56 = vmul.u32.u64.low %v5312_v29, %v880_v31  ;;  %v5365_v1 = vmul.u32.u64.high %v5312_v29, %v880_v31, %v5364_v56  ;;  %v876_v12 = vsel %vm870_vm8, %v873_v17, %v875_v22  ;;  %v4689_v27 = vpop.f32.mrf.mxu1 }
 0x1ef   :  { %v1002_v3 = vshrl.u32 %v1001_v50, 30  ;;  %v5369_v5 = vmul.u32.u64.low %v5312_v29, %v884_v26  ;;  %v5370_v7 = vmul.u32.u64.high %v5312_v29, %v884_v26, %v5369_v5  ;;  %v1153_v10 = vand.u32 8388607, %v6899_v30 }
 0x1f0   :  { %v1160_v14 = vand.u32 31, %v1158_v8  ;;  %v5376_v15 = vadd.f32 %v5287_v63, %v768_v58  ;;  %v895_v16 = vadd.s32 1, %v5365_v1  ;;  %v892_v19 = vmul.u32 %v5312_v29, %v876_v12 }
 0x1f1   :  { %v1003_v28 = vshll.u32 %v1002_v3, 30  ;;  %vm894_vm12 = vc.u32 %v5370_v7, %v5364_v56  ;;  %v1154_v42 = vor.u32 8388608, %v1153_v10  ;;  %v1026_v17 = vsub.s32 4, %v1002_v3 }
 0x1f2   :  { %v896_v32 = vsel %vm894_vm12, %v895_v16, %v5365_v1  ;;  %v1161_v24 = vsub.s32 32, %v1160_v14  ;;  %v1046_v25 = vand.u32 2139095040, %v5376_v15  ;;  %v6898_v38 = vand.u32 2147483647, %v5376_v15 }
 0x1f3   :  { %v1004_v18 = vsub.s32 %v1000_v13, %v1003_v28  ;;  %v897_v21 = vadd.s32 %v896_v32, %v892_v19  ;;  %v996_v46 = vadd.s32 %v5342_v54, %v5339_v52  ;;  %v5394_v22 = vshll.u32 %v1154_v42, 8 }
 0x1f4   :  { %v5397_v31 = vadd.f32 %v4689_v27, %v5287_v63  ;;  %v5399_v26 = vshrl.u32 %v1158_v8, 5  ;;  %v1164_v4 = vshrl.u32 %v6904_v34, %v1161_v24  ;;  %v5402_v1 = vshrl.u32 %v1046_v25, 23 }
 0x1f5   :  { %v1006_v20 = vsub.s32 0, %v1004_v18  ;;  %v898_v50 = vadd.s32 536870912, %v897_v21  ;;  %v1027_v58 = vsel %vm942_vm14, %v1026_v17, %v1002_v3  ;;  %v1170_v52 = vshrl.u32 %v4844_v44, %v1161_v24 }
 0x1f6   :  { %v5411_v54 = vand.u32 8388607, %v6898_v38  ;;  %v1163_v10 = vshll.u32 %v4841_v33, %v1160_v14  ;;  %v1167_v8 = vshrl.u32 %v6900_v40, %v1161_v24  ;;  %v1173_v28 = vshrl.u32 %v4845_v48, %v1161_v24 }
 0x1f7   :  { %v4230_v29 = vmin.u32 %v1006_v20, %v1004_v18  ;;  %v5406_v5 = vshrl.u32 %v898_v50, 30  ;;  %v1166_v19 = vshll.u32 %v6904_v34, %v1160_v14  ;;  %v1169_v3 = vshll.u32 %v6900_v40, %v1160_v14 }
 0x1f8   :  { %v1176_v32 = vshrl.u32 %v6902_v62, %v1161_v24  ;;  %v5422_v42 = vsel %vm5387_vm13, 0, %v1027_v58  ;;  %v1165_v20 = vor.u32 %v1164_v4, %v1163_v10  ;;  %v1172_v25 = vshll.u32 %v4844_v44, %v1160_v14 }
 0x1f9   :  { %v1008_v60 = vclz %v4230_v29  ;;  %v900_v16 = vshll.u32 %v5406_v5, 30  ;;  %v1171_v29 = vor.u32 %v1170_v52, %v1169_v3  ;;  %v1175_v50 = vshll.u32 %v4845_v48, %v1160_v14 }
 0x1fa   :  { %v1168_v30 = vor.u32 %v1167_v8, %v1166_v19  ;;  %v1174_v40 = vor.u32 %v1173_v28, %v1172_v25  ;;  %v1162_v34 = vshrl.u32 %v4841_v33, %v1161_v24  ;;  %vm1178_vm0 = vcmp.lt.s32.totalorder %v5399_v26, 1 }
 0x1fb   :  { %v4231_v12 = vadd.s32 4294967294, %v1008_v60  ;;  %v5425_v17 = vsub.s32 %v897_v21, %v900_v16  ;;  %v1177_v11 = vor.u32 %v1176_v32, %v1175_v50  ;;  %vm839_vm1 = vcmp.lt.s32.totalorder %v5298_v6, 0 }
 0x1fc   :  { %vm1181_vm2 = vcmp.lt.s32.totalorder %v5399_v26, 4  ;;  %v923_v21 = vsub.s32 4, %v5406_v5  ;;  %vm1180_vm3 = vcmp.lt.s32.totalorder %v5399_v26, 3  ;;  %v1186_v24 = vsel %vm1178_vm0, %v1165_v20, %v1168_v30 }
 0x1fd   :  { %vm4232_vm15 = vcmp.lt.s32.totalorder %v4231_v12, 0  ;;  %v903_v62 = vsub.s32 0, %v5425_v17  ;;  %v1183_v52 = vsel %vm1181_vm2, %v1171_v29, 2102212464  ;;  %v1187_v28 = vsel %vm1181_vm2, %v1174_v40, 920167782 }
 0x1fe   :  { %v1011_v27 = vsel %vm4232_vm15, 0, %v4231_v12  ;;  %v1190_v16 = vsel %vm1178_vm0, %v1168_v30, %v1171_v29  ;;  %v1191_v19 = vsel %vm1181_vm2, %v1177_v11, 1326507024  ;;  %vm1179_vm5 = vcmp.lt.s32.totalorder %v5399_v26, 2 }
 0x1ff   :  { %v1012_v60 = vsub.s32 32, %v1011_v27  ;;  %v1016_v38 = vsub.s32 4294967266, %v1011_v27  ;;  %v1013_v4 = vshll.u32 %v1004_v18, %v1011_v27  ;;  %v4226_v14 = vmin.u32 %v903_v62, %v5425_v17 }
 0x200   :  { %v6911_v18 = vand.u32 2147483647, %v5298_v6  ;;  %v1188_v62 = vsel %vm1180_vm3, %v1171_v29, %v1187_v28  ;;  %v1182_v32 = vsel %vm1178_vm0, %v1162_v34, %v1165_v20  ;;  %v1184_v25 = vsel %vm1180_vm3, %v1168_v30, %v1183_v52 }
 0x201   :  { %v1014_v58 = vshrl.u32 %v996_v46, %v1012_v60  ;;  %v1017_v10 = vadd.s32 127, %v1016_v38  ;;  %v905_v46 = vclz %v4226_v14  ;;  %v1189_v60 = vsel %vm1179_vm5, %v1186_v24, %v1188_v62 }
 0x202   :  { %vm5440_vm4 = vcmp.le.f32.partialorder %v6911_v18, 0.7853982  ;;  %v5456_v29 = vmul.u32.u64.low %v5394_v22, %v1189_v60  ;;  %v5457_v11 = vmul.u32.u64.high %v5394_v22, %v1189_v60, %v5456_v29  ;;  %v1185_v14 = vsel %vm1179_vm5, %v1182_v32, %v1184_v25 }
 0x203   :  { %v1015_v12 = vor.u32 %v1014_v58, %v1013_v4  ;;  %v1018_v8 = vshll.u32 %v1017_v10, 23  ;;  %v4227_v50 = vadd.s32 4294967294, %v905_v46  ;;  %v1192_v4 = vsel %vm1180_vm3, %v1174_v40, %v1191_v19 }
 0x204   :  { %v1193_v10 = vsel %vm1179_vm5, %v1190_v16, %v1192_v4  ;;  %v893_v30 = vadd.s32 %v5364_v56, %v5370_v7  ;;  %v4233_v26 = vadd.s32 4294967169, %v5402_v1  ;;  %v2714_v40 = vadd.s32 3, %v5422_v42 }
 0x205   :  { %v1019_v3 = vor.u32 4788187, %v1018_v8  ;;  %v1022_v27 = vcvt.s32.f32 %v1015_v12  ;;  %vm4228_vm6 = vcmp.lt.s32.totalorder %v4227_v50, 0  ;;  %v924_v28 = vsel %vm839_vm1, %v923_v21, %v5406_v5 }
 0x206   :  { %v5460_v8 = vmul.u32.u64.low %v5394_v22, %v1193_v10  ;;  %v5461_v34 = vmul.u32.u64.high %v5394_v22, %v1193_v10, %v5460_v8  ;;  %v908_v52 = vsel %vm4228_vm6, 0, %v4227_v50  ;;  %v1201_v46 = vmul.u32 %v5394_v22, %v1185_v14 }
 0x207   :  { %v1020_v58 = vand.u32 2147483647, %v1019_v3  ;;  %v909_v12 = vsub.s32 32, %v908_v52  ;;  %v913_v24 = vsub.s32 4294967266, %v908_v52  ;;  %v1204_v62 = vadd.s32 1, %v5457_v11 }
 0x208   :  { %v1053_v16 = vadd.s32 1, %v4233_v26  ;;  %v910_v19 = vshll.u32 %v5425_v17, %v908_v52  ;;  %vm1203_vm7 = vc.u32 %v5461_v34, %v5456_v29  ;;  %v926_v3 = vsel %vm5440_vm4, 0, %v924_v28 }
 0x209   :  { %v1023_v20 = vmul.f32 %v1022_v27, %v1020_v58  ;;  %v911_v56 = vshrl.u32 %v893_v30, %v909_v12  ;;  %v914_v7 = vadd.s32 127, %v913_v24  ;;  %v1205_v5 = vsel %vm1203_vm7, %v1204_v62, %v5457_v11 }
 0x20a   :  { %vm1054_vm8 = vcmp.gt.s32.totalorder %v1053_v16, 0  ;;  %v1206_v17 = vadd.s32 %v1205_v5, %v1201_v46  ;;  %v5483_v27 = vand.u32 3, %v5422_v42  ;;  %v5485_v4 = vand.u32 3, %v2714_v40 }
 0x20b   :  { %v1024_v18 = vxor.u32 2147483648, %v1023_v20  ;;  %v912_v21 = vor.u32 %v911_v56, %v910_v19  ;;  %v915_v32 = vshll.u32 %v914_v7, 23  ;;  %v1055_v25 = vsel %vm1054_vm8, %v1053_v16, 0 }
 0x20c   :  { %v1207_v60 = vadd.s32 536870912, %v1206_v17  ;;  %v2610_v58 = vadd.s32 3, %v926_v3  ;;  %v1051_v10 = vor.u32 8388608, %v5411_v54  ;;  %v1057_v11 = vand.u32 31, %v1055_v25 }
 0x20d   :  { %v1025_v1 = vsel %vm942_vm14, %v1024_v18, %v1023_v20  ;;  %v916_v50 = vor.u32 4788187, %v915_v32  ;;  %v919_v13 = vcvt.s32.f32 %v912_v21  ;;  %v1355_v20 = vand.u32 2139095040, %v5397_v31 }
 0x20e   :  { %v1028_v22 = vsel %vm5387_vm13, %v5293_v2, %v1025_v1  ;;  %v1208_v8 = vshrl.u32 %v1207_v60, 30  ;;  %v5491_v30 = vadd.f32 %v5237_v35, %v5246_v23  ;;  %v1058_v52 = vsub.s32 32, %v1057_v11 }
 0x20f   :  { %4775 = vcosq.f32 %v1028_v22  ;;  %v917_v14 = vand.u32 2147483647, %v916_v50  ;;  %v5495_v42 = vadd.f32 %v5246_v23, %v5239_v36  ;;  %vm1148_vm9 = vcmp.lt.s32.totalorder %v5301_v9, 0 }
 0x210   :  { %4777 = vsinq.f32 %v1028_v22  ;;  %v1209_v40 = vshll.u32 %v1208_v8, 30  ;;  %v5498_v54 = vand.u32 3, %v926_v3  ;;  %v5500_v12 = vand.u32 3, %v2610_v58 }
 0x211   :  { %v920_v26 = vmul.f32 %v919_v13, %v917_v14  ;;  %v5503_v24 = vadd.s32 %v5456_v29, %v5461_v34  ;;  %v5505_v28 = vshll.u32 %v1051_v10, 8  ;;  %vm1038_vm10 = vcmp.eq.s32.totalorder %v5483_v27, 2 }
 0x212   :  { %vm2720_vm11 = vcmp.eq.s32.totalorder %v5485_v4, 2  ;;  %v5509_v36 = vsub.s32 %v1206_v17, %v1209_v40  ;;  %v5511_v18 = vshrl.u32 %v1055_v25, 5  ;;  %v5513_v46 = vshrl.u32 %v1355_v20, 23 }
 0x213   :  { %v921_v35 = vxor.u32 2147483648, %v920_v26  ;;  %vm1035_vm12 = vcmp.eq.s32.totalorder %v5483_v27, 0  ;;  %vm2717_vm13 = vcmp.eq.s32.totalorder %v5485_v4, 0  ;;  %v1232_v62 = vsub.s32 4, %v1208_v8 }
 0x214   :  { %v1060_v29 = vshll.u32 %v4841_v33, %v1057_v11  ;;  %v6914_v34 = vmov 2475754826   ;;  %v1067_v19 = vshrl.u32 %v4844_v44, %v1058_v52  ;;  %vm1034_vm14 = vcmp.lt.s32.totalorder %v5483_v27, 2 }
 0x215   :  { %v1061_v16 = vshrl.u32 %v6914_v34, %v1058_v52  ;;  %vm2716_vm15 = vcmp.lt.s32.totalorder %v5485_v4, 2  ;;  %v922_v56 = vsel %vm839_vm1, %v921_v35, %v920_v26  ;;  %v1212_v7 = vsub.s32 0, %v5509_v36 }
 0x216   :  { %v6915_v1 = vmov 2131351028   ;;  %v1070_v5 = vshrl.u32 %v4845_v48, %v1058_v52  ;;  %vm1032_vm0 = vweird.f32 %v5293_v2  ;;  %v925_v22 = vsel %vm5440_vm4, %v5298_v6, %v922_v56 }
 0x217   :  { %v1064_v3 = vshrl.u32 %v6915_v1, %v1058_v52  ;;  %v1063_v21 = vshll.u32 %v6914_v34, %v1057_v11  ;;  %v1066_v32 = vshll.u32 %v6915_v1, %v1057_v11  ;;  %v6916_v17 = vmov 1326507024  }
 0x218   :  { %v1073_v25 = vshrl.u32 %v6916_v17, %v1058_v52  ;;  %4779 = vcosq.f32 %v925_v22  ;;  %v4238_v50 = vmin.u32 %v1212_v7, %v5509_v36  ;;  %v1059_v60 = vshrl.u32 %v4841_v33, %v1058_v52 }
 0x219   :  { %v1069_v58 = vshll.u32 %v4844_v44, %v1057_v11  ;;  %4781 = vsinq.f32 %v925_v22  ;;  %v1062_v10 = vor.u32 %v1061_v16, %v1060_v29  ;;  %v1068_v14 = vor.u32 %v1067_v19, %v1066_v32 }
 0x21a   :  { %v1072_v13 = vshll.u32 %v4845_v48, %v1057_v11  ;;  %v1214_v20 = vclz %v4238_v50  ;;  %v5540_v26 = vsel %vm1148_vm9, %v1232_v62, %v1208_v8  ;;  %v1065_v40 = vor.u32 %v1064_v3, %v1063_v21 }
 0x21b   :  { %v1071_v35 = vor.u32 %v1070_v5, %v1069_v58  ;;  %vm1075_vm1 = vcmp.lt.s32.totalorder %v5511_v18, 1  ;;  %vm1076_vm2 = vcmp.lt.s32.totalorder %v5511_v18, 2  ;;  %vm1077_vm3 = vcmp.lt.s32.totalorder %v5511_v18, 3 }
 0x21c   :  { %v4776_v38 = vpop.eup %4775  ;;  %v1074_v7 = vor.u32 %v1073_v25, %v1072_v13  ;;  %v4239_v29 = vadd.s32 4294967294, %v1214_v20  ;;  %vm1078_vm4 = vcmp.lt.s32.totalorder %v5511_v18, 4  ;;  %v1079_v62 = vsel %vm1075_vm1, %v1059_v60, %v1062_v10 }
 0x21d   :  { %v4778_v56 = vpop.eup %4777  ;;  %v1039_v0 = vxor.u32 2147483648, %v4776_v38  ;;  %v1080_v16 = vsel %vm1078_vm4, %v1068_v14, 2102212464  ;;  %v6917_v5 = vand.u32 2147483647, %v5301_v9  ;;  %vm935_vm7 = vcmp.eq.s32.totalorder %v5498_v54, 2 }
 0x21e   :  { %v1036_v52 = vxor.u32 2147483648, %v4778_v56  ;;  %vm4240_vm6 = vcmp.lt.s32.totalorder %v4239_v29, 0  ;;  %v1081_v50 = vsel %vm1077_vm3, %v1065_v40, %v1080_v16  ;;  %vm932_vm8 = vcmp.eq.s32.totalorder %v5498_v54, 0 }
 0x21f   :  { %v1040_v11 = vsel %vm1038_vm10, %v1039_v0, %v4778_v56  ;;  %v2722_v8 = vsel %vm2720_vm11, %v1039_v0, %v4778_v56  ;;  %vm5560_vm5 = vcmp.le.f32.partialorder %v6917_v5, 0.7853982  ;;  %v1083_v0 = vsel %vm1075_vm1, %v1062_v10, %v1065_v40 }
 0x220   :  { %v1037_v19 = vsel %vm1035_vm12, %v4776_v38, %v1036_v52  ;;  %v2719_v3 = vsel %vm2717_vm13, %v4776_v38, %v1036_v52  ;;  %v1217_v25 = vsel %vm4240_vm6, 0, %v4239_v29  ;;  %vm931_vm10 = vcmp.lt.s32.totalorder %v5498_v54, 2 }
 0x221   :  { %v1041_v21 = vsel %vm1034_vm14, %v1037_v19, %v1040_v11  ;;  %v2723_v32 = vsel %vm2716_vm15, %v2719_v3, %v2722_v8  ;;  %v1218_v10 = vsub.s32 32, %v1217_v25  ;;  %v1219_v27 = vshll.u32 %v5509_v36, %v1217_v25 }
 0x222   :  { %v1042_v60 = vsel %vm1032_vm0, nan, %v1041_v21  ;;  %v2724_v58 = vsel %vm1032_vm0, nan, %v2723_v32  ;;  %vm2612_vm11 = vcmp.lt.s32.totalorder %v5500_v12, 2  ;;  %v1222_v38 = vsub.s32 4294967266, %v1217_v25 }
 0x223   :  { %v2486_v4 = vmul.f32 %v1042_v60, %v5491_v30  ;;  %v4182_v13 = vmul.f32 %v2724_v58, %v5491_v30  ;;  %v1084_v20 = vsel %vm1078_vm4, %v1071_v35, 920167782  ;;  %vm929_vm12 = vweird.f32 %v5298_v6 }
 0x224   :  { %v1220_v2 = vshrl.u32 %v5503_v24, %v1218_v10  ;;  %v1085_v56 = vsel %vm1077_vm3, %v1068_v14, %v1084_v20  ;;  %v1087_v36 = vsel %vm1075_vm1, %v1065_v40, %v1068_v14  ;;  %v1088_v30 = vsel %vm1078_vm4, %v1074_v7, 1326507024 }
 0x225   :  { %2502 = vst [vmem:[%s6896_s10 + $0x8] sm:$0xff] %v2486_v4  ;;  %4198 = vst [vmem:[%s6897_s11 + $0x8] sm:$0xff] %v4182_v13  ;;  %v1223_v52 = vadd.s32 127, %v1222_v38  ;;  %v1082_v24 = vsel %vm1076_vm2, %v1079_v62, %v1081_v50  ;;  %v1086_v29 = vsel %vm1076_vm2, %v1083_v0, %v1085_v56  ;;  %v1089_v14 = vsel %vm1077_vm3, %v1071_v35, %v1088_v30  ;;  %v4780_v16 = vpop.eup %4779 }
 0x226   :  { %v1221_v40 = vor.u32 %v1220_v2, %v1219_v27  ;;  %v1090_v7 = vsel %vm1076_vm2, %v1087_v36, %v1089_v14  ;;  %v5608_v11 = vmul.u32.u64.low %v5505_v28, %v1086_v29  ;;  %v5609_v8 = vmul.u32.u64.high %v5505_v28, %v1086_v29, %v5608_v11  ;;  %v4782_v0 = vpop.eup %4781 }
 0x227   :  { %v1224_v19 = vshll.u32 %v1223_v52, 23  ;;  %v5613_v3 = vmul.u32.u64.low %v5505_v28, %v1090_v7  ;;  %v5614_v62 = vmul.u32.u64.high %v5505_v28, %v1090_v7, %v5613_v3  ;;  %v4245_v5 = vadd.s32 4294967169, %v5513_v46 }
 0x228   :  { %v936_v21 = vxor.u32 2147483648, %v4780_v16  ;;  %vm2613_vm13 = vcmp.eq.s32.totalorder %v5500_v12, 0  ;;  %vm2616_vm14 = vcmp.eq.s32.totalorder %v5500_v12, 2  ;;  %v1352_v18 = vand.u32 2147483647, %v5397_v31 }
 0x229   :  { %v933_v35 = vxor.u32 2147483648, %v4782_v0  ;;  %v1225_v32 = vor.u32 4788187, %v1224_v19  ;;  %v1235_v25 = vsel %vm5560_vm5, 0, %v5540_v26  ;;  %v1362_v50 = vadd.s32 1, %v4245_v5 }
 0x22a   :  { %v937_v60 = vsel %vm935_vm7, %v936_v21, %v4782_v0  ;;  %v2618_v58 = vsel %vm2616_vm14, %v936_v21, %v4782_v0  ;;  %v1098_v46 = vmul.u32 %v5505_v28, %v1082_v24  ;;  %v1101_v10 = vadd.s32 1, %v5609_v8 }
 0x22b   :  { %v934_v27 = vsel %vm932_vm8, %v4780_v16, %v933_v35  ;;  %v2615_v4 = vsel %vm2613_vm13, %v4780_v16, %v933_v35  ;;  %v1226_v13 = vand.u32 2147483647, %v1225_v32  ;;  %v1228_v38 = vcvt.s32.f32 %v1221_v40  ;;  %v778_v40 = vpop.f32.mrf.mxu1 }
 0x22c   :  { %v938_v20 = vsel %vm931_vm10, %v934_v27, %v937_v60  ;;  %v2619_v26 = vsel %vm2612_vm11, %v2615_v4, %v2618_v58  ;;  %vm1100_vm15 = vc.u32 %v5614_v62, %v5608_v11  ;;  %vm1363_vm0 = vcmp.gt.s32.totalorder %v1362_v50, 0 }
 0x22d   :  { %v939_v28 = vsel %vm929_vm12, nan, %v938_v20  ;;  %v2620_v2 = vsel %vm929_vm12, nan, %v2619_v26  ;;  %v1229_v56 = vmul.f32 %v1228_v38, %v1226_v13  ;;  %v1102_v36 = vsel %vm1100_vm15, %v1101_v10, %v5609_v8 }
 0x22e   :  { %v2485_v30 = vmul.f32 %v939_v28, %v5495_v42  ;;  %v4181_v54 = vmul.f32 %v2620_v2, %v5495_v42  ;;  %v1103_v52 = vadd.s32 %v1102_v36, %v1098_v46  ;;  %v1364_v12 = vsel %vm1363_vm0, %v1362_v50, 0 }
 0x22f   :  { %v1230_v24 = vxor.u32 2147483648, %v1229_v56  ;;  %v2922_v29 = vadd.s32 3, %v1235_v25  ;;  %v1366_v14 = vand.u32 31, %v1364_v12  ;;  %v1359_v42 = vand.u32 8388607, %v1352_v18 }
 0x230   :  { %2501 = vst [vmem:[%s6896_s10] sm:$0xff] %v2485_v30  ;;  %4197 = vst [vmem:[%s6897_s11] sm:$0xff] %v4181_v54  ;;  %v1104_v6 = vadd.s32 536870912, %v1103_v52  ;;  %v5655_v19 = vand.u32 3, %v1235_v25  ;;  %v5660_v5 = vadd.f32 %v5287_v63, %v778_v40  ;;  %v1365_v10 = vshrl.u32 %v1364_v12, 5 }
 0x231   :  { %v1231_v7 = vsel %vm1148_vm9, %v1230_v24, %v1229_v56  ;;  %v1367_v8 = vsub.s32 32, %v1366_v14  ;;  %v5662_v0 = vand.u32 3, %v2922_v29  ;;  %v1369_v22 = vshll.u32 %v4841_v33, %v1366_v14 }
 0x232   :  { %v1234_v16 = vsel %vm5560_vm5, %v5301_v9, %v1231_v7  ;;  %v5657_v3 = vshrl.u32 %v1104_v6, 30  ;;  %v1372_v50 = vshll.u32 %v6914_v34, %v1366_v14  ;;  %v1375_v60 = vshll.u32 %v6915_v1, %v1366_v14 }
 0x233   :  { %4783 = vcosq.f32 %v1234_v16  ;;  %v1370_v21 = vshrl.u32 %v6914_v34, %v1367_v8  ;;  %v1373_v35 = vshrl.u32 %v6915_v1, %v1367_v8  ;;  %v1376_v25 = vshrl.u32 %v4844_v44, %v1367_v8 }
 0x234   :  { %4785 = vsinq.f32 %v1234_v16  ;;  %v1106_v32 = vshll.u32 %v5657_v3, 30  ;;  %v1378_v63 = vshll.u32 %v4844_v44, %v1366_v14  ;;  %v1379_v58 = vshrl.u32 %v4845_v48, %v1367_v8 }
 0x235   :  { %v1381_v27 = vshll.u32 %v4845_v48, %v1366_v14  ;;  %v1382_v4 = vshrl.u32 %v6916_v17, %v1367_v8  ;;  %v1371_v13 = vor.u32 %v1370_v21, %v1369_v22  ;;  %v1374_v38 = vor.u32 %v1373_v35, %v1372_v50 }
 0x236   :  { %v5673_v46 = vsub.s32 %v1103_v52, %v1106_v32  ;;  %v1377_v20 = vor.u32 %v1376_v25, %v1375_v60  ;;  %v1380_v26 = vor.u32 %v1379_v58, %v1378_v63  ;;  %v5679_v28 = vadd.f32 %v5241_v37, %v5246_v23 }
 0x237   :  { %vm1045_vm9 = vcmp.lt.s32.totalorder %v5376_v15, 0  ;;  %v1383_v56 = vor.u32 %v1382_v4, %v1381_v27  ;;  %v1360_v36 = vor.u32 8388608, %v1359_v42  ;;  %v1368_v30 = vshrl.u32 %v4841_v33, %v1367_v8 }
 0x238   :  { %v1109_v2 = vsub.s32 0, %v5673_v46  ;;  %v1249_v54 = vand.u32 2147483647, %v5660_v5  ;;  %v1252_v52 = vand.u32 2139095040, %v5660_v5  ;;  %vm1244_vm1 = vcmp.eq.s32.totalorder %v5655_v19, 2 }
 0x239   :  { %vm2928_vm2 = vcmp.eq.s32.totalorder %v5662_v0, 2  ;;  %v1129_v37 = vsub.s32 4, %v5657_v3  ;;  %vm1384_vm3 = vcmp.lt.s32.totalorder %v1365_v10, 1  ;;  %vm1387_vm4 = vcmp.lt.s32.totalorder %v1365_v10, 4 }
 0x23a   :  { %v4234_v12 = vmin.u32 %v1109_v2, %v5673_v46  ;;  %vm1241_vm5 = vcmp.eq.s32.totalorder %v5655_v19, 0  ;;  %vm2925_vm6 = vcmp.eq.s32.totalorder %v5662_v0, 0  ;;  %vm1386_vm7 = vcmp.lt.s32.totalorder %v1365_v10, 3 }
 0x23b   :  { %v1389_v23 = vsel %vm1387_vm4, %v1377_v20, 2102212464  ;;  %v1392_v24 = vsel %vm1384_vm3, %v1371_v13, %v1374_v38  ;;  %v1393_v29 = vsel %vm1387_vm4, %v1380_v26, 920167782  ;;  %vm1240_vm8 = vcmp.lt.s32.totalorder %v5655_v19, 2 }
 0x23c   :  { %vm2924_vm10 = vcmp.lt.s32.totalorder %v5662_v0, 2  ;;  %v1111_v14 = vclz %v4234_v12  ;;  %v1394_v40 = vsel %vm1386_vm7, %v1377_v20, %v1393_v29  ;;  %v1396_v6 = vsel %vm1384_vm3, %v1374_v38, %v1377_v20 }
 0x23d   :  { %v1397_v7 = vsel %vm1387_vm4, %v1383_v56, 1326507024  ;;  %vm1238_vm11 = vweird.f32 %v5301_v9  ;;  %v1099_v42 = vadd.s32 %v5608_v11, %v5614_v62  ;;  %vm1385_vm12 = vcmp.lt.s32.totalorder %v1365_v10, 2 }
 0x23e   :  { %v1388_v8 = vsel %vm1384_vm3, %v1368_v30, %v1371_v13  ;;  %v1400_v16 = vshll.u32 %v1360_v36, 8  ;;  %v4235_v21 = vadd.s32 4294967294, %v1111_v14  ;;  %v1390_v35 = vsel %vm1386_vm7, %v1374_v38, %v1389_v23 }
 0x23f   :  { %v1395_v32 = vsel %vm1385_vm12, %v1392_v24, %v1394_v40  ;;  %v1398_v22 = vsel %vm1386_vm7, %v1380_v26, %v1397_v7  ;;  %v1253_v63 = vshrl.u32 %v1252_v52, 23  ;;  %v1130_v11 = vsel %vm1045_vm9, %v1129_v37, %v5657_v3 }
 0x240   :  { %v1399_v25 = vsel %vm1385_vm12, %v1396_v6, %v1398_v22  ;;  %v5705_v50 = vmul.u32.u64.low %v1400_v16, %v1395_v32  ;;  %v5706_v60 = vmul.u32.u64.high %v1400_v16, %v1395_v32, %v5705_v50  ;;  %v4784_v58 = vpop.eup %4783  ;;  %vm4236_vm13 = vcmp.lt.s32.totalorder %v4235_v21, 0 }
 0x241   :  { %v5712_v62 = vmul.u32.u64.low %v1400_v16, %v1399_v25  ;;  %v5713_v27 = vmul.u32.u64.high %v1400_v16, %v1399_v25, %v5712_v62  ;;  %v4786_v4 = vpop.eup %4785  ;;  %v1245_v13 = vxor.u32 2147483648, %v4784_v58  ;;  %v1114_v38 = vsel %vm4236_vm13, 0, %v4235_v21 }
 0x242   :  { %v1391_v20 = vsel %vm1385_vm12, %v1388_v8, %v1390_v35  ;;  %v4241_v26 = vadd.s32 4294967169, %v1253_v63  ;;  %v1242_v2 = vxor.u32 2147483648, %v4786_v4  ;;  %v1115_v56 = vsub.s32 32, %v1114_v38 }
 0x243   :  { %v1116_v36 = vshll.u32 %v5673_v46, %v1114_v38  ;;  %v1119_v30 = vsub.s32 4294967266, %v1114_v38  ;;  %v1246_v52 = vsel %vm1244_vm1, %v1245_v13, %v4786_v4  ;;  %v2930_v3 = vsel %vm2928_vm2, %v1245_v13, %v4786_v4  ;;  %v4692_v4 = vpop.f32.mrf.mxu1 }
 0x244   :  { %v1410_v12 = vadd.s32 1, %v5706_v60  ;;  %v1259_v37 = vadd.s32 1, %v4241_v26  ;;  %v1243_v23 = vsel %vm1241_vm5, %v4784_v58, %v1242_v2  ;;  %v2927_v10 = vsel %vm2925_vm6, %v4784_v58, %v1242_v2 }
 0x245   :  { %v1117_v24 = vshrl.u32 %v1099_v42, %v1115_v56  ;;  %v1120_v29 = vadd.s32 127, %v1119_v30  ;;  %v1247_v46 = vsel %vm1240_vm8, %v1243_v23, %v1246_v52  ;;  %v2931_v14 = vsel %vm2924_vm10, %v2927_v10, %v2930_v3 }
 0x246   :  { %v1407_v40 = vmul.u32 %v1400_v16, %v1391_v20  ;;  %vm1409_vm14 = vc.u32 %v5713_v27, %v5705_v50  ;;  %v1248_v6 = vsel %vm1238_vm11, nan, %v1247_v46  ;;  %v2932_v7 = vsel %vm1238_vm11, nan, %v2931_v14 }
 0x247   :  { %v1118_v8 = vor.u32 %v1117_v24, %v1116_v36  ;;  %v1121_v21 = vshll.u32 %v1120_v29, 23  ;;  %v2488_v42 = vmul.f32 %v1248_v6, %v5679_v28  ;;  %v4184_v19 = vmul.f32 %v2932_v7, %v5679_v28 }
 0x248   :  { %v1411_v35 = vsel %vm1409_vm14, %v1410_v12, %v5706_v60  ;;  %vm1260_vm15 = vcmp.gt.s32.totalorder %v1259_v37, 0  ;;  %v6920_v0 = vand.u32 2147483647, %v5376_v15  ;;  %v1256_v28 = vand.u32 8388607, %v1249_v54 }
 0x249   :  { %v1122_v32 = vor.u32 4788187, %v1121_v21  ;;  %v1412_v22 = vadd.s32 %v1411_v35, %v1407_v40  ;;  %v1261_v25 = vsel %vm1260_vm15, %v1259_v37, 0  ;;  %2504 = vst [vmem:[%s6896_s10 + $0x18] sm:$0xff] %v2488_v42  ;;  %4200 = vst [vmem:[%s6897_s11 + $0x18] sm:$0xff] %v4184_v19  ;;  %v1125_v58 = vcvt.s32.f32 %v1118_v8 }
 0x24a   :  { %vm5741_vm0 = vcmp.le.f32.partialorder %v6920_v0, 0.7853982  ;;  %v1263_v60 = vand.u32 31, %v1261_v25  ;;  %v1257_v2 = vor.u32 8388608, %v1256_v28  ;;  %v1262_v23 = vshrl.u32 %v1261_v25, 5 }
 0x24b   :  { %v1132_v9 = vsel %vm5741_vm0, 0, %v1130_v11  ;;  %v1123_v63 = vand.u32 2147483647, %v1122_v32  ;;  %v1413_v62 = vadd.s32 536870912, %v1412_v22  ;;  %v5762_v11 = vld [vmem:[%s6895_s9] ss:$0 sm:$0xff]  ;;  %vm1135_vm11 = vweird.f32 %v5376_v15 }
 0x24c   :  { %v1264_v13 = vsub.s32 32, %v1263_v60  ;;  %v2818_v20 = vadd.s32 3, %v1132_v9  ;;  %v5765_v30 = vadd.f32 %v5762_v11, %v4692_v4  ;;  %v1266_v10 = vshll.u32 %v4841_v33, %v1263_v60 }
 0x24d   :  { %v1126_v38 = vmul.f32 %v1125_v58, %v1123_v63  ;;  %v5755_v26 = vshrl.u32 %v1413_v62, 30  ;;  %v1269_v24 = vshll.u32 %v6914_v34, %v1263_v60  ;;  %v1272_v29 = vshll.u32 %v6915_v1, %v1263_v60 }
 0x24e   :  { %v1267_v56 = vshrl.u32 %v6914_v34, %v1264_v13  ;;  %v1270_v36 = vshrl.u32 %v6915_v1, %v1264_v13  ;;  %v1273_v12 = vshrl.u32 %v4844_v44, %v1264_v13  ;;  %v1276_v37 = vshrl.u32 %v4845_v48, %v1264_v13 }
 0x24f   :  { %v1127_v52 = vxor.u32 2147483648, %v1126_v38  ;;  %v1415_v3 = vshll.u32 %v5755_v26, 30  ;;  %v1275_v40 = vshll.u32 %v4844_v44, %v1263_v60  ;;  %v1279_v6 = vshrl.u32 %v6916_v17, %v1264_v13 }
 0x250   :  { %v1268_v8 = vor.u32 %v1267_v56, %v1266_v10  ;;  %v1271_v21 = vor.u32 %v1270_v36, %v1269_v24  ;;  %v1278_v42 = vshll.u32 %v4845_v48, %v1263_v60  ;;  %v1274_v35 = vor.u32 %v1273_v12, %v1272_v29 }
 0x251   :  { %v1128_v46 = vsel %vm1045_vm9, %v1127_v52, %v1126_v38  ;;  %v5775_v14 = vsub.s32 %v1412_v22, %v1415_v3  ;;  %v1277_v0 = vor.u32 %v1276_v37, %v1275_v40  ;;  %v5784_v32 = vand.u32 3, %v1132_v9 }
 0x252   :  { %v1131_v7 = vsel %vm5741_vm0, %v5376_v15, %v1128_v46  ;;  %v5786_v22 = vand.u32 3, %v2818_v20  ;;  %v1280_v28 = vor.u32 %v1279_v6, %v1278_v42  ;;  %v1297_v63 = vshll.u32 %v1257_v2, 8 }
 0x253   :  { %4787 = vcosq.f32 %v1131_v7  ;;  %v1418_v19 = vsub.s32 0, %v5775_v14  ;;  %v1265_v16 = vshrl.u32 %v4841_v33, %v1264_v13  ;;  %vm1281_vm9 = vcmp.lt.s32.totalorder %v1262_v23, 1 }
 0x254   :  { %4789 = vsinq.f32 %v1131_v7  ;;  %vm1284_vm1 = vcmp.lt.s32.totalorder %v1262_v23, 4  ;;  %v1561_v60 = vand.u32 2139095040, %v5765_v30  ;;  %vm1354_vm2 = vcmp.lt.s32.totalorder %v5397_v31, 0 }
 0x255   :  { %v4246_v25 = vmin.u32 %v1418_v19, %v5775_v14  ;;  %v1286_v62 = vsel %vm1284_vm1, %v1274_v35, 2102212464  ;;  %v1289_v4 = vsel %vm1281_vm9, %v1268_v8, %v1271_v21  ;;  %v1290_v38 = vsel %vm1284_vm1, %v1277_v0, 920167782 }
 0x256   :  { %v1438_v9 = vsub.s32 4, %v5755_v26  ;;  %vm1282_vm3 = vcmp.lt.s32.totalorder %v1262_v23, 2  ;;  %vm1283_vm4 = vcmp.lt.s32.totalorder %v1262_v23, 3  ;;  %v1293_v20 = vsel %vm1281_vm9, %v1271_v21, %v1274_v35 }
 0x257   :  { %v1420_v58 = vclz %v4246_v25  ;;  %v1285_v36 = vsel %vm1281_vm9, %v1265_v16, %v1268_v8  ;;  %v1291_v2 = vsel %vm1283_vm4, %v1274_v35, %v1290_v38  ;;  %v1294_v52 = vsel %vm1284_vm1, %v1280_v28, 1326507024 }
 0x258   :  { %vm1141_vm5 = vcmp.eq.s32.totalorder %v5784_v32, 2  ;;  %vm5796_vm6 = vcmp.le.f32.partialorder %v1352_v18, 0.7853982  ;;  %v1287_v3 = vsel %vm1283_vm4, %v1271_v21, %v1286_v62  ;;  %v1292_v12 = vsel %vm1282_vm3, %v1289_v4, %v1291_v2 }
 0x259   :  { %v4247_v56 = vadd.s32 4294967294, %v1420_v58  ;;  %v1295_v37 = vsel %vm1283_vm4, %v1277_v0, %v1294_v52  ;;  %v1562_v10 = vshrl.u32 %v1561_v60, 23  ;;  %vm1138_vm7 = vcmp.eq.s32.totalorder %v5784_v32, 0 }
 0x25a   :  { %v1296_v24 = vsel %vm1282_vm3, %v1293_v20, %v1295_v37  ;;  %v5803_v29 = vmul.u32.u64.low %v1297_v63, %v1292_v12  ;;  %v5804_v46 = vmul.u32.u64.high %v1297_v63, %v1292_v12, %v5803_v29  ;;  %vm1137_vm10 = vcmp.lt.s32.totalorder %v5784_v32, 2 }
 0x25b   :  { %vm4248_vm8 = vcmp.lt.s32.totalorder %v4247_v56, 0  ;;  %v5808_v40 = vmul.u32.u64.low %v1297_v63, %v1296_v24  ;;  %v5809_v6 = vmul.u32.u64.high %v1297_v63, %v1296_v24, %v5808_v40  ;;  %v4253_v7 = vadd.s32 4294967169, %v1562_v10 }
 0x25c   :  { %v1423_v18 = vsel %vm4248_vm8, 0, %v4247_v56  ;;  %v1408_v8 = vadd.s32 %v5705_v50, %v5713_v27  ;;  %v1288_v19 = vsel %vm1282_vm3, %v1285_v36, %v1287_v3  ;;  %vm2820_vm12 = vcmp.lt.s32.totalorder %v5786_v22, 2 }
 0x25d   :  { %v1424_v21 = vsub.s32 32, %v1423_v18  ;;  %v1428_v42 = vsub.s32 4294967266, %v1423_v18  ;;  %vm2821_vm13 = vcmp.eq.s32.totalorder %v5786_v22, 0  ;;  %vm2824_vm14 = vcmp.eq.s32.totalorder %v5786_v22, 2 }
 0x25e   :  { %v1568_v35 = vadd.s32 1, %v4253_v7  ;;  %v1425_v0 = vshll.u32 %v5775_v14, %v1423_v18  ;;  %v1307_v16 = vadd.s32 1, %v5804_v46  ;;  %v1439_v50 = vsel %vm1354_vm2, %v1438_v9, %v5755_v26 }
 0x25f   :  { %v1426_v25 = vshrl.u32 %v1408_v8, %v1424_v21  ;;  %v1429_v28 = vadd.s32 127, %v1428_v42  ;;  %v1304_v27 = vmul.u32 %v1297_v63, %v1288_v19  ;;  %vm1306_vm15 = vc.u32 %v5809_v6, %v5803_v29 }
 0x260   :  { %v4788_v60 = vpop.eup %4787  ;;  %vm1569_vm0 = vcmp.gt.s32.totalorder %v1568_v35, 0  ;;  %v1308_v14 = vsel %vm1306_vm15, %v1307_v16, %v5804_v46  ;;  %v1558_v56 = vand.u32 2147483647, %v5765_v30  ;;  %v1441_v9 = vsel %vm5796_vm6, 0, %v1439_v50 }
 0x261   :  { %v4790_v23 = vpop.eup %4789  ;;  %v1142_v58 = vxor.u32 2147483648, %v4788_v60  ;;  %v1427_v62 = vor.u32 %v1426_v25, %v1425_v0  ;;  %v1430_v4 = vshll.u32 %v1429_v28, 23  ;;  %v1309_v20 = vadd.s32 %v1308_v14, %v1304_v27 }
 0x262   :  { %v1139_v38 = vxor.u32 2147483648, %v4790_v23  ;;  %v1570_v36 = vsel %vm1569_vm0, %v1568_v35, 0  ;;  %v1565_v21 = vand.u32 8388607, %v1558_v56  ;;  %v5858_v0 = vand.u32 3, %v1441_v9 }
 0x263   :  { %v1143_v2 = vsel %vm1141_vm5, %v1142_v58, %v4790_v23  ;;  %v2826_v26 = vsel %vm2824_vm14, %v1142_v58, %v4790_v23  ;;  %v1431_v63 = vor.u32 4788187, %v1430_v4  ;;  %v1434_v12 = vcvt.s32.f32 %v1427_v62  ;;  %v788_v58 = vpop.f32.mrf.mxu1 }
 0x264   :  { %v1140_v52 = vsel %vm1138_vm7, %v4788_v60, %v1139_v38  ;;  %v2823_v3 = vsel %vm2821_vm13, %v4788_v60, %v1139_v38  ;;  %v1310_v37 = vadd.s32 536870912, %v1309_v20  ;;  %v1572_v18 = vand.u32 31, %v1570_v36 }
 0x265   :  { %v1144_v10 = vsel %vm1137_vm10, %v1140_v52, %v1143_v2  ;;  %v2827_v24 = vsel %vm2820_vm12, %v2823_v3, %v2826_v26  ;;  %v1432_v46 = vand.u32 2147483647, %v1431_v63  ;;  %v3130_v25 = vadd.s32 3, %v1441_v9 }
 0x266   :  { %v1145_v40 = vsel %vm1135_vm11, nan, %v1144_v10  ;;  %v2828_v7 = vsel %vm1135_vm11, nan, %v2827_v24  ;;  %v5845_v8 = vshrl.u32 %v1310_v37, 30  ;;  %v1573_v22 = vsub.s32 32, %v1572_v18 }
 0x267   :  { %v2487_v42 = vmul.f32 %v1145_v40, %v5249_v39  ;;  %v4183_v32 = vmul.f32 %v2828_v7, %v5249_v39  ;;  %v1435_v19 = vmul.f32 %v1434_v12, %v1432_v46  ;;  %v1566_v16 = vor.u32 8388608, %v1565_v21 }
 0x268   :  { %v1312_v35 = vshll.u32 %v5845_v8, 30  ;;  %v5862_v39 = vshrl.u32 %v1570_v36, 5  ;;  %v1576_v50 = vshrl.u32 %v6914_v34, %v1573_v22  ;;  %v1579_v27 = vshrl.u32 %v6915_v1, %v1573_v22 }
 0x269   :  { %2503 = vst [vmem:[%s6896_s10 + $0x10] sm:$0xff] %v2487_v42  ;;  %4199 = vst [vmem:[%s6897_s11 + $0x10] sm:$0xff] %v4183_v32  ;;  %v1436_v15 = vxor.u32 2147483648, %v1435_v19  ;;  %v1582_v23 = vshrl.u32 %v4844_v44, %v1573_v22  ;;  %v1575_v14 = vshll.u32 %v4841_v33, %v1572_v18  ;;  %v1578_v38 = vshll.u32 %v6914_v34, %v1572_v18 }
 0x26a   :  { %v5860_v28 = vsub.s32 %v1309_v20, %v1312_v35  ;;  %v1581_v20 = vshll.u32 %v6915_v1, %v1572_v18  ;;  %v1584_v36 = vshll.u32 %v4844_v44, %v1572_v18  ;;  %v1585_v2 = vshrl.u32 %v4845_v48, %v1573_v22 }
 0x26b   :  { %v1437_v60 = vsel %vm1354_vm2, %v1436_v15, %v1435_v19  ;;  %v5878_v26 = vand.u32 3, %v3130_v25  ;;  %v5882_v13 = vadd.f32 %v5762_v11, %v788_v58  ;;  %v1577_v9 = vor.u32 %v1576_v50, %v1575_v14 }
 0x26c   :  { %v1440_v62 = vsel %vm5796_vm6, %v5397_v31, %v1437_v60  ;;  %v1315_v4 = vsub.s32 0, %v5860_v28  ;;  %v1580_v52 = vor.u32 %v1579_v27, %v1578_v38  ;;  %v1583_v3 = vor.u32 %v1582_v23, %v1581_v20 }
 0x26d   :  { %4791 = vcosq.f32 %v1440_v62  ;;  %v1586_v12 = vor.u32 %v1585_v2, %v1584_v36  ;;  %v1305_v37 = vadd.s32 %v5803_v29, %v5809_v6  ;;  %v1587_v24 = vshll.u32 %v4845_v48, %v1572_v18 }
 0x26e   :  { %4793 = vsinq.f32 %v1440_v62  ;;  %v4242_v63 = vmin.u32 %v1315_v4, %v5860_v28  ;;  %v1588_v46 = vshrl.u32 %v6916_v17, %v1573_v22  ;;  %v1335_v40 = vsub.s32 4, %v5845_v8 }
 0x26f   :  { %v1574_v7 = vshrl.u32 %v4841_v33, %v1573_v22  ;;  %vm1590_vm9 = vcmp.lt.s32.totalorder %v5862_v39, 1  ;;  %v1606_v21 = vshll.u32 %v1566_v16, 8  ;;  %vm1251_vm1 = vcmp.lt.s32.totalorder %v5660_v5, 0 }
 0x270   :  { %v1317_v10 = vclz %v4242_v63  ;;  %v1589_v32 = vor.u32 %v1588_v46, %v1587_v24  ;;  %vm1592_vm2 = vcmp.lt.s32.totalorder %v5862_v39, 3  ;;  %vm1593_vm3 = vcmp.lt.s32.totalorder %v5862_v39, 4 }
 0x271   :  { %v1595_v29 = vsel %vm1593_vm3, %v1583_v3, 2102212464  ;;  %v1598_v6 = vsel %vm1590_vm9, %v1577_v9, %v1580_v52  ;;  %v1599_v18 = vsel %vm1593_vm3, %v1586_v12, 920167782  ;;  %v1602_v19 = vsel %vm1590_vm9, %v1580_v52, %v1583_v3 }
 0x272   :  { %v4243_v42 = vadd.s32 4294967294, %v1317_v10  ;;  %vm1450_vm4 = vcmp.eq.s32.totalorder %v5858_v0, 2  ;;  %vm1591_vm6 = vcmp.lt.s32.totalorder %v5862_v39, 2  ;;  %v1600_v22 = vsel %vm1592_vm2, %v1583_v3, %v1599_v18 }
 0x273   :  { %v1603_v35 = vsel %vm1593_vm3, %v1589_v32, 1326507024  ;;  %vm1447_vm7 = vcmp.eq.s32.totalorder %v5858_v0, 0  ;;  %v1594_v25 = vsel %vm1590_vm9, %v1574_v7, %v1577_v9  ;;  %v1601_v16 = vsel %vm1591_vm6, %v1598_v6, %v1600_v22 }
 0x274   :  { %vm4244_vm5 = vcmp.lt.s32.totalorder %v4243_v42, 0  ;;  %v1604_v60 = vsel %vm1592_vm2, %v1586_v12, %v1603_v35  ;;  %vm1446_vm8 = vcmp.lt.s32.totalorder %v5858_v0, 2  ;;  %vm5912_vm10 = vcmp.le.f32.partialorder %v1249_v54, 0.7853982  ;;  %v4695_v54 = vpop.f32.mrf.mxu1 }
 0x275   :  { %v1320_v15 = vsel %vm4244_vm5, 0, %v4243_v42  ;;  %v1596_v58 = vsel %vm1592_vm2, %v1580_v52, %v1595_v29  ;;  %v1605_v62 = vsel %vm1591_vm6, %v1602_v19, %v1604_v60  ;;  %vm1444_vm11 = vweird.f32 %v5397_v31 }
 0x276   :  { %v1321_v27 = vsub.s32 32, %v1320_v15  ;;  %v1325_v23 = vsub.s32 4294967266, %v1320_v15  ;;  %v5921_v4 = vmul.u32.u64.low %v1606_v21, %v1605_v62  ;;  %v5922_v14 = vmul.u32.u64.high %v1606_v21, %v1605_v62, %v5921_v4 }
 0x277   :  { %v5924_v38 = vmul.u32.u64.low %v1606_v21, %v1601_v16  ;;  %v5925_v20 = vmul.u32.u64.high %v1606_v21, %v1601_v16, %v5924_v38  ;;  %vm3132_vm12 = vcmp.lt.s32.totalorder %v5878_v26, 2  ;;  %v1322_v36 = vshll.u32 %v5860_v28, %v1320_v15 }
 0x278   :  { %v1323_v2 = vshrl.u32 %v1305_v37, %v1321_v27  ;;  %v1326_v63 = vadd.s32 127, %v1325_v23  ;;  %vm3133_vm13 = vcmp.eq.s32.totalorder %v5878_v26, 0  ;;  %vm3136_vm14 = vcmp.eq.s32.totalorder %v5878_v26, 2 }
 0x279   :  { %v1597_v9 = vsel %vm1591_vm6, %v1594_v25, %v1596_v58  ;;  %v1458_v52 = vand.u32 2139095040, %v5882_v13  ;;  %v1455_v24 = vand.u32 2147483647, %v5882_v13  ;;  %v5937_v46 = vadd.f32 %v5762_v11, %v4695_v54 }
 0x27a   :  { %v4792_v3 = vpop.eup %4791  ;;  %v1324_v12 = vor.u32 %v1323_v2, %v1322_v36  ;;  %v1327_v10 = vshll.u32 %v1326_v63, 23  ;;  %v1336_v7 = vsel %vm1251_vm1, %v1335_v40, %v5845_v8  ;;  %vm1615_vm15 = vc.u32 %v5922_v14, %v5924_v38 }
 0x27b   :  { %v4794_v28 = vpop.eup %4793  ;;  %v1451_v37 = vxor.u32 2147483648, %v4792_v3  ;;  %v1616_v39 = vadd.s32 1, %v5925_v20  ;;  %v1613_v29 = vmul.u32 %v1606_v21, %v1597_v9  ;;  %v1459_v6 = vshrl.u32 %v1458_v52, 23 }
 0x27c   :  { %v1448_v42 = vxor.u32 2147483648, %v4794_v28  ;;  %v1328_v32 = vor.u32 4788187, %v1327_v10  ;;  %v1331_v22 = vcvt.s32.f32 %v1324_v12  ;;  %v1338_v60 = vsel %vm5912_vm10, 0, %v1336_v7 }
 0x27d   :  { %v1452_v18 = vsel %vm1450_vm4, %v1451_v37, %v4794_v28  ;;  %v3138_v19 = vsel %vm3136_vm14, %v1451_v37, %v4794_v28  ;;  %v1617_v35 = vsel %vm1615_vm15, %v1616_v39, %v5925_v20  ;;  %v4249_v27 = vadd.s32 4294967169, %v1459_v6 }
 0x27e   :  { %v1449_v8 = vsel %vm1447_vm7, %v4792_v3, %v1448_v42  ;;  %v3135_v40 = vsel %vm3133_vm13, %v4792_v3, %v1448_v42  ;;  %v1329_v15 = vand.u32 2147483647, %v1328_v32  ;;  %v1618_v25 = vadd.s32 %v1617_v35, %v1613_v29 }
 0x27f   :  { %v1453_v21 = vsel %vm1446_vm8, %v1449_v8, %v1452_v18  ;;  %v3139_v16 = vsel %vm3132_vm12, %v3135_v40, %v3138_v19  ;;  %v1462_v26 = vand.u32 8388607, %v1455_v24  ;;  %v1465_v54 = vadd.s32 1, %v4249_v27 }
 0x280   :  { %v1454_v23 = vsel %vm1444_vm11, nan, %v1453_v21  ;;  %v3140_v58 = vsel %vm1444_vm11, nan, %v3139_v16  ;;  %v1332_v62 = vmul.f32 %v1331_v22, %v1329_v15  ;;  %v1619_v4 = vadd.s32 536870912, %v1618_v25 }
 0x281   :  { %v2490_v20 = vmul.f32 %v1454_v23, %v5252_v41  ;;  %v4186_v0 = vmul.f32 %v3140_v58, %v5252_v41  ;;  %vm1466_vm0 = vcmp.gt.s32.totalorder %v1465_v54, 0  ;;  %v1767_v31 = vand.u32 2139095040, %v5937_v46 }
 0x282   :  { %v1333_v36 = vxor.u32 2147483648, %v1332_v62  ;;  %v1620_v2 = vshrl.u32 %v1619_v4, 30  ;;  %v3026_v63 = vadd.s32 3, %v1338_v60  ;;  %v1467_v52 = vsel %vm1466_vm0, %v1465_v54, 0 }
 0x283   :  { %2506 = vst [vmem:[%s6896_s10 + $0x28] sm:$0xff] %v2490_v20  ;;  %4202 = vst [vmem:[%s6897_s11 + $0x28] sm:$0xff] %v4186_v0  ;;  %v1463_v12 = vor.u32 8388608, %v1462_v26  ;;  %v1469_v10 = vand.u32 31, %v1467_v52  ;;  %v1764_v37 = vand.u32 2147483647, %v5937_v46  ;;  %v1614_v50 = vadd.s32 %v5924_v38, %v5922_v14 }
 0x284   :  { %v1334_v41 = vsel %vm1251_vm1, %v1333_v36, %v1332_v62  ;;  %v1621_v9 = vshll.u32 %v1620_v2, 30  ;;  %vm1560_vm9 = vcmp.lt.s32.totalorder %v5765_v30, 0  ;;  %v1768_v39 = vshrl.u32 %v1767_v31, 23 }
 0x285   :  { %v1337_v3 = vsel %vm5912_vm10, %v5660_v5, %v1334_v41  ;;  %v1470_v7 = vsub.s32 32, %v1469_v10  ;;  %v5984_v42 = vand.u32 3, %v1338_v60  ;;  %v5986_v32 = vand.u32 3, %v3026_v63 }
 0x286   :  { %4795 = vcosq.f32 %v1337_v3  ;;  %v5980_v28 = vsub.s32 %v1618_v25, %v1621_v9  ;;  %v1644_v6 = vsub.s32 4, %v1620_v2  ;;  %v5993_v22 = vshll.u32 %v1463_v12, 8 }
 0x287   :  { %4797 = vsinq.f32 %v1337_v3  ;;  %v1473_v18 = vshrl.u32 %v6914_v34, %v1470_v7  ;;  %v1476_v19 = vshrl.u32 %v6915_v1, %v1470_v7  ;;  %v5996_v8 = vshrl.u32 %v1467_v52, 5 }
 0x288   :  { %v1624_v29 = vsub.s32 0, %v5980_v28  ;;  %v1472_v40 = vshll.u32 %v4841_v33, %v1469_v10  ;;  %v6001_v15 = vand.u32 8388607, %v1764_v37  ;;  %v1475_v14 = vshll.u32 %v6914_v34, %v1469_v10 }
 0x289   :  { %v1478_v38 = vshll.u32 %v6915_v1, %v1469_v10  ;;  %v1479_v25 = vshrl.u32 %v4844_v44, %v1470_v7  ;;  %v4261_v21 = vadd.s32 4294967169, %v1768_v39  ;;  %v1481_v27 = vshll.u32 %v4844_v44, %v1469_v10 }
 0x28a   :  { %v4254_v35 = vmin.u32 %v1624_v29, %v5980_v28  ;;  %v1474_v60 = vor.u32 %v1473_v18, %v1472_v40  ;;  %v1482_v23 = vshrl.u32 %v4845_v48, %v1470_v7  ;;  %vm1347_vm1 = vcmp.eq.s32.totalorder %v5984_v42, 2 }
 0x28b   :  { %vm3032_vm2 = vcmp.eq.s32.totalorder %v5986_v32, 2  ;;  %v6012_v58 = vsel %vm1560_vm9, %v1644_v6, %v1620_v2  ;;  %v1471_v62 = vshrl.u32 %v4841_v33, %v1470_v7  ;;  %v1477_v4 = vor.u32 %v1476_v19, %v1475_v14 }
 0x28c   :  { %v1626_v16 = vclz %v4254_v35  ;;  %v1480_v20 = vor.u32 %v1479_v25, %v1478_v38  ;;  %vm1344_vm3 = vcmp.eq.s32.totalorder %v5984_v42, 0  ;;  %vm3029_vm4 = vcmp.eq.s32.totalorder %v5986_v32, 0 }
 0x28d   :  { %v1483_v26 = vor.u32 %v1482_v23, %v1481_v27  ;;  %v1484_v54 = vshll.u32 %v4845_v48, %v1469_v10  ;;  %v1485_v36 = vshrl.u32 %v6916_v17, %v1470_v7  ;;  %vm1343_vm5 = vcmp.lt.s32.totalorder %v5984_v42, 2 }
 0x28e   :  { %v4255_v0 = vadd.s32 4294967294, %v1626_v16  ;;  %vm3028_vm6 = vcmp.lt.s32.totalorder %v5986_v32, 2  ;;  %vm1487_vm7 = vcmp.lt.s32.totalorder %v5996_v8, 1  ;;  %vm1488_vm8 = vcmp.lt.s32.totalorder %v5996_v8, 2 }
 0x28f   :  { %vm1489_vm10 = vcmp.lt.s32.totalorder %v5996_v8, 3  ;;  %vm1490_vm11 = vcmp.lt.s32.totalorder %v5996_v8, 4  ;;  %vm1341_vm12 = vweird.f32 %v5660_v5  ;;  %v1486_v2 = vor.u32 %v1485_v36, %v1484_v54  ;;  %v798_v8 = vpop.f32.mrf.mxu1 }
 0x290   :  { %vm4256_vm13 = vcmp.lt.s32.totalorder %v4255_v0, 0  ;;  %v1491_v31 = vsel %vm1487_vm7, %v1471_v62, %v1474_v60  ;;  %v1492_v41 = vsel %vm1490_vm11, %v1480_v20, 2102212464  ;;  %v1495_v52 = vsel %vm1487_vm7, %v1474_v60, %v1477_v4 }
 0x291   :  { %v1629_v63 = vsel %vm4256_vm13, 0, %v4255_v0  ;;  %v1493_v9 = vsel %vm1489_vm10, %v1477_v4, %v1492_v41  ;;  %v1496_v3 = vsel %vm1490_vm11, %v1483_v26, 920167782  ;;  %v1499_v39 = vsel %vm1487_vm7, %v1477_v4, %v1480_v20 }
 0x292   :  { %v1630_v12 = vsub.s32 32, %v1629_v63  ;;  %v1631_v10 = vshll.u32 %v5980_v28, %v1629_v63  ;;  %v1634_v7 = vsub.s32 4294967266, %v1629_v63  ;;  %v1494_v6 = vsel %vm1488_vm8, %v1491_v31, %v1493_v9 }
 0x293   :  { %v4796_v29 = vpop.eup %4795  ;;  %v1497_v18 = vsel %vm1489_vm10, %v1480_v20, %v1496_v3  ;;  %v1500_v19 = vsel %vm1490_vm11, %v1486_v2, 1326507024  ;;  %v1774_v35 = vadd.s32 1, %v4261_v21  ;;  %vm6087_vm15 = vcmp.le.f32.partialorder %v1558_v56, 0.7853982 }
 0x294   :  { %v4798_v40 = vpop.eup %4797  ;;  %v1348_v14 = vxor.u32 2147483648, %v4796_v29  ;;  %v1632_v38 = vshrl.u32 %v1614_v50, %v1630_v12  ;;  %v1635_v25 = vadd.s32 127, %v1634_v7  ;;  %v1498_v28 = vsel %vm1488_vm8, %v1495_v52, %v1497_v18 }
 0x295   :  { %v1345_v16 = vxor.u32 2147483648, %v4798_v40  ;;  %v1501_v60 = vsel %vm1489_vm10, %v1483_v26, %v1500_v19  ;;  %v6050_v27 = vmul.u32.u64.low %v5993_v22, %v1498_v28  ;;  %v6051_v23 = vmul.u32.u64.high %v5993_v22, %v1498_v28, %v6050_v27 }
 0x296   :  { %v1349_v62 = vsel %vm1347_vm1, %v1348_v14, %v4798_v40  ;;  %v3034_v21 = vsel %vm3032_vm2, %v1348_v14, %v4798_v40  ;;  %v1633_v50 = vor.u32 %v1632_v38, %v1631_v10  ;;  %v1636_v4 = vshll.u32 %v1635_v25, 23 }
 0x297   :  { %v1346_v20 = vsel %vm1344_vm3, %v4796_v29, %v1345_v16  ;;  %v3031_v0 = vsel %vm3029_vm4, %v4796_v29, %v1345_v16  ;;  %v1502_v26 = vsel %vm1488_vm8, %v1499_v39, %v1501_v60  ;;  %vm1775_vm14 = vcmp.gt.s32.totalorder %v1774_v35, 0 }
 0x298   :  { %v1350_v54 = vsel %vm1343_vm5, %v1346_v20, %v1349_v62  ;;  %v3035_v36 = vsel %vm3028_vm6, %v3031_v0, %v3034_v21  ;;  %v1637_v2 = vor.u32 4788187, %v1636_v4  ;;  %v1640_v31 = vcvt.s32.f32 %v1633_v50 }
 0x299   :  { %v1351_v41 = vsel %vm1341_vm12, nan, %v1350_v54  ;;  %v3036_v63 = vsel %vm1341_vm12, nan, %v3035_v36  ;;  %v6073_v9 = vmul.u32.u64.low %v5993_v22, %v1502_v26  ;;  %v6074_v52 = vmul.u32.u64.high %v5993_v22, %v1502_v26, %v6073_v9 }
 0x29a   :  { %v2489_v3 = vmul.f32 %v1351_v41, %v5255_v43  ;;  %v4185_v42 = vmul.f32 %v3036_v63, %v5255_v43  ;;  %v1638_v12 = vand.u32 2147483647, %v1637_v2  ;;  %v1513_v32 = vadd.s32 1, %v6051_v23 }
 0x29b   :  { %v1776_v10 = vsel %vm1775_vm14, %v1774_v35, 0  ;;  %v6092_v39 = vadd.f32 %v5762_v11, %v798_v8  ;;  %v1647_v29 = vsel %vm6087_vm15, 0, %v6012_v58  ;;  %v1510_v18 = vmul.u32 %v5993_v22, %v1494_v6 }
 0x29c   :  { %2505 = vst [vmem:[%s6896_s10 + $0x20] sm:$0xff] %v2489_v3  ;;  %4201 = vst [vmem:[%s6897_s11 + $0x20] sm:$0xff] %v4185_v42  ;;  %v1641_v7 = vmul.f32 %v1640_v31, %v1638_v12  ;;  %v1778_v43 = vand.u32 31, %v1776_v10  ;;  %vm1512_vm0 = vc.u32 %v6074_v52, %v6050_v27  ;;  %v1772_v19 = vor.u32 8388608, %v6001_v15 }
 0x29d   :  { %v1514_v35 = vsel %vm1512_vm0, %v1513_v32, %v6051_v23  ;;  %v1777_v40 = vshrl.u32 %v1776_v10, 5  ;;  %v6115_v50 = vand.u32 3, %v1647_v29  ;;  %v3338_v36 = vadd.s32 3, %v1647_v29 }
 0x29e   :  { %v1642_v56 = vxor.u32 2147483648, %v1641_v7  ;;  %v1779_v14 = vsub.s32 32, %v1778_v43  ;;  %v1515_v38 = vadd.s32 %v1514_v35, %v1510_v18  ;;  %v1781_v25 = vshll.u32 %v4841_v33, %v1778_v43 }
 0x29f   :  { %v1784_v28 = vshll.u32 %v6914_v34, %v1778_v43  ;;  %v1787_v16 = vshll.u32 %v6915_v1, %v1778_v43  ;;  %v1790_v15 = vshll.u32 %v4844_v44, %v1778_v43  ;;  %v1793_v31 = vshll.u32 %v4845_v48, %v1778_v43 }
 0x2a0   :  { %v1643_v22 = vsel %vm1560_vm9, %v1642_v56, %v1641_v7  ;;  %v1782_v58 = vshrl.u32 %v6914_v34, %v1779_v14  ;;  %v1785_v6 = vshrl.u32 %v6915_v1, %v1779_v14  ;;  %v1516_v23 = vadd.s32 536870912, %v1515_v38  ;;  %v4698_v56 = vpop.f32.mrf.mxu1 }
 0x2a1   :  { %v1646_v60 = vsel %vm6087_vm15, %v5765_v30, %v1643_v22  ;;  %v1788_v62 = vshrl.u32 %v4844_v44, %v1779_v14  ;;  %v1791_v21 = vshrl.u32 %v4845_v48, %v1779_v14  ;;  %v1780_v2 = vshrl.u32 %v4841_v33, %v1779_v14 }
 0x2a2   :  { %4799 = vcosq.f32 %v1646_v60  ;;  %v1783_v4 = vor.u32 %v1782_v58, %v1781_v25  ;;  %v1786_v20 = vor.u32 %v1785_v6, %v1784_v28  ;;  %v1517_v0 = vshrl.u32 %v1516_v23, 30 }
 0x2a3   :  { %4801 = vsinq.f32 %v1646_v60  ;;  %v1789_v26 = vor.u32 %v1788_v62, %v1787_v16  ;;  %v1792_v54 = vor.u32 %v1791_v21, %v1790_v15  ;;  %v1794_v41 = vshrl.u32 %v6916_v17, %v1779_v14 }
 0x2a4   :  { %v1518_v63 = vshll.u32 %v1517_v0, 30  ;;  %vm1796_vm9 = vcmp.lt.s32.totalorder %v1777_v40, 1  ;;  %vm1798_vm1 = vcmp.lt.s32.totalorder %v1777_v40, 3  ;;  %vm1799_vm2 = vcmp.lt.s32.totalorder %v1777_v40, 4 }
 0x2a5   :  { %v1795_v9 = vor.u32 %v1794_v41, %v1793_v31  ;;  %v1801_v8 = vsel %vm1799_vm2, %v1789_v26, 2102212464  ;;  %v1804_v3 = vsel %vm1796_vm9, %v1783_v4, %v1786_v20  ;;  %v1805_v42 = vsel %vm1799_vm2, %v1792_v54, 920167782 }
 0x2a6   :  { %vm6125_vm3 = vcmp.le.f32.partialorder %v1455_v24, 0.7853982  ;;  %v6129_v32 = vsub.s32 %v1515_v38, %v1518_v63  ;;  %vm1797_vm4 = vcmp.lt.s32.totalorder %v1777_v40, 2  ;;  %v1806_v10 = vsel %vm1798_vm1, %v1789_v26, %v1805_v42 }
 0x2a7   :  { %v1812_v5 = vshll.u32 %v1772_v19, 8  ;;  %v1541_v7 = vsub.s32 4, %v1517_v0  ;;  %v1800_v43 = vsel %vm1796_vm9, %v1780_v2, %v1783_v4  ;;  %v1807_v29 = vsel %vm1797_vm4, %v1804_v3, %v1806_v10 }
 0x2a8   :  { %v1664_v18 = vand.u32 2139095040, %v6092_v39  ;;  %v1521_v35 = vsub.s32 0, %v6129_v32  ;;  %v1802_v24 = vsel %vm1798_vm1, %v1786_v20, %v1801_v8  ;;  %v1808_v14 = vsel %vm1796_vm9, %v1786_v20, %v1789_v26 }
 0x2a9   :  { %v1809_v38 = vsel %vm1799_vm2, %v1795_v9, 1326507024  ;;  %v3339_v25 = vand.u32 3, %v3338_v36  ;;  %v6140_v19 = vmul.u32.u64.low %v1812_v5, %v1807_v29  ;;  %v6141_v16 = vmul.u32.u64.high %v1812_v5, %v1807_v29, %v6140_v19 }
 0x2aa   :  { %v1810_v28 = vsel %vm1798_vm1, %v1792_v54, %v1809_v38  ;;  %vm1652_vm5 = vcmp.lt.s32.totalorder %v6115_v50, 2  ;;  %vm1457_vm6 = vcmp.lt.s32.totalorder %v5882_v13, 0  ;;  %v4250_v22 = vmin.u32 %v1521_v35, %v6129_v32 }
 0x2ab   :  { %v6148_v58 = vadd.f32 %v5762_v11, %v4698_v56  ;;  %vm1650_vm7 = vweird.f32 %v5765_v30  ;;  %v1542_v6 = vsel %vm1457_vm6, %v1541_v7, %v1517_v0  ;;  %v1803_v15 = vsel %vm1797_vm4, %v1800_v43, %v1802_v24 }
 0x2ac   :  { %v1811_v60 = vsel %vm1797_vm4, %v1808_v14, %v1810_v28  ;;  %v1661_v23 = vand.u32 2147483647, %v6092_v39  ;;  %v1523_v62 = vclz %v4250_v22  ;;  %v1665_v20 = vshrl.u32 %v1664_v18, 23 }
 0x2ad   :  { %v6156_v21 = vmul.u32.u64.low %v1812_v5, %v1811_v60  ;;  %v6157_v4 = vmul.u32.u64.high %v1812_v5, %v1811_v60, %v6156_v21  ;;  %vm1653_vm8 = vcmp.eq.s32.totalorder %v6115_v50, 0  ;;  %vm1656_vm10 = vcmp.eq.s32.totalorder %v6115_v50, 2 }
 0x2ae   :  { %vm3340_vm11 = vcmp.lt.s32.totalorder %v3339_v25, 2  ;;  %v1822_v11 = vadd.s32 1, %v6141_v16  ;;  %vm3341_vm12 = vcmp.eq.s32.totalorder %v3339_v25, 0  ;;  %vm3344_vm13 = vcmp.eq.s32.totalorder %v3339_v25, 2 }
 0x2af   :  { %v4800_v26 = vpop.eup %4799  ;;  %v1511_v40 = vadd.s32 %v6050_v27, %v6074_v52  ;;  %v4251_v0 = vadd.s32 4294967294, %v1523_v62  ;;  %v1544_v2 = vsel %vm6125_vm3, 0, %v1542_v6  ;;  %v1819_v31 = vmul.u32 %v1812_v5, %v1803_v15 }
 0x2b0   :  { %v4802_v54 = vpop.eup %4801  ;;  %v1657_v36 = vxor.u32 2147483648, %v4800_v26  ;;  %v1668_v41 = vand.u32 8388607, %v1661_v23  ;;  %vm1821_vm15 = vc.u32 %v6157_v4, %v6140_v19  ;;  %v4257_v9 = vadd.s32 4294967169, %v1665_v20 }
 0x2b1   :  { %v1654_v63 = vxor.u32 2147483648, %v4802_v54  ;;  %vm4252_vm14 = vcmp.lt.s32.totalorder %v4251_v0, 0  ;;  %v1823_v3 = vsel %vm1821_vm15, %v1822_v11, %v6141_v16  ;;  %v3234_v50 = vadd.s32 3, %v1544_v2 }
 0x2b2   :  { %v1658_v8 = vsel %vm1656_vm10, %v1657_v36, %v4802_v54  ;;  %v3346_v27 = vsel %vm3344_vm13, %v1657_v36, %v4802_v54  ;;  %v1526_v52 = vsel %vm4252_vm14, 0, %v4251_v0  ;;  %v1824_v56 = vadd.s32 %v1823_v3, %v1819_v31 }
 0x2b3   :  { %v1655_v42 = vsel %vm1653_vm8, %v4800_v26, %v1654_v63  ;;  %v3343_v10 = vsel %vm3341_vm12, %v4800_v26, %v1654_v63  ;;  %v1527_v5 = vsub.s32 32, %v1526_v52  ;;  %v1528_v7 = vshll.u32 %v6129_v32, %v1526_v52 }
 0x2b4   :  { %v1659_v43 = vsel %vm1652_vm5, %v1655_v42, %v1658_v8  ;;  %v3347_v29 = vsel %vm3340_vm11, %v3343_v10, %v3346_v27  ;;  %v1531_v18 = vsub.s32 4294967266, %v1526_v52  ;;  %v1671_v38 = vadd.s32 1, %v4257_v9 }
 0x2b5   :  { %v1660_v35 = vsel %vm1650_vm7, nan, %v1659_v43  ;;  %v3348_v24 = vsel %vm1650_vm7, nan, %v3347_v29  ;;  %v1529_v14 = vshrl.u32 %v1511_v40, %v1527_v5  ;;  %v1825_v22 = vadd.s32 536870912, %v1824_v56 }
 0x2b6   :  { %v2492_v28 = vmul.f32 %v1660_v35, %v5258_v45  ;;  %v4188_v16 = vmul.f32 %v3348_v24, %v5258_v45  ;;  %v1532_v32 = vadd.s32 127, %v1531_v18  ;;  %vm1672_vm0 = vcmp.gt.s32.totalorder %v1671_v38, 0 }
 0x2b7   :  { %v1530_v30 = vor.u32 %v1529_v14, %v1528_v7  ;;  %v1826_v6 = vshrl.u32 %v1825_v22, 30  ;;  %v1673_v15 = vsel %vm1672_vm0, %v1671_v38, 0  ;;  %v1669_v60 = vor.u32 8388608, %v1668_v41 }
 0x2b8   :  { %2508 = vst [vmem:[%s6896_s10 + $0x38] sm:$0xff] %v2492_v28  ;;  %4204 = vst [vmem:[%s6897_s11 + $0x38] sm:$0xff] %v4188_v16  ;;  %v1533_v25 = vshll.u32 %v1532_v32, 23  ;;  %v1675_v62 = vand.u32 31, %v1673_v15  ;;  %v1973_v45 = vand.u32 2139095040, %v6148_v58  ;;  %v6193_v11 = vand.u32 3, %v1544_v2 }
 0x2b9   :  { %v1827_v20 = vshll.u32 %v1826_v6, 30  ;;  %vm1766_vm9 = vcmp.lt.s32.totalorder %v5937_v46, 0  ;;  %v1537_v0 = vcvt.s32.f32 %v1530_v30  ;;  %v6196_v54 = vand.u32 3, %v3234_v50 }
 0x2ba   :  { %v1534_v21 = vor.u32 4788187, %v1533_v25  ;;  %v1676_v26 = vsub.s32 32, %v1675_v62  ;;  %v6199_v63 = vshll.u32 %v1669_v60, 8  ;;  %v1970_v41 = vand.u32 2147483647, %v6148_v58 }
 0x2bb   :  { %v1828_v36 = vsub.s32 %v1824_v56, %v1827_v20  ;;  %v1974_v9 = vshrl.u32 %v1973_v45, 23  ;;  %v1820_v2 = vadd.s32 %v6140_v19, %v6157_v4  ;;  %v1674_v52 = vshrl.u32 %v1673_v15, 5 }
 0x2bc   :  { %v1535_v40 = vand.u32 2147483647, %v1534_v21  ;;  %v1679_v31 = vshrl.u32 %v6914_v34, %v1676_v26  ;;  %v1678_v3 = vshll.u32 %v4841_v33, %v1675_v62  ;;  %v1682_v42 = vshrl.u32 %v6915_v1, %v1676_v26 }
 0x2bd   :  { %v1830_v27 = vsub.s32 0, %v1828_v36  ;;  %v1685_v10 = vshrl.u32 %v4844_v44, %v1676_v26  ;;  %v1688_v5 = vshrl.u32 %v4845_v48, %v1676_v26  ;;  %v1850_v29 = vsub.s32 4, %v1826_v6 }
 0x2be   :  { %v1538_v8 = vmul.f32 %v1537_v0, %v1535_v40  ;;  %v1684_v18 = vshll.u32 %v6915_v1, %v1675_v62  ;;  %v1680_v56 = vor.u32 %v1679_v31, %v1678_v3  ;;  %v1681_v35 = vshll.u32 %v6914_v34, %v1675_v62 }
 0x2bf   :  { %v4262_v43 = vmin.u32 %v1830_v27, %v1828_v36  ;;  %v1687_v19 = vshll.u32 %v4844_v44, %v1675_v62  ;;  %v4269_v4 = vadd.s32 4294967169, %v1974_v9  ;;  %v1691_v28 = vshrl.u32 %v6916_v17, %v1676_v26 }
 0x2c0   :  { %v1539_v7 = vxor.u32 2147483648, %v1538_v8  ;;  %v1686_v38 = vor.u32 %v1685_v10, %v1684_v18  ;;  %v1683_v32 = vor.u32 %v1682_v42, %v1681_v35  ;;  %v1690_v50 = vshll.u32 %v4845_v48, %v1675_v62 }
 0x2c1   :  { %v1832_v14 = vclz %v4262_v43  ;;  %v1689_v22 = vor.u32 %v1688_v5, %v1687_v19  ;;  %v1851_v25 = vsel %vm1766_vm9, %v1850_v29, %v1826_v6  ;;  %v1677_v15 = vshrl.u32 %v4841_v33, %v1676_v26 }
 0x2c2   :  { %v1540_v24 = vsel %vm1457_vm6, %v1539_v7, %v1538_v8  ;;  %v1692_v60 = vor.u32 %v1691_v28, %v1690_v50  ;;  %vm1693_vm1 = vcmp.lt.s32.totalorder %v1674_v52, 1  ;;  %vm1696_vm2 = vcmp.lt.s32.totalorder %v1674_v52, 4 }
 0x2c3   :  { %v1543_v16 = vsel %vm6125_vm3, %v5882_v13, %v1540_v24  ;;  %v4263_v30 = vadd.s32 4294967294, %v1832_v14  ;;  %vm6223_vm4 = vcmp.le.f32.partialorder %v1764_v37, 0.7853982  ;;  %vm1694_vm5 = vcmp.lt.s32.totalorder %v1674_v52, 2 }
 0x2c4   :  { %4803 = vcosq.f32 %v1543_v16  ;;  %vm1695_vm6 = vcmp.lt.s32.totalorder %v1674_v52, 3  ;;  %v1698_v62 = vsel %vm1696_vm2, %v1686_v38, 2102212464  ;;  %v1697_v21 = vsel %vm1693_vm1, %v1677_v15, %v1680_v56 }
 0x2c5   :  { %4805 = vsinq.f32 %v1543_v16  ;;  %vm4264_vm3 = vcmp.lt.s32.totalorder %v4263_v30, 0  ;;  %v1701_v6 = vsel %vm1693_vm1, %v1680_v56, %v1683_v32  ;;  %v1702_v20 = vsel %vm1696_vm2, %v1689_v22, 920167782 }
 0x2c6   :  { %v1835_v45 = vsel %vm4264_vm3, 0, %v4263_v30  ;;  %v1699_v0 = vsel %vm1695_vm6, %v1683_v32, %v1698_v62  ;;  %v1705_v31 = vsel %vm1693_vm1, %v1683_v32, %v1686_v38  ;;  %v1703_v37 = vsel %vm1695_vm6, %v1686_v38, %v1702_v20 }
 0x2c7   :  { %v1836_v26 = vsub.s32 32, %v1835_v45  ;;  %v1840_v40 = vsub.s32 4294967266, %v1835_v45  ;;  %v1837_v9 = vshll.u32 %v1828_v36, %v1835_v45  ;;  %v1706_v8 = vsel %vm1696_vm2, %v1692_v60, 1326507024 }
 0x2c8   :  { %v1980_v27 = vadd.s32 1, %v4269_v4  ;;  %v1704_v10 = vsel %vm1694_vm5, %v1701_v6, %v1703_v37  ;;  %v1707_v5 = vsel %vm1695_vm6, %v1689_v22, %v1706_v8  ;;  %vm1549_vm8 = vcmp.lt.s32.totalorder %v6193_v11, 2 }
 0x2c9   :  { %v1838_v3 = vshrl.u32 %v1820_v2, %v1836_v26  ;;  %v1841_v42 = vadd.s32 127, %v1840_v40  ;;  %v1708_v7 = vsel %vm1694_vm5, %v1705_v31, %v1707_v5  ;;  %v1700_v2 = vsel %vm1694_vm5, %v1697_v21, %v1699_v0 }
 0x2ca   :  { %v6236_v43 = vmul.u32.u64.low %v6199_v63, %v1704_v10  ;;  %v6237_v29 = vmul.u32.u64.high %v6199_v63, %v1704_v10, %v6236_v43  ;;  %vm1981_vm7 = vcmp.gt.s32.totalorder %v1980_v27, 0  ;;  %v6248_v19 = vand.u32 8388607, %v1970_v41 }
 0x2cb   :  { %v1839_v36 = vor.u32 %v1838_v3, %v1837_v9  ;;  %v1842_v18 = vshll.u32 %v1841_v42, 23  ;;  %v6241_v56 = vmul.u32.u64.low %v6199_v63, %v1708_v7  ;;  %v6242_v35 = vmul.u32.u64.high %v6199_v63, %v1708_v7, %v6241_v56 }
 0x2cc   :  { %v1982_v4 = vsel %vm1981_vm7, %v1980_v27, 0  ;;  %vm1547_vm10 = vweird.f32 %v5882_v13  ;;  %vm1550_vm11 = vcmp.eq.s32.totalorder %v6193_v11, 0  ;;  %vm1553_vm12 = vcmp.eq.s32.totalorder %v6193_v11, 2 }
 0x2cd   :  { %v1843_v24 = vor.u32 4788187, %v1842_v18  ;;  %v1984_v14 = vand.u32 31, %v1982_v4  ;;  %vm3236_vm13 = vcmp.lt.s32.totalorder %v6196_v54, 2  ;;  %vm3237_vm14 = vcmp.eq.s32.totalorder %v6196_v54, 0 }
 0x2ce   :  { %v1853_v52 = vsel %vm6223_vm4, 0, %v1851_v25  ;;  %v1719_v38 = vadd.s32 1, %v6237_v29  ;;  %v1846_v16 = vcvt.s32.f32 %v1839_v36  ;;  %v1716_v32 = vmul.u32 %v6199_v63, %v1700_v2 }
 0x2cf   :  { %v1844_v28 = vand.u32 2147483647, %v1843_v24  ;;  %vm1718_vm15 = vc.u32 %v6242_v35, %v6236_v43  ;;  %vm3240_vm0 = vcmp.eq.s32.totalorder %v6196_v54, 2  ;;  %v1978_v30 = vor.u32 8388608, %v6248_v19  ;;  %v808_v19 = vpop.f32.mrf.mxu1 }
 0x2d0   :  { %v1720_v50 = vsel %vm1718_vm15, %v1719_v38, %v6237_v29  ;;  %v6264_v15 = vsub.s32 32, %v1984_v14  ;;  %v3546_v45 = vadd.s32 3, %v1853_v52  ;;  %v6266_v20 = vshrl.u32 %v1982_v4, 5 }
 0x2d1   :  { %v4804_v22 = vpop.eup %4803  ;;  %v1847_v62 = vmul.f32 %v1846_v16, %v1844_v28  ;;  %v1721_v21 = vadd.s32 %v1720_v50, %v1716_v32  ;;  %v1987_v63 = vshll.u32 %v4841_v33, %v1984_v14  ;;  %v1990_v26 = vshll.u32 %v6914_v34, %v1984_v14  ;;  %v6321_v50 = vld [vmem:[%s6895_s9] ss:$0 sm:$0xff] }
 0x2d2   :  { %v4806_v60 = vpop.eup %4805  ;;  %v1554_v25 = vxor.u32 2147483648, %v4804_v22  ;;  %v1988_v27 = vshrl.u32 %v6914_v34, %v6264_v15  ;;  %v1991_v3 = vshrl.u32 %v6915_v1, %v6264_v15  ;;  %v1994_v11 = vshrl.u32 %v4844_v44, %v6264_v15 }
 0x2d3   :  { %v1551_v6 = vxor.u32 2147483648, %v4806_v60  ;;  %v1848_v31 = vxor.u32 2147483648, %v1847_v62  ;;  %v1722_v9 = vadd.s32 536870912, %v1721_v21  ;;  %v1993_v4 = vshll.u32 %v6915_v1, %v1984_v14 }
 0x2d4   :  { %v1555_v40 = vsel %vm1553_vm12, %v1554_v25, %v4806_v60  ;;  %v3242_v0 = vsel %vm3240_vm0, %v1554_v25, %v4806_v60  ;;  %v1996_v13 = vshll.u32 %v4844_v44, %v1984_v14  ;;  %v1997_v12 = vshrl.u32 %v4845_v48, %v6264_v15 }
 0x2d5   :  { %v1552_v37 = vsel %vm1550_vm11, %v4804_v22, %v1551_v6  ;;  %v3239_v8 = vsel %vm3237_vm14, %v4804_v22, %v1551_v6  ;;  %v1849_v5 = vsel %vm1766_vm9, %v1848_v31, %v1847_v62  ;;  %v6286_v7 = vshrl.u32 %v1722_v9, 30 }
 0x2d6   :  { %v1556_v42 = vsel %vm1549_vm8, %v1552_v37, %v1555_v40  ;;  %v3243_v10 = vsel %vm3236_vm13, %v3239_v8, %v3242_v0  ;;  %v1852_v18 = vsel %vm6223_vm4, %v5937_v46, %v1849_v5  ;;  %v1989_v24 = vor.u32 %v1988_v27, %v1987_v63 }
 0x2d7   :  { %v1557_v29 = vsel %vm1547_vm10, nan, %v1556_v42  ;;  %v3244_v36 = vsel %vm1547_vm10, nan, %v3243_v10  ;;  %4807 = vcosq.f32 %v1852_v18  ;;  %v1724_v2 = vshll.u32 %v6286_v7, 30 }
 0x2d8   :  { %v2491_v54 = vmul.f32 %v1557_v29, %v5261_v47  ;;  %v4187_v56 = vmul.f32 %v3244_v36, %v5261_v47  ;;  %4809 = vsinq.f32 %v1852_v18  ;;  %v1992_v38 = vor.u32 %v1991_v3, %v1990_v26 }
 0x2d9   :  { %v6310_v47 = vsub.s32 %v1721_v21, %v1724_v2  ;;  %v2000_v28 = vshrl.u32 %v6916_v17, %v6264_v15  ;;  %v6314_v16 = vand.u32 3, %v1853_v52  ;;  %v6316_v32 = vand.u32 3, %v3546_v45 }
 0x2da   :  { %2507 = vst [vmem:[%s6896_s10 + $0x30] sm:$0xff] %v2491_v54  ;;  %4203 = vst [vmem:[%s6897_s11 + $0x30] sm:$0xff] %v4187_v56  ;;  %v1998_v22 = vor.u32 %v1997_v12, %v1996_v13  ;;  %v6324_v60 = vadd.f32 %v6321_v50, %v808_v19  ;;  %v1995_v62 = vor.u32 %v1994_v11, %v1993_v4  ;;  %vm1663_vm9 = vcmp.lt.s32.totalorder %v6092_v39, 0 }
 0x2db   :  { %v1727_v25 = vsub.s32 0, %v6310_v47  ;;  %v1999_v21 = vshll.u32 %v4845_v48, %v1984_v14  ;;  %vm2002_vm1 = vcmp.lt.s32.totalorder %v6266_v20, 1  ;;  %vm2005_vm2 = vcmp.lt.s32.totalorder %v6266_v20, 4 }
 0x2dc   :  { %v2010_v6 = vsel %vm2002_vm1, %v1989_v24, %v1992_v38  ;;  %v2011_v63 = vsel %vm2005_vm2, %v1998_v22, 920167782  ;;  %vm1862_vm4 = vcmp.eq.s32.totalorder %v6314_v16, 2  ;;  %vm3552_vm3 = vcmp.eq.s32.totalorder %v6316_v32, 2 }
 0x2dd   :  { %v4258_v52 = vmin.u32 %v1727_v25, %v6310_v47  ;;  %v2001_v45 = vor.u32 %v2000_v28, %v1999_v21  ;;  %v1747_v14 = vsub.s32 4, %v6286_v7  ;;  %vm2004_vm5 = vcmp.lt.s32.totalorder %v6266_v20, 3 }
 0x2de   :  { %v6340_v26 = vshll.u32 %v1978_v30, 8  ;;  %v1870_v40 = vand.u32 2139095040, %v6324_v60  ;;  %vm1859_vm6 = vcmp.eq.s32.totalorder %v6314_v16, 0  ;;  %vm3549_vm7 = vcmp.eq.s32.totalorder %v6316_v32, 0 }
 0x2df   :  { %v1729_v0 = vclz %v4258_v52  ;;  %vm2003_vm8 = vcmp.lt.s32.totalorder %v6266_v20, 2  ;;  %v2007_v31 = vsel %vm2005_vm2, %v1995_v62, 2102212464  ;;  %v2012_v9 = vsel %vm2004_vm5, %v1995_v62, %v2011_v63 }
 0x2e0   :  { %vm1858_vm10 = vcmp.lt.s32.totalorder %v6314_v16, 2  ;;  %vm3548_vm11 = vcmp.lt.s32.totalorder %v6316_v32, 2  ;;  %v1986_v30 = vshrl.u32 %v4841_v33, %v6264_v15  ;;  %v2013_v37 = vsel %vm2003_vm8, %v2010_v6, %v2012_v9 }
 0x2e1   :  { %v2014_v8 = vsel %vm2002_vm1, %v1992_v38, %v1995_v62  ;;  %v1867_v27 = vand.u32 2147483647, %v6324_v60  ;;  %vm1856_vm12 = vweird.f32 %v5937_v46  ;;  %v4259_v3 = vadd.s32 4294967294, %v1729_v0 }
 0x2e2   :  { %v2015_v42 = vsel %vm2005_vm2, %v2001_v45, 1326507024  ;;  %v6363_v10 = vmul.u32.u64.low %v6340_v26, %v2013_v37  ;;  %v6364_v5 = vmul.u32.u64.high %v6340_v26, %v2013_v37, %v6363_v10  ;;  %v2006_v15 = vsel %vm2002_vm1, %v1986_v30, %v1989_v24 }
 0x2e3   :  { %v2008_v29 = vsel %vm2004_vm5, %v1992_v38, %v2007_v31  ;;  %v2016_v36 = vsel %vm2004_vm5, %v1998_v22, %v2015_v42  ;;  %v1871_v18 = vshrl.u32 %v1870_v40, 23  ;;  %v1717_v11 = vadd.s32 %v6236_v43, %v6242_v35 }
 0x2e4   :  { %vm4260_vm13 = vcmp.lt.s32.totalorder %v4259_v3, 0  ;;  %v1748_v54 = vsel %vm1663_vm9, %v1747_v14, %v6286_v7  ;;  %v2017_v56 = vsel %vm2003_vm8, %v2014_v8, %v2016_v36  ;;  %v4808_v2 = vpop.eup %4807  ;;  %v2009_v43 = vsel %vm2003_vm8, %v2006_v15, %v2008_v29  ;;  %v4701_v29 = vpop.f32.mrf.mxu1 }
 0x2e5   :  { %v1732_v19 = vsel %vm4260_vm13, 0, %v4259_v3  ;;  %v6381_v4 = vmul.u32.u64.low %v6340_v26, %v2017_v56  ;;  %v6382_v13 = vmul.u32.u64.high %v6340_v26, %v2017_v56, %v6381_v4  ;;  %v4265_v12 = vadd.s32 4294967169, %v1871_v18  ;;  %v4810_v24 = vpop.eup %4809 }
 0x2e6   :  { %v1863_v38 = vxor.u32 2147483648, %v4808_v2  ;;  %v1733_v28 = vsub.s32 32, %v1732_v19  ;;  %v1737_v22 = vsub.s32 4294967266, %v1732_v19  ;;  %v1860_v35 = vxor.u32 2147483648, %v4810_v24 }
 0x2e7   :  { %v1734_v7 = vshll.u32 %v6310_v47, %v1732_v19  ;;  %v2028_v25 = vadd.s32 1, %v6364_v5  ;;  %v1877_v62 = vadd.s32 1, %v4265_v12  ;;  %v2025_v14 = vmul.u32 %v6340_v26, %v2009_v43 }
 0x2e8   :  { %v1864_v21 = vsel %vm1862_vm4, %v1863_v38, %v4810_v24  ;;  %v3554_v52 = vsel %vm3552_vm3, %v1863_v38, %v4810_v24  ;;  %v1735_v45 = vshrl.u32 %v1717_v11, %v1733_v28  ;;  %v1738_v6 = vadd.s32 127, %v1737_v22 }
 0x2e9   :  { %v1861_v63 = vsel %vm1859_vm6, %v4808_v2, %v1860_v35  ;;  %v3551_v20 = vsel %vm3549_vm7, %v4808_v2, %v1860_v35  ;;  %vm2027_vm14 = vc.u32 %v6382_v13, %v6363_v10  ;;  %vm1878_vm15 = vcmp.gt.s32.totalorder %v1877_v62, 0 }
 0x2ea   :  { %v1865_v47 = vsel %vm1858_vm10, %v1861_v63, %v1864_v21  ;;  %v3555_v40 = vsel %vm3548_vm11, %v3551_v20, %v3554_v52  ;;  %v1736_v0 = vor.u32 %v1735_v45, %v1734_v7  ;;  %v1739_v31 = vshll.u32 %v1738_v6, 23 }
 0x2eb   :  { %v1866_v9 = vsel %vm1856_vm12, nan, %v1865_v47  ;;  %v3556_v30 = vsel %vm1856_vm12, nan, %v3555_v40  ;;  %v2029_v37 = vsel %vm2027_vm14, %v2028_v25, %v6364_v5  ;;  %vm6412_vm0 = vcmp.le.f32.partialorder %v1661_v23, 0.7853982 }
 0x2ec   :  { %v2494_v26 = vmul.f32 %v1866_v9, %v5264_v49  ;;  %v4190_v8 = vmul.f32 %v3556_v30, %v5264_v49  ;;  %v1740_v32 = vor.u32 4788187, %v1739_v31  ;;  %v1750_v3 = vsel %vm6412_vm0, 0, %v1748_v54 }
 0x2ed   :  { %v2030_v42 = vadd.s32 %v2029_v37, %v2025_v14  ;;  %v1879_v46 = vsel %vm1878_vm15, %v1877_v62, 0  ;;  %v1743_v5 = vcvt.s32.f32 %v1736_v0  ;;  %v1874_v23 = vand.u32 8388607, %v1867_v27 }
 0x2ee   :  { %2510 = vst [vmem:[%s6896_s10 + $0x48] sm:$0xff] %v2494_v26  ;;  %4206 = vst [vmem:[%s6897_s11 + $0x48] sm:$0xff] %v4190_v8  ;;  %v1741_v49 = vand.u32 2147483647, %v1740_v32  ;;  %v1881_v15 = vand.u32 31, %v1879_v46  ;;  %v3442_v54 = vadd.s32 3, %v1750_v3  ;;  %v6429_v2 = vadd.f32 %v6321_v50, %v4701_v29 }
 0x2ef   :  { %v2031_v36 = vadd.s32 536870912, %v2030_v42  ;;  %v1875_v4 = vor.u32 8388608, %v1874_v23  ;;  %v6434_v28 = vshrl.u32 %v1879_v46, 5  ;;  %v6452_v31 = vand.u32 3, %v1750_v3 }
 0x2f0   :  { %v1744_v18 = vmul.f32 %v1743_v5, %v1741_v49  ;;  %v1882_v11 = vsub.s32 32, %v1881_v15  ;;  %v1884_v7 = vshll.u32 %v4841_v33, %v1881_v15  ;;  %v1887_v25 = vshll.u32 %v6914_v34, %v1881_v15 }
 0x2f1   :  { %v6426_v56 = vshrl.u32 %v2031_v36, 30  ;;  %v1890_v62 = vshll.u32 %v6915_v1, %v1881_v15  ;;  %v1893_v45 = vshll.u32 %v4844_v44, %v1881_v15  ;;  %v1896_v14 = vshll.u32 %v4845_v48, %v1881_v15 }
 0x2f2   :  { %v1745_v19 = vxor.u32 2147483648, %v1744_v18  ;;  %v1885_v12 = vshrl.u32 %v6914_v34, %v1882_v11  ;;  %v1888_v24 = vshrl.u32 %v6915_v1, %v1882_v11  ;;  %v1891_v22 = vshrl.u32 %v4844_v44, %v1882_v11 }
 0x2f3   :  { %v2033_v38 = vshll.u32 %v6426_v56, 30  ;;  %v1894_v43 = vshrl.u32 %v4845_v48, %v1882_v11  ;;  %v1897_v6 = vshrl.u32 %v6916_v17, %v1882_v11  ;;  %v6454_v9 = vand.u32 3, %v3442_v54 }
 0x2f4   :  { %v1746_v35 = vsel %vm1663_vm9, %v1745_v19, %v1744_v18  ;;  %v1886_v63 = vor.u32 %v1885_v12, %v1884_v7  ;;  %v1889_v20 = vor.u32 %v1888_v24, %v1887_v25  ;;  %v1892_v40 = vor.u32 %v1891_v22, %v1890_v62 }
 0x2f5   :  { %v1749_v21 = vsel %vm6412_vm0, %v6092_v39, %v1746_v35  ;;  %v6446_v52 = vsub.s32 %v2030_v42, %v2033_v38  ;;  %v1895_v0 = vor.u32 %v1894_v43, %v1893_v45  ;;  %vm1972_vm9 = vcmp.lt.s32.totalorder %v6148_v58, 0 }
 0x2f6   :  { %4811 = vcosq.f32 %v1749_v21  ;;  %v1898_v37 = vor.u32 %v1897_v6, %v1896_v14  ;;  %v1915_v26 = vshll.u32 %v1875_v4, 8  ;;  %v1883_v8 = vshrl.u32 %v4841_v33, %v1882_v11 }
 0x2f7   :  { %4813 = vsinq.f32 %v1749_v21  ;;  %v2036_v47 = vsub.s32 0, %v6446_v52  ;;  %vm1899_vm1 = vcmp.lt.s32.totalorder %v6434_v28, 1  ;;  %vm1902_vm2 = vcmp.lt.s32.totalorder %v6434_v28, 4 }
 0x2f8   :  { %v2179_v16 = vand.u32 2139095040, %v6429_v2  ;;  %v1904_v42 = vsel %vm1902_vm2, %v1892_v40, 2102212464  ;;  %v1907_v3 = vsel %vm1899_vm1, %v1886_v63, %v1889_v20  ;;  %v1908_v46 = vsel %vm1902_vm2, %v1895_v0, 920167782 }
 0x2f9   :  { %v4270_v30 = vmin.u32 %v2036_v47, %v6446_v52  ;;  %v2056_v49 = vsub.s32 4, %v6426_v56  ;;  %vm1900_vm4 = vcmp.lt.s32.totalorder %v6434_v28, 2  ;;  %vm1901_vm3 = vcmp.lt.s32.totalorder %v6434_v28, 3 }
 0x2fa   :  { %v1911_v5 = vsel %vm1899_vm1, %v1889_v20, %v1892_v40  ;;  %vm1759_vm5 = vcmp.eq.s32.totalorder %v6452_v31, 2  ;;  %v1903_v15 = vsel %vm1899_vm1, %v1883_v8, %v1886_v63  ;;  %v1909_v29 = vsel %vm1901_vm3, %v1892_v40, %v1908_v46 }
 0x2fb   :  { %v2038_v32 = vclz %v4270_v30  ;;  %v1912_v36 = vsel %vm1902_vm2, %v1898_v37, 1326507024  ;;  %vm1756_vm6 = vcmp.eq.s32.totalorder %v6452_v31, 0  ;;  %vm3445_vm7 = vcmp.eq.s32.totalorder %v6454_v9, 0 }
 0x2fc   :  { %vm6470_vm8 = vcmp.le.f32.partialorder %v1970_v41, 0.7853982  ;;  %v1905_v11 = vsel %vm1901_vm3, %v1889_v20, %v1904_v42  ;;  %v1910_v54 = vsel %vm1900_vm4, %v1907_v3, %v1909_v29  ;;  %v1913_v19 = vsel %vm1901_vm3, %v1895_v0, %v1912_v36 }
 0x2fd   :  { %v4271_v23 = vadd.s32 4294967294, %v2038_v32  ;;  %v2180_v4 = vshrl.u32 %v2179_v16, 23  ;;  %vm1755_vm10 = vcmp.lt.s32.totalorder %v6452_v31, 2  ;;  %vm3444_vm11 = vcmp.lt.s32.totalorder %v6454_v9, 2 }
 0x2fe   :  { %v1914_v12 = vsel %vm1900_vm4, %v1911_v5, %v1913_v19  ;;  %v6480_v24 = vmul.u32.u64.low %v1915_v26, %v1910_v54  ;;  %v6481_v38 = vmul.u32.u64.high %v1915_v26, %v1910_v54, %v6480_v24  ;;  %vm1753_vm13 = vweird.f32 %v6092_v39 }
 0x2ff   :  { %vm4272_vm12 = vcmp.lt.s32.totalorder %v4271_v23, 0  ;;  %v6485_v22 = vmul.u32.u64.low %v1915_v26, %v1914_v12  ;;  %v6486_v43 = vmul.u32.u64.high %v1915_v26, %v1914_v12, %v6485_v22  ;;  %v4277_v35 = vadd.s32 4294967169, %v2180_v4 }
 0x300   :  { %v2041_v41 = vsel %vm4272_vm12, 0, %v4271_v23  ;;  %v2026_v7 = vadd.s32 %v6363_v10, %v6382_v13  ;;  %v1906_v21 = vsel %vm1900_vm4, %v1903_v15, %v1905_v11  ;;  %vm3448_vm14 = vcmp.eq.s32.totalorder %v6454_v9, 2 }
 0x301   :  { %v2042_v25 = vsub.s32 32, %v2041_v41  ;;  %v2046_v62 = vsub.s32 4294967266, %v2041_v41  ;;  %v2057_v45 = vsel %vm1972_vm9, %v2056_v49, %v6426_v56  ;;  %v2176_v6 = vand.u32 2147483647, %v6429_v2 }
 0x302   :  { %v2186_v63 = vadd.s32 1, %v4277_v35  ;;  %v2043_v14 = vshll.u32 %v6446_v52, %v2041_v41  ;;  %v1925_v10 = vadd.s32 1, %v6481_v38  ;;  %v1922_v28 = vmul.u32 %v1915_v26, %v1906_v21 }
 0x303   :  { %v4812_v20 = vpop.eup %4811  ;;  %v2044_v47 = vshrl.u32 %v2026_v7, %v2042_v25  ;;  %v2047_v40 = vadd.s32 127, %v2046_v62  ;;  %vm1924_vm15 = vc.u32 %v6486_v43, %v6480_v24  ;;  %v2059_v49 = vsel %vm6470_vm8, 0, %v2057_v45 }
 0x304   :  { %v4814_v13 = vpop.eup %4813  ;;  %v1760_v0 = vxor.u32 2147483648, %v4812_v20  ;;  %vm2187_vm0 = vcmp.gt.s32.totalorder %v2186_v63, 0  ;;  %v1926_v8 = vsel %vm1924_vm15, %v1925_v10, %v6481_v38  ;;  %v2183_v31 = vand.u32 8388607, %v2176_v6 }
 0x305   :  { %v1757_v30 = vxor.u32 2147483648, %v4814_v13  ;;  %v2045_v37 = vor.u32 %v2044_v47, %v2043_v14  ;;  %v2048_v56 = vshll.u32 %v2047_v40, 23  ;;  %v1927_v32 = vadd.s32 %v1926_v8, %v1922_v28 }
 0x306   :  { %v1761_v16 = vsel %vm1759_vm5, %v1760_v0, %v4814_v13  ;;  %v3450_v52 = vsel %vm3448_vm14, %v1760_v0, %v4814_v13  ;;  %v2188_v42 = vsel %vm2187_vm0, %v2186_v63, 0  ;;  %v6532_v39 = vand.u32 3, %v2059_v49 }
 0x307   :  { %v1758_v26 = vsel %vm1756_vm6, %v4812_v20, %v1757_v30  ;;  %v3447_v3 = vsel %vm3445_vm7, %v4812_v20, %v1757_v30  ;;  %v2049_v46 = vor.u32 4788187, %v2048_v56  ;;  %v2052_v15 = vcvt.s32.f32 %v2045_v37  ;;  %v818_v30 = vpop.f32.mrf.mxu1 }
 0x308   :  { %v1762_v5 = vsel %vm1755_vm10, %v1758_v26, %v1761_v16  ;;  %v3451_v23 = vsel %vm3444_vm11, %v3447_v3, %v3450_v52  ;;  %v1928_v29 = vadd.s32 536870912, %v1927_v32  ;;  %v2190_v19 = vand.u32 31, %v2188_v42 }
 0x309   :  { %v1763_v36 = vsel %vm1753_vm13, nan, %v1762_v5  ;;  %v3452_v11 = vsel %vm1753_vm13, nan, %v3451_v23  ;;  %v2050_v54 = vand.u32 2147483647, %v2049_v46  ;;  %v3754_v35 = vadd.s32 3, %v2059_v49 }
 0x30a   :  { %v2493_v4 = vmul.f32 %v1763_v36, %v5267_v51  ;;  %v4189_v12 = vmul.f32 %v3452_v11, %v5267_v51  ;;  %v6522_v38 = vshrl.u32 %v1928_v29, 30  ;;  %v2191_v41 = vsub.s32 32, %v2190_v19 }
 0x30b   :  { %v2053_v9 = vmul.f32 %v2052_v15, %v2050_v54  ;;  %v2184_v21 = vor.u32 8388608, %v2183_v31  ;;  %v2189_v14 = vshrl.u32 %v2188_v42, 5  ;;  %v2193_v47 = vshll.u32 %v4841_v33, %v2190_v19 }
 0x30c   :  { %2509 = vst [vmem:[%s6896_s10 + $0x40] sm:$0xff] %v2493_v4  ;;  %4205 = vst [vmem:[%s6897_s11 + $0x40] sm:$0xff] %v4189_v12  ;;  %v1930_v22 = vshll.u32 %v6522_v38, 30  ;;  %v2194_v7 = vshrl.u32 %v6914_v34, %v2191_v41  ;;  %v2197_v25 = vshrl.u32 %v6915_v1, %v2191_v41  ;;  %v2200_v45 = vshrl.u32 %v4844_v44, %v2191_v41 }
 0x30d   :  { %v2054_v51 = vxor.u32 2147483648, %v2053_v9  ;;  %v2203_v63 = vshrl.u32 %v4845_v48, %v2191_v41  ;;  %v2196_v40 = vshll.u32 %v6914_v34, %v2190_v19  ;;  %v2199_v0 = vshll.u32 %v6915_v1, %v2190_v19 }
 0x30e   :  { %v6537_v62 = vsub.s32 %v1927_v32, %v1930_v22  ;;  %v2202_v28 = vshll.u32 %v4844_v44, %v2190_v19  ;;  %v6551_v37 = vand.u32 3, %v3754_v35  ;;  %v2195_v56 = vor.u32 %v2194_v7, %v2193_v47 }
 0x30f   :  { %v2055_v20 = vsel %vm1972_vm9, %v2054_v51, %v2053_v9  ;;  %v2198_v8 = vor.u32 %v2197_v25, %v2196_v40  ;;  %vm1869_vm9 = vcmp.lt.s32.totalorder %v6324_v60, 0  ;;  %v2201_v52 = vor.u32 %v2200_v45, %v2199_v0 }
 0x310   :  { %v2058_v10 = vsel %vm6470_vm8, %v6148_v58, %v2055_v20  ;;  %v1933_v13 = vsub.s32 0, %v6537_v62  ;;  %v2204_v18 = vor.u32 %v2203_v63, %v2202_v28  ;;  %v2205_v32 = vshll.u32 %v4845_v48, %v2190_v19 }
 0x311   :  { %4815 = vcosq.f32 %v2058_v10  ;;  %v2206_v42 = vshrl.u32 %v6916_v17, %v2191_v41  ;;  %v2224_v26 = vshll.u32 %v2184_v21, 8  ;;  %v6558_v3 = vadd.f32 %v6321_v50, %v818_v30 }
 0x312   :  { %4817 = vsinq.f32 %v2058_v10  ;;  %v4266_v16 = vmin.u32 %v1933_v13, %v6537_v62  ;;  %v1953_v49 = vsub.s32 4, %v6522_v38  ;;  %v2192_v5 = vshrl.u32 %v4841_v33, %v2191_v41 }
 0x313   :  { %vm2208_vm1 = vcmp.lt.s32.totalorder %v2189_v14, 1  ;;  %v2207_v23 = vor.u32 %v2206_v42, %v2205_v32  ;;  %vm2209_vm2 = vcmp.lt.s32.totalorder %v2189_v14, 2  ;;  %vm2210_vm4 = vcmp.lt.s32.totalorder %v2189_v14, 3 }
 0x314   :  { %v1935_v46 = vclz %v4266_v16  ;;  %vm2211_vm3 = vcmp.lt.s32.totalorder %v2189_v14, 4  ;;  %vm6564_vm5 = vcmp.le.f32.partialorder %v1867_v27, 0.7853982  ;;  %v2216_v11 = vsel %vm2208_vm1, %v2195_v56, %v2198_v8 }
 0x315   :  { %v2213_v36 = vsel %vm2211_vm3, %v2201_v52, 2102212464  ;;  %v2217_v54 = vsel %vm2211_vm3, %v2204_v18, 920167782  ;;  %v2212_v19 = vsel %vm2208_vm1, %v2192_v5, %v2195_v56  ;;  %v2220_v12 = vsel %vm2208_vm1, %v2198_v8, %v2201_v52 }
 0x316   :  { %v4267_v29 = vadd.s32 4294967294, %v1935_v46  ;;  %v2218_v4 = vsel %vm2210_vm4, %v2201_v52, %v2217_v54  ;;  %v2221_v31 = vsel %vm2211_vm3, %v2207_v23, 1326507024  ;;  %v2214_v9 = vsel %vm2210_vm4, %v2198_v8, %v2213_v36 }
 0x317   :  { %v2219_v41 = vsel %vm2209_vm2, %v2216_v11, %v2218_v4  ;;  %v2222_v22 = vsel %vm2210_vm4, %v2204_v18, %v2221_v31  ;;  %vm2064_vm7 = vcmp.lt.s32.totalorder %v6532_v39, 2  ;;  %vm2065_vm8 = vcmp.eq.s32.totalorder %v6532_v39, 0  ;;  %v4704_v31 = vpop.f32.mrf.mxu1 }
 0x318   :  { %vm4268_vm6 = vcmp.lt.s32.totalorder %v4267_v29, 0  ;;  %v2223_v35 = vsel %vm2209_vm2, %v2220_v12, %v2222_v22  ;;  %v6570_v27 = vmul.u32.u64.low %v2224_v26, %v2219_v41  ;;  %v6571_v7 = vmul.u32.u64.high %v2224_v26, %v2219_v41, %v6570_v27 }
 0x319   :  { %v1938_v51 = vsel %vm4268_vm6, 0, %v4267_v29  ;;  %v1923_v25 = vadd.s32 %v6480_v24, %v6486_v43  ;;  %vm2062_vm10 = vweird.f32 %v6148_v58  ;;  %v1954_v63 = vsel %vm1869_vm9, %v1953_v49, %v6522_v38 }
 0x31a   :  { %v1939_v21 = vsub.s32 32, %v1938_v51  ;;  %v1943_v45 = vsub.s32 4294967266, %v1938_v51  ;;  %v2215_v20 = vsel %vm2209_vm2, %v2212_v19, %v2214_v9  ;;  %v1940_v10 = vshll.u32 %v6537_v62, %v1938_v51 }
 0x31b   :  { %v6583_v47 = vmul.u32.u64.low %v2224_v26, %v2223_v35  ;;  %v6584_v40 = vmul.u32.u64.high %v2224_v26, %v2223_v35, %v6583_v47  ;;  %v2076_v28 = vand.u32 2139095040, %v6558_v3  ;;  %vm2068_vm11 = vcmp.eq.s32.totalorder %v6532_v39, 2 }
 0x31c   :  { %v1941_v13 = vshrl.u32 %v1923_v25, %v1939_v21  ;;  %v1944_v0 = vadd.s32 127, %v1943_v45  ;;  %vm3756_vm12 = vcmp.lt.s32.totalorder %v6551_v37, 2  ;;  %vm3757_vm13 = vcmp.eq.s32.totalorder %v6551_v37, 0 }
 0x31d   :  { %v2234_v24 = vadd.s32 1, %v6571_v7  ;;  %vm3760_vm14 = vcmp.eq.s32.totalorder %v6551_v37, 2  ;;  %v2077_v30 = vshrl.u32 %v2076_v28, 23  ;;  %v1956_v8 = vsel %vm6564_vm5, 0, %v1954_v63 }
 0x31e   :  { %v4816_v43 = vpop.eup %4815  ;;  %v1942_v38 = vor.u32 %v1941_v13, %v1940_v10  ;;  %v1945_v14 = vshll.u32 %v1944_v0, 23  ;;  %v2231_v16 = vmul.u32 %v2224_v26, %v2215_v20  ;;  %vm2233_vm15 = vc.u32 %v6584_v40, %v6570_v27 }
 0x31f   :  { %v4818_v56 = vpop.eup %4817  ;;  %v2069_v62 = vxor.u32 2147483648, %v4816_v43  ;;  %v2235_v32 = vsel %vm2233_vm15, %v2234_v24, %v6571_v7  ;;  %v2073_v42 = vand.u32 2147483647, %v6558_v3  ;;  %v4273_v23 = vadd.s32 4294967169, %v2077_v30 }
 0x320   :  { %v2066_v52 = vxor.u32 2147483648, %v4818_v56  ;;  %v1946_v18 = vor.u32 4788187, %v1945_v14  ;;  %v2236_v5 = vadd.s32 %v2235_v32, %v2231_v16  ;;  %v1949_v11 = vcvt.s32.f32 %v1942_v38 }
 0x321   :  { %v2070_v46 = vsel %vm2068_vm11, %v2069_v62, %v4818_v56  ;;  %v3762_v49 = vsel %vm3760_vm14, %v2069_v62, %v4818_v56  ;;  %v2083_v12 = vadd.s32 1, %v4273_v23  ;;  %v2080_v51 = vand.u32 8388607, %v2073_v42 }
 0x322   :  { %v2067_v29 = vsel %vm2065_vm8, %v4816_v43, %v2066_v52  ;;  %v3759_v26 = vsel %vm3757_vm13, %v4816_v43, %v2066_v52  ;;  %v1947_v36 = vand.u32 2147483647, %v1946_v18  ;;  %v2237_v4 = vadd.s32 536870912, %v2236_v5 }
 0x323   :  { %v2071_v54 = vsel %vm2064_vm7, %v2067_v29, %v2070_v46  ;;  %v3763_v19 = vsel %vm3756_vm12, %v3759_v26, %v3762_v49  ;;  %vm2084_vm0 = vcmp.gt.s32.totalorder %v2083_v12, 0  ;;  %v6618_v21 = vadd.f32 %v6321_v50, %v4704_v31 }
 0x324   :  { %v2072_v9 = vsel %vm2062_vm10, nan, %v2071_v54  ;;  %v3764_v41 = vsel %vm2062_vm10, nan, %v3763_v19  ;;  %v1950_v22 = vmul.f32 %v1949_v11, %v1947_v36  ;;  %v2238_v7 = vshrl.u32 %v2237_v4, 30 }
 0x325   :  { %v2496_v35 = vmul.f32 %v2072_v9, %v5270_v53  ;;  %v4192_v39 = vmul.f32 %v3764_v41, %v5270_v53  ;;  %v2085_v25 = vsel %vm2084_vm0, %v2083_v12, 0  ;;  %v3650_v58 = vadd.s32 3, %v1956_v8 }
 0x326   :  { %v1951_v37 = vxor.u32 2147483648, %v1950_v22  ;;  %v2239_v45 = vshll.u32 %v2238_v7, 30  ;;  %v2087_v63 = vand.u32 31, %v2085_v25  ;;  %v2081_v10 = vor.u32 8388608, %v2080_v51 }
 0x327   :  { %2512 = vst [vmem:[%s6896_s10 + $0x58] sm:$0xff] %v2496_v35  ;;  %4208 = vst [vmem:[%s6897_s11 + $0x58] sm:$0xff] %v4192_v39  ;;  %v6633_v0 = vand.u32 3, %v1956_v8  ;;  %vm2178_vm1 = vcmp.lt.s32.totalorder %v6429_v2, 0  ;;  %v2385_v28 = vand.u32 2139095040, %v6618_v21  ;;  %v6637_v24 = vand.u32 3, %v3650_v58 }
 0x328   :  { %v1952_v53 = vsel %vm1869_vm9, %v1951_v37, %v1950_v22  ;;  %v6631_v47 = vsub.s32 %v2236_v5, %v2239_v45  ;;  %v2088_v13 = vsub.s32 32, %v2087_v63  ;;  %v2382_v38 = vand.u32 2147483647, %v6618_v21 }
 0x329   :  { %v1955_v20 = vsel %vm6564_vm5, %v6324_v60, %v1952_v53  ;;  %v2232_v15 = vadd.s32 %v6570_v27, %v6584_v40  ;;  %v2262_v14 = vsub.s32 4, %v2238_v7  ;;  %v2086_v8 = vshrl.u32 %v2085_v25, 5 }
 0x32a   :  { %4819 = vcosq.f32 %v1955_v20  ;;  %v2242_v43 = vsub.s32 0, %v6631_v47  ;;  %v2091_v30 = vshrl.u32 %v6914_v34, %v2088_v13  ;;  %v2094_v56 = vshrl.u32 %v6915_v1, %v2088_v13 }
 0x32b   :  { %4821 = vsinq.f32 %v1955_v20  ;;  %v2090_v16 = vshll.u32 %v4841_v33, %v2087_v63  ;;  %v6647_v52 = vshll.u32 %v2081_v10, 8  ;;  %v2093_v18 = vshll.u32 %v6914_v34, %v2087_v63 }
 0x32c   :  { %v4278_v62 = vmin.u32 %v2242_v43, %v6631_v47  ;;  %v2096_v32 = vshll.u32 %v6915_v1, %v2087_v63  ;;  %v2097_v46 = vshrl.u32 %v4844_v44, %v2088_v13  ;;  %v2386_v49 = vshrl.u32 %v2385_v28, 23 }
 0x32d   :  { %v2092_v40 = vor.u32 %v2091_v30, %v2090_v16  ;;  %v2099_v5 = vshll.u32 %v4844_v44, %v2087_v63  ;;  %v2100_v23 = vshrl.u32 %v4845_v48, %v2088_v13  ;;  %v6656_v29 = vsel %vm2178_vm1, %v2262_v14, %v2238_v7 }
 0x32e   :  { %v2244_v27 = vclz %v4278_v62  ;;  %v2089_v26 = vshrl.u32 %v4841_v33, %v2088_v13  ;;  %v2095_v36 = vor.u32 %v2094_v56, %v2093_v18  ;;  %v2098_v11 = vor.u32 %v2097_v46, %v2096_v32 }
 0x32f   :  { %vm1965_vm9 = vcmp.eq.s32.totalorder %v6633_v0, 2  ;;  %vm3656_vm2 = vcmp.eq.s32.totalorder %v6637_v24, 2  ;;  %v2101_v19 = vor.u32 %v2100_v23, %v2099_v5  ;;  %v2102_v4 = vshll.u32 %v4845_v48, %v2087_v63 }
 0x330   :  { %v4279_v54 = vadd.s32 4294967294, %v2244_v27  ;;  %v2103_v12 = vshrl.u32 %v6916_v17, %v2088_v13  ;;  %vm1962_vm4 = vcmp.eq.s32.totalorder %v6633_v0, 0  ;;  %vm3653_vm3 = vcmp.eq.s32.totalorder %v6637_v24, 0 }
 0x331   :  { %vm2105_vm5 = vcmp.lt.s32.totalorder %v2086_v8, 1  ;;  %vm2106_vm6 = vcmp.lt.s32.totalorder %v2086_v8, 2  ;;  %vm2107_vm7 = vcmp.lt.s32.totalorder %v2086_v8, 3  ;;  %vm2108_vm8 = vcmp.lt.s32.totalorder %v2086_v8, 4 }
 0x332   :  { %vm1961_vm10 = vcmp.lt.s32.totalorder %v6633_v0, 2  ;;  %vm3652_vm11 = vcmp.lt.s32.totalorder %v6637_v24, 2  ;;  %vm4280_vm12 = vcmp.lt.s32.totalorder %v4279_v54, 0  ;;  %v2104_v31 = vor.u32 %v2103_v12, %v2102_v4 }
 0x333   :  { %v2109_v9 = vsel %vm2105_vm5, %v2089_v26, %v2092_v40  ;;  %v2110_v41 = vsel %vm2108_vm8, %v2098_v11, 2102212464  ;;  %vm1959_vm13 = vweird.f32 %v6324_v60  ;;  %v2247_v22 = vsel %vm4280_vm12, 0, %v4279_v54 }
 0x334   :  { %v2111_v51 = vsel %vm2107_vm7, %v2095_v36, %v2110_v41  ;;  %v2113_v35 = vsel %vm2105_vm5, %v2092_v40, %v2095_v36  ;;  %v2114_v39 = vsel %vm2108_vm8, %v2101_v19, 920167782  ;;  %v2248_v7 = vsub.s32 32, %v2247_v22 }
 0x335   :  { %v2249_v37 = vshll.u32 %v6631_v47, %v2247_v22  ;;  %v2252_v25 = vsub.s32 4294967266, %v2247_v22  ;;  %v2117_v58 = vsel %vm2105_vm5, %v2095_v36, %v2098_v11  ;;  %v2112_v45 = vsel %vm2106_vm6, %v2109_v9, %v2111_v51 }
 0x336   :  { %v2115_v63 = vsel %vm2107_vm7, %v2098_v11, %v2114_v39  ;;  %v2118_v53 = vsel %vm2108_vm8, %v2104_v31, 1326507024  ;;  %v4285_v20 = vadd.s32 4294967169, %v2386_v49  ;;  %v2250_v13 = vshrl.u32 %v2232_v15, %v2248_v7 }
 0x337   :  { %v4820_v10 = vpop.eup %4819  ;;  %v2253_v28 = vadd.s32 127, %v2252_v25  ;;  %v2116_v43 = vsel %vm2106_vm6, %v2113_v35, %v2115_v63  ;;  %v2119_v14 = vsel %vm2107_vm7, %v2101_v19, %v2118_v53  ;;  %v2128_v0 = vmul.u32 %v6647_v52, %v2112_v45 }
 0x338   :  { %v4822_v30 = vpop.eup %4821  ;;  %v1966_v56 = vxor.u32 2147483648, %v4820_v10  ;;  %v2120_v47 = vsel %vm2106_vm6, %v2117_v58, %v2119_v14  ;;  %v6682_v62 = vmul.u32.u64.low %v6647_v52, %v2116_v43  ;;  %v6683_v16 = vmul.u32.u64.high %v6647_v52, %v2116_v43, %v6682_v62 }
 0x339   :  { %v1963_v18 = vxor.u32 2147483648, %v4822_v30  ;;  %v2251_v32 = vor.u32 %v2250_v13, %v2249_v37  ;;  %v2254_v46 = vshll.u32 %v2253_v28, 23  ;;  %v2392_v49 = vadd.s32 1, %v4285_v20 }
 0x33a   :  { %v1967_v15 = vsel %vm1965_vm9, %v1966_v56, %v4822_v30  ;;  %v3658_v27 = vsel %vm3656_vm2, %v1966_v56, %v4822_v30  ;;  %v6691_v40 = vmul.u32.u64.low %v6647_v52, %v2120_v47  ;;  %v6692_v5 = vmul.u32.u64.high %v6647_v52, %v2120_v47, %v6691_v40 }
 0x33b   :  { %v1964_v8 = vsel %vm1962_vm4, %v4820_v10, %v1963_v18  ;;  %v3655_v23 = vsel %vm3653_vm3, %v4820_v10, %v1963_v18  ;;  %v2255_v26 = vor.u32 4788187, %v2254_v46  ;;  %v2258_v36 = vcvt.s32.f32 %v2251_v32 }
 0x33c   :  { %v1968_v11 = vsel %vm1961_vm10, %v1964_v8, %v1967_v15  ;;  %v3659_v54 = vsel %vm3652_vm11, %v3655_v23, %v3658_v27  ;;  %v2131_v19 = vadd.s32 1, %v6683_v16  ;;  %vm2393_vm14 = vcmp.gt.s32.totalorder %v2392_v49, 0 }
 0x33d   :  { %v1969_v4 = vsel %vm1959_vm13, nan, %v1968_v11  ;;  %v3660_v12 = vsel %vm1959_vm13, nan, %v3659_v54  ;;  %v2256_v31 = vand.u32 2147483647, %v2255_v26  ;;  %v2394_v9 = vsel %vm2393_vm14, %v2392_v49, 0 }
 0x33e   :  { %v2495_v41 = vmul.f32 %v1969_v4, %v5273_v55  ;;  %v4191_v22 = vmul.f32 %v3660_v12, %v5273_v55  ;;  %vm2130_vm15 = vc.u32 %v6692_v5, %v6682_v62  ;;  %v2396_v35 = vand.u32 31, %v2394_v9 }
 0x33f   :  { %v2259_v24 = vmul.f32 %v2258_v36, %v2256_v31  ;;  %v2132_v51 = vsel %vm2130_vm15, %v2131_v19, %v6683_v16  ;;  %vm2177_vm0 = vcmp.le.f32.partialorder %v2176_v6, 0.7853982  ;;  %v2389_v39 = vand.u32 8388607, %v2382_v38  ;;  %v828_v16 = vpop.f32.mrf.mxu1 }
 0x340   :  { %2511 = vst [vmem:[%s6896_s10 + $0x50] sm:$0xff] %v2495_v41  ;;  %4207 = vst [vmem:[%s6897_s11 + $0x50] sm:$0xff] %v4191_v22  ;;  %v2133_v55 = vadd.s32 %v2132_v51, %v2128_v0  ;;  %v2265_v52 = vsel %vm2177_vm0, 0, %v6656_v29  ;;  %v2397_v7 = vsub.s32 32, %v2396_v35  ;;  %v2395_v25 = vshrl.u32 %v2394_v9, 5 }
 0x341   :  { %v2260_v60 = vxor.u32 2147483648, %v2259_v24  ;;  %v2399_v58 = vshll.u32 %v4841_v33, %v2396_v35  ;;  %v2402_v45 = vshll.u32 %v6914_v34, %v2396_v35  ;;  %v2405_v20 = vshll.u32 %v6915_v1, %v2396_v35 }
 0x342   :  { %v2134_v37 = vadd.s32 536870912, %v2133_v55  ;;  %v2400_v53 = vshrl.u32 %v6914_v34, %v2397_v7  ;;  %v2403_v6 = vshrl.u32 %v6915_v1, %v2397_v7  ;;  %v2406_v13 = vshrl.u32 %v4844_v44, %v2397_v7 }
 0x343   :  { %v2261_v63 = vsel %vm2178_vm1, %v2260_v60, %v2259_v24  ;;  %v2409_v28 = vshrl.u32 %v4845_v48, %v2397_v7  ;;  %v2408_v43 = vshll.u32 %v4844_v44, %v2396_v35  ;;  %v2411_v14 = vshll.u32 %v4845_v48, %v2396_v35 }
 0x344   :  { %v2264_v29 = vsel %vm2177_vm0, %v6429_v2, %v2261_v63  ;;  %v6732_v10 = vshrl.u32 %v2134_v37, 30  ;;  %v2412_v30 = vshrl.u32 %v6916_v17, %v2397_v7  ;;  %v2407_v47 = vor.u32 %v2406_v13, %v2405_v20 }
 0x345   :  { %4823 = vcosq.f32 %v2264_v29  ;;  %v2401_v18 = vor.u32 %v2400_v53, %v2399_v58  ;;  %v2404_v32 = vor.u32 %v2403_v6, %v2402_v45  ;;  %v2410_v46 = vor.u32 %v2409_v28, %v2408_v43 }
 0x346   :  { %4825 = vsinq.f32 %v2264_v29  ;;  %v2136_v56 = vshll.u32 %v6732_v10, 30  ;;  %v2413_v49 = vor.u32 %v2412_v30, %v2411_v14  ;;  %v3962_v15 = vadd.s32 3, %v2265_v52 }
 0x347   :  { %v2390_v40 = vor.u32 8388608, %v2389_v39  ;;  %v2269_v8 = vand.u32 3, %v2265_v52  ;;  %vm2417_vm1 = vcmp.lt.s32.totalorder %v2395_v25, 4  ;;  %v6743_v23 = vadd.f32 %v6321_v50, %v828_v16 }
 0x348   :  { %v6740_v27 = vsub.s32 %v2133_v55, %v2136_v56  ;;  %v2398_v36 = vshrl.u32 %v4841_v33, %v2397_v7  ;;  %vm2414_vm9 = vcmp.lt.s32.totalorder %v2395_v25, 1  ;;  %v2419_v11 = vsel %vm2417_vm1, %v2407_v47, 2102212464 }
 0x349   :  { %v2422_v54 = vsel %vm2414_vm9, %v2401_v18, %v2404_v32  ;;  %v2423_v19 = vsel %vm2417_vm1, %v2410_v46, 920167782  ;;  %v2426_v4 = vsel %vm2414_vm9, %v2404_v32, %v2407_v47  ;;  %v2427_v12 = vsel %vm2417_vm1, %v2413_v49, 1326507024 }
 0x34a   :  { %v2139_v26 = vsub.s32 0, %v6740_v27  ;;  %v3963_v31 = vand.u32 3, %v3962_v15  ;;  %vm2416_vm2 = vcmp.lt.s32.totalorder %v2395_v25, 3  ;;  %v2430_v41 = vshll.u32 %v2390_v40, 8 }
 0x34b   :  { %vm2415_vm4 = vcmp.lt.s32.totalorder %v2395_v25, 2  ;;  %v2418_v22 = vsel %vm2414_vm9, %v2398_v36, %v2401_v18  ;;  %v2424_v0 = vsel %vm2416_vm2, %v2407_v47, %v2423_v19  ;;  %v2428_v50 = vsel %vm2416_vm2, %v2410_v46, %v2427_v12 }
 0x34c   :  { %v4274_v9 = vmin.u32 %v2139_v26, %v6740_v27  ;;  %v2420_v51 = vsel %vm2416_vm2, %v2404_v32, %v2419_v11  ;;  %v2425_v35 = vsel %vm2415_vm4, %v2422_v54, %v2424_v0  ;;  %v2429_v55 = vsel %vm2415_vm4, %v2426_v4, %v2428_v50 }
 0x34d   :  { %vm2268_vm3 = vweird.f32 %v6429_v2  ;;  %vm2270_vm5 = vcmp.lt.s32.totalorder %v2269_v8, 2  ;;  %vm2271_vm6 = vcmp.eq.s32.totalorder %v2269_v8, 0  ;;  %vm2274_vm7 = vcmp.eq.s32.totalorder %v2269_v8, 2 }
 0x34e   :  { %v2141_v24 = vclz %v4274_v9  ;;  %v2282_v60 = vand.u32 2139095040, %v6743_v23  ;;  %vm3964_vm8 = vcmp.lt.s32.totalorder %v3963_v31, 2  ;;  %v2421_v37 = vsel %vm2415_vm4, %v2418_v22, %v2420_v51 }
 0x34f   :  { %v6752_v39 = vmul.u32.u64.low %v2430_v41, %v2429_v55  ;;  %v6753_v7 = vmul.u32.u64.high %v2430_v41, %v2429_v55, %v6752_v39  ;;  %v6756_v58 = vmul.u32.u64.low %v2430_v41, %v2425_v35  ;;  %v6757_v45 = vmul.u32.u64.high %v2430_v41, %v2425_v35, %v6756_v58 }
 0x350   :  { %v4275_v52 = vadd.s32 4294967294, %v2141_v24  ;;  %v2283_v63 = vshrl.u32 %v2282_v60, 23  ;;  %vm3965_vm10 = vcmp.eq.s32.totalorder %v3963_v31, 0  ;;  %vm3968_vm11 = vcmp.eq.s32.totalorder %v3963_v31, 2 }
 0x351   :  { %v2129_v6 = vadd.s32 %v6682_v62, %v6692_v5  ;;  %v2159_v28 = vsub.s32 4, %v6732_v10  ;;  %v2437_v56 = vmul.u32 %v2430_v41, %v2421_v37  ;;  %vm2439_vm13 = vc.u32 %v6753_v7, %v6756_v58 }
 0x352   :  { %v4824_v53 = vpop.eup %4823  ;;  %vm4276_vm12 = vcmp.lt.s32.totalorder %v4275_v52, 0  ;;  %v4281_v43 = vadd.s32 4294967169, %v2283_v63  ;;  %v2440_v40 = vadd.s32 1, %v6757_v45  ;;  %vm2075_vm15 = vcmp.lt.s32.totalorder %v6558_v3, 0 }
 0x353   :  { %v4826_v20 = vpop.eup %4825  ;;  %v2275_v29 = vxor.u32 2147483648, %v4824_v53  ;;  %v2144_v13 = vsel %vm4276_vm12, 0, %v4275_v52  ;;  %v2279_v2 = vand.u32 2147483647, %v6743_v23  ;;  %v2160_v0 = vsel %vm2075_vm15, %v2159_v28, %v6732_v10 }
 0x354   :  { %v2272_v25 = vxor.u32 2147483648, %v4826_v20  ;;  %v2145_v14 = vsub.s32 32, %v2144_v13  ;;  %v2149_v30 = vsub.s32 4294967266, %v2144_v13  ;;  %v2146_v18 = vshll.u32 %v6740_v27, %v2144_v13 }
 0x355   :  { %v2276_v47 = vsel %vm2274_vm7, %v2275_v29, %v4826_v20  ;;  %v3970_v16 = vsel %vm3968_vm11, %v2275_v29, %v4826_v20  ;;  %v2289_v26 = vadd.s32 1, %v4281_v43  ;;  %v2441_v8 = vsel %vm2439_vm13, %v2440_v40, %v6757_v45 }
 0x356   :  { %v2273_v62 = vsel %vm2271_vm6, %v4824_v53, %v2272_v25  ;;  %v3967_v5 = vsel %vm3965_vm10, %v4824_v53, %v2272_v25  ;;  %v2147_v32 = vshrl.u32 %v2129_v6, %v2145_v14  ;;  %v2150_v46 = vadd.s32 127, %v2149_v30 }
 0x357   :  { %v2277_v49 = vsel %vm2270_vm5, %v2273_v62, %v2276_v47  ;;  %v3971_v15 = vsel %vm3964_vm8, %v3967_v5, %v3970_v16  ;;  %vm2290_vm14 = vcmp.gt.s32.totalorder %v2289_v26, 0  ;;  %v2442_v31 = vadd.s32 %v2441_v8, %v2437_v56 }
 0x358   :  { %v2278_v36 = vsel %vm2268_vm3, nan, %v2277_v49  ;;  %v3972_v27 = vsel %vm2268_vm3, nan, %v3971_v15  ;;  %v2148_v11 = vor.u32 %v2147_v32, %v2146_v18  ;;  %v2151_v54 = vshll.u32 %v2150_v46, 23 }
 0x359   :  { %v2498_v19 = vmul.f32 %v2278_v36, %v5276_v57  ;;  %v4194_v4 = vmul.f32 %v3972_v27, %v5276_v57  ;;  %v2291_v9 = vsel %vm2290_vm14, %v2289_v26, 0  ;;  %v2443_v50 = vadd.s32 536870912, %v2442_v31 }
 0x35a   :  { %v2152_v12 = vor.u32 4788187, %v2151_v54  ;;  %v2293_v41 = vand.u32 31, %v2291_v9  ;;  %v2155_v22 = vcvt.s32.f32 %v2148_v11  ;;  %vm6792_vm0 = vcmp.le.f32.partialorder %v2073_v42, 0.7853982 }
 0x35b   :  { %2514 = vst [vmem:[%s6896_s10 + $0x68] sm:$0xff] %v2498_v19  ;;  %4210 = vst [vmem:[%s6897_s11 + $0x68] sm:$0xff] %v4194_v4  ;;  %v6796_v55 = vshrl.u32 %v2443_v50, 30  ;;  %v2162_v60 = vsel %vm6792_vm0, 0, %v2160_v0  ;;  %v2286_v52 = vand.u32 8388607, %v2279_v2  ;;  %vm2165_vm5 = vweird.f32 %v6558_v3 }
 0x35c   :  { %v2153_v57 = vand.u32 2147483647, %v2152_v12  ;;  %v2294_v24 = vsub.s32 32, %v2293_v41  ;;  %v2292_v53 = vshrl.u32 %v2291_v9, 5  ;;  %v2296_v6 = vshll.u32 %v4841_v33, %v2293_v41 }
 0x35d   :  { %v2445_v45 = vshll.u32 %v6796_v55, 30  ;;  %v2299_v20 = vshll.u32 %v6914_v34, %v2293_v41  ;;  %v2302_v29 = vshll.u32 %v6915_v1, %v2293_v41  ;;  %v2305_v43 = vshll.u32 %v4844_v44, %v2293_v41 }
 0x35e   :  { %v2156_v35 = vmul.f32 %v2155_v22, %v2153_v57  ;;  %v2297_v39 = vshrl.u32 %v6914_v34, %v2294_v24  ;;  %v2300_v10 = vshrl.u32 %v6915_v1, %v2294_v24  ;;  %v2303_v42 = vshrl.u32 %v4844_v44, %v2294_v24 }
 0x35f   :  { %v2306_v63 = vshrl.u32 %v4845_v48, %v2294_v24  ;;  %v2446_v28 = vsub.s32 %v2442_v31, %v2445_v45  ;;  %v2309_v25 = vshrl.u32 %v6916_v17, %v2294_v24  ;;  %v2308_v47 = vshll.u32 %v4845_v48, %v2293_v41 }
 0x360   :  { %v2157_v37 = vxor.u32 2147483648, %v2156_v35  ;;  %v2298_v30 = vor.u32 %v2297_v39, %v2296_v6  ;;  %v2301_v56 = vor.u32 %v2300_v10, %v2299_v20  ;;  %v2304_v16 = vor.u32 %v2303_v42, %v2302_v29 }
 0x361   :  { %v2448_v34 = vsub.s32 0, %v2446_v28  ;;  %v2307_v1 = vor.u32 %v2306_v63, %v2305_v43  ;;  %v2287_v18 = vor.u32 8388608, %v2286_v52  ;;  %v2310_v5 = vor.u32 %v2309_v25, %v2308_v47 }
 0x362   :  { %v2158_v13 = vsel %vm2075_vm15, %v2157_v37, %v2156_v35  ;;  %v3858_v32 = vadd.s32 3, %v2162_v60  ;;  %vm2311_vm1 = vcmp.lt.s32.totalorder %v2292_v53, 1  ;;  %vm2314_vm9 = vcmp.lt.s32.totalorder %v2292_v53, 4 }
 0x363   :  { %v2161_v14 = vsel %vm6792_vm0, %v6558_v3, %v2158_v13  ;;  %v4286_v62 = vmin.u32 %v2448_v34, %v2446_v28  ;;  %v2316_v17 = vsel %vm2314_vm9, %v2304_v16, 2102212464  ;;  %v2319_v46 = vsel %vm2311_vm1, %v2298_v30, %v2301_v56 }
 0x364   :  { %4827 = vcosq.f32 %v2161_v14  ;;  %v2320_v49 = vsel %vm2314_vm9, %v2307_v1, 920167782  ;;  %v2295_v15 = vshrl.u32 %v4841_v33, %v2294_v24  ;;  %vm2313_vm2 = vcmp.lt.s32.totalorder %v2292_v53, 3 }
 0x365   :  { %4829 = vsinq.f32 %v2161_v14  ;;  %v2450_v44 = vclz %v4286_v62  ;;  %v2323_v40 = vsel %vm2311_vm1, %v2301_v56, %v2304_v16  ;;  %v2327_v48 = vshll.u32 %v2287_v18, 8 }
 0x366   :  { %vm2312_vm4 = vcmp.lt.s32.totalorder %v2292_v53, 2  ;;  %v2321_v36 = vsel %vm2313_vm2, %v2304_v16, %v2320_v49  ;;  %v2324_v27 = vsel %vm2314_vm9, %v2310_v5, 1326507024  ;;  %v2315_v11 = vsel %vm2311_vm1, %v2295_v15, %v2298_v30 }
 0x367   :  { %v4287_v26 = vadd.s32 4294967294, %v2450_v44  ;;  %v2317_v54 = vsel %vm2313_vm2, %v2301_v56, %v2316_v17  ;;  %v2322_v19 = vsel %vm2312_vm4, %v2319_v46, %v2321_v36  ;;  %v2325_v4 = vsel %vm2313_vm2, %v2307_v1, %v2324_v27 }
 0x368   :  { %v2326_v8 = vsel %vm2312_vm4, %v2323_v40, %v2325_v4  ;;  %v6821_v12 = vmul.u32.u64.low %v2327_v48, %v2322_v19  ;;  %v6822_v31 = vmul.u32.u64.high %v2327_v48, %v2322_v19, %v6821_v12  ;;  %v2166_v33 = vand.u32 3, %v2162_v60 }
 0x369   :  { %vm4288_vm3 = vcmp.lt.s32.totalorder %v4287_v26, 0  ;;  %v6825_v41 = vmul.u32.u64.low %v2327_v48, %v2326_v8  ;;  %v6826_v57 = vmul.u32.u64.high %v2327_v48, %v2326_v8, %v6825_v41  ;;  %v2438_v22 = vadd.s32 %v6756_v58, %v6753_v7 }
 0x36a   :  { %v2453_v9 = vsel %vm4288_vm3, 0, %v4287_v26  ;;  %v2318_v24 = vsel %vm2312_vm4, %v2315_v11, %v2317_v54  ;;  %v3859_v51 = vand.u32 3, %v3858_v32  ;;  %v2337_v10 = vadd.s32 1, %v6822_v31 }
 0x36b   :  { %v2454_v0 = vsub.s32 32, %v2453_v9  ;;  %v2458_v50 = vsub.s32 4294967266, %v2453_v9  ;;  %v2455_v35 = vshll.u32 %v2446_v28, %v2453_v9  ;;  %vm2167_vm6 = vcmp.lt.s32.totalorder %v2166_v33, 2 }
 0x36c   :  { %vm2168_vm7 = vcmp.eq.s32.totalorder %v2166_v33, 0  ;;  %v2334_v37 = vmul.u32 %v2327_v48, %v2318_v24  ;;  %vm2336_vm8 = vc.u32 %v6826_v57, %v6821_v12  ;;  %vm2171_vm10 = vcmp.eq.s32.totalorder %v2166_v33, 2 }
 0x36d   :  { %v2456_v52 = vshrl.u32 %v2438_v22, %v2454_v0  ;;  %v2459_v39 = vadd.s32 127, %v2458_v50  ;;  %v2338_v63 = vsel %vm2336_vm8, %v2337_v10, %v6822_v31  ;;  %vm3864_vm11 = vcmp.eq.s32.totalorder %v3859_v51, 2 }
 0x36e   :  { %v2339_v6 = vadd.s32 %v2338_v63, %v2334_v37  ;;  %vm3861_vm12 = vcmp.eq.s32.totalorder %v3859_v51, 0  ;;  %vm3860_vm13 = vcmp.lt.s32.totalorder %v3859_v51, 2  ;;  %vm2384_vm14 = vcmp.lt.s32.totalorder %v6618_v21, 0 }
 0x36f   :  { %v2457_v45 = vor.u32 %v2456_v52, %v2455_v35  ;;  %v2460_v42 = vshll.u32 %v2459_v39, 23  ;;  %v2468_v3 = vsub.s32 4, %v6796_v55  ;;  %vm2383_vm15 = vcmp.le.f32.partialorder %v2382_v38, 0.7853982 }
 0x370   :  { %v2340_v25 = vadd.s32 536870912, %v2339_v6  ;;  %v2335_v54 = vadd.s32 %v6821_v12, %v6826_v57  ;;  %vm2280_vm8 = vcmp.le.f32.partialorder %v2279_v2, 0.7853982 }
 0x371   :  { %v4828_v60 = vpop.eup %4827  ;;  %v2461_v13 = vor.u32 4788187, %v2460_v42  ;;  %v2464_v47 = vcvt.s32.f32 %v2457_v45  ;;  %v2469_v15 = vsel %vm2384_vm14, %v2468_v3, %v6796_v55 }
 0x372   :  { %v4830_v7 = vpop.eup %4829  ;;  %v2172_v58 = vxor.u32 2147483648, %v4828_v60  ;;  %v6842_v1 = vshrl.u32 %v2340_v25, 30  ;;  %v2471_v26 = vsel %vm2383_vm15, 0, %v2469_v15 }
 0x373   :  { %v2169_v53 = vxor.u32 2147483648, %v4830_v7  ;;  %v2462_v56 = vand.u32 2147483647, %v2461_v13  ;;  %v4170_v27 = vadd.s32 3, %v2471_v26  ;;  %v2475_v4 = vand.u32 3, %v2471_v26 }
 0x374   :  { %v2173_v20 = vsel %vm2171_vm10, %v2172_v58, %v4830_v7  ;;  %v3866_v29 = vsel %vm3864_vm11, %v2172_v58, %v4830_v7  ;;  %v2342_v32 = vshll.u32 %v6842_v1, 30 }
 0x375   :  { %v2170_v28 = vsel %vm2168_vm7, %v4828_v60, %v2169_v53  ;;  %v3863_v43 = vsel %vm3861_vm12, %v4828_v60, %v2169_v53  ;;  %v2465_v5 = vmul.f32 %v2464_v47, %v2462_v56  ;;  %v4171_v8 = vand.u32 3, %v4170_v27 }
 0x376   :  { %v2174_v14 = vsel %vm2167_vm6, %v2170_v28, %v2173_v20  ;;  %v3867_v30 = vsel %vm3860_vm13, %v3863_v43, %v3866_v29  ;;  %v2343_v17 = vsub.s32 %v2339_v6, %v2342_v32  ;;  %vm2476_vm1 = vcmp.lt.s32.totalorder %v2475_v4, 2  ;;  %v6941_v32 = vld [vmem:[#allocation2_spill] sm:$0xff] }
 0x377   :  { %v2175_v34 = vsel %vm2165_vm5, nan, %v2174_v14  ;;  %v3868_v16 = vsel %vm2165_vm5, nan, %v3867_v30  ;;  %v2466_v44 = vxor.u32 2147483648, %v2465_v5  ;;  %vm2477_vm9 = vcmp.eq.s32.totalorder %v2475_v4, 0 }
 0x378   :  { %v2497_v18 = vmul.f32 %v2175_v34, %v5279_v59  ;;  %v4193_v62 = vmul.f32 %v3868_v16, %v5279_v59  ;;  %v2345_v49 = vsub.s32 0, %v2343_v17  ;;  %vm2480_vm2 = vcmp.eq.s32.totalorder %v2475_v4, 2 }
 0x379   :  { %v2467_v59 = vsel %vm2384_vm14, %v2466_v44, %v2465_v5  ;;  %vm4176_vm4 = vcmp.eq.s32.totalorder %v4171_v8, 2  ;;  %vm4172_vm3 = vcmp.lt.s32.totalorder %v4171_v8, 2  ;;  %vm4173_vm5 = vcmp.eq.s32.totalorder %v4171_v8, 0 }
 0x37a   :  { %2513 = vst [vmem:[%s6896_s10 + $0x60] sm:$0xff] %v2497_v18  ;;  %4209 = vst [vmem:[%s6897_s11 + $0x60] sm:$0xff] %v4193_v62  ;;  %v2470_v46 = vsel %vm2383_vm15, %v6618_v21, %v2467_v59  ;;  %v4282_v40 = vmin.u32 %v2345_v49, %v2343_v17  ;;  %vm2474_vm6 = vweird.f32 %v6618_v21  ;;  %vm2281_vm7 = vcmp.lt.s32.totalorder %v6743_v23, 0 }
 0x37b   :  { %4831 = vcosq.f32 %v2470_v46  ;;  %v2365_v21 = vsub.s32 4, %v6842_v1 }
 0x37c   :  { %4833 = vsinq.f32 %v2470_v46  ;;  %v2347_v48 = vclz %v4282_v40 }
 0x37e   :  { %v4283_v36 = vadd.s32 4294967294, %v2347_v48 }
 0x380   :  { %vm4284_vm0 = vcmp.lt.s32.totalorder %v4283_v36, 0 }
 0x381   :  { %v2350_v11 = vsel %vm4284_vm0, 0, %v4283_v36  ;;  %vm2371_vm0 = vweird.f32 %v6743_v23 }
 0x382   :  { %v2351_v19 = vsub.s32 32, %v2350_v11  ;;  %v2355_v38 = vsub.s32 4294967266, %v2350_v11  ;;  %v2352_v31 = vshll.u32 %v2343_v17, %v2350_v11 }
 0x384   :  { %v2353_v33 = vshrl.u32 %v2335_v54, %v2351_v19  ;;  %v2356_v9 = vadd.s32 127, %v2355_v38 }
 0x386   :  { %v2354_v55 = vor.u32 %v2353_v33, %v2352_v31  ;;  %v2357_v22 = vshll.u32 %v2356_v9, 23 }
 0x388   :  { %v4832_v41 = vpop.eup %4831  ;;  %v2358_v51 = vor.u32 4788187, %v2357_v22  ;;  %v2361_v10 = vcvt.s32.f32 %v2354_v55 }
 0x389   :  { %v4834_v0 = vpop.eup %4833  ;;  %v2481_v50 = vxor.u32 2147483648, %v4832_v41 }
 0x38a   :  { %v2478_v24 = vxor.u32 2147483648, %v4834_v0  ;;  %v2359_v39 = vand.u32 2147483647, %v2358_v51 }
 0x38b   :  { %v2482_v35 = vsel %vm2480_vm2, %v2481_v50, %v4834_v0  ;;  %v4178_v12 = vsel %vm4176_vm4, %v2481_v50, %v4834_v0 }
 0x38c   :  { %v2479_v57 = vsel %vm2477_vm9, %v4832_v41, %v2478_v24  ;;  %v4175_v52 = vsel %vm4173_vm5, %v4832_v41, %v2478_v24  ;;  %v2362_v45 = vmul.f32 %v2361_v10, %v2359_v39 }
 0x38d   :  { %v2483_v60 = vsel %vm2476_vm1, %v2479_v57, %v2482_v35  ;;  %v4179_v37 = vsel %vm4172_vm3, %v4175_v52, %v4178_v12 }
 0x38e   :  { %v2484_v7 = vsel %vm2474_vm6, nan, %v2483_v60  ;;  %v4180_v58 = vsel %vm2474_vm6, nan, %v4179_v37  ;;  %v2363_v53 = vxor.u32 2147483648, %v2362_v45 }
 0x38f   :  { %v2500_v42 = vmul.f32 %v2484_v7, %v5282_v61  ;;  %v4196_v63 = vmul.f32 %v4180_v58, %v5282_v61  ;;  %v2366_v61 = vsel %vm2281_vm7, %v2365_v21, %v6842_v1 }
 0x390   :  { %v2364_v6 = vsel %vm2281_vm7, %v2363_v53, %v2362_v45  ;;  %v2368_v29 = vsel %vm2280_vm8, 0, %v2366_v61 }
 0x391   :  { %2516 = vst [vmem:[%s6896_s10 + $0x78] sm:$0xff] %v2500_v42  ;;  %4212 = vst [vmem:[%s6897_s11 + $0x78] sm:$0xff] %v4196_v63  ;;  %v2367_v20 = vsel %vm2280_vm8, %v6743_v23, %v2364_v6  ;;  %v4066_v13 = vadd.s32 3, %v2368_v29  ;;  %v2372_v28 = vand.u32 3, %v2368_v29 }
 0x392   :  { %4835 = vcosq.f32 %v2367_v20 }
 0x393   :  { %4837 = vsinq.f32 %v2367_v20  ;;  %v4067_v43 = vand.u32 3, %v4066_v13  ;;  %vm2377_vm10 = vcmp.eq.s32.totalorder %v2372_v28, 2  ;;  %vm2374_vm12 = vcmp.eq.s32.totalorder %v2372_v28, 0 }
 0x394   :  { %vm2373_vm14 = vcmp.lt.s32.totalorder %v2372_v28, 2 }
 0x395   :  { %vm4072_vm11 = vcmp.eq.s32.totalorder %v4067_v43, 2  ;;  %vm4069_vm13 = vcmp.eq.s32.totalorder %v4067_v43, 0  ;;  %vm4068_vm15 = vcmp.lt.s32.totalorder %v4067_v43, 2 }
 0x39f   :  { %v4836_v25 = vpop.eup %4835 }
 0x3a0   :  { %v4838_v14 = vpop.eup %4837  ;;  %v2378_v30 = vxor.u32 2147483648, %v4836_v25 }
 0x3a1   :  { %v2375_v56 = vxor.u32 2147483648, %v4838_v14 }
 0x3a2   :  { %v2379_v47 = vsel %vm2377_vm10, %v2378_v30, %v4838_v14  ;;  %v4074_v2 = vsel %vm4072_vm11, %v2378_v30, %v4838_v14 }
 0x3a3   :  { %v2376_v34 = vsel %vm2374_vm12, %v4836_v25, %v2375_v56  ;;  %v4071_v16 = vsel %vm4069_vm13, %v4836_v25, %v2375_v56 }
 0x3a4   :  { %v2380_v1 = vsel %vm2373_vm14, %v2376_v34, %v2379_v47  ;;  %v4075_v18 = vsel %vm4068_vm15, %v4071_v16, %v4074_v2 }
 0x3a5   :  { %v2381_v62 = vsel %vm2371_vm0, nan, %v2380_v1  ;;  %v4076_v5 = vsel %vm2371_vm0, nan, %v4075_v18 }
 0x3a6   :  { %v2499_v44 = vmul.f32 %v2381_v62, %v6941_v32  ;;  %v4195_v3 = vmul.f32 %v4076_v5, %v6941_v32 }
 0x3a8   :  { %2515 = vst [vmem:[%s6896_s10 + $0x70] sm:$0xff] %v2499_v44  ;;  %4211 = vst [vmem:[%s6897_s11 + $0x70] sm:$0xff] %v4195_v3 }

// kernel: _lambda_.3
= control target key start
LH: loop header
LB: loop body
LE: loop exit
PB: predicated region body
PF: predicated region fallthrough
CT: control target
= control target key end

     0   :  { %s3180_s27 = smov 0   ;;  %s3182_s28 = smov 0   ;;  %s4779_s0 = inlined_call_operand.vmem [shape: f32[2,16,16,32], index: 0, kind: input, shape index: {}, may-alias: {0,1,2}]   ;;  %s4780_s1 = inlined_call_operand.vmem [shape: f32[2,16,16,32], index: 1, kind: input, shape index: {}, may-alias: {0,1,2}]   ;;  %s4781_s2 = inlined_call_operand.vmem [shape: f32[2,16,16,32], index: 2, kind: input, shape index: {}, may-alias: {0,1,2}]   ;;  %s4782_s3 = inlined_call_operand.vmem [shape: f32[2,16,16,32], index: 3, kind: input, shape index: {}]   ;;  %s4783_s4 = inlined_call_operand.vmem [shape: f32[32,128], index: 4, kind: input, shape index: {}]   ;;  %s4784_s5 = inlined_call_operand.vmem [shape: f32[1,128], index: 5, kind: input, shape index: {}]   ;;  %s4785_s6 = inlined_call_operand.vmem [shape: f32[128,128], index: 6, kind: input, shape index: {}]   ;;  %s4786_s7 = inlined_call_operand.vmem [shape: f32[1,128], index: 7, kind: input, shape index: {}]   ;;  %s4787_s8 = inlined_call_operand.vmem [shape: f32[2,16,16,128], index: 8, kind: output, shape index: {}]  }
   0x1   :  { %s3184_s29 = smov 0  }
   0x2 LB: > { %s30_s30 = sadd.s32 1, %s3126_s28  ;;  %p2773_p0 = scmp.ge.s32.totalorder %s3130_s29, 1  ;;  %s3130_s29 = sphi %s3184_s29, %s18_s29   ;;  %s3126_s28 = sphi %s3182_s28, %s4917_s28   ;;  %s3122_s27 = sphi %s3180_s27, %s4916_s27  }
   0x3   : > { %p32_p1 = scmp.ge.s32.totalorder %s30_s30, 2  ;;  %p366_p2 = scmp.lt.s32.totalorder %s3130_s29, 3 }
   0x5   : > { %s4919_s30 = smov (%p32_p1, %s30_s30), 0  ;;  %p367_p3 = pnand %p2773_p0, %p366_p2 }
   0x7   : > { %370 = sbr.rel (%p367_p3) target bundleno = 536 (0x218), region = 52 }
   0xc   : > { %v1969_v0 = vld [vmem:[%s4783_s4 + $0x18] sm:$0xff]  ;;  %v1968_v1 = vld [vmem:[%s4783_s4 + $0x10] sm:$0xff]  ;;  %p447_p4 = scmp.lt.s32.totalorder %s3122_s27, 1  ;;  %v1967_v2 = vld [vmem:[%s4783_s4 + $0x8] sm:$0xff]  ;;  %vm1835_vm0 = vcmask 261120   ;;  %vm713_vm1 = vcmask 1040384  }
   0xd   : > { %2911 = vmatprep.subr.mxu0 %v1969_v0  ;;  %v1966_v3 = vld [vmem:[%s4783_s4] sm:$0xff]  ;;  %vm810_vm2 = vcmask 1046528   ;;  %s3132_s24 = smov 64   ;;  %s3133_s25 = smov 32   ;;  %vm1868_vm3 = vcmask 523264   ;;  %vm1901_vm4 = vcmask 785408  }
   0xe   : > { %2912 = vmatpush3.msra.mxu0 %v1969_v0  ;;  %s4921_s27 = smov (!%p447_p4, %s3122_s27), 1  ;;  %s3134_s26 = smov 96  }
   0xf   : > { %2913 = vmatprep.subr.mxu0 %v1968_v1  ;;  %s3210_s17 = sshll.u32 %s4921_s27, 8 }
  0x10   : > { %2914 = vmatpush3.msra.mxu0 %v1968_v1  ;;  %s3216_s20 = scalar_lea.vmem %s4779_s0, %s3210_s17  ;;  %s3222_s23 = scalar_lea.vmem %s4782_s3, %s3210_s17 }
  0x11   : > { %2915 = vmatprep.subr.mxu0 %v1967_v2  ;;  %v1934_v4 = vld [vmem:[%s3222_s23] sm:$0xff]  ;;  %v1935_v5 = vld [vmem:[%s3222_s23 + $0x8] sm:$0xff]  ;;  %v1936_v6 = vld [vmem:[%s3222_s23 + $0x10] sm:$0xff]  ;;  %s469_s14 = scalar_lea.vmem %s4780_s1, %s3210_s17 }
  0x12   : > { %2916 = vmatpush3.msra.mxu0 %v1967_v2  ;;  %2919 = vmatprep.mubr.msk.f32.mxu0 %vm1835_vm0, %v1934_v4  ;;  %v519_v7 = vld [vmem:[%s3216_s20 + $0x30] sm:$0xff]  ;;  %v521_v8 = vld [vmem:[%s3216_s20 + $0x40] sm:$0xff]  ;;  %v518_v15 = vld [vmem:[%s3216_s20 + $0x28] sm:$0xff] }
  0x13   : > { %2917 = vmatprep.subr.mxu0 %v1966_v3  ;;  %v3231_v9 = vld [vmem:[%s3216_s20 + $0x50] sm:$0xff]  ;;  %v3234_v10 = vmul.f32 0.25, %v521_v8  ;;  %v587_v12 = vmul.f32 0.75, %v519_v7  ;;  %v589_v13 = vmul.f32 0.75, %v521_v8  ;;  %v517_v14 = vld [vmem:[%s3216_s20 + $0x20] sm:$0xff]  ;;  %v1937_v16 = vld [vmem:[%s3222_s23 + $0x18] sm:$0xff] }
  0x14   : > { %2918 = vmatpush3.msra.mxu0 %v1966_v3  ;;  %v3237_v11 = vmul.f32 0.25, %v3231_v9  ;;  %v3243_v17 = vmul.f32 0.25, %v519_v7  ;;  %v520_v18 = vld [vmem:[%s3216_s20 + $0x38] sm:$0xff]  ;;  %v3246_v19 = vmul.f32 0.25, %v517_v14  ;;  %v3248_v20 = vmul.f32 0.25, %v518_v15  ;;  %v1938_v21 = vld [vmem:[%s3222_s23 + $0x20] sm:$0xff] }
  0x15   : > { %2920 = vmatmul.mubr.msk.f32.vlgmr.msra.gmra.mxu0 %vm1835_vm0, %v1935_v5  ;;  %v655_v22 = vadd.f32 %v587_v12, %v3234_v10  ;;  %v588_v24 = vmul.f32 0.75, %v520_v18  ;;  %v522_v25 = vld [vmem:[%s3216_s20 + $0x48] sm:$0xff]  ;;  %v3256_v26 = vmul.f32 0.25, %v520_v18  ;;  %v1940_v42 = vld [vmem:[%s3222_s23 + $0x30] sm:$0xff]  ;;  %v1941_v55 = vld [vmem:[%s3222_s23 + $0x38] sm:$0xff] }
  0x16   : > { %2922 = vmatprep.mubr.msk.f32.mxu0 %vm1835_vm0, %v1936_v6  ;;  %v3253_v23 = vadd.f32 %v589_v13, %v3237_v11  ;;  %v3259_v27 = vadd.f32 %v587_v12, %v3246_v19  ;;  %v3261_v28 = vmul.f32 0.25, %v522_v25  ;;  %v3263_v29 = vmul.f32 0.75, %v522_v25  ;;  %v1939_v35 = vld [vmem:[%s3222_s23 + $0x28] sm:$0xff]  ;;  %v1942_v60 = vld [vmem:[%s3222_s23 + $0x40] sm:$0xff]  ;;  %v524_v63 = vld [vmem:[%s3216_s20 + $0x58] sm:$0xff] }
  0x17   : > { %v3266_v30 = vadd.f32 %v589_v13, %v3243_v17  ;;  %v1108_v31 = vrot.slane %v655_v22, 7  ;;  %v1329_v32 = vmul.f32 0.75, %v655_v22  ;;  %v3270_v33 = vadd.f32 %v588_v24, %v3248_v20  ;;  %v1943_v7 = vld [vmem:[%s3222_s23 + $0x48] sm:$0xff]  ;;  %v3316_v12 = vld [vmem:[%s3216_s20 + $0x60] sm:$0xff]  ;;  %v1944_v13 = vld [vmem:[%s3222_s23 + $0x50] sm:$0xff] }
  0x18   : > { %v1204_v34 = vrot.slane %v655_v22, 1  ;;  %v820_v36 = vrot.slane %v3259_v27, 1  ;;  %v945_v37 = vmul.f32 0.75, %v3259_v27  ;;  %v4788_v38 = vrot.slane %v3259_v27, 7 }
  0x19   : > { %2923 = vmatmul.mubr.msk.f32.gmra.mxu0 %vm1835_vm0, %v1937_v16  ;;  %v656_v39 = vadd.f32 %v588_v24, %v3261_v28  ;;  %v1182_v40 = vsel %vm713_vm1, %v655_v22, %v1108_v31  ;;  %v821_v41 = vrot.slane %v3270_v33, 1  ;;  %v3282_v43 = vmul.f32 0.75, %v3270_v33 }
  0x1a   : > { %2925 = vmatprep.mubr.msk.f32.mxu0 %vm1835_vm0, %v1938_v21  ;;  %v3286_v44 = vadd.f32 %v3263_v29, %v3256_v26  ;;  %v1297_v45 = vmul.f32 0.25, %v1182_v40  ;;  %v797_v46 = vsel %vm713_vm1, %v3259_v27, %v4788_v38  ;;  %v823_v5 = vrot.slane %v3266_v30, 1 }
  0x1b   : > { %v1109_v47 = vrot.slane %v656_v39, 7  ;;  %v1330_v48 = vmul.f32 0.75, %v656_v39  ;;  %v822_v49 = vsel %vm810_vm2, %v820_v36, %v821_v41  ;;  %v913_v50 = vmul.f32 0.25, %v797_v46  ;;  %v526_v36 = vld [vmem:[%s3216_s20 + $0x68] sm:$0xff] }
  0x1c   : > { %v894_v51 = vsel %vm810_vm2, %v821_v41, %v3270_v33  ;;  %v1205_v52 = vrot.slane %v656_v39, 1  ;;  %v1361_v53 = vadd.f32 %v1329_v32, %v1297_v45  ;;  %v1009_v54 = vmul.f32 0.25, %v822_v49 }
  0x1d   : > { %2926 = vmatmul.mubr.msk.f32.gmra.mxu0 %vm1835_vm0, %v1939_v35  ;;  %v1110_v56 = vsel %vm713_vm1, %v1108_v31, %v1109_v47  ;;  %v1010_v57 = vmul.f32 0.25, %v894_v51  ;;  %v3299_v58 = vadd.f32 %v945_v37, %v913_v50  ;;  %v824_v4 = vrot.slane %v3286_v44, 1 }
  0x1e   : > { %2928 = vmatprep.mubr.msk.f32.mxu0 %vm1835_vm0, %v1940_v42  ;;  %v1298_v59 = vmul.f32 0.25, %v1110_v56  ;;  %v1278_v61 = vsel %vm810_vm2, %v1205_v52, %v656_v39  ;;  %v1206_v62 = vsel %vm810_vm2, %v1204_v34, %v1205_v52  ;;  %1623 = vrot.lane.b32.xlu1 %v1361_v53, %s3132_s24  ;;  %v1041_v0 = vadd.f32 %v1009_v54, %v945_v37  ;;  %v1945_v37 = vld [vmem:[%s3222_s23 + $0x58] sm:$0xff]  ;;  %v1947_v53 = vld [vmem:[%s3222_s23 + $0x68] sm:$0xff] }
  0x1f   : > { %v1394_v1 = vmul.f32 0.25, %v1278_v61  ;;  %v1393_v3 = vmul.f32 0.25, %v1206_v62  ;;  %v1042_v6 = vadd.f32 %v1010_v57, %v3282_v43  ;;  %v3313_v8 = vmul.f32 0.25, %v524_v63  ;;  %v1948_v57 = vld [vmem:[%s3222_s23 + $0x70] sm:$0xff] }
  0x20   : > { %v1362_v2 = vadd.f32 %v1330_v48, %v1298_v59  ;;  %1495 = vrot.lane.b32.xlu0 %v1041_v0, %s3133_s25  ;;  %v895_v14 = vsel %vm810_vm2, %v824_v4, %v3286_v44  ;;  %v825_v15 = vsel %vm810_vm2, %v823_v5, %v824_v4  ;;  %v1111_v16 = vrot.slane %v3253_v23, 7  ;;  %v1949_v4 = vld [vmem:[%s3222_s23 + $0x78] sm:$0xff] }
  0x21   : > { %2929 = vmatmul.mubr.msk.f32.gmra.mxu0 %vm1835_vm0, %v1941_v55  ;;  %v1426_v18 = vadd.f32 %v1394_v1, %v1330_v48  ;;  %v3325_v21 = vmul.f32 0.75, %v3286_v44  ;;  %v1012_v22 = vmul.f32 0.25, %v895_v14  ;;  %v658_v24 = vadd.f32 %v3263_v29, %v3313_v8 }
  0x22   : > { %2931 = vmatprep.mubr.msk.f32.mxu0 %vm1835_vm0, %v1942_v60  ;;  %1625 = vrot.lane.b32.xlu1 %v1362_v2, %s3132_s24  ;;  %v1425_v25 = vadd.f32 %v1393_v3, %v1329_v32  ;;  %v592_v31 = vmul.f32 0.75, %v524_v63  ;;  %v3331_v34 = vmul.f32 0.25, %v3316_v12  ;;  %v591_v35 = vmul.f32 0.75, %v3231_v9  ;;  %v1946_v32 = vld [vmem:[%s3222_s23 + $0x60] sm:$0xff] }
  0x23   : > { %v3339_v39 = vmul.f32 0.75, %v3266_v30  ;;  %v1011_v40 = vmul.f32 0.25, %v825_v15  ;;  %v1112_v29 = vrot.slane %v658_v24, 7  ;;  %v1207_v41 = vrot.slane %v3253_v23, 1 }
  0x24   : > { %1497 = vrot.lane.b32.xlu0 %v1042_v6, %s3133_s25  ;;  %v1183_v42 = vsel %vm713_vm1, %v3253_v23, %v1111_v16  ;;  %v1208_v45 = vrot.slane %v658_v24, 1  ;;  %v3346_v9 = vadd.f32 %v592_v31, %v3261_v28  ;;  %v3349_v46 = vadd.f32 %v591_v35, %v3234_v10  ;;  %v527_v6 = vld [vmem:[%s3216_s20 + $0x70] sm:$0xff] }
  0x25   : > { %2932 = vmatmul.mubr.msk.f32.gmra.mxu0 %vm1835_vm0, %v1943_v7  ;;  %v1044_v47 = vadd.f32 %v1012_v22, %v3325_v21  ;;  %v1113_v48 = vsel %vm713_vm1, %v1111_v16, %v1112_v29  ;;  %v1332_v49 = vmul.f32 0.75, %v658_v24  ;;  %v3354_v50 = vmul.f32 0.25, %v526_v36  ;;  %v1950_v7 = vld [vmem:[%s3222_s23 + $0x80] sm:$0xff]  ;;  %v528_v22 = vld [vmem:[%s3216_s20 + $0x78] sm:$0xff]  ;;  %v1952_v29 = vld [vmem:[%s3222_s23 + $0x90] sm:$0xff] }
  0x26   : > { %2934 = vmatprep.mubr.msk.f32.mxu0 %vm1835_vm0, %v1944_v13  ;;  %1753 = vrot.lane.b32.xlu1 %v1426_v18, %s3134_s26  ;;  %v1300_v51 = vmul.f32 0.25, %v1113_v48  ;;  %v1279_v28 = vsel %vm810_vm2, %v1208_v45, %v658_v24  ;;  %v3359_v52 = vadd.f32 %v591_v35, %v3331_v34  ;;  %v1043_v10 = vadd.f32 %v1011_v40, %v3339_v39 }
  0x27   : > { %v1299_v54 = vmul.f32 0.25, %v1183_v42  ;;  %v1331_v55 = vmul.f32 0.75, %v3253_v23  ;;  %v827_v56 = vrot.slane %v3346_v9, 1  ;;  %v1209_v59 = vsel %vm810_vm2, %v1207_v41, %v1208_v45 }
  0x28   : > { %1751 = vrot.lane.b32.xlu0 %v1425_v25, %s3134_s26  ;;  %v826_v60 = vrot.slane %v3349_v46, 1  ;;  %v660_v61 = vadd.f32 %v592_v31, %v3354_v50  ;;  %v1364_v62 = vadd.f32 %v1332_v49, %v1300_v51  ;;  %v1396_v63 = vmul.f32 0.25, %v1279_v28 }
  0x29   : > { %2935 = vmatmul.mubr.msk.f32.gmra.mxu0 %vm1835_vm0, %v1945_v37  ;;  %v896_v23 = vsel %vm810_vm2, %v827_v56, %v3346_v9  ;;  %v1114_v0 = vrot.slane %v3359_v52, 7  ;;  %v594_v2 = vmul.f32 0.75, %v526_v36  ;;  %v1363_v3 = vadd.f32 %v1331_v55, %v1299_v54  ;;  %v1951_v36 = vld [vmem:[%s3222_s23 + $0x88] sm:$0xff]  ;;  %v1953_v54 = vld [vmem:[%s3222_s23 + $0x98] sm:$0xff] }
  0x2a   : > { %2937 = vmatprep.mubr.msk.f32.mxu0 %vm1835_vm0, %v1946_v32  ;;  %1501 = vrot.lane.b32.xlu1 %v1044_v47, %s3133_s25  ;;  %v1115_v1 = vrot.slane %v660_v61, 7  ;;  %v1395_v5 = vmul.f32 0.25, %v1209_v59  ;;  %v828_v13 = vsel %vm810_vm2, %v826_v60, %v827_v56  ;;  %v1428_v14 = vadd.f32 %v1396_v63, %v1332_v49 }
  0x2b   : > { %v3384_v15 = vmul.f32 0.75, %v3346_v9  ;;  %v1014_v16 = vmul.f32 0.25, %v896_v23  ;;  %v1211_v18 = vrot.slane %v660_v61, 1  ;;  %v3390_v25 = vadd.f32 %v594_v2, %v3313_v8 }
  0x2c   : > { %1499 = vrot.lane.b32.xlu0 %v1043_v10, %s3133_s25  ;;  %v1116_v24 = vsel %vm713_vm1, %v1114_v0, %v1115_v1  ;;  %v3392_v31 = vmul.f32 0.25, %v527_v6  ;;  %v1427_v35 = vadd.f32 %v1395_v5, %v1331_v55  ;;  %v3398_v37 = vmul.f32 0.75, %v3349_v46  ;;  %v1956_v5 = vld [vmem:[%s3222_s23 + $0xb0] sm:$0xff] }
  0x2d   : > { %2938 = vmatmul.mubr.msk.f32.gmra.mxu0 %vm1835_vm0, %v1947_v53  ;;  %v1013_v40 = vmul.f32 0.25, %v828_v13  ;;  %v1184_v41 = vsel %vm713_vm1, %v3359_v52, %v1114_v0  ;;  %v1210_v32 = vrot.slane %v3359_v52, 1  ;;  %v593_v8 = vmul.f32 0.75, %v3316_v12  ;;  %v3436_v0 = vld [vmem:[%s3216_s20 + $0x80] sm:$0xff] }
  0x2e   : > { %2940 = vmatprep.mubr.msk.f32.mxu0 %vm1835_vm0, %v1948_v57  ;;  %1629 = vrot.lane.b32.xlu1 %v1364_v62, %s3132_s24  ;;  %v3405_v42 = vmul.f32 0.25, %v528_v22  ;;  %v1046_v45 = vadd.f32 %v1014_v16, %v3384_v15  ;;  %v1302_v47 = vmul.f32 0.25, %v1116_v24  ;;  %v1334_v48 = vmul.f32 0.75, %v660_v61 }
  0x2f   : > { %v1280_v49 = vsel %vm810_vm2, %v1211_v18, %v660_v61  ;;  %v830_v51 = vrot.slane %v3390_v25, 1  ;;  %v3413_v28 = vadd.f32 %v593_v8, %v3237_v11  ;;  %v3416_v12 = vadd.f32 %v593_v8, %v3392_v31  ;;  %v1954_v11 = vld [vmem:[%s3222_s23 + $0xa0] sm:$0xff] }
  0x30   : > { %1627 = vrot.lane.b32.xlu0 %v1363_v3, %s3132_s24  ;;  %v3419_v10 = vadd.f32 %v594_v2, %v3405_v42  ;;  %v1045_v53 = vadd.f32 %v1013_v40, %v3398_v37  ;;  %v1301_v55 = vmul.f32 0.25, %v1184_v41  ;;  %v1333_v56 = vmul.f32 0.75, %v3359_v52  ;;  %v1955_v2 = vld [vmem:[%s3222_s23 + $0xa8] sm:$0xff]  ;;  %v1958_v8 = vld [vmem:[%s3222_s23 + $0xc0] sm:$0xff] }
  0x31   : > { %2941 = vmatmul.mubr.msk.f32.gmra.mxu0 %vm1835_vm0, %v1949_v4  ;;  %v1212_v57 = vsel %vm810_vm2, %v1210_v32, %v1211_v18  ;;  %v829_v59 = vrot.slane %v3413_v28, 1  ;;  %v1366_v60 = vadd.f32 %v1334_v48, %v1302_v47  ;;  %v1398_v61 = vmul.f32 0.25, %v1280_v49  ;;  %v530_v4 = vld [vmem:[%s3216_s20 + $0x88] sm:$0xff] }
  0x32   : > { %2943 = vmatprep.mubr.msk.f32.mxu0 %vm1835_vm0, %v1950_v7  ;;  %1757 = vrot.lane.b32.xlu1 %v1428_v14, %s3134_s26  ;;  %v897_v62 = vsel %vm810_vm2, %v830_v51, %v3390_v25  ;;  %v1117_v63 = vrot.slane %v3416_v12, 7  ;;  %v1118_v52 = vrot.slane %v3419_v10, 7  ;;  %v596_v23 = vmul.f32 0.75, %v528_v22 }
  0x33   : > { %v1365_v1 = vadd.f32 %v1333_v56, %v1301_v55  ;;  %v1397_v3 = vmul.f32 0.25, %v1212_v57  ;;  %v831_v7 = vsel %vm810_vm2, %v829_v59, %v830_v51  ;;  %v595_v13 = vmul.f32 0.75, %v527_v6 }
  0x34   : > { %1755 = vrot.lane.b32.xlu0 %v1427_v35, %s3134_s26  ;;  %v1430_v14 = vadd.f32 %v1398_v61, %v1334_v48  ;;  %v3446_v16 = vmul.f32 0.75, %v3390_v25  ;;  %v1016_v18 = vmul.f32 0.25, %v897_v62  ;;  %v3449_v22 = vmul.f32 0.25, %v3436_v0  ;;  %v1960_v61 = vld [vmem:[%s3222_s23 + $0xd0] sm:$0xff] }
  0x35   : > { %2944 = vmatmul.mubr.msk.f32.gmra.mxu0 %vm1835_vm0, %v1951_v36  ;;  %v1119_v24 = vsel %vm713_vm1, %v1117_v63, %v1118_v52  ;;  %v1214_v35 = vrot.slane %v3419_v10, 1  ;;  %v3455_v36 = vadd.f32 %v596_v23, %v3354_v50  ;;  %v3457_v6 = vmul.f32 0.25, %v530_v4 }
  0x36   : > { %2946 = vmatprep.mubr.msk.f32.mxu0 %vm1835_vm0, %v1952_v29  ;;  %1505 = vrot.lane.b32.xlu1 %v1046_v45, %s3133_s25  ;;  %4823 = vst [vmem:[#allocation2_spill] sm:$0xff] %v3446_v16  ;;  %v1429_v40 = vadd.f32 %v1397_v3, %v1333_v56  ;;  %v1957_v29 = vld [vmem:[%s3222_s23 + $0xb8] sm:$0xff]  ;;  %v3463_v41 = vmul.f32 0.75, %v3413_v28  ;;  %v1015_v32 = vmul.f32 0.25, %v831_v7  ;;  %v1185_v45 = vsel %vm713_vm1, %v3416_v12, %v1117_v63  ;;  %v3503_v7 = vld [vmem:[%s3216_s20 + $0x90] sm:$0xff] }
  0x37   : > { %v1213_v50 = vrot.slane %v3416_v12, 1  ;;  %v3470_v47 = vadd.f32 %v595_v13, %v3331_v34  ;;  %v1048_v48 = vadd.f32 %v1016_v18, %v3446_v16  ;;  %v1304_v49 = vmul.f32 0.25, %v1119_v24  ;;  %v1962_v24 = vld [vmem:[%s3222_s23 + $0xe0] sm:$0xff] }
  0x38   : > { %1503 = vrot.lane.b32.xlu0 %v1045_v53, %s3133_s25  ;;  %4824 = vst [vmem:[#allocation3_spill] sm:$0xff] %v3463_v41  ;;  %v1336_v51 = vmul.f32 0.75, %v3419_v10  ;;  %v1281_v53 = vsel %vm810_vm2, %v1214_v35, %v3419_v10  ;;  %v3480_v55 = vadd.f32 %v595_v13, %v3449_v22  ;;  %v3483_v34 = vadd.f32 %v596_v23, %v3457_v6  ;;  %v532_v13 = vld [vmem:[%s3216_s20 + $0x98] sm:$0xff] }
  0x39   : > { %2947 = vmatmul.mubr.msk.f32.gmra.mxu0 %vm1835_vm0, %v1953_v54  ;;  %v833_v54 = vrot.slane %v3455_v36, 1  ;;  %v1047_v56 = vadd.f32 %v1015_v32, %v3463_v41  ;;  %v1303_v57 = vmul.f32 0.25, %v1185_v45  ;;  %v1335_v59 = vmul.f32 0.75, %v3416_v12 }
  0x3a   : > { %2949 = vmatprep.mubr.msk.f32.mxu0 %vm1835_vm0, %v1954_v11  ;;  %1633 = vrot.lane.b32.xlu1 %v1366_v60, %s3132_s24  ;;  %v1959_v11 = vld [vmem:[%s3222_s23 + $0xc8] sm:$0xff]  ;;  %v1215_v10 = vsel %vm810_vm2, %v1213_v50, %v1214_v35  ;;  %v832_v60 = vrot.slane %v3470_v47, 1  ;;  %v1368_v62 = vadd.f32 %v1336_v51, %v1304_v49  ;;  %v1400_v63 = vmul.f32 0.25, %v1281_v53 }
  0x3b   : > { %v898_v52 = vsel %vm810_vm2, %v833_v54, %v3455_v36  ;;  %v1120_v12 = vrot.slane %v3480_v55, 7  ;;  %v1121_v23 = vrot.slane %v3483_v34, 7  ;;  %v1399_v3 = vmul.f32 0.25, %v1215_v10  ;;  %v2345_v10 = vld [vmem:[%s4785_s6 + $0x78] sm:$0xff] }
  0x3c   : > { %1631 = vrot.lane.b32.xlu0 %v1365_v1, %s3132_s24  ;;  %v598_v1 = vmul.f32 0.75, %v530_v4  ;;  %v597_v18 = vmul.f32 0.75, %v3436_v0  ;;  %v1432_v35 = vadd.f32 %v1400_v63, %v1336_v51  ;;  %v3511_v4 = vmul.f32 0.75, %v3455_v36  ;;  %v1963_v51 = vld [vmem:[%s3222_s23 + $0xe8] sm:$0xff]  ;;  %3047 = vmatprep.subr.mxu1 %v2345_v10 }
  0x3d   : > { %2950 = vmatmul.mubr.msk.f32.gmra.mxu0 %vm1835_vm0, %v1955_v2  ;;  %v1367_v2 = vadd.f32 %v1335_v59, %v1303_v57  ;;  %v1122_v32 = vsel %vm713_vm1, %v1120_v12, %v1121_v23  ;;  %v3520_v0 = vmul.f32 0.25, %v3503_v7  ;;  %v3522_v45 = vmul.f32 0.25, %v532_v13  ;;  %v2344_v23 = vld [vmem:[%s4785_s6 + $0x70] sm:$0xff]  ;;  %3063 = vmatpush3.msra.mxu1 %v2345_v10 }
  0x3e   : > { %2952 = vmatprep.mubr.msk.f32.mxu0 %vm1835_vm0, %v1956_v5  ;;  %1761 = vrot.lane.b32.xlu1 %v1430_v14, %s3134_s26  ;;  %v1961_v5 = vld [vmem:[%s3222_s23 + $0xd8] sm:$0xff]  ;;  %v834_v14 = vsel %vm810_vm2, %v832_v60, %v833_v54  ;;  %4825 = vst [vmem:[#allocation4_spill] sm:$0xff] %v3511_v4  ;;  %v1431_v50 = vadd.f32 %v1399_v3, %v1335_v59  ;;  %v1306_v57 = vmul.f32 0.25, %v1122_v32  ;;  %v1338_v59 = vmul.f32 0.75, %v3483_v34  ;;  %v3574_v32 = vld [vmem:[%s3216_s20 + $0xa0] sm:$0xff] }
  0x3f   : > { %v1017_v49 = vmul.f32 0.25, %v834_v14  ;;  %v1186_v53 = vsel %vm713_vm1, %v3480_v55, %v1120_v12  ;;  %v3534_v54 = vadd.f32 %v597_v18, %v3392_v31  ;;  %v3547_v31 = vadd.f32 %v597_v18, %v3520_v0  ;;  %2967 = vmatprep.subr.mxu0 %v2345_v10  ;;  %3048 = vmatprep.subr.mxu1 %v2344_v23 }
  0x40   : > { %1759 = vrot.lane.b32.xlu0 %v1429_v40, %s3134_s26  ;;  %v1018_v40 = vmul.f32 0.25, %v898_v52  ;;  %v1305_v52 = vmul.f32 0.25, %v1186_v53  ;;  %v1337_v12 = vmul.f32 0.75, %v3480_v55  ;;  %v1370_v3 = vadd.f32 %v1338_v59, %v1306_v57  ;;  %3064 = vmatpush3.msra.mxu1 %v2344_v23  ;;  %v3592_v57 = vld [vmem:[%s4785_s6 + $0x58] sm:$0xff] }
  0x41   : > { %2953 = vmatmul.mubr.msk.f32.gmra.mxu0 %vm1835_vm0, %v1957_v29  ;;  %v1217_v29 = vrot.slane %v3483_v34, 1  ;;  %v1123_v18 = vrot.slane %v3547_v31, 7  ;;  %v599_v53 = vmul.f32 0.75, %v3503_v7 }
  0x42   : > { %2955 = vmatprep.mubr.msk.f32.mxu0 %vm1835_vm0, %v1958_v8  ;;  %1509 = vrot.lane.b32.xlu1 %v1048_v48, %s3133_s25  ;;  %v3517_v8 = vadd.f32 %v598_v1, %v3405_v42  ;;  %v3526_v48 = vmul.f32 0.75, %v3470_v47  ;;  %v1216_v42 = vrot.slane %v3480_v55, 1  ;;  %v2343_v55 = vld [vmem:[%s4785_s6 + $0x68] sm:$0xff] }
  0x43   : > { %v1282_v60 = vsel %vm810_vm2, %v1217_v29, %v3483_v34  ;;  %v1965_v34 = vld [vmem:[%s3222_s23 + $0xf8] sm:$0xff]  ;;  %3049 = vmatprep.subr.mxu1 %v2343_v55  ;;  %2968 = vmatpush3.msra.mxu0 %v2345_v10  ;;  %v3599_v10 = vmul.f32 0.25, %v3574_v32 }
  0x44   : > { %1507 = vrot.lane.b32.xlu0 %v1047_v56, %s3133_s25  ;;  %4826 = vst [vmem:[#allocation5_spill] sm:$0xff] %v3526_v48  ;;  %v1964_v56 = vld [vmem:[%s3222_s23 + $0xf0] sm:$0xff]  ;;  %v1049_v63 = vadd.f32 %v1017_v49, %v3526_v48  ;;  %v3580_v49 = vld [vmem:[%s4785_s6 + $0x60] sm:$0xff]  ;;  %3065 = vmatpush3.msra.mxu1 %v2343_v55  ;;  %s4704_s23 = scalar_lea.vmem %s4787_s8, %s3210_s17 }
  0x45   : > { %2956 = vmatmul.mubr.msk.f32.gmra.mxu0 %vm1835_vm0, %v1959_v11  ;;  %v1050_v11 = vadd.f32 %v1018_v40, %v3511_v4  ;;  %v1369_v40 = vadd.f32 %v1337_v12, %v1305_v52  ;;  %3050 = vmatprep.subr.mxu1 %v3580_v49 }
  0x46   : > { %2958 = vmatprep.mubr.msk.f32.mxu0 %vm1835_vm0, %v1960_v61  ;;  %1637 = vrot.lane.b32.xlu1 %v1368_v62, %s3132_s24  ;;  %v836_v61 = vrot.slane %v3517_v8, 1  ;;  %v3550_v62 = vadd.f32 %v598_v1, %v3522_v45  ;;  %v1218_v1 = vsel %vm810_vm2, %v1216_v42, %v1217_v29  ;;  %v3586_v42 = vmul.f32 0.75, %v3517_v8 }
  0x47   : > { %v1401_v29 = vmul.f32 0.25, %v1218_v1  ;;  %2969 = vmatprep.subr.mxu0 %v2344_v23  ;;  %3066 = vmatpush3.msra.mxu1 %v3580_v49  ;;  %v1219_v1 = vrot.slane %v3547_v31, 1 }
  0x48   : > { %1635 = vrot.lane.b32.xlu0 %v1367_v2, %s3132_s24  ;;  %v835_v2 = vrot.slane %v3534_v54, 1  ;;  %v899_v14 = vsel %vm810_vm2, %v836_v61, %v3517_v8  ;;  %4827 = vst [vmem:[#allocation6_spill] sm:$0xff] %v3586_v42  ;;  %3051 = vmatprep.subr.mxu1 %v3592_v57 }
  0x49   : > { %2959 = vmatmul.mubr.msk.f32.gmra.mxu0 %vm1835_vm0, %v1961_v5  ;;  %v1402_v5 = vmul.f32 0.25, %v1282_v60  ;;  %3067 = vmatpush3.msra.mxu1 %v3592_v57 }
  0x4a   : > { %2961 = vmatprep.mubr.msk.f32.mxu0 %vm1835_vm0, %v1962_v24  ;;  %1765 = vrot.lane.b32.xlu1 %v1432_v35, %s3134_s26  ;;  %v1124_v24 = vrot.slane %v3550_v62, 7  ;;  %v600_v35 = vmul.f32 0.75, %v532_v13 }
  0x4b   : > { %v1434_v13 = vadd.f32 %v1402_v5, %v1338_v59  ;;  %2970 = vmatpush3.msra.mxu0 %v2344_v23  ;;  %v1340_v5 = vmul.f32 0.75, %v3550_v62  ;;  %v3634_v23 = vadd.f32 %v599_v53, %v3599_v10 }
  0x4c   : > { %1763 = vrot.lane.b32.xlu0 %v1431_v50, %s3134_s26  ;;  %v534_v50 = vld [vmem:[%s3216_s20 + $0xa8] sm:$0xff]  ;;  %v1125_v60 = vsel %vm713_vm1, %v1123_v18, %v1124_v24  ;;  %v3596_v7 = vadd.f32 %v600_v35, %v3457_v6  ;;  %v3612_v6 = vld [vmem:[%s4785_s6 + $0x50] sm:$0xff]  ;;  %2971 = vmatprep.subr.mxu0 %v2343_v55 }
  0x4d   : > { %2962 = vmatmul.mubr.msk.f32.gmra.mxu0 %vm1835_vm0, %v1963_v51  ;;  %v837_v51 = vsel %vm810_vm2, %v835_v2, %v836_v61  ;;  %v3601_v59 = vmul.f32 0.25, %v534_v50  ;;  %v1433_v61 = vadd.f32 %v1401_v29, %v1337_v12  ;;  %v3618_v2 = vadd.f32 %v599_v53, %v3449_v22  ;;  %3052 = vmatprep.subr.mxu1 %v3612_v6 }
  0x4e   : > { %2964 = vmatprep.mubr.msk.f32.mxu0 %vm1835_vm0, %v1964_v56  ;;  %1513 = vrot.lane.b32.xlu1 %v1050_v11, %s3133_s25  ;;  %v1020_v56 = vmul.f32 0.25, %v899_v14  ;;  %v1220_v11 = vrot.slane %v3550_v62, 1  ;;  %4828 = vst [vmem:[#allocation7_spill] sm:$0xff] %v3596_v7  ;;  %v1019_v52 = vmul.f32 0.25, %v837_v51  ;;  %v3628_v14 = vld [vmem:[%s4785_s6 + $0x48] sm:$0xff]  ;;  %v1339_v51 = vmul.f32 0.75, %v3547_v31 }
  0x4f   : > { %v3637_v24 = vadd.f32 %v600_v35, %v3601_v59  ;;  %3068 = vmatpush3.msra.mxu1 %v3612_v6  ;;  %v838_v53 = vrot.slane %v3618_v2, 1  ;;  %2972 = vmatpush3.msra.mxu0 %v2343_v55  ;;  %v602_v55 = vmul.f32 0.75, %v534_v50 }
  0x50   : > { %1511 = vrot.lane.b32.xlu0 %v1049_v63, %s3133_s25  ;;  %v3606_v63 = vmul.f32 0.75, %v3534_v54  ;;  %v1052_v12 = vadd.f32 %v1020_v56, %v3586_v42  ;;  %v1283_v22 = vsel %vm810_vm2, %v1220_v11, %v3550_v62  ;;  %v3647_v62 = vld [vmem:[%s4785_s6 + $0x40] sm:$0xff]  ;;  %v1221_v35 = vsel %vm810_vm2, %v1219_v1, %v1220_v11  ;;  %3053 = vmatprep.subr.mxu1 %v3628_v14  ;;  %v3657_v56 = vld [vmem:[%s4785_s6 + $0x38] sm:$0xff] }
  0x51   : > { %2965 = vmatmul.mubr.msk.f32.gmra.mxu0 %vm1835_vm0, %v1965_v34  ;;  %v1187_v34 = vsel %vm713_vm1, %v3547_v31, %v1123_v18  ;;  %v839_v18 = vrot.slane %v3596_v7, 1  ;;  %v1404_v31 = vmul.f32 0.25, %v1283_v22  ;;  %3069 = vmatpush3.msra.mxu1 %v3628_v14  ;;  %v1403_v1 = vmul.f32 0.25, %v1221_v35 }
  0x52   : > { %1641 = vrot.lane.b32.xlu1 %v1370_v3, %s3132_s24  ;;  %4829 = vst [vmem:[#allocation8_spill] sm:$0xff] %v3606_v63  ;;  %v1308_v3 = vmul.f32 0.25, %v1125_v60  ;;  %v1307_v29 = vmul.f32 0.25, %v1187_v34  ;;  %v1126_v60 = vrot.slane %v3634_v23, 7  ;;  %3054 = vmatprep.subr.mxu1 %v3647_v62  ;;  %v601_v22 = vmul.f32 0.75, %v3574_v32  ;;  %v3691_v32 = vld [vmem:[%s4785_s6 + $0x28] sm:$0xff] }
  0x53   : > { %v900_v11 = vsel %vm810_vm2, %v839_v18, %v3596_v7  ;;  %2973 = vmatprep.subr.mxu0 %v3580_v49  ;;  %3070 = vmatpush3.msra.mxu1 %v3647_v62  ;;  %v840_v50 = vsel %vm810_vm2, %v838_v53, %v839_v18 }
  0x54   : > { %1639 = vrot.lane.b32.xlu0 %v1369_v40, %s3132_s24  ;;  %v1051_v40 = vadd.f32 %v1019_v52, %v3606_v63  ;;  %v3664_v52 = vld [vmem:[%s3216_s20 + $0xb0] sm:$0xff]  ;;  %v1371_v34 = vadd.f32 %v1339_v51, %v1307_v29  ;;  %3055 = vmatprep.subr.mxu1 %v3657_v56  ;;  %v3682_v29 = vmul.f32 0.75, %v3596_v7  ;;  %v1022_v35 = vmul.f32 0.25, %v900_v11 }
  0x55   : > { %2974 = vmatpush3.msra.mxu0 %v3580_v49  ;;  %v3685_v38 = vmul.f32 0.25, %v3664_v52  ;;  %3071 = vmatpush3.msra.mxu1 %v3657_v56  ;;  %v1223_v49 = vrot.slane %v3637_v24, 1  ;;  %v1021_v11 = vmul.f32 0.25, %v840_v50  ;;  %v1222_v63 = vrot.slane %v3634_v23, 1 }
  0x56   : > { %1769 = vrot.lane.b32.xlu1 %v1434_v13, %s3134_s26  ;;  %v1372_v13 = vadd.f32 %v1340_v5, %v1308_v3  ;;  %v3674_v3 = vld [vmem:[%s4785_s6 + $0x30] sm:$0xff]  ;;  %4830 = vst [vmem:[#allocation9_spill] sm:$0xff] %v3682_v29  ;;  %2975 = vmatprep.subr.mxu0 %v3592_v57  ;;  %v3716_v42 = vadd.f32 %v601_v22, %v3520_v0 }
  0x57   : > { %3056 = vmatprep.subr.mxu1 %v3674_v3  ;;  %2976 = vmatpush3.msra.mxu0 %v3592_v57  ;;  %v1284_v0 = vsel %vm810_vm2, %v1223_v49, %v3637_v24  ;;  %v3733_v57 = vadd.f32 %v601_v22, %v3685_v38 }
  0x58   : > { %1767 = vrot.lane.b32.xlu0 %v1433_v61, %s3134_s26  ;;  %v1127_v61 = vrot.slane %v3637_v24, 7  ;;  %3072 = vmatpush3.msra.mxu1 %v3674_v3  ;;  %4833 = vst [vmem:[#allocation12_spill] sm:$0xff] %v3716_v42  ;;  %v841_v22 = vrot.slane %v3716_v42, 1 }
  0x59   : > { %3057 = vmatprep.subr.mxu1 %v3691_v32  ;;  %2977 = vmatprep.subr.mxu0 %v3612_v6  ;;  %v1225_v7 = vrot.slane %v3733_v57, 1 }
  0x5a   : > { %1517 = vrot.lane.b32.xlu1 %v1052_v12, %s3133_s25  ;;  %v536_v12 = vld [vmem:[%s3216_s20 + $0xb8] sm:$0xff]  ;;  %v1128_v18 = vsel %vm713_vm1, %v1126_v60, %v1127_v61  ;;  %v1188_v61 = vsel %vm713_vm1, %v3634_v23, %v1126_v60  ;;  %3073 = vmatpush3.msra.mxu1 %v3691_v32 }
  0x5b   : > { %v3698_v53 = vmul.f32 0.25, %v536_v12  ;;  %v3727_v60 = vld [vmem:[%s4785_s6 + $0x18] sm:$0xff]  ;;  %2978 = vmatpush3.msra.mxu0 %v3612_v6  ;;  %v604_v6 = vmul.f32 0.75, %v536_v12  ;;  %v603_v12 = vmul.f32 0.75, %v3664_v52 }
  0x5c   : > { %1515 = vrot.lane.b32.xlu0 %v1051_v40, %s3133_s25  ;;  %v1436_v40 = vadd.f32 %v1404_v31, %v1340_v5  ;;  %v3696_v5 = vadd.f32 %v602_v55, %v3522_v45  ;;  %v3704_v31 = vmul.f32 0.75, %v3618_v2  ;;  %v3710_v45 = vld [vmem:[%s4785_s6 + $0x20] sm:$0xff]  ;;  %2979 = vmatprep.subr.mxu0 %v3628_v14 }
  0x5d   : > { %3058 = vmatprep.subr.mxu1 %v3710_v45  ;;  %2980 = vmatpush3.msra.mxu0 %v3628_v14  ;;  %v3789_v52 = vadd.f32 %v604_v6, %v3601_v59 }
  0x5e   : > { %1645 = vrot.lane.b32.xlu1 %v1372_v13, %s3132_s24  ;;  %4831 = vst [vmem:[#allocation10_spill] sm:$0xff] %v3696_v5  ;;  %v1435_v13 = vadd.f32 %v1403_v1, %v1339_v51  ;;  %4832 = vst [vmem:[#allocation11_spill] sm:$0xff] %v3704_v31  ;;  %v1054_v51 = vadd.f32 %v1022_v35, %v3682_v29  ;;  %v1342_v1 = vmul.f32 0.75, %v3637_v24  ;;  %v842_v50 = vrot.slane %v3696_v5, 1  ;;  %v3747_v24 = vld [vmem:[%s4785_s6 + $0x10] sm:$0xff] }
  0x5f   : > { %v1053_v35 = vadd.f32 %v1021_v11, %v3704_v31  ;;  %v1341_v29 = vmul.f32 0.75, %v3634_v23  ;;  %3074 = vmatpush3.msra.mxu1 %v3710_v45  ;;  %v3758_v11 = vld [vmem:[%s4785_s6 + $0x8] sm:$0xff]  ;;  %v3773_v4 = vmul.f32 0.75, %v3696_v5  ;;  %4835 = vst [vmem:[#allocation14_spill] sm:$0xff] %v3789_v52  ;;  %2981 = vmatprep.subr.mxu0 %v3647_v62 }
  0x60   : > { %1643 = vrot.lane.b32.xlu0 %v1371_v34, %s3132_s24  ;;  %v1310_v34 = vmul.f32 0.25, %v1128_v18  ;;  %v1309_v18 = vmul.f32 0.25, %v1188_v61  ;;  %3059 = vmatprep.subr.mxu1 %v3727_v60  ;;  %v538_v31 = vld [vmem:[%s3216_s20 + $0xc8] sm:$0xff]  ;;  %v843_v48 = vsel %vm810_vm2, %v841_v22, %v842_v50 }
  0x61   : > { %3075 = vmatpush3.msra.mxu1 %v3727_v60  ;;  %4834 = vst [vmem:[#allocation13_spill] sm:$0xff] %v3773_v4  ;;  %v3794_v41 = vmul.f32 0.25, %v538_v31  ;;  %2982 = vmatpush3.msra.mxu0 %v3647_v62 }
  0x62   : > { %1773 = vrot.lane.b32.xlu1 %v1436_v40, %s3134_s26  ;;  %v3736_v40 = vadd.f32 %v602_v55, %v3698_v53  ;;  %v1224_v55 = vsel %vm810_vm2, %v1222_v63, %v1223_v49  ;;  %v1374_v23 = vadd.f32 %v1342_v1, %v1310_v34  ;;  %v901_v63 = vsel %vm810_vm2, %v842_v50, %v3696_v5 }
  0x63   : > { %v1129_v49 = vrot.slane %v3733_v57, 7  ;;  %3060 = vmatprep.subr.mxu1 %v3747_v24  ;;  %v1405_v34 = vmul.f32 0.25, %v1224_v55  ;;  %v1024_v55 = vmul.f32 0.25, %v901_v63  ;;  %2983 = vmatprep.subr.mxu0 %v3657_v56  ;;  %v3822_v62 = vadd.f32 %v604_v6, %v3794_v41 }
  0x64   : > { %1771 = vrot.lane.b32.xlu0 %v1435_v13, %s3134_s26  ;;  %v1406_v13 = vmul.f32 0.25, %v1284_v0  ;;  %v1130_v61 = vrot.slane %v3736_v40, 7  ;;  %v3768_v0 = vld [vmem:[%s3216_s20 + $0xc0] sm:$0xff]  ;;  %3076 = vmatpush3.msra.mxu1 %v3747_v24  ;;  %v1226_v5 = vrot.slane %v3736_v40, 1 }
  0x65   : > { %3061 = vmatprep.subr.mxu1 %v3758_v11  ;;  %v3792_v22 = vmul.f32 0.25, %v3768_v0  ;;  %v1437_v14 = vadd.f32 %v1405_v34, %v1341_v29  ;;  %v1189_v59 = vsel %vm713_vm1, %v3733_v57, %v1129_v49  ;;  %2984 = vmatpush3.msra.mxu0 %v3657_v56 }
  0x66   : > { %1521 = vrot.lane.b32.xlu1 %v1054_v51, %s3133_s25  ;;  %v1373_v51 = vadd.f32 %v1341_v29, %v1309_v18  ;;  %v1438_v18 = vadd.f32 %v1406_v13, %v1342_v1  ;;  %v1131_v50 = vsel %vm713_vm1, %v1129_v49, %v1130_v61  ;;  %3077 = vmatpush3.msra.mxu1 %v3758_v11  ;;  %v3800_v1 = vmul.f32 0.75, %v3716_v42 }
  0x67   : > { %v3806_v13 = vadd.f32 %v603_v12, %v3599_v10  ;;  %v1056_v29 = vadd.f32 %v1024_v55, %v3773_v4  ;;  %v1312_v63 = vmul.f32 0.25, %v1131_v50  ;;  %v1344_v61 = vmul.f32 0.75, %v3736_v40  ;;  %2985 = vmatprep.subr.mxu0 %v3674_v3 }
  0x68   : > { %1519 = vrot.lane.b32.xlu0 %v1053_v35, %s3133_s25  ;;  %v3781_v35 = vld [vmem:[%s4785_s6] sm:$0xff]  ;;  %4836 = vst [vmem:[#allocation15_spill] sm:$0xff] %v3800_v1  ;;  %v1227_v49 = vsel %vm810_vm2, %v1225_v7, %v1226_v5  ;;  %v845_v10 = vrot.slane %v3789_v52, 1  ;;  %2986 = vmatpush3.msra.mxu0 %v3674_v3  ;;  %v1133_v50 = vrot.slane %v3822_v62, 7  ;;  %v539_v3 = vld [vmem:[%s3216_s20 + $0xd0] sm:$0xff] }
  0x69   : > { %3062 = vmatprep.subr.mxu1 %v3781_v35  ;;  %4837 = vst [vmem:[#allocation16_spill] sm:$0xff] %v3806_v13  ;;  %v844_v7 = vrot.slane %v3806_v13, 1  ;;  %v1376_v6 = vadd.f32 %v1344_v61, %v1312_v63  ;;  %2987 = vmatprep.subr.mxu0 %v3691_v32 }
  0x6a   : > { %1649 = vrot.lane.b32.xlu1 %v1374_v23, %s3132_s24  ;;  %v1023_v23 = vmul.f32 0.25, %v843_v48  ;;  %3078 = vmatpush3.msra.mxu1 %v3781_v35  ;;  %v1285_v48 = vsel %vm810_vm2, %v1226_v5, %v3736_v40  ;;  %v1343_v40 = vmul.f32 0.75, %v3733_v57  ;;  %v606_v5 = vmul.f32 0.75, %v538_v31 }
  0x6b   : > { %v1408_v56 = vmul.f32 0.25, %v1285_v48  ;;  %v902_v55 = vsel %vm810_vm2, %v845_v10, %v3789_v52  ;;  %2988 = vmatpush3.msra.mxu0 %v3691_v32  ;;  %v3850_v48 = vmul.f32 0.75, %v3789_v52 }
  0x6c   : > { %1647 = vrot.lane.b32.xlu0 %v1373_v51, %s3132_s24  ;;  %v3819_v51 = vadd.f32 %v603_v12, %v3792_v22  ;;  %v1055_v34 = vadd.f32 %v1023_v23, %v3800_v1  ;;  %v1407_v12 = vmul.f32 0.25, %v1227_v49  ;;  %2989 = vmatprep.subr.mxu0 %v3710_v45  ;;  %v846_v23 = vsel %vm810_vm2, %v844_v7, %v845_v10 }
  0x6d   : > { %2990 = vmatpush3.msra.mxu0 %v3710_v45  ;;  %v1440_v63 = vadd.f32 %v1408_v56, %v1344_v61  ;;  %4839 = vst [vmem:[#allocation18_spill] sm:$0xff] %v3850_v48  ;;  %v1026_v49 = vmul.f32 0.25, %v902_v55  ;;  %v1229_v10 = vrot.slane %v3822_v62, 1  ;;  %v3862_v45 = vmul.f32 0.75, %v3806_v13 }
  0x6e   : > { %1777 = vrot.lane.b32.xlu1 %v1438_v18, %s3134_s26  ;;  %v1311_v18 = vmul.f32 0.25, %v1189_v59  ;;  %v1132_v57 = vrot.slane %v3819_v51, 7  ;;  %v3844_v59 = vadd.f32 %v606_v5, %v3698_v53  ;;  %v1439_v32 = vadd.f32 %v1407_v12, %v1343_v40  ;;  %2991 = vmatprep.subr.mxu0 %v3727_v60 }
  0x6f   : > { %v3855_v53 = vmul.f32 0.25, %v539_v3  ;;  %2992 = vmatpush3.msra.mxu0 %v3727_v60  ;;  %4840 = vst [vmem:[#allocation19_spill] sm:$0xff] %v3862_v45  ;;  %v1058_v60 = vadd.f32 %v1026_v49, %v3850_v48  ;;  %v1346_v12 = vmul.f32 0.75, %v3822_v62  ;;  %v1345_v55 = vmul.f32 0.75, %v3819_v51  ;;  %v3899_v49 = vld [vmem:[%s3216_s20] sm:$0xff] }
  0x70   : > { %1775 = vrot.lane.b32.xlu0 %v1437_v14, %s3134_s26  ;;  %v1375_v31 = vadd.f32 %v1343_v40, %v1311_v18  ;;  %v540_v14 = vld [vmem:[%s3216_s20 + $0xd8] sm:$0xff]  ;;  %4838 = vst [vmem:[#allocation17_spill] sm:$0xff] %v3844_v59  ;;  %v1190_v61 = vsel %vm713_vm1, %v3819_v51, %v1132_v57  ;;  %v1228_v40 = vrot.slane %v3819_v51, 1  ;;  %2993 = vmatprep.subr.mxu0 %v3747_v24  ;;  %v848_v7 = vrot.slane %v3844_v59, 1 }
  0x71   : > { %v3857_v18 = vmul.f32 0.25, %v540_v14  ;;  %2994 = vmatpush3.msra.mxu0 %v3747_v24  ;;  %v581_v48 = vmul.f32 0.75, %v3899_v49 }
  0x72   : > { %1525 = vrot.lane.b32.xlu1 %v1056_v29, %s3133_s25  ;;  %v605_v29 = vmul.f32 0.75, %v3768_v0  ;;  %v1025_v0 = vmul.f32 0.25, %v846_v23  ;;  %2995 = vmatprep.subr.mxu0 %v3758_v11  ;;  %v903_v23 = vsel %vm810_vm2, %v848_v7, %v3844_v59 }
  0x73   : > { %2996 = vmatpush3.msra.mxu0 %v3758_v11 }
  0x74   : > { %1523 = vrot.lane.b32.xlu0 %v1055_v34, %s3133_s25  ;;  %v1134_v34 = vsel %vm713_vm1, %v1132_v57, %v1133_v50  ;;  %v1313_v57 = vmul.f32 0.25, %v1190_v61  ;;  %v673_v24 = vadd.f32 %v605_v29, %v3855_v53  ;;  %v674_v50 = vadd.f32 %v606_v5, %v3857_v18  ;;  %2997 = vmatprep.subr.mxu0 %v3781_v35 }
  0x75   : > { %v1314_v56 = vmul.f32 0.25, %v1134_v34  ;;  %v1057_v51 = vadd.f32 %v1025_v0, %v3862_v45  ;;  %2998 = vmatpush3.msra.mxu0 %v3781_v35  ;;  %v3902_v34 = vld [vmem:[%s3216_s20 + $0x8] sm:$0xff]  ;;  %v3906_v35 = vmul.f32 0.75, %v3844_v59 }
  0x76   : > { %1653 = vrot.lane.b32.xlu1 %v1376_v6, %s3132_s24  ;;  %v3870_v6 = vadd.f32 %v605_v29, %v3685_v38  ;;  %v1286_v38 = vsel %vm810_vm2, %v1229_v10, %v3822_v62  ;;  %v545_v29 = vld [vmem:[%s469_s14] sm:$0xff]  ;;  %v1377_v0 = vadd.f32 %v1345_v55, %v1313_v57  ;;  %v1136_v45 = vrot.slane %v674_v50, 7 }
  0x77   : > { %v1378_v5 = vadd.f32 %v1346_v12, %v1314_v56  ;;  %v1410_v11 = vmul.f32 0.25, %v1286_v38  ;;  %4842 = vst [vmem:[#allocation21_spill] sm:$0xff] %v3906_v35  ;;  %v1232_v56 = vrot.slane %v674_v50, 1  ;;  %v549_v38 = vmul.f32 0.25, %v545_v29 }
  0x78   : > { %1651 = vrot.lane.b32.xlu0 %v1375_v31, %s3132_s24  ;;  %4841 = vst [vmem:[#allocation20_spill] sm:$0xff] %v3870_v6  ;;  %v1230_v31 = vsel %vm810_vm2, %v1228_v40, %v1229_v10  ;;  %v847_v62 = vrot.slane %v3870_v6, 1  ;;  %v546_v10 = vld [vmem:[%s469_s14 + $0x8] sm:$0xff]  ;;  %v1135_v40 = vrot.slane %v673_v24, 7  ;;  %v3911_v4 = vmul.f32 0.75, %v3902_v34 }
  0x79   : > { %v1409_v61 = vmul.f32 0.25, %v1230_v31  ;;  %v1442_v57 = vadd.f32 %v1410_v11, %v1346_v12  ;;  %v1231_v31 = vrot.slane %v673_v24, 1  ;;  %v3926_v12 = vmul.f32 0.75, %v3870_v6  ;;  %v3929_v11 = vld [vmem:[%s3216_s20 + $0xe0] sm:$0xff] }
  0x7a   : > { %1781 = vrot.lane.b32.xlu1 %v1440_v63, %s3134_s26  ;;  %v3896_v63 = vmul.f32 0.75, %v540_v14  ;;  %v849_v14 = vsel %vm810_vm2, %v847_v62, %v848_v7  ;;  %v1137_v7 = vsel %vm713_vm1, %v1135_v40, %v1136_v45  ;;  %v724_v62 = vrot.slane %v3270_v33, 7 }
  0x7b   : > { %v1441_v29 = vadd.f32 %v1409_v61, %v1345_v55  ;;  %4845 = vst [vmem:[#allocation24_spill] sm:$0xff] %v3926_v12  ;;  %v1287_v55 = vsel %vm810_vm2, %v1232_v56, %v674_v50  ;;  %v3933_v45 = vadd.f32 %v581_v48, %v549_v38  ;;  %v1233_v61 = vsel %vm810_vm2, %v1231_v31, %v1232_v56 }
  0x7c   : > { %1779 = vrot.lane.b32.xlu0 %v1439_v32, %s3134_s26  ;;  %v607_v32 = vmul.f32 0.75, %v539_v3  ;;  %v550_v3 = vmul.f32 0.25, %v546_v10  ;;  %v3949_v38 = vmul.f32 0.25, %v3929_v11  ;;  %v1347_v56 = vmul.f32 0.75, %v673_v24 }
  0x7d   : > { %4846 = vst [vmem:[#allocation25_spill] sm:$0xff] %v3933_v45  ;;  %v1412_v31 = vmul.f32 0.25, %v1287_v55  ;;  %v1411_v59 = vmul.f32 0.25, %v1233_v61  ;;  %v811_v1 = vrot.slane %v3933_v45, 1 }
  0x7e   : > { %1529 = vrot.lane.b32.xlu1 %v1058_v60, %s3133_s25  ;;  %v1028_v60 = vmul.f32 0.25, %v903_v23  ;;  %v3919_v23 = vadd.f32 %v3896_v63, %v3794_v41  ;;  %v1191_v41 = vsel %vm713_vm1, %v673_v24, %v1135_v40  ;;  %v3936_v33 = vadd.f32 %v3911_v4, %v550_v3 }
  0x7f   : > { %v3967_v55 = vadd.f32 %v607_v32, %v3949_v38 }
  0x80   : > { %1527 = vrot.lane.b32.xlu0 %v1057_v51, %s3133_s25  ;;  %v3915_v51 = vadd.f32 %v607_v32, %v3792_v22  ;;  %4844 = vst [vmem:[#allocation23_spill] sm:$0xff] %v3919_v23  ;;  %v1060_v10 = vadd.f32 %v1028_v60, %v3906_v35  ;;  %v1348_v22 = vmul.f32 0.75, %v674_v50  ;;  %4847 = vst [vmem:[#allocation26_spill] sm:$0xff] %v3936_v33  ;;  %v3943_v35 = vld [vmem:[%s3216_s20 + $0x10] sm:$0xff]  ;;  %v4848_v50 = vrot.slane %v3259_v27, 7 }
  0x81   : > { %v812_v6 = vrot.slane %v3936_v33, 1  ;;  %v3957_v27 = vmul.f32 0.25, %v3943_v35 }
  0x82   : > { %1657 = vrot.lane.b32.xlu1 %v1378_v5, %s3132_s24  ;;  %4843 = vst [vmem:[#allocation22_spill] sm:$0xff] %v3915_v51  ;;  %v1027_v5 = vmul.f32 0.25, %v849_v14  ;;  %v850_v60 = vrot.slane %v3915_v51, 1  ;;  %v851_v14 = vrot.slane %v3919_v23, 1  ;;  %v725_v40 = vsel %vm713_vm1, %v4848_v50, %v724_v62  ;;  %v516_v62 = vld [vmem:[%s3216_s20 + $0x18] sm:$0xff] }
  0x83   : > { %v914_v52 = vmul.f32 0.25, %v725_v40  ;;  %v1443_v40 = vadd.f32 %v1411_v59, %v1347_v56  ;;  %v3981_v32 = vadd.f32 %v581_v48, %v3957_v27 }
  0x84   : > { %1655 = vrot.lane.b32.xlu0 %v1377_v0, %s3132_s24  ;;  %v1316_v0 = vmul.f32 0.25, %v1137_v7  ;;  %v1059_v3 = vadd.f32 %v1027_v5, %v3926_v12  ;;  %v542_v7 = vld [vmem:[%s3216_s20 + $0xe8] sm:$0xff]  ;;  %v904_v24 = vsel %vm810_vm2, %v851_v14, %v3919_v23  ;;  %v727_v5 = vrot.slane %v3286_v44, 7 }
  0x85   : > { %v3969_v61 = vmul.f32 0.25, %v542_v7  ;;  %v891_v44 = vsel %vm810_vm2, %v812_v6, %v3936_v33 }
  0x86   : > { %1785 = vrot.lane.b32.xlu1 %v1442_v57, %s3134_s26  ;;  %v1315_v57 = vmul.f32 0.25, %v1191_v41  ;;  %v1380_v50 = vadd.f32 %v1348_v22, %v1316_v0  ;;  %v726_v41 = vrot.slane %v3266_v30, 7  ;;  %v3973_v0 = vmul.f32 0.75, %v3915_v51 }
  0x87   : > { %v3996_v48 = vadd.f32 %v3896_v63, %v3969_v61  ;;  %v1099_v63 = vrot.slane %v3981_v32, 7 }
  0x88   : > { %1783 = vrot.lane.b32.xlu0 %v1441_v29, %s3134_s26  ;;  %v852_v29 = vsel %vm810_vm2, %v850_v60, %v851_v14  ;;  %v1379_v12 = vadd.f32 %v1347_v56, %v1315_v57  ;;  %4849 = vst [vmem:[#allocation27_spill] sm:$0xff] %v3973_v0  ;;  %v3975_v60 = vmul.f32 0.25, %v516_v62  ;;  %v813_v14 = vsel %vm810_vm2, %v811_v1, %v812_v6 }
  0x89   : > { %v1029_v13 = vmul.f32 0.25, %v852_v29  ;;  %v1030_v57 = vmul.f32 0.25, %v904_v24  ;;  %v728_v59 = vsel %vm713_vm1, %v726_v41, %v727_v5  ;;  %v798_v1 = vsel %vm713_vm1, %v3266_v30, %v726_v41 }
  0x8a   : > { %1533 = vrot.lane.b32.xlu1 %v1060_v10, %s3133_s25  ;;  %v1444_v10 = vadd.f32 %v1412_v31, %v1348_v22  ;;  %v3988_v22 = vmul.f32 0.75, %v3919_v23  ;;  %v1138_v6 = vrot.slane %v3967_v55, 7  ;;  %v1003_v31 = vmul.f32 0.25, %v813_v14 }
  0x8b   : > { %v1004_v29 = vmul.f32 0.25, %v891_v44  ;;  %v4006_v24 = vadd.f32 %v3911_v4, %v3975_v60  ;;  %v978_v30 = vadd.f32 %v3282_v43, %v914_v52  ;;  %v916_v14 = vmul.f32 0.25, %v728_v59 }
  0x8c   : > { %1531 = vrot.lane.b32.xlu0 %v1059_v3, %s3133_s25  ;;  %v3985_v3 = vmul.f32 0.75, %v3933_v45  ;;  %4851 = vst [vmem:[#allocation29_spill] sm:$0xff] %v3988_v22  ;;  %v1062_v41 = vadd.f32 %v1030_v57, %v3988_v22  ;;  %v915_v44 = vmul.f32 0.25, %v798_v1  ;;  %v1192_v43 = vsel %vm713_vm1, %v3967_v55, %v1138_v6 }
  0x8d   : > { %v4019_v52 = vmul.f32 0.75, %v542_v7  ;;  %v4026_v59 = vmul.f32 0.75, %v3967_v55  ;;  %v1179_v1 = vsel %vm713_vm1, %v3981_v32, %v1099_v63  ;;  %v3106_v7 = vld [vmem:[%s3216_s20 + $0x28] sm:$0xff]  ;;  %v1235_v23 = vrot.slane %v3996_v48, 1 }
  0x8e   : > { %1661 = vrot.lane.b32.xlu1 %v1380_v50, %s3132_s24  ;;  %4850 = vst [vmem:[#allocation28_spill] sm:$0xff] %v3985_v3  ;;  %v4002_v50 = vmul.f32 0.75, %v3936_v33  ;;  %v1139_v33 = vrot.slane %v3996_v48, 7  ;;  %v4034_v22 = vmul.f32 0.75, %v3106_v7  ;;  %v1291_v45 = vmul.f32 0.25, %v1179_v1 }
  0x90   : > { %1659 = vrot.lane.b32.xlu0 %v1379_v12, %s3132_s24  ;;  %v3999_v56 = vpop.permute.xlu1 %1623  ;;  %4852 = vst [vmem:[#allocation30_spill] sm:$0xff] %v4002_v50  ;;  %v1061_v12 = vadd.f32 %v1029_v13, %v3973_v0  ;;  %v1035_v13 = vadd.f32 %v1003_v31, %v3985_v3  ;;  %v1036_v57 = vadd.f32 %v1004_v29, %v4002_v50  ;;  %v1317_v31 = vmul.f32 0.25, %v1192_v43 }
  0x91   : > { %v4039_v29 = vmul.f32 0.75, %v3981_v32  ;;  %v4042_v50 = vmul.f32 0.75, %v3996_v48  ;;  %v4045_v3 = vmul.f32 0.75, %v3929_v11  ;;  %v1140_v7 = vsel %vm713_vm1, %v1138_v6, %v1139_v33 }
  0x92   : > { %v1496_v5 = vpop.permute.xlu0 %1495  ;;  %1789 = vrot.lane.b32.xlu1 %v1444_v10, %s3134_s26  ;;  %v1196_v11 = vrot.slane %v4006_v24, 1  ;;  %v551_v33 = vmul.f32 0.25, %v3899_v49  ;;  %v4073_v49 = vadd.f32 %v4019_v52, %v3857_v18  ;;  %v1324_v18 = vmul.f32 0.75, %v4006_v24 }
  0x93   : > { %v4015_v4 = vsel %vm1835_vm0, %v3299_v58, %v1496_v5  ;;  %v1100_v58 = vrot.slane %v4006_v24, 7  ;;  %v4031_v5 = vmul.f32 0.75, %v516_v62 }
  0x94   : > { %1787 = vrot.lane.b32.xlu0 %v1443_v40, %s3134_s26  ;;  %v1626_v10 = vpop.permute.xlu1 %1625  ;;  %v1234_v40 = vrot.slane %v3967_v55, 1  ;;  %v1195_v55 = vrot.slane %v3981_v32, 1  ;;  %v4061_v32 = vmul.f32 0.75, %v3943_v35  ;;  %v980_v35 = vadd.f32 %v3325_v21, %v916_v14 }
  0x95   : > { %v1101_v51 = vsel %vm713_vm1, %v1099_v63, %v1100_v58  ;;  %v1318_v63 = vmul.f32 0.25, %v1140_v7  ;;  %v4089_v7 = vld [vmem:[%s3216_s20 + $0xf0] sm:$0xff]  ;;  %v979_v21 = vadd.f32 %v3339_v39, %v915_v44  ;;  %v854_v39 = vrot.slane %v4073_v49, 1 }
  0x96   : > { %v1498_v0 = vpop.permute.xlu0 %1497  ;;  %1535 = vrot.lane.b32.xlu1 %v1061_v12, %s3133_s25  ;;  %v1236_v58 = vsel %vm810_vm2, %v1234_v40, %v1235_v23  ;;  %v4095_v14 = vadd.f32 %v4061_v32, %v551_v33 }
  0x97   : > { %v1843_v62 = vsel %vm1835_vm0, %v978_v30, %v1498_v0  ;;  %v552_v0 = vmul.f32 0.25, %v3902_v34  ;;  %v1381_v30 = vadd.f32 %v4026_v59, %v1317_v31  ;;  %v3107_v34 = vld [vmem:[%s3216_s20 + $0x20] sm:$0xff]  ;;  %v1292_v31 = vmul.f32 0.25, %v1101_v51 }
  0x98   : > { %1483 = vrot.lane.b32.xlu0 %v1035_v13, %s3133_s25  ;;  %v1754_v12 = vpop.permute.xlu1 %1753  ;;  %v1876_v43 = vsel %vm1868_vm3, %v1843_v62, %v1626_v10  ;;  %v4069_v10 = vadd.f32 %v4045_v3, %v3855_v53  ;;  %v4076_v13 = vmul.f32 0.75, %v3107_v34  ;;  %v1355_v53 = vadd.f32 %v4039_v29, %v1291_v45  ;;  %v544_v34 = vld [vmem:[%s3216_s20 + $0xf8] sm:$0xff]  ;;  %s2823_s20 = sadd.s32 240, %s3210_s17 }
  0x99   : > { %v4056_v42 = vsel %vm1901_vm4, %v1876_v43, %v1754_v12  ;;  %v1197_v62 = vsel %vm810_vm2, %v1195_v55, %v1196_v11  ;;  %v1382_v51 = vadd.f32 %v4042_v50, %v1318_v63  ;;  %v1413_v45 = vmul.f32 0.25, %v1236_v58  ;;  %s4192_s18 = scalar_lea.vmem %s4781_s2, %s2823_s20 }
  0x9a   : > { %v4063_v6 = vpop.permute.xlu0 %1751  ;;  %1537 = vrot.lane.b32.xlu1 %v1062_v41, %s3133_s25  ;;  %v4081_v41 = vadd.f32 %v4034_v22, %v3975_v60  ;;  %v1288_v60 = vsel %vm810_vm2, %v1235_v23, %v3996_v48  ;;  %v853_v55 = vrot.slane %v4069_v10, 1  ;;  %v1387_v44 = vmul.f32 0.25, %v1197_v62 }
  0x9b   : > { %v645_v23 = vmul.f32 0.25, %v4089_v7  ;;  %v4107_v48 = vadd.f32 %v4076_v13, %v3957_v27  ;;  %v1275_v63 = vsel %vm810_vm2, %v1196_v11, %v4006_v24  ;;  %v814_v62 = vrot.slane %v4095_v14, 1 }
  0x9c   : > { %1485 = vrot.lane.b32.xlu0 %v1036_v57, %s3133_s25  ;;  %v1502_v1 = vpop.permute.xlu1 %1501  ;;  %v4098_v57 = vadd.f32 %v4031_v5, %v552_v0  ;;  %v1356_v0 = vadd.f32 %v1324_v18, %v1292_v31 }
  0x9d   : > { %v1845_v43 = vsel %vm1835_vm0, %v980_v35, %v1502_v1  ;;  %v817_v16 = vrot.slane %v4107_v48, 1  ;;  %v1445_v1 = vadd.f32 %v1413_v45, %v4026_v59  ;;  %v4124_v24 = vmul.f32 0.75, %v4107_v48 }
  0x9e   : > { %v1500_v40 = vpop.permute.xlu0 %1499  ;;  %1663 = vrot.lane.b32.xlu1 %v1381_v30, %s3132_s24  ;;  %v1414_v30 = vmul.f32 0.25, %v1288_v60  ;;  %v815_v27 = vrot.slane %v4098_v57, 1  ;;  %v4128_v31 = vadd.f32 %v645_v23, %v4045_v3  ;;  %v646_v60 = vmul.f32 0.25, %v544_v34 }
  0x9f   : > { %v1844_v12 = vsel %vm1835_vm0, %v979_v21, %v1500_v40  ;;  %v1419_v59 = vadd.f32 %v1387_v44, %v4039_v29  ;;  %v905_v45 = vsel %vm810_vm2, %v854_v39, %v4073_v49  ;;  %v4146_v29 = vmul.f32 0.75, %v4069_v10 }
  0xa0   : > { %1611 = vrot.lane.b32.xlu0 %v1355_v53, %s3132_s24  ;;  %v1630_v33 = vpop.permute.xlu1 %1629  ;;  %v855_v53 = vsel %vm810_vm2, %v853_v55, %v854_v39  ;;  %v1446_v3 = vadd.f32 %v1414_v30, %v4042_v50  ;;  %v816_v23 = vsel %vm810_vm2, %v814_v62, %v815_v27  ;;  %v4149_v39 = vmul.f32 0.75, %v4073_v49 }
  0xa1   : > { %v1878_v58 = vsel %vm1868_vm3, %v1845_v43, %v1630_v33  ;;  %v4853_v43 = vrot.slane %v4081_v41, 1  ;;  %v1031_v44 = vmul.f32 0.25, %v855_v53  ;;  %v1032_v30 = vmul.f32 0.25, %v905_v45 }
  0xa2   : > { %v1628_v35 = vpop.permute.xlu0 %1627  ;;  %1665 = vrot.lane.b32.xlu1 %v1382_v51, %s3132_s24  ;;  %v1388_v51 = vmul.f32 0.25, %v1275_v63  ;;  %v4165_v62 = vmul.f32 0.75, %v4095_v14  ;;  %v892_v53 = vsel %vm810_vm2, %v815_v27, %v4098_v57 }
  0xa3   : > { %v1877_v11 = vsel %vm1868_vm3, %v1844_v12, %v1628_v35  ;;  %v819_v21 = vsel %vm810_vm2, %v817_v16, %v4853_v43  ;;  %v651_v16 = vadd.f32 %v4061_v32, %v3246_v19  ;;  %v1141_v19 = vrot.slane %v4128_v31, 7 }
  0xa4   : > { %1613 = vrot.lane.b32.xlu0 %v1356_v0, %s3132_s24  ;;  %v1758_v40 = vpop.permute.xlu1 %1757  ;;  %v1007_v55 = vmul.f32 0.25, %v819_v21  ;;  %v4159_v32 = vadd.f32 %v646_v60, %v4019_v52  ;;  %v1005_v35 = vmul.f32 0.25, %v816_v23  ;;  %v1063_v52 = vadd.f32 %v1031_v44, %v4146_v29 }
  0xa5   : > { %v4138_v12 = vsel %vm1901_vm4, %v1878_v58, %v1758_v40  ;;  %v1420_v58 = vadd.f32 %v1388_v51, %v1324_v18  ;;  %v1064_v18 = vadd.f32 %v1032_v30, %v4149_v39  ;;  %v4178_v60 = vmul.f32 0.75, %v4098_v57 }
  0xa6   : > { %4854 = vst [vmem:[#allocation31_spill] sm:$0xff] %v4138_v12  ;;  %v1756_v33 = vpop.permute.xlu0 %1755  ;;  %1791 = vrot.lane.b32.xlu1 %v1445_v1, %s3134_s26  ;;  %v4152_v0 = vadd.f32 %v1007_v55, %v4124_v24  ;;  %v652_v1 = vadd.f32 %v4031_v5, %v3248_v20  ;;  %v1193_v21 = vsel %vm713_vm1, %v4128_v31, %v1141_v19  ;;  %v1142_v20 = vrot.slane %v4159_v32, 7 }
  0xa7   : > { %v4155_v50 = vsel %vm1901_vm4, %v1877_v11, %v1756_v33  ;;  %v1102_v11 = vrot.slane %v651_v16, 7  ;;  %v1037_v27 = vadd.f32 %v1005_v35, %v4165_v62  ;;  %v1006_v40 = vmul.f32 0.25, %v892_v53  ;;  %v547_v53 = vld [vmem:[%s4192_s18] sm:$0xff] }
  0xa8   : > { %1739 = vrot.lane.b32.xlu0 %v1419_v59, %s3134_s26  ;;  %v4162_v63 = vpop.permute.xlu1 %1505  ;;  %v4187_v59 = vmul.f32 0.75, %v544_v34  ;;  %v1103_v51 = vrot.slane %v652_v1, 7  ;;  %v1237_v55 = vrot.slane %v4128_v31, 1  ;;  %v611_v23 = vmul.f32 0.75, %v4089_v7 }
  0xa9   : > { %4855 = vst [vmem:[#allocation32_spill] sm:$0xff] %v4162_v63  ;;  %v1180_v45 = vsel %vm713_vm1, %v651_v16, %v1102_v11  ;;  %v1319_v34 = vmul.f32 0.25, %v1193_v21  ;;  %v1351_v44 = vmul.f32 0.75, %v4128_v31  ;;  %v1198_v30 = vrot.slane %v651_v16, 1 }
  0xaa   : > { %v4172_v43 = vpop.permute.xlu0 %1503  ;;  %1793 = vrot.lane.b32.xlu1 %v1446_v3, %s3134_s26  ;;  %v1238_v3 = vrot.slane %v4159_v32, 1  ;;  %v1143_v35 = vsel %vm713_vm1, %v1141_v19, %v1142_v20  ;;  %v1038_v63 = vadd.f32 %v1006_v40, %v4178_v60  ;;  %v1293_v12 = vmul.f32 0.25, %v1180_v45 }
  0xab   : > { %4856 = vst [vmem:[#allocation33_spill] sm:$0xff] %v4172_v43  ;;  %v1325_v7 = vmul.f32 0.75, %v651_v16  ;;  %v4212_v31 = vadd.f32 %v611_v23, %v3949_v38  ;;  %v4216_v19 = vadd.f32 %v4187_v59, %v3969_v61  ;;  %v1320_v40 = vmul.f32 0.25, %v1143_v35 }
  0xac   : > { %1741 = vrot.lane.b32.xlu0 %v1420_v58, %s3134_s26  ;;  %v4184_v5 = vpop.permute.xlu1 %1633  ;;  %v1199_v58 = vrot.slane %v652_v1, 1  ;;  %v1239_v21 = vsel %vm810_vm2, %v1237_v55, %v1238_v3  ;;  %v647_v45 = vmul.f32 0.25, %v547_v53  ;;  %v1326_v55 = vmul.f32 0.75, %v652_v1 }
  0xad   : > { %4857 = vst [vmem:[#allocation34_spill] sm:$0xff] %v4184_v5  ;;  %v856_v61 = vrot.slane %v4212_v31, 1  ;;  %v4240_v53 = vadd.f32 %v4076_v13, %v3243_v17  ;;  %v4861_v17 = vrot.slane %v4081_v41, 1 }
  0xae   : > { %v4198_v33 = vpop.permute.xlu0 %1631  ;;  %1539 = vrot.lane.b32.xlu1 %v1063_v52, %s3133_s25  ;;  %v1104_v52 = vsel %vm713_vm1, %v1102_v11, %v1103_v51  ;;  %v1200_v16 = vsel %vm810_vm2, %v1198_v30, %v1199_v58  ;;  %v1357_v51 = vadd.f32 %v1325_v7, %v1293_v12  ;;  %v4230_v30 = vadd.f32 %v647_v45, %v611_v23 }
  0xaf   : > { %4858 = vst [vmem:[#allocation35_spill] sm:$0xff] %v4198_v33  ;;  %v1352_v33 = vmul.f32 0.75, %v4159_v32  ;;  %v1294_v38 = vmul.f32 0.25, %v1104_v52  ;;  %v1389_v43 = vmul.f32 0.25, %v1200_v16  ;;  %v1875_v12 = vsel %vm1868_vm3, %v4015_v4, %v3999_v56  ;;  %v548_v56 = vld [vmem:[%s4192_s18 + $0x8] sm:$0xff] }
  0xb0   : > { %1487 = vrot.lane.b32.xlu0 %v1037_v27, %s3133_s25  ;;  %v4205_v5 = vpop.permute.xlu1 %1761  ;;  %v1383_v27 = vadd.f32 %v1351_v44, %v1319_v34  ;;  %v1276_v35 = vsel %vm810_vm2, %v1199_v58, %v652_v1  ;;  %v4244_v52 = vsel %vm1901_vm4, %v1875_v12, %v4063_v6  ;;  %v893_v13 = vsel %vm810_vm2, %v4861_v17, %v4081_v41 }
  0xb1   : > { %4859 = vst [vmem:[#allocation36_spill] sm:$0xff] %v4205_v5  ;;  %v1415_v5 = vmul.f32 0.25, %v1239_v21  ;;  %v1384_v34 = vadd.f32 %v1352_v33, %v1320_v40  ;;  %v1358_v21 = vadd.f32 %v1326_v55, %v1294_v38  ;;  %v1421_v4 = vadd.f32 %v1389_v43, %v1325_v7 }
  0xb2   : > { %v4218_v20 = vpop.permute.xlu0 %1759  ;;  %1541 = vrot.lane.b32.xlu1 %v1064_v18, %s3133_s25  ;;  %v1390_v58 = vmul.f32 0.25, %v1276_v35  ;;  %v1144_v43 = vrot.slane %v4230_v30, 7  ;;  %v1105_v7 = vrot.slane %v4240_v53, 7  ;;  %v4270_v40 = vadd.f32 %v4034_v22, %v3256_v26 }
  0xb3   : > { %4860 = vst [vmem:[#allocation37_spill] sm:$0xff] %v4218_v20  ;;  %v857_v20 = vrot.slane %v4216_v19, 1  ;;  %v4276_v38 = vmul.f32 0.75, %v4081_v41  ;;  %v4297_v17 = vmul.f32 0.75, %v4230_v30 }
  0xb4   : > { %1489 = vrot.lane.b32.xlu0 %v1038_v63, %s3133_s25  ;;  %v4223_v11 = vpop.permute.xlu1 %1509  ;;  %v1289_v63 = vsel %vm810_vm2, %v1238_v3, %v4159_v32  ;;  %v1422_v26 = vadd.f32 %v1390_v58, %v1326_v55  ;;  %v1181_v22 = vsel %vm713_vm1, %v4240_v53, %v1105_v7  ;;  %v756_v55 = vrot.slane %v4069_v10, 7 }
  0xb5   : > { %v858_v32 = vsel %vm810_vm2, %v856_v61, %v857_v20  ;;  %v906_v1 = vsel %vm810_vm2, %v857_v20, %v4216_v19  ;;  %v1416_v3 = vmul.f32 0.25, %v1289_v63  ;;  %v648_v20 = vmul.f32 0.25, %v548_v56 }
  0xb6   : > { %v4227_v18 = vpop.permute.xlu0 %1507  ;;  %1667 = vrot.lane.b32.xlu1 %v1383_v27, %s3132_s24  ;;  %v1447_v27 = vadd.f32 %v1415_v5, %v1351_v44  ;;  %v4261_v5 = vmul.f32 0.75, %v4216_v19  ;;  %v4265_v44 = vmul.f32 0.75, %v4212_v31  ;;  %v1033_v45 = vmul.f32 0.25, %v858_v32 }
  0xb7   : > { %v1008_v61 = vmul.f32 0.25, %v893_v13  ;;  %v1448_v12 = vadd.f32 %v1416_v3, %v1352_v33  ;;  %v1194_v63 = vsel %vm713_vm1, %v4230_v30, %v1144_v43  ;;  %v4286_v35 = vadd.f32 %v648_v20, %v4187_v59 }
  0xb8   : > { %1615 = vrot.lane.b32.xlu0 %v1357_v51, %s3132_s24  ;;  %v4247_v23 = vpop.permute.xlu1 %1637  ;;  %v1034_v51 = vmul.f32 0.25, %v906_v1  ;;  %v1065_v32 = vadd.f32 %v1033_v45, %v4265_v44  ;;  %v1321_v1 = vmul.f32 0.25, %v1194_v63  ;;  %v4300_v59 = vmul.f32 0.75, %v4240_v53 }
  0xb9   : > { %v1240_v13 = vrot.slane %v4230_v30, 1  ;;  %v1295_v3 = vmul.f32 0.25, %v1181_v22  ;;  %v808_v58 = vsel %vm713_vm1, %v4069_v10, %v756_v55  ;;  %v717_v20 = vrot.slane %v4095_v14, 7 }
  0xba   : > { %v4257_v6 = vpop.permute.xlu0 %1635  ;;  %1669 = vrot.lane.b32.xlu1 %v1384_v34, %s3132_s24  ;;  %v1066_v33 = vadd.f32 %v1034_v51, %v4261_v5  ;;  %v757_v45 = vrot.slane %v4073_v49, 7  ;;  %v1145_v51 = vrot.slane %v4286_v35, 7  ;;  %v935_v30 = vmul.f32 0.25, %v808_v58 }
  0xbb   : > { %v795_v10 = vsel %vm713_vm1, %v4095_v14, %v717_v20  ;;  %v718_v49 = vrot.slane %v4098_v57, 7  ;;  %v720_v14 = vrot.slane %v4107_v48, 7 }
  0xbc   : > { %1617 = vrot.lane.b32.xlu0 %v1358_v21, %s3132_s24  ;;  %v4273_v16 = vpop.permute.xlu1 %1765  ;;  %v1106_v21 = vrot.slane %v4270_v40, 7  ;;  %v758_v22 = vsel %vm713_vm1, %v756_v55, %v757_v45  ;;  %v760_v55 = vrot.slane %v4216_v19, 7  ;;  %v1146_v57 = vsel %vm713_vm1, %v1144_v43, %v1145_v51 }
  0xbd   : > { %4862 = vst [vmem:[#allocation38_spill] sm:$0xff] %v4273_v16  ;;  %v4325_v16 = vadd.f32 %v4146_v29, %v935_v30  ;;  %v796_v19 = vsel %vm713_vm1, %v4107_v48, %v720_v14  ;;  %v1202_v51 = vrot.slane %v4270_v40, 1 }
  0xbe   : > { %v4278_v34 = vpop.permute.xlu0 %1763  ;;  %1795 = vrot.lane.b32.xlu1 %v1447_v27, %s3134_s26  ;;  %v1040_v27 = vadd.f32 %v1008_v61, %v4276_v38  ;;  %v4312_v61 = vmul.f32 0.75, %v4286_v35  ;;  %v1107_v63 = vsel %vm713_vm1, %v1105_v7, %v1106_v21  ;;  %v909_v7 = vmul.f32 0.25, %v795_v10 }
  0xbf   : > { %v936_v21 = vmul.f32 0.25, %v758_v22  ;;  %v911_v10 = vmul.f32 0.25, %v796_v19  ;;  %v1322_v22 = vmul.f32 0.25, %v1146_v57 }
  0xc0   : > { %1743 = vrot.lane.b32.xlu0 %v1421_v4, %s3134_s26  ;;  %v4290_v56 = vpop.permute.xlu1 %1513 }
  0xc1   : > { %4863 = vst [vmem:[#allocation39_spill] sm:$0xff] %v4290_v56  ;;  %v4339_v29 = vadd.f32 %v4149_v39, %v936_v21 }
  0xc2   : > { %v4303_v4 = vpop.permute.xlu0 %1511  ;;  %1797 = vrot.lane.b32.xlu1 %v1448_v12, %s3134_s26  ;;  %v1241_v12 = vrot.slane %v4286_v35, 1 }
  0xc3   : > { %4864 = vst [vmem:[#allocation40_spill] sm:$0xff] %v4303_v4  ;;  %v1201_v4 = vrot.slane %v4240_v53, 1  ;;  %v4336_v53 = vadd.f32 %v4165_v62, %v909_v7  ;;  %v721_v62 = vrot.slane %v4081_v41, 7 }
  0xc4   : > { %1745 = vrot.lane.b32.xlu0 %v1422_v26, %s3134_s26  ;;  %v4316_v56 = vpop.permute.xlu1 %1641  ;;  %v719_v26 = vsel %vm713_vm1, %v717_v20, %v718_v49 }
  0xc5   : > { %4865 = vst [vmem:[#allocation41_spill] sm:$0xff] %v4316_v56  ;;  %v759_v56 = vrot.slane %v4212_v31, 7  ;;  %v910_v45 = vmul.f32 0.25, %v719_v26  ;;  %v722_v48 = vsel %vm713_vm1, %v720_v14, %v721_v62  ;;  %v1328_v26 = vmul.f32 0.75, %v4270_v40 }
  0xc6   : > { %v4327_v58 = vpop.permute.xlu0 %1639  ;;  %1543 = vrot.lane.b32.xlu1 %v1065_v32, %s3133_s25  ;;  %v912_v7 = vmul.f32 0.25, %v722_v48 }
  0xc7   : > { %v809_v20 = vsel %vm713_vm1, %v4212_v31, %v759_v56  ;;  %v761_v43 = vsel %vm713_vm1, %v759_v56, %v760_v55  ;;  %v4353_v39 = vadd.f32 %v4178_v60, %v910_v45  ;;  %v1385_v31 = vadd.f32 %v4297_v17, %v1321_v1 }
  0xc8   : > { %1491 = vrot.lane.b32.xlu0 %v4152_v0, %s3133_s25  ;;  %v4343_v32 = vpop.permute.xlu1 %1769  ;;  %v937_v30 = vmul.f32 0.25, %v809_v20  ;;  %v938_v49 = vmul.f32 0.25, %v761_v43  ;;  %v1242_v56 = vsel %vm810_vm2, %v1240_v13, %v1241_v12  ;;  %v4365_v60 = vadd.f32 %v4124_v24, %v911_v10 }
  0xc9   : > { %v1296_v1 = vmul.f32 0.25, %v1107_v63  ;;  %v1203_v13 = vsel %vm810_vm2, %v1201_v4, %v1202_v51  ;;  %v1417_v55 = vmul.f32 0.25, %v1242_v56  ;;  %v730_v56 = vrot.slane %v3346_v9, 7 }
  0xca   : > { %v4355_v0 = vpop.permute.xlu0 %1767  ;;  %1545 = vrot.lane.b32.xlu1 %v1066_v33, %s3133_s25  ;;  %v4362_v41 = vadd.f32 %v4265_v44, %v937_v30  ;;  %4866 = vst [vmem:[#allocation42_spill] sm:$0xff] %v4365_v60  ;;  %v1359_v33 = vadd.f32 %v4300_v59, %v1295_v3  ;;  %v4373_v14 = vadd.f32 %v4261_v5, %v938_v49  ;;  %v1391_v57 = vmul.f32 0.25, %v1203_v13 }
  0xcb   : > { %v4377_v44 = vadd.f32 %v4276_v38, %v912_v7  ;;  %v1290_v3 = vsel %vm810_vm2, %v1241_v12, %v4286_v35  ;;  %v1360_v5 = vadd.f32 %v1328_v26, %v1296_v1  ;;  %v1277_v38 = vsel %vm810_vm2, %v1202_v51, %v4270_v40 }
  0xcc   : > { %1493 = vrot.lane.b32.xlu0 %v1040_v27, %s3133_s25  ;;  %v4368_v21 = vpop.permute.xlu1 %1517  ;;  %4867 = vst [vmem:[#allocation43_spill] sm:$0xff] %v4373_v14  ;;  %v1386_v27 = vadd.f32 %v4312_v61, %v1322_v22  ;;  %v1449_v45 = vadd.f32 %v1417_v55, %v4297_v17  ;;  %v1418_v20 = vmul.f32 0.25, %v1290_v3  ;;  %v1423_v12 = vadd.f32 %v1391_v57, %v4300_v59  ;;  %v4409_v17 = vld [vmem:[%s4784_s5] ss:$0 sm:$0xff] }
  0xcd   : > { %4868 = vst [vmem:[#allocation44_spill] sm:$0xff] %v4377_v44  ;;  %v1392_v43 = vmul.f32 0.25, %v1277_v38  ;;  %v729_v22 = vrot.slane %v3349_v46, 7  ;;  %v733_v1 = vrot.slane %v3390_v25, 7  ;;  %v735_v13 = vrot.slane %v3470_v47, 7 }
  0xce   : > { %v4379_v24 = vpop.permute.xlu0 %1515  ;;  %1671 = vrot.lane.b32.xlu1 %v1385_v31, %s3132_s24  ;;  %v1450_v40 = vadd.f32 %v1418_v20, %v4312_v61  ;;  %v736_v3 = vrot.slane %v3455_v36, 7 }
  0xcf   : > { %v1424_v31 = vadd.f32 %v1392_v43, %v1328_v26  ;;  %v799_v55 = vsel %vm713_vm1, %v3349_v46, %v729_v22  ;;  %v731_v25 = vsel %vm713_vm1, %v729_v22, %v730_v56  ;;  %v801_v46 = vsel %vm713_vm1, %v3470_v47, %v735_v13 }
  0xd0   : > { %1619 = vrot.lane.b32.xlu0 %v1359_v33, %s3132_s24  ;;  %v4386_v63 = vpop.permute.xlu1 %1645  ;;  %v732_v33 = vrot.slane %v3413_v28, 7  ;;  %v737_v36 = vsel %vm713_vm1, %v735_v13, %v736_v3 }
  0xd2   : > { %v4390_v4 = vpop.permute.xlu0 %1643  ;;  %1673 = vrot.lane.b32.xlu1 %v1386_v27, %s3132_s24  ;;  %v734_v20 = vsel %vm713_vm1, %v732_v33, %v733_v1 }
  0xd4   : > { %1621 = vrot.lane.b32.xlu0 %v1360_v5, %s3132_s24  ;;  %v4397_v35 = vpop.permute.xlu1 %1773 }
  0xd5   : > { %v4394_v19 = vpop.f32.mrf.mxu0 }
  0xd6   : > { %v4402_v30 = vpop.permute.xlu0 %1771  ;;  %1799 = vrot.lane.b32.xlu1 %v1449_v45, %s3134_s26  ;;  %v917_v45 = vmul.f32 0.25, %v799_v55  ;;  %v922_v55 = vmul.f32 0.25, %v737_v36 }
  0xd7   : > { %v4400_v62 = vpop.f32.mrf.mxu0 }
  0xd8   : > { %1747 = vrot.lane.b32.xlu0 %v1423_v12, %s3134_s26  ;;  %v4412_v10 = vpop.permute.xlu1 %1521  ;;  %v800_v12 = vsel %vm713_vm1, %v3413_v28, %v732_v33  ;;  %v920_v28 = vmul.f32 0.25, %v734_v20  ;;  %v981_v47 = vadd.f32 %v3398_v37, %v917_v45  ;;  %v741_v37 = vrot.slane %v3618_v2, 7 }
  0xd9   : > { %v2924_v51 = vpop.f32.mrf.mxu0  ;;  %v919_v33 = vmul.f32 0.25, %v800_v12 }
  0xda   : > { %v4415_v59 = vadd.f32 %v2924_v51, %v4409_v17  ;;  %v4418_v48 = vpop.permute.xlu0 %1519  ;;  %1801 = vrot.lane.b32.xlu1 %v1450_v40, %s3134_s26  ;;  %v738_v40 = vrot.slane %v3534_v54, 7  ;;  %v739_v51 = vrot.slane %v3517_v8, 7 }
  0xdb   : > { %v2149_v49 = vpop.f32.mrf.mxu0 }
  0xdc   : > { %v4422_v61 = vadd.f32 %v4409_v17, %v2149_v49  ;;  %1749 = vrot.lane.b32.xlu0 %v1424_v31, %s3134_s26  ;;  %v4429_v26 = vpop.permute.xlu1 %1649  ;;  %v918_v49 = vmul.f32 0.25, %v731_v25  ;;  %v740_v8 = vsel %vm713_vm1, %v738_v40, %v739_v51  ;;  %v802_v25 = vsel %vm713_vm1, %v3534_v54, %v738_v40  ;;  %v4872_v51 = vld [vmem:[#allocation3_spill] sm:$0xff] }
  0xdd   : > { %v2927_v7 = vpop.f32.mrf.mxu0  ;;  %v923_v44 = vmul.f32 0.25, %v802_v25 }
  0xde   : > { %v4432_v27 = vadd.f32 %v2927_v7, %v4409_v17  ;;  %v4437_v5 = vpop.permute.xlu0 %1647  ;;  %v982_v12 = vadd.f32 %v3384_v15, %v918_v49 }
  0xdf   : > { %v2159_v9 = vpop.f32.mrf.mxu0 }
  0xe0   : > { %4869 = vst [vmem:[#allocation45_spill] sm:$0xff] %v4432_v27  ;;  %v4440_v57 = vadd.f32 %v4409_v17, %v2159_v9  ;;  %v4448_v43 = vpop.permute.xlu1 %1777  ;;  %v921_v9 = vmul.f32 0.25, %v801_v46  ;;  %v4873_v27 = vld [vmem:[#allocation7_spill] sm:$0xff] }
  0xe1   : > { %v2930_v38 = vpop.f32.mrf.mxu0  ;;  %v742_v54 = vrot.slane %v4873_v27, 7 }
  0xe2   : > { %4870 = vst [vmem:[#allocation46_spill] sm:$0xff] %v4440_v57  ;;  %v2175_v31 = vadd.f32 %v2930_v38, %v4409_v17  ;;  %v4454_v56 = vpop.permute.xlu0 %1775  ;;  %v4875_v57 = vld [vmem:[#allocation33_spill] sm:$0xff] }
  0xe3   : > { %v2169_v22 = vpop.f32.mrf.mxu0 }
  0xe4   : > { %v2170_v7 = vadd.f32 %v4409_v17, %v2169_v22  ;;  %v4458_v13 = vpop.permute.xlu1 %1525  ;;  %v2305_v38 = vadd.f32 %v2175_v31, %v4056_v42  ;;  %v4874_v42 = vld [vmem:[#allocation5_spill] sm:$0xff] }
  0xe5   : > { %v2933_v1 = vpop.f32.mrf.mxu0  ;;  %v985_v31 = vadd.f32 %v4874_v42, %v921_v9  ;;  %v4879_v9 = vld [vmem:[#allocation35_spill] sm:$0xff] }
  0xe6   : > { %v2304_v3 = vadd.f32 %v2170_v7, %v4244_v52  ;;  %v2185_v22 = vadd.f32 %v2933_v1, %v4409_v17  ;;  %v4468_v45 = vpop.permute.xlu0 %1523  ;;  %v4871_v52 = vld [vmem:[#allocation2_spill] sm:$0xff]  ;;  %v983_v7 = vadd.f32 %v4872_v51, %v919_v33  ;;  %v924_v1 = vmul.f32 0.25, %v740_v8  ;;  %v4878_v51 = vld [vmem:[#allocation32_spill] sm:$0xff] }
  0xe7   : > { %v2179_v20 = vpop.f32.mrf.mxu0  ;;  %v984_v36 = vadd.f32 %v4871_v52, %v920_v28  ;;  %v4877_v28 = vld [vmem:[#allocation31_spill] sm:$0xff] }
  0xe8   : > { %v2180_v46 = vadd.f32 %v4409_v17, %v2179_v20  ;;  %3008 = vmatprep.mubr.f32.mxu1 %v2304_v3  ;;  %v4476_v49 = vpop.permute.xlu1 %1653  ;;  %v1846_v20 = vsel %vm1835_vm0, %v981_v47, %v4875_v57  ;;  %v4876_v3 = vld [vmem:[#allocation4_spill] sm:$0xff]  ;;  %v2307_v52 = vadd.f32 %v2185_v22, %v4877_v28  ;;  %v4880_v47 = vld [vmem:[#allocation34_spill] sm:$0xff]  ;;  %v4881_v22 = vld [vmem:[#allocation37_spill] sm:$0xff] }
  0xe9   : > { %v2936_v40 = vpop.f32.mrf.mxu0  ;;  %3009 = vmatmul.mubr.f32.vlgmr.msra.gmra.mxu1 %v2305_v38  ;;  %v986_v14 = vadd.f32 %v4876_v3, %v922_v55  ;;  %v1847_v38 = vsel %vm1835_vm0, %v982_v12, %v4878_v51  ;;  %v1879_v8 = vsel %vm1868_vm3, %v1846_v20, %v4879_v9  ;;  %v4882_v12 = vld [vmem:[#allocation12_spill] sm:$0xff]  ;;  %v4884_v28 = vld [vmem:[#allocation6_spill] sm:$0xff] }
  0xea   : > { %v2306_v15 = vadd.f32 %v2180_v46, %v4155_v50  ;;  %v2195_v33 = vadd.f32 %v2936_v40, %v4409_v17  ;;  %v803_v50 = vsel %vm713_vm1, %v3618_v2, %v741_v37  ;;  %v4489_v25 = vpop.permute.xlu0 %1651  ;;  %v1880_v55 = vsel %vm1868_vm3, %v1847_v38, %v4880_v47  ;;  %v4883_v20 = vld [vmem:[#allocation36_spill] sm:$0xff] }
  0xeb   : > { %v2189_v27 = vpop.f32.mrf.mxu0  ;;  %v1912_v46 = vsel %vm1901_vm4, %v1879_v8, %v4881_v22  ;;  %v743_v40 = vsel %vm713_vm1, %v741_v37, %v742_v54  ;;  %v744_v42 = vrot.slane %v4882_v12, 7  ;;  %v1913_v2 = vsel %vm1901_vm4, %v1880_v55, %v4883_v20  ;;  %v4885_v9 = vld [vmem:[#allocation8_spill] sm:$0xff]  ;;  %v4889_v20 = vld [vmem:[#allocation14_spill] sm:$0xff] }
  0xec   : > { %v2190_v57 = vadd.f32 %v4409_v17, %v2189_v27  ;;  %3011 = vmatprep.mubr.f32.mxu1 %v2306_v15  ;;  %v988_v51 = vadd.f32 %v4884_v28, %v924_v1  ;;  %v987_v27 = vadd.f32 %v4885_v9, %v923_v44  ;;  %v4502_v60 = vpop.permute.xlu1 %1781  ;;  %v1848_v38 = vsel %vm1835_vm0, %v983_v7, %v4227_v18  ;;  %v4891_v9 = vld [vmem:[#allocation11_spill] sm:$0xff] }
  0xed   : > { %v2939_v3 = vpop.f32.mrf.mxu0  ;;  %3012 = vmatmul.mubr.f32.gmra.mxu1 %v2307_v52  ;;  %v925_v8 = vmul.f32 0.25, %v803_v50  ;;  %v2309_v47 = vadd.f32 %v2195_v33, %v1913_v2  ;;  %v1849_v52 = vsel %vm1835_vm0, %v984_v36, %v4223_v11  ;;  %v1881_v55 = vsel %vm1868_vm3, %v1848_v38, %v4257_v6  ;;  %v4886_v33 = vld [vmem:[#allocation10_spill] sm:$0xff] }
  0xee   : > { %v2308_v15 = vadd.f32 %v2190_v57, %v1912_v46  ;;  %v2205_v37 = vadd.f32 %v2939_v3, %v4409_v17  ;;  %v926_v1 = vmul.f32 0.25, %v743_v40  ;;  %v4511_v22 = vpop.permute.xlu0 %1779  ;;  %v1882_v18 = vsel %vm1868_vm3, %v1849_v52, %v4247_v23  ;;  %v4887_v6 = vld [vmem:[#allocation38_spill] sm:$0xff]  ;;  %v4888_v40 = vld [vmem:[#allocation16_spill] sm:$0xff] }
  0xef   : > { %v2199_v54 = vpop.f32.mrf.mxu0  ;;  %v1914_v7 = vsel %vm1901_vm4, %v1881_v55, %v4278_v34  ;;  %v745_v50 = vrot.slane %v4886_v33, 7  ;;  %v804_v11 = vsel %vm713_vm1, %v4882_v12, %v744_v42  ;;  %v1915_v57 = vsel %vm1901_vm4, %v1882_v18, %v4887_v6  ;;  %v4890_v23 = vld [vmem:[#allocation40_spill] sm:$0xff] }
  0xf0   : > { %v2200_v44 = vadd.f32 %v4409_v17, %v2199_v54  ;;  %3014 = vmatprep.mubr.f32.mxu1 %v2308_v15  ;;  %v747_v3 = vrot.slane %v4888_v40, 7  ;;  %v748_v2 = vrot.slane %v4889_v20, 7  ;;  %v4525_v28 = vpop.permute.xlu1 %1529  ;;  %v1850_v34 = vsel %vm1835_vm0, %v985_v31, %v4890_v23  ;;  %v4894_v31 = vld [vmem:[#allocation41_spill] sm:$0xff] }
  0xf1   : > { %v2942_v36 = vpop.f32.mrf.mxu0  ;;  %3015 = vmatmul.mubr.f32.gmra.mxu1 %v2309_v47  ;;  %v989_v15 = vadd.f32 %v4891_v9, %v925_v8  ;;  %v2311_v38 = vadd.f32 %v2205_v37, %v1915_v57  ;;  %v4892_v47 = vld [vmem:[#allocation39_spill] sm:$0xff]  ;;  %v1883_v55 = vsel %vm1868_vm3, %v1850_v34, %v4327_v58  ;;  %v927_v6 = vmul.f32 0.25, %v804_v11 }
  0xf2   : > { %v2310_v46 = vadd.f32 %v2200_v44, %v1914_v7  ;;  %v2215_v12 = vadd.f32 %v2942_v36, %v4409_v17  ;;  %v1851_v52 = vsel %vm1835_vm0, %v986_v14, %v4892_v47  ;;  %v4893_v44 = vld [vmem:[#allocation9_spill] sm:$0xff]  ;;  %v4536_v7 = vpop.permute.xlu0 %1527  ;;  %v1916_v37 = vsel %vm1901_vm4, %v1883_v55, %v4355_v0 }
  0xf3   : > { %v2209_v54 = vpop.f32.mrf.mxu0  ;;  %v990_v18 = vadd.f32 %v4893_v44, %v926_v1  ;;  %v1884_v8 = vsel %vm1868_vm3, %v1851_v52, %v4894_v31  ;;  %v746_v36 = vsel %vm713_vm1, %v744_v42, %v745_v50  ;;  %v749_v1 = vsel %vm713_vm1, %v747_v3, %v748_v2  ;;  %v4897_v47 = vld [vmem:[#allocation17_spill] sm:$0xff] }
  0xf4   : > { %v2210_v33 = vadd.f32 %v4409_v17, %v2209_v54  ;;  %3017 = vmatprep.mubr.f32.mxu1 %v2310_v46  ;;  %v1917_v58 = vsel %vm1901_vm4, %v1884_v8, %v4343_v32  ;;  %v4547_v20 = vpop.permute.xlu1 %1657  ;;  %v4895_v46 = vld [vmem:[#allocation20_spill] sm:$0xff]  ;;  %v1852_v34 = vsel %vm1835_vm0, %v987_v27, %v4379_v24  ;;  %v805_v0 = vsel %vm713_vm1, %v4888_v40, %v747_v3  ;;  %v4896_v40 = vld [vmem:[#allocation15_spill] sm:$0xff] }
  0xf5   : > { %v2945_v14 = vpop.f32.mrf.mxu0  ;;  %3018 = vmatmul.mubr.f32.gmra.mxu1 %v2311_v38  ;;  %v750_v23 = vrot.slane %v4895_v46, 7  ;;  %v2313_v42 = vadd.f32 %v2215_v12, %v1917_v58  ;;  %v1853_v32 = vsel %vm1835_vm0, %v988_v51, %v4368_v21  ;;  %v1885_v2 = vsel %vm1868_vm3, %v1852_v34, %v4390_v4 }
  0xf6   : > { %v2312_v57 = vadd.f32 %v2210_v33, %v1916_v37  ;;  %v2225_v50 = vadd.f32 %v2945_v14, %v4409_v17  ;;  %v928_v9 = vmul.f32 0.25, %v746_v36  ;;  %v1656_v38 = vpop.permute.xlu0 %1655  ;;  %v1886_v24 = vsel %vm1868_vm3, %v1853_v32, %v4386_v63  ;;  %v4898_v36 = vld [vmem:[#allocation13_spill] sm:$0xff] }
  0xf7   : > { %v2219_v11 = vpop.f32.mrf.mxu0  ;;  %v1918_v27 = vsel %vm1901_vm4, %v1885_v2, %v4402_v30  ;;  %v991_v3 = vadd.f32 %v4896_v40, %v927_v6  ;;  %v751_v21 = vrot.slane %v4897_v47, 7  ;;  %v1919_v4 = vsel %vm1901_vm4, %v1886_v24, %v4397_v35 }
  0xf8   : > { %v2220_v54 = vadd.f32 %v4409_v17, %v2219_v11  ;;  %3020 = vmatprep.mubr.f32.mxu1 %v2312_v57  ;;  %v930_v51 = vmul.f32 0.25, %v749_v1  ;;  %v929_v52 = vmul.f32 0.25, %v805_v0  ;;  %v1786_v44 = vpop.permute.xlu1 %1785  ;;  %v1854_v33 = vsel %vm1835_vm0, %v989_v15, %v4418_v48 }
  0xf9   : > { %v2948_v12 = vpop.f32.mrf.mxu0  ;;  %3021 = vmatmul.mubr.f32.gmra.mxu1 %v2313_v42  ;;  %v2315_v63 = vadd.f32 %v2225_v50, %v1919_v4  ;;  %v806_v8 = vsel %vm713_vm1, %v4895_v46, %v750_v23  ;;  %v1855_v37 = vsel %vm1835_vm0, %v990_v18, %v4412_v10  ;;  %v1887_v35 = vsel %vm1868_vm3, %v1854_v33, %v4437_v5  ;;  %v4899_v5 = vld [vmem:[#allocation18_spill] sm:$0xff]  ;;  %v4900_v50 = vld [vmem:[#allocation19_spill] sm:$0xff] }
  0xfa   : > { %v2314_v55 = vadd.f32 %v2220_v54, %v1918_v27  ;;  %v2235_v31 = vadd.f32 %v2948_v12, %v4409_v17  ;;  %v992_v6 = vadd.f32 %v4898_v36, %v928_v9  ;;  %v1784_v14 = vpop.permute.xlu0 %1783  ;;  %v1888_v48 = vsel %vm1868_vm3, %v1855_v37, %v4429_v26  ;;  %v4901_v12 = vld [vmem:[#allocation24_spill] sm:$0xff] }
  0xfb   : > { %v2229_v30 = vpop.f32.mrf.mxu0  ;;  %v1920_v15 = vsel %vm1901_vm4, %v1887_v35, %v4454_v56  ;;  %v752_v1 = vsel %vm713_vm1, %v750_v23, %v751_v21  ;;  %v1921_v10 = vsel %vm1901_vm4, %v1888_v48, %v4448_v43  ;;  %v994_v18 = vadd.f32 %v4899_v5, %v930_v51 }
  0xfc   : > { %v2230_v58 = vadd.f32 %v4409_v17, %v2229_v30  ;;  %3023 = vmatprep.mubr.f32.mxu1 %v2314_v55  ;;  %v1534_v34 = vpop.permute.xlu1 %1533  ;;  %v931_v0 = vmul.f32 0.25, %v806_v8  ;;  %v1856_v42 = vsel %vm1835_vm0, %v991_v3, %v4468_v45  ;;  %v993_v26 = vadd.f32 %v4900_v50, %v929_v52  ;;  %v4902_v52 = vld [vmem:[#allocation21_spill] sm:$0xff]  ;;  %v4905_v50 = vld [vmem:[#allocation23_spill] sm:$0xff] }
  0xfd   : > { %v2951_v57 = vpop.f32.mrf.mxu0  ;;  %3024 = vmatmul.mubr.f32.gmra.mxu1 %v2315_v63  ;;  %v2317_v11 = vadd.f32 %v2235_v31, %v1921_v10  ;;  %v1857_v23 = vsel %vm1835_vm0, %v992_v6, %v4458_v13  ;;  %v1889_v43 = vsel %vm1868_vm3, %v1856_v42, %v4489_v25  ;;  %v932_v2 = vmul.f32 0.25, %v752_v1 }
  0xfe   : > { %v2316_v46 = vadd.f32 %v2230_v58, %v1920_v15  ;;  %v2245_v56 = vadd.f32 %v2951_v57, %v4409_v17  ;;  %v1532_v9 = vpop.permute.xlu0 %1531  ;;  %v1890_v45 = vsel %vm1868_vm3, %v1857_v23, %v4476_v49  ;;  %v1922_v24 = vsel %vm1901_vm4, %v1889_v43, %v4511_v22  ;;  %v4903_v57 = vld [vmem:[#allocation22_spill] sm:$0xff] }
  0xff   : > { %v2239_v32 = vpop.f32.mrf.mxu0  ;;  %v1923_v40 = vsel %vm1901_vm4, %v1890_v45, %v4502_v60  ;;  %v1858_v25 = vsel %vm1835_vm0, %v993_v26, %v4536_v7  ;;  %v995_v47 = vadd.f32 %v4901_v12, %v931_v0  ;;  %v1859_v49 = vsel %vm1835_vm0, %v994_v18, %v4525_v28 }
 0x100   : > { %v2240_v54 = vadd.f32 %v4409_v17, %v2239_v32  ;;  %3026 = vmatprep.mubr.f32.mxu1 %v2316_v46  ;;  %v1662_v3 = vpop.permute.xlu1 %1661  ;;  %v2319_v21 = vadd.f32 %v2245_v56, %v1923_v40  ;;  %v1891_v22 = vsel %vm1868_vm3, %v1858_v25, %v1656_v38  ;;  %v996_v55 = vadd.f32 %v4902_v52, %v932_v2  ;;  %v4906_v32 = vld [vmem:[#allocation26_spill] sm:$0xff] }
 0x101   : > { %v2954_v27 = vpop.f32.mrf.mxu0  ;;  %3027 = vmatmul.mubr.f32.gmra.mxu1 %v2317_v11  ;;  %v1892_v7 = vsel %vm1868_vm3, %v1859_v49, %v4547_v20  ;;  %v1924_v63 = vsel %vm1901_vm4, %v1891_v22, %v1784_v14  ;;  %v1860_v28 = vsel %vm1835_vm0, %v995_v47, %v1532_v9  ;;  %v753_v10 = vrot.slane %v4903_v57, 7 }
 0x102   : > { %v2318_v13 = vadd.f32 %v2240_v54, %v1922_v24  ;;  %v2255_v4 = vadd.f32 %v2954_v27, %v4409_v17  ;;  %v1660_v33 = vpop.permute.xlu0 %1659  ;;  %v1925_v30 = vsel %vm1901_vm4, %v1892_v7, %v1786_v44  ;;  %v1861_v6 = vsel %vm1835_vm0, %v996_v55, %v1534_v34  ;;  %v4904_v34 = vld [vmem:[#allocation25_spill] sm:$0xff] }
 0x103   : > { %v2249_v51 = vpop.f32.mrf.mxu0  ;;  %v1893_v58 = vsel %vm1868_vm3, %v1860_v28, %v1660_v33  ;;  %v1894_v14 = vsel %vm1868_vm3, %v1861_v6, %v1662_v3  ;;  %v714_v0 = vrot.slane %v4904_v34, 7  ;;  %v807_v42 = vsel %vm713_vm1, %v4903_v57, %v753_v10  ;;  %v4909_v55 = vld [vmem:[#allocation29_spill] sm:$0xff] }
 0x104   : > { %v2250_v60 = vadd.f32 %v4409_v17, %v2249_v51  ;;  %3029 = vmatprep.mubr.f32.mxu1 %v2318_v13  ;;  %v1790_v37 = vpop.permute.xlu1 %1789  ;;  %v2321_v38 = vadd.f32 %v2255_v4, %v1925_v30  ;;  %v754_v26 = vrot.slane %v4905_v50, 7  ;;  %v715_v23 = vrot.slane %v4906_v32, 7  ;;  %v4907_v13 = vld [vmem:[#allocation27_spill] sm:$0xff] }
 0x105   : > { %v2957_v31 = vpop.f32.mrf.mxu0  ;;  %3030 = vmatmul.mubr.f32.gmra.mxu1 %v2319_v21  ;;  %v1927_v15 = vsel %vm1901_vm4, %v1894_v14, %v1790_v37  ;;  %v794_v56 = vsel %vm713_vm1, %v4904_v34, %v714_v0  ;;  %v933_v2 = vmul.f32 0.25, %v807_v42  ;;  %v4908_v21 = vld [vmem:[#allocation28_spill] sm:$0xff]  ;;  %v2140_v37 = vadd.f32 %v4409_v17, %v4400_v62 }
 0x106   : > { %v2320_v8 = vadd.f32 %v2250_v60, %v1924_v63  ;;  %v2265_v35 = vadd.f32 %v2957_v31, %v4409_v17  ;;  %v1788_v48 = vpop.permute.xlu0 %1787  ;;  %v755_v54 = vsel %vm713_vm1, %v753_v10, %v754_v26  ;;  %v907_v24 = vmul.f32 0.25, %v794_v56  ;;  %v4910_v31 = vld [vmem:[#allocation30_spill] sm:$0xff] }
 0x107   : > { %v2259_v36 = vpop.f32.mrf.mxu0  ;;  %v1926_v44 = vsel %vm1901_vm4, %v1893_v58, %v1788_v48  ;;  %v716_v27 = vsel %vm713_vm1, %v714_v0, %v715_v23  ;;  %v997_v3 = vadd.f32 %v4907_v13, %v933_v2  ;;  %v934_v25 = vmul.f32 0.25, %v755_v54 }
 0x108   : > { %v2260_v20 = vadd.f32 %v4409_v17, %v2259_v36  ;;  %3032 = vmatprep.mubr.f32.mxu1 %v2320_v8  ;;  %v1536_v5 = vpop.permute.xlu1 %1535  ;;  %v2323_v18 = vadd.f32 %v2265_v35, %v1927_v15  ;;  %v971_v4 = vadd.f32 %v4908_v21, %v907_v24  ;;  %v908_v51 = vmul.f32 0.25, %v716_v27 }
 0x109   : > { %3033 = vmatmul.mubr.f32.gmra.mxu1 %v2321_v38  ;;  %v2960_v9 = vpop.f32.mrf.mxu0  ;;  %v1862_v52 = vsel %vm1835_vm0, %v997_v3, %v1536_v5  ;;  %v998_v33 = vadd.f32 %v4909_v55, %v934_v25  ;;  %v2145_v62 = vadd.f32 %v4394_v19, %v4409_v17 }
 0x10a   : > { %v2322_v1 = vadd.f32 %v2260_v20, %v1926_v44  ;;  %v1484_v46 = vpop.permute.xlu0 %1483  ;;  %v972_v30 = vadd.f32 %v4910_v31, %v908_v51  ;;  %v2275_v38 = vadd.f32 %v2960_v9, %v4409_v17 }
 0x10b   : > { %v2269_v12 = vpop.f32.mrf.mxu0  ;;  %v1836_v63 = vsel %vm1835_vm0, %v971_v4, %v1484_v46 }
 0x10c   : > { %3035 = vmatprep.mubr.f32.mxu1 %v2322_v1  ;;  %v1538_v11 = vpop.permute.xlu1 %1537  ;;  %v2270_v22 = vadd.f32 %v4409_v17, %v2269_v12 }
 0x10d   : > { %3036 = vmatmul.mubr.f32.gmra.mxu1 %v2323_v18  ;;  %v1863_v6 = vsel %vm1835_vm0, %v998_v33, %v1538_v11  ;;  %v2963_v50 = vpop.f32.mrf.mxu0 }
 0x10e   : > { %v1486_v43 = vpop.permute.xlu0 %1485  ;;  %v2285_v27 = vadd.f32 %v2963_v50, %v4409_v17  ;;  %v4915_v50 = vld [vmem:[#allocation45_spill] sm:$0xff] }
 0x10f   : > { %v1837_v44 = vsel %vm1835_vm0, %v972_v30, %v1486_v43  ;;  %v2279_v56 = vpop.f32.mrf.mxu0 }
 0x110   : > { %v1664_v45 = vpop.permute.xlu1 %1663  ;;  %v2280_v23 = vadd.f32 %v4409_v17, %v2279_v56 }
 0x111   : > { %v1895_v60 = vsel %vm1868_vm3, %v1862_v52, %v1664_v45 }
 0x112   : > { %v1612_v40 = vpop.permute.xlu0 %1611 }
 0x113   : > { %v1869_v28 = vsel %vm1868_vm3, %v1836_v63, %v1612_v40 }
 0x114   : > { %v1666_v47 = vpop.permute.xlu1 %1665 }
 0x115   : > { %v1896_v48 = vsel %vm1868_vm3, %v1863_v6, %v1666_v47 }
 0x116   : > { %v1614_v49 = vpop.permute.xlu0 %1613 }
 0x117   : > { %v1870_v1 = vsel %vm1868_vm3, %v1837_v44, %v1614_v49 }
 0x118   : > { %v1792_v7 = vpop.permute.xlu1 %1791 }
 0x119   : > { %v1928_v8 = vsel %vm1901_vm4, %v1895_v60, %v1792_v7  ;;  %v2966_v60 = vpop.f32.mrf.mxu0 }
 0x11a   : > { %v2324_v35 = vadd.f32 %v2270_v22, %v1928_v8  ;;  %v1740_v36 = vpop.permute.xlu0 %1739 }
 0x11b   : > { %v1902_v58 = vsel %vm1901_vm4, %v1869_v28, %v1740_v36  ;;  %v2289_v63 = vpop.f32.mrf.mxu0 }
 0x11c   : > { %v2298_v20 = vadd.f32 %v2140_v37, %v1902_v58  ;;  %v1794_v14 = vpop.permute.xlu1 %1793  ;;  %3038 = vmatprep.mubr.f32.mxu1 %v2324_v35  ;;  %v2290_v8 = vadd.f32 %v4409_v17, %v2289_v63 }
 0x11d   : > { %v1929_v15 = vsel %vm1901_vm4, %v1896_v48, %v1794_v14 }
 0x11e   : > { %v2325_v57 = vadd.f32 %v2275_v38, %v1929_v15  ;;  %v1742_v10 = vpop.permute.xlu0 %1741  ;;  %2999 = vmatprep.mubr.f32.mxu0 %v2298_v20  ;;  %v4911_v38 = vld [vmem:[#allocation42_spill] sm:$0xff]  ;;  %v4912_v20 = vld [vmem:[#allocation43_spill] sm:$0xff] }
 0x11f   : > { %v1903_v5 = vsel %vm1901_vm4, %v1870_v1, %v1742_v10  ;;  %v4914_v10 = vld [vmem:[#allocation44_spill] sm:$0xff] }
 0x120   : > { %v2299_v18 = vadd.f32 %v2145_v62, %v1903_v5  ;;  %v1540_v46 = vpop.permute.xlu1 %1539  ;;  %3039 = vmatmul.mubr.f32.gmra.mxu1 %v2325_v57  ;;  %v4913_v62 = vld [vmem:[#allocation46_spill] sm:$0xff] }
 0x121   : > { %v1864_v43 = vsel %vm1835_vm0, %v4325_v16, %v1540_v46 }
 0x122   : > { %3000 = vmatmul.mubr.f32.vlgmr.msra.gmra.mxu0 %v2299_v18  ;;  %v1488_v34 = vpop.permute.xlu0 %1487 }
 0x123   : > { %v1838_v54 = vsel %vm1835_vm0, %v4336_v53, %v1488_v34 }
 0x124   : > { %v1542_v0 = vpop.permute.xlu1 %1541 }
 0x125   : > { %v1865_v3 = vsel %vm1835_vm0, %v4339_v29, %v1542_v0 }
 0x126   : > { %v1490_v42 = vpop.permute.xlu0 %1489 }
 0x127   : > { %v1839_v53 = vsel %vm1835_vm0, %v4353_v39, %v1490_v42 }
 0x128   : > { %v1668_v26 = vpop.permute.xlu1 %1667 }
 0x129   : > { %v1897_v2 = vsel %vm1868_vm3, %v1864_v43, %v1668_v26 }
 0x12a   : > { %v1616_v11 = vpop.permute.xlu0 %1615 }
 0x12b   : > { %v1871_v24 = vsel %vm1868_vm3, %v1838_v54, %v1616_v11 }
 0x12c   : > { %v1670_v32 = vpop.permute.xlu1 %1669 }
 0x12d   : > { %v1898_v16 = vsel %vm1868_vm3, %v1865_v3, %v1670_v32 }
 0x12e   : > { %v1618_v19 = vpop.permute.xlu0 %1617 }
 0x12f   : > { %v1872_v4 = vsel %vm1868_vm3, %v1839_v53, %v1618_v19 }
 0x130   : > { %v1796_v9 = vpop.permute.xlu1 %1795 }
 0x131   : > { %v1930_v45 = vsel %vm1901_vm4, %v1897_v2, %v1796_v9 }
 0x132   : > { %v2326_v40 = vadd.f32 %v2280_v23, %v1930_v45  ;;  %v1744_v13 = vpop.permute.xlu0 %1743 }
 0x133   : > { %v1904_v25 = vsel %vm1901_vm4, %v1871_v24, %v1744_v13 }
 0x134   : > { %v2300_v12 = vadd.f32 %v4422_v61, %v1904_v25  ;;  %v1798_v47 = vpop.permute.xlu1 %1797  ;;  %3041 = vmatprep.mubr.f32.mxu1 %v2326_v40 }
 0x135   : > { %v1931_v21 = vsel %vm1901_vm4, %v1898_v16, %v1798_v47 }
 0x136   : > { %v2327_v51 = vadd.f32 %v2285_v27, %v1931_v21  ;;  %v1746_v49 = vpop.permute.xlu0 %1745  ;;  %3002 = vmatprep.mubr.f32.mxu0 %v2300_v12 }
 0x137   : > { %v1905_v29 = vsel %vm1901_vm4, %v1872_v4, %v1746_v49 }
 0x138   : > { %v2301_v22 = vadd.f32 %v4415_v59, %v1905_v29  ;;  %v1544_v52 = vpop.permute.xlu1 %1543  ;;  %3042 = vmatmul.mubr.f32.gmra.mxu1 %v2327_v51 }
 0x139   : > { %v1866_v37 = vsel %vm1835_vm0, %v4362_v41, %v1544_v52  ;;  %v2295_v41 = vadd.f32 %v2966_v60, %v4409_v17  ;;  %v4698_v17 = vld [vmem:[%s4786_s7] ss:$0 sm:$0xff] }
 0x13a   : > { %v1492_v55 = vpop.permute.xlu0 %1491  ;;  %3003 = vmatmul.mubr.f32.gmra.mxu0 %v2301_v22 }
 0x13b   : > { %v1840_v35 = vsel %vm1835_vm0, %v4911_v38, %v1492_v55 }
 0x13c   : > { %v1546_v61 = vpop.permute.xlu1 %1545 }
 0x13d   : > { %v1867_v14 = vsel %vm1835_vm0, %v4912_v20, %v1546_v61 }
 0x13e   : > { %v1494_v33 = vpop.permute.xlu0 %1493 }
 0x13f   : > { %v1841_v5 = vsel %vm1835_vm0, %v4914_v10, %v1494_v33 }
 0x140   : > { %v1672_v7 = vpop.permute.xlu1 %1671 }
 0x141   : > { %v1899_v28 = vsel %vm1868_vm3, %v1866_v37, %v1672_v7 }
 0x142   : > { %v1620_v39 = vpop.permute.xlu0 %1619 }
 0x143   : > { %v1873_v6 = vsel %vm1868_vm3, %v1840_v35, %v1620_v39 }
 0x144   : > { %v1674_v31 = vpop.permute.xlu1 %1673 }
 0x145   : > { %v1900_v15 = vsel %vm1868_vm3, %v1867_v14, %v1674_v31 }
 0x146   : > { %v1622_v30 = vpop.permute.xlu0 %1621 }
 0x147   : > { %v1874_v46 = vsel %vm1868_vm3, %v1841_v5, %v1622_v30 }
 0x148   : > { %v1800_v59 = vpop.permute.xlu1 %1799 }
 0x149   : > { %v1932_v36 = vsel %vm1901_vm4, %v1899_v28, %v1800_v59 }
 0x14a   : > { %v2328_v58 = vadd.f32 %v2290_v8, %v1932_v36  ;;  %v1748_v48 = vpop.permute.xlu0 %1747 }
 0x14b   : > { %v1906_v44 = vsel %vm1901_vm4, %v1873_v6, %v1748_v48 }
 0x14c   : > { %v2302_v1 = vadd.f32 %v4913_v62, %v1906_v44  ;;  %v1802_v57 = vpop.permute.xlu1 %1801  ;;  %3044 = vmatprep.mubr.f32.mxu1 %v2328_v58 }
 0x14d   : > { %v1933_v18 = vsel %vm1901_vm4, %v1900_v15, %v1802_v57 }
 0x14e   : > { %v2329_v34 = vadd.f32 %v2295_v41, %v1933_v18  ;;  %v1750_v0 = vpop.permute.xlu0 %1749  ;;  %3005 = vmatprep.mubr.f32.mxu0 %v2302_v1 }
 0x14f   : > { %v1907_v42 = vsel %vm1901_vm4, %v1874_v46, %v1750_v0 }
 0x150   : > { %v2303_v26 = vadd.f32 %v4915_v50, %v1907_v42  ;;  %3045 = vmatmul.mubr.f32.gmra.mxu1 %v2329_v34 }
 0x152   : > { %3006 = vmatmul.mubr.f32.gmra.mxu0 %v2303_v26 }
 0x1a9   : > { %v3010_v11 = vpop.f32.mrf.mxu1 }
 0x1aa   : > { %v2455_v56 = vadd.f32 %v3010_v11, %v4698_v17 }
 0x1ab   : > { %v2449_v32 = vpop.f32.mrf.mxu1 }
 0x1ac   : > { %2585 = vst [vmem:[%s4704_s23 + $0x38] sm:$0xff] %v2455_v56  ;;  %v2450_v19 = vadd.f32 %v4698_v17, %v2449_v32 }
 0x1ad   : > { %v3013_v23 = vpop.f32.mrf.mxu1 }
 0x1ae   : > { %2584 = vst [vmem:[%s4704_s23 + $0x30] sm:$0xff] %v2450_v19  ;;  %v2465_v43 = vadd.f32 %v3013_v23, %v4698_v17 }
 0x1af   : > { %v2459_v2 = vpop.f32.mrf.mxu1 }
 0x1b0   : > { %2587 = vst [vmem:[%s4704_s23 + $0x48] sm:$0xff] %v2465_v43  ;;  %v2460_v9 = vadd.f32 %v4698_v17, %v2459_v2 }
 0x1b1   : > { %v3016_v54 = vpop.f32.mrf.mxu1 }
 0x1b2   : > { %2586 = vst [vmem:[%s4704_s23 + $0x40] sm:$0xff] %v2460_v9  ;;  %v2475_v45 = vadd.f32 %v3016_v54, %v4698_v17 }
 0x1b3   : > { %v2469_v24 = vpop.f32.mrf.mxu1 }
 0x1b4   : > { %2589 = vst [vmem:[%s4704_s23 + $0x58] sm:$0xff] %v2475_v45  ;;  %v2470_v27 = vadd.f32 %v4698_v17, %v2469_v24 }
 0x1b5   : > { %v3019_v40 = vpop.f32.mrf.mxu1 }
 0x1b6   : > { %2588 = vst [vmem:[%s4704_s23 + $0x50] sm:$0xff] %v2470_v27  ;;  %v2485_v13 = vadd.f32 %v3019_v40, %v4698_v17 }
 0x1b7   : > { %v2479_v3 = vpop.f32.mrf.mxu1 }
 0x1b8   : > { %2591 = vst [vmem:[%s4704_s23 + $0x68] sm:$0xff] %v2485_v13  ;;  %v2480_v25 = vadd.f32 %v4698_v17, %v2479_v3 }
 0x1b9   : > { %v3022_v16 = vpop.f32.mrf.mxu1 }
 0x1ba   : > { %2590 = vst [vmem:[%s4704_s23 + $0x60] sm:$0xff] %v2480_v25  ;;  %v2495_v12 = vadd.f32 %v3022_v16, %v4698_v17 }
 0x1bb   : > { %v2489_v47 = vpop.f32.mrf.mxu1 }
 0x1bc   : > { %2593 = vst [vmem:[%s4704_s23 + $0x78] sm:$0xff] %v2495_v12  ;;  %v2490_v53 = vadd.f32 %v4698_v17, %v2489_v47 }
 0x1bd   : > { %v3025_v21 = vpop.f32.mrf.mxu1 }
 0x1be   : > { %2592 = vst [vmem:[%s4704_s23 + $0x70] sm:$0xff] %v2490_v53  ;;  %v2505_v4 = vadd.f32 %v3025_v21, %v4698_v17 }
 0x1bf   : > { %v2499_v51 = vpop.f32.mrf.mxu1 }
 0x1c0   : > { %2595 = vst [vmem:[%s4704_s23 + $0x88] sm:$0xff] %v2505_v4  ;;  %v2500_v49 = vadd.f32 %v4698_v17, %v2499_v51 }
 0x1c1   : > { %v3028_v29 = vpop.f32.mrf.mxu1 }
 0x1c2   : > { %2594 = vst [vmem:[%s4704_s23 + $0x80] sm:$0xff] %v2500_v49  ;;  %v2515_v22 = vadd.f32 %v3028_v29, %v4698_v17 }
 0x1c3   : > { %v2509_v52 = vpop.f32.mrf.mxu1 }
 0x1c4   : > { %2597 = vst [vmem:[%s4704_s23 + $0x98] sm:$0xff] %v2515_v22  ;;  %v2510_v55 = vadd.f32 %v4698_v17, %v2509_v52 }
 0x1c5   : > { %v3031_v61 = vpop.f32.mrf.mxu1 }
 0x1c6   : > { %2596 = vst [vmem:[%s4704_s23 + $0x90] sm:$0xff] %v2510_v55  ;;  %v2525_v33 = vadd.f32 %v3031_v61, %v4698_v17 }
 0x1c7   : > { %v2519_v60 = vpop.f32.mrf.mxu1 }
 0x1c8   : > { %2599 = vst [vmem:[%s4704_s23 + $0xa8] sm:$0xff] %v2525_v33  ;;  %v2520_v7 = vadd.f32 %v4698_v17, %v2519_v60 }
 0x1c9   : > { %v3034_v39 = vpop.f32.mrf.mxu1 }
 0x1ca   : > { %2598 = vst [vmem:[%s4704_s23 + $0xa0] sm:$0xff] %v2520_v7  ;;  %v2535_v63 = vadd.f32 %v3034_v39, %v4698_v17 }
 0x1cb   : > { %v2529_v31 = vpop.f32.mrf.mxu1 }
 0x1cc   : > { %2601 = vst [vmem:[%s4704_s23 + $0xb8] sm:$0xff] %v2535_v63  ;;  %v2530_v30 = vadd.f32 %v4698_v17, %v2529_v31 }
 0x1cd   : > { %v3037_v8 = vpop.f32.mrf.mxu1 }
 0x1ce   : > { %2600 = vst [vmem:[%s4704_s23 + $0xb0] sm:$0xff] %v2530_v30  ;;  %v2545_v37 = vadd.f32 %v3037_v8, %v4698_v17 }
 0x1cf   : > { %v2539_v28 = vpop.f32.mrf.mxu1 }
 0x1d0   : > { %2603 = vst [vmem:[%s4704_s23 + $0xc8] sm:$0xff] %v2545_v37  ;;  %v2540_v59 = vadd.f32 %v4698_v17, %v2539_v28 }
 0x1d2   : > { %2602 = vst [vmem:[%s4704_s23 + $0xc0] sm:$0xff] %v2540_v59 }
 0x1e0   : > { %v3040_v38 = vpop.f32.mrf.mxu1 }
 0x1e1   : > { %v2555_v35 = vadd.f32 %v3040_v38, %v4698_v17 }
 0x1e2   : > { %v3001_v36 = vpop.f32.mrf.mxu0  ;;  %v2549_v6 = vpop.f32.mrf.mxu1 }
 0x1e3   : > { %v2425_v58 = vadd.f32 %v3001_v36, %v4698_v17  ;;  %2605 = vst [vmem:[%s4704_s23 + $0xd8] sm:$0xff] %v2555_v35  ;;  %v2550_v48 = vadd.f32 %v4698_v17, %v2549_v6 }
 0x1e4   : > { %v2419_v20 = vpop.f32.mrf.mxu0 }
 0x1e5   : > { %2579 = vst [vmem:[%s4704_s23 + $0x8] sm:$0xff] %v2425_v58  ;;  %v2420_v14 = vadd.f32 %v4698_v17, %v2419_v20  ;;  %2604 = vst [vmem:[%s4704_s23 + $0xd0] sm:$0xff] %v2550_v48 }
 0x1e7   : > { %2578 = vst [vmem:[%s4704_s23] sm:$0xff] %v2420_v14 }
 0x1f8   : > { %v3043_v44 = vpop.f32.mrf.mxu1 }
 0x1f9   : > { %v2565_v15 = vadd.f32 %v3043_v44, %v4698_v17 }
 0x1fa   : > { %v3004_v41 = vpop.f32.mrf.mxu0  ;;  %v2559_v62 = vpop.f32.mrf.mxu1 }
 0x1fb   : > { %v2435_v1 = vadd.f32 %v3004_v41, %v4698_v17  ;;  %2607 = vst [vmem:[%s4704_s23 + $0xe8] sm:$0xff] %v2565_v15  ;;  %v2560_v57 = vadd.f32 %v4698_v17, %v2559_v62 }
 0x1fc   : > { %v2429_v10 = vpop.f32.mrf.mxu0 }
 0x1fd   : > { %2581 = vst [vmem:[%s4704_s23 + $0x18] sm:$0xff] %v2435_v1  ;;  %v2430_v5 = vadd.f32 %v4698_v17, %v2429_v10  ;;  %2606 = vst [vmem:[%s4704_s23 + $0xe0] sm:$0xff] %v2560_v57 }
 0x1ff   : > { %2580 = vst [vmem:[%s4704_s23 + $0x10] sm:$0xff] %v2430_v5 }
 0x210   : > { %v3046_v18 = vpop.f32.mrf.mxu1 }
 0x211   : > { %v2575_v46 = vadd.f32 %v3046_v18, %v4698_v17 }
 0x212   : > { %v3007_v34 = vpop.f32.mrf.mxu0  ;;  %v2569_v0 = vpop.f32.mrf.mxu1 }
 0x213   : > { %v2445_v42 = vadd.f32 %v3007_v34, %v4698_v17  ;;  %2609 = vst [vmem:[%s4704_s23 + $0xf8] sm:$0xff] %v2575_v46  ;;  %v2570_v50 = vadd.f32 %v4698_v17, %v2569_v0 }
 0x214   : > { %v2439_v26 = vpop.f32.mrf.mxu0 }
 0x215   : > { %2583 = vst [vmem:[%s4704_s23 + $0x28] sm:$0xff] %v2445_v42  ;;  %v2440_v11 = vadd.f32 %v4698_v17, %v2439_v26  ;;  %2608 = vst [vmem:[%s4704_s23 + $0xf0] sm:$0xff] %v2570_v50 }
 0x217   : > { %2582 = vst [vmem:[%s4704_s23 + $0x20] sm:$0xff] %v2440_v11 }
 0x218 PF: > { %s18_s29 = sadd.s32 1, %s3130_s29   ;;  %s4916_s27 = smov %s3126_s28 }
 0x219   : > { %p15_p5 = scmp.ge.s32.totalorder %s18_s29, 4   ;;  %s4917_s28 = smov %s4919_s30 }
 0x21b   :  { %17 = sbr.rel (!%p15_p5) target bundleno = 2 (0x2), region = 91 }

</bundles_post_ra>
